<compile_context>
chip_gen: v7x
topology: tpu7x:2x2x1
jax: 0.10.0
libtpu: 0.0.40
codegen_flags: <defaults>
</compile_context>

<pallas_src>
import functools
import math

import jax
import jax.numpy as jnp
from jax.experimental import pallas as pl
from jax.experimental.pallas import tpu as pltpu


_NT_DIMS = (((1,), (1,)), ((), ()))   # contract last dim of both operands (QK^T)


@functools.lru_cache(maxsize=None)
def _vmem_limit():
    """3/4 of physical VMEM (v7x ~48 MiB; v5e/v6e capped at 96 MiB)."""
    try:
        cap = int(pltpu.get_tpu_info().vmem_capacity_bytes)
    except Exception:
        cap = 64 * 1024 * 1024
    return min((cap * 3) // 4, 96 * 1024 * 1024)


def _round_up(n, m):
    return ((n + m - 1) // m) * m


def _pick_tile(n, candidates):
    """Largest candidate dividing n (n is always a multiple of 128 for row axes)."""
    for c in candidates:
        if c <= n and n % c == 0:
            return c
    return n


# ------------------- input embedding + positional add (row-tiled) -----------

def _embed_kernel(feat_ref, pos_ref, w_ref, b_ref, o_ref):
    # feat: [tm, D] f32, pos: [tm, E] f32, w: [D, E] bf16, b: [1, E] f32
    o_ref[...] = (
        jnp.dot(feat_ref[...].astype(jnp.bfloat16), w_ref[...],
                preferred_element_type=jnp.float32)
        + b_ref[...] + pos_ref[...]
    ).astype(o_ref.dtype)


def embed(feat, pos, wt, b):
    """feat:[M,D] f32, pos:[M,E] f32, wt:[D,E] bf16, b:[1,E] f32 -> [M,E] bf16."""
    M, D = feat.shape
    E = wt.shape[1]
    tm = _pick_tile(M, (512, 256, 128))
    return pl.pallas_call(
        _embed_kernel,
        out_shape=jax.ShapeDtypeStruct((M, E), jnp.bfloat16),
        grid=(M // tm,),
        in_specs=[
            pl.BlockSpec((tm, D), lambda i: (i, 0)),
            pl.BlockSpec((tm, E), lambda i: (i, 0)),
            pl.BlockSpec((D, E), lambda i: (0, 0)),
            pl.BlockSpec((1, E), lambda i: (0, 0)),
        ],
        out_specs=pl.BlockSpec((tm, E), lambda i: (i, 0)),
        compiler_params=pltpu.CompilerParams(
            dimension_semantics=("parallel",),
            vmem_limit_bytes=_vmem_limit(),
        ),
    )(feat, pos, wt, b)


# ----- fused QKV + attention + out_proj (per-head accum) + residual + LN1 ---

def _attn_layer_kernel(x_ref, bias_ref, wqkv_ref, bqkv_ref, wo_ref, bo_ref,
                       g_ref, bln_ref, o_ref, *, num_heads, head_dim):
    E = num_heads * head_dim
    x_bf = x_ref[0]                        # [Lp, E] bf16
    x0 = x_bf.astype(jnp.float32)          # residual (f32)
    bias = bias_ref[0]                     # [1, Lp] f32 key-padding bias

    # QKV projection. 1/sqrt(head_dim) is pre-folded into the Q columns of
    # wqkv/bqkv.  Three separate [Lp,E] projections keep f32 temps small.
    def _proj(off):
        return (jnp.dot(x_bf, wqkv_ref[:, off:off + E],
                        preferred_element_type=jnp.float32)
                + bqkv_ref[:, off:off + E]).astype(jnp.bfloat16)

    q = _proj(0)
    k = _proj(E)
    v = _proj(2 * E)

    # per-head attention; out-projection accumulated per head (no concat)
    proj_acc = jnp.zeros((x_bf.shape[0], E), jnp.float32)
    for h in range(num_heads):
        sl = slice(h * head_dim, (h + 1) * head_dim)
        s = jax.lax.dot_general(q[:, sl], k[:, sl], _NT_DIMS,
                                preferred_element_type=jnp.float32) + bias
        m = jnp.max(s, axis=-1, keepdims=True)
        p = jnp.exp(s - m)
        inv = pl.reciprocal(jnp.sum(p, axis=-1, keepdims=True), approx=True)
        ho = jnp.dot((p * inv).astype(jnp.bfloat16), v[:, sl],
                     preferred_element_type=jnp.float32)        # [Lp, Dh]
        proj_acc = proj_acc + jnp.dot(ho.astype(jnp.bfloat16), wo_ref[sl, :],
                                      preferred_element_type=jnp.float32)

    # residual + LayerNorm1 (f32, eps = 1e-5)
    y = x0 + proj_acc + bo_ref[...]
    mean = jnp.mean(y, axis=-1, keepdims=True)
    yc = y - mean
    var = jnp.mean(yc * yc, axis=-1, keepdims=True)
    rstd = jax.lax.rsqrt(var + 1e-5)
    o_ref[0] = (yc * rstd * g_ref[...] + bln_ref[...]).astype(o_ref.dtype)


def attn_block(x, kp_bias, wqkv, bqkv, wo, bo, g, bln, num_heads):
    """x:[B,Lp,E] bf16, kp_bias:[B,1,Lp] f32 -> [B,Lp,E] bf16."""
    B, Lp, E = x.shape
    kern = functools.partial(_attn_layer_kernel, num_heads=num_heads,
                             head_dim=E // num_heads)
    return pl.pallas_call(
        kern,
        out_shape=jax.ShapeDtypeStruct((B, Lp, E), jnp.bfloat16),
        grid=(B,),
        in_specs=[
            pl.BlockSpec((1, Lp, E), lambda b: (b, 0, 0)),
            pl.BlockSpec((1, 1, Lp), lambda b: (b, 0, 0)),
            pl.BlockSpec((E, 3 * E), lambda b: (0, 0)),
            pl.BlockSpec((1, 3 * E), lambda b: (0, 0)),
            pl.BlockSpec((E, E), lambda b: (0, 0)),
            pl.BlockSpec((1, E), lambda b: (0, 0)),
            pl.BlockSpec((1, E), lambda b: (0, 0)),
            pl.BlockSpec((1, E), lambda b: (0, 0)),
        ],
        out_specs=pl.BlockSpec((1, Lp, E), lambda b: (b, 0, 0)),
        compiler_params=pltpu.CompilerParams(
            dimension_semantics=("parallel",),
            vmem_limit_bytes=_vmem_limit(),
        ),
    )(x, kp_bias, wqkv, bqkv, wo, bo, g, bln)


# ------------- fused FFN + residual + LayerNorm2 kernel (F-tiled) -----------

def _ffn_ln_kernel(x_ref, w1_ref, b1_ref, w2_ref, b2_ref, g_ref, bln_ref,
                   o_ref, acc_ref):
    f = pl.program_id(1)

    @pl.when(f == 0)
    def _():
        acc_ref[...] = jnp.zeros_like(acc_ref)

    x_bf = x_ref[...]                                                # [tm, E] bf16
    h = jnp.dot(x_bf, w1_ref[...],
                preferred_element_type=jnp.float32) + b1_ref[...]    # [tm, tf] f32
    h = jnp.maximum(h, 0.0)                                          # relu
    acc_ref[...] += jnp.dot(h.astype(jnp.bfloat16), w2_ref[...],
                            preferred_element_type=jnp.float32)      # [tm, E] f32

    @pl.when(f == pl.num_programs(1) - 1)
    def _():
        y = x_bf.astype(jnp.float32) + acc_ref[...] + b2_ref[...]    # residual
        mean = jnp.mean(y, axis=-1, keepdims=True)
        yc = y - mean
        var = jnp.mean(yc * yc, axis=-1, keepdims=True)
        rstd = jax.lax.rsqrt(var + 1e-5)
        o_ref[...] = (yc * rstd * g_ref[...] + bln_ref[...]).astype(o_ref.dtype)


def ffn_ln(x, w1t, b1, w2t, b2, g, bln):
    """x:[M,E] bf16; w1t:[E,F], w2t:[F,E] bf16; bias/LN f32 -> [M,E] bf16."""
    M, E = x.shape
    F = w1t.shape[1]
    tm = _pick_tile(M, (512, 256, 128))
    tf = _pick_tile(F, (1024, 512, 256, 128))   # capped at 1024 for v7x VMEM
    return pl.pallas_call(
        _ffn_ln_kernel,
        out_shape=jax.ShapeDtypeStruct((M, E), jnp.bfloat16),
        grid=(M // tm, F // tf),
        in_specs=[
            pl.BlockSpec((tm, E), lambda i, f: (i, 0)),
            pl.BlockSpec((E, tf), lambda i, f: (0, f)),
            pl.BlockSpec((1, tf), lambda i, f: (0, f)),
            pl.BlockSpec((tf, E), lambda i, f: (f, 0)),
            pl.BlockSpec((1, E), lambda i, f: (0, 0)),
            pl.BlockSpec((1, E), lambda i, f: (0, 0)),
            pl.BlockSpec((1, E), lambda i, f: (0, 0)),
        ],
        out_specs=pl.BlockSpec((tm, E), lambda i, f: (i, 0)),
        scratch_shapes=[pltpu.VMEM((tm, E), jnp.float32)],
        compiler_params=pltpu.CompilerParams(
            dimension_semantics=("parallel", "arbitrary"),
            vmem_limit_bytes=_vmem_limit(),
        ),
    )(x, w1t, b1, w2t, b2, g, bln)


# ----------------------------- model (glue) --------------------------------

def coordinate_transformer_forward(params, features, positions, mask, *,
                                   num_heads):
    """features:[B,L,D] f32, positions:[B,L] i32, mask:[B,L] bool (True=valid)."""
    B, L, D = features.shape
    E = params["in_emb_wt"].shape[1]

    # Pad sequence length to a lane-dense multiple of 128.  Padded keys get a
    # -1e9 attention bias; padded rows are dropped at the end.
    Lp = _round_up(L, 128)
    pad = Lp - L
    if pad:
        features = jnp.pad(features, ((0, 0), (0, pad), (0, 0)))
        positions = jnp.pad(positions, ((0, 0), (0, pad)))       # index 0 (valid)
        mask = jnp.pad(mask, ((0, 0), (0, pad)))                 # False
    M = B * Lp

    pos_emb = jnp.take(params["pos_emb"], positions, axis=0)     # gather (glue)
    x = embed(features.reshape(M, D), pos_emb.reshape(M, E),
              params["in_emb_wt"], params["in_emb_b"]).reshape(B, Lp, E)

    # src_key_padding_mask = ~mask  ->  -1e9 bias at padded keys (f32)
    kp_bias = jnp.where(mask, 0.0, -1e9).astype(jnp.float32).reshape(B, 1, Lp)

    for lp in params["layers"]:
        x = attn_block(x, kp_bias, lp["qkv_wt"], lp["qkv_b"], lp["out_wt"],
                       lp["out_b"], lp["ln1_g"], lp["ln1_b"], num_heads)
        x = ffn_ln(x.reshape(M, E), lp["ffn_w1t"], lp["ffn_b1"],
                   lp["ffn_w2t"], lp["ffn_b2"], lp["ln2_g"], lp["ln2_b"]
                   ).reshape(B, Lp, E)

    # Lane-sparse N=2 prediction head: leave to XLA (tiny GEMV).
    coords = x.astype(jnp.float32) @ params["pred_w"].T + params["pred_b"]
    coords = coords[:, :L, :]

    # coordinates[:, 0, :] = [0, 0]; coordinates[:, -1, :] = [600, 0]
    coords = coords.at[:, 0, :].set(jnp.array([0.0, 0.0], dtype=coords.dtype))
    coords = coords.at[:, -1, :].set(jnp.array([600.0, 0.0], dtype=coords.dtype))
    return coords


def init_params(key, input_dim, embed_dim, num_heads, num_layers, max_pos=600):
    keys = jax.random.split(key, 3 + num_layers)

    def w(k, shape, scale=0.02):
        return (scale * jax.random.normal(k, shape)).astype(jnp.float32)

    params = {
        # weights stored pre-transposed ([in, out]) and in bf16 for the MXU
        "in_emb_wt": w(keys[0], (input_dim, embed_dim)).astype(jnp.bfloat16),
        "in_emb_b": jnp.zeros((1, embed_dim), jnp.float32),
        "pos_emb": w(keys[1], (max_pos, embed_dim)),
        "pred_w": w(keys[2], (2, embed_dim)),
        "pred_b": jnp.zeros((2,), jnp.float32),
        "layers": [],
    }
    dff = 4 * embed_dim
    head_dim = embed_dim // num_heads
    scale = 1.0 / math.sqrt(head_dim)
    for li in range(num_layers):
        lk = jax.random.split(keys[3 + li], 5)
        qkv_w = w(lk[0], (embed_dim, 3 * embed_dim))
        qkv_b = 0.01 * jax.random.normal(lk[4], (1, 3 * embed_dim),
                                         dtype=jnp.float32)
        # fold 1/sqrt(head_dim) into the Q block of the in-projection (weight+bias)
        qkv_w = qkv_w.at[:, :embed_dim].multiply(scale)
        qkv_b = qkv_b.at[:, :embed_dim].multiply(scale)
        params["layers"].append({
            "qkv_wt": qkv_w.astype(jnp.bfloat16),
            "qkv_b": qkv_b,
            "out_wt": w(lk[1], (embed_dim, embed_dim)).astype(jnp.bfloat16),
            "out_b": jnp.zeros((1, embed_dim), jnp.float32),
            "ffn_w1t": w(lk[2], (embed_dim, dff)).astype(jnp.bfloat16),
            "ffn_b1": jnp.zeros((1, dff), jnp.float32),
            "ffn_w2t": w(lk[3], (dff, embed_dim)).astype(jnp.bfloat16),
            "ffn_b2": jnp.zeros((1, embed_dim), jnp.float32),
            "ln1_g": jnp.ones((1, embed_dim), jnp.float32),
            "ln1_b": jnp.zeros((1, embed_dim), jnp.float32),
            "ln2_g": jnp.ones((1, embed_dim), jnp.float32),
            "ln2_b": jnp.zeros((1, embed_dim), jnp.float32),
        })
    return params


if __name__ == "__main__":
    # Small shapes consistent with the module (scaled down from 1024/8/8).
    B, L = 2, 16
    INPUT_DIM, EMBED_DIM, NUM_HEADS, NUM_LAYERS = 32, 128, 4, 2

    key = jax.random.PRNGKey(0)
    kf, _ = jax.random.split(key)
    features = jax.random.normal(kf, (B, L, INPUT_DIM), dtype=jnp.float32)
    positions = jnp.broadcast_to(jnp.arange(L, dtype=jnp.int32), (B, L))
    mask = jnp.ones((B, L), dtype=bool).at[1, L - 4:].set(False)  # pad 4 pts

    params = init_params(jax.random.PRNGKey(42), INPUT_DIM, EMBED_DIM,
                         NUM_HEADS, NUM_LAYERS)

    fwd = jax.jit(functools.partial(coordinate_transformer_forward,
                                    num_heads=NUM_HEADS))
    coords = jax.block_until_ready(fwd(params, features, positions, mask))
    assert coords.shape == (B, L, 2)
    assert bool(jnp.all(jnp.isfinite(coords)))
    print("KERNEL_OK")
</pallas_src>

<mosaic_0001>
module attributes {stable_mosaic.version = 11 : i64} {
  func.func @_attn_layer_kernel(%arg0: i32, %arg1: memref<1x128x128xbf16, #tpu.memory_space<vmem>>, %arg2: memref<1x1x128xf32, #tpu.memory_space<vmem>>, %arg3: memref<128x384xbf16, #tpu.memory_space<vmem>>, %arg4: memref<1x384xf32, #tpu.memory_space<vmem>>, %arg5: memref<128x128xbf16, #tpu.memory_space<vmem>>, %arg6: memref<1x128xf32, #tpu.memory_space<vmem>>, %arg7: memref<1x128xf32, #tpu.memory_space<vmem>>, %arg8: memref<1x128xf32, #tpu.memory_space<vmem>>, %arg9: memref<1x128x128xbf16, #tpu.memory_space<vmem>>) attributes {dimension_semantics = [#tpu.dimension_semantics<parallel>], iteration_bounds = array<i64: 2>, scalar_prefetch = 0 : i64, scratch_operands = 0 : i64, tpu.core_type = #tpu.core_type<tc>, window_params = [{transform_indices = @transform_0, window_bounds = array<i64: 1, 128, 128>}, {transform_indices = @transform_1, window_bounds = array<i64: 1, 1, 128>}, {pipeline_mode = #tpu.pipeline_mode<synchronous>, transform_indices = @transform_2, window_bounds = array<i64: 128, 384>}, {pipeline_mode = #tpu.pipeline_mode<synchronous>, transform_indices = @transform_3, window_bounds = array<i64: 1, 384>}, {pipeline_mode = #tpu.pipeline_mode<synchronous>, transform_indices = @transform_4, window_bounds = array<i64: 128, 128>}, {pipeline_mode = #tpu.pipeline_mode<synchronous>, transform_indices = @transform_5, window_bounds = array<i64: 1, 128>}, {pipeline_mode = #tpu.pipeline_mode<synchronous>, transform_indices = @transform_6, window_bounds = array<i64: 1, 128>}, {pipeline_mode = #tpu.pipeline_mode<synchronous>, transform_indices = @transform_7, window_bounds = array<i64: 1, 128>}, {transform_indices = @transform_8, window_bounds = array<i64: 1, 128, 128>}]} {
    %c0 = arith.constant 0 : index
    %c0_0 = arith.constant 0 : index
    %c0_1 = arith.constant 0 : index
    %0 = vector.load %arg1[%c0, %c0_0, %c0_1] : memref<1x128x128xbf16, #tpu.memory_space<vmem>>, vector<1x128x128xbf16>
    %1 = vector.shape_cast %0 : vector<1x128x128xbf16> to vector<128x128xbf16>
    %2 = arith.extf %1 : vector<128x128xbf16> to vector<128x128xf32>
    %c0_2 = arith.constant 0 : index
    %c0_3 = arith.constant 0 : index
    %c0_4 = arith.constant 0 : index
    %3 = vector.load %arg2[%c0_2, %c0_3, %c0_4] : memref<1x1x128xf32, #tpu.memory_space<vmem>>, vector<1x1x128xf32>
    %4 = vector.shape_cast %3 : vector<1x1x128xf32> to vector<1x128xf32>
    %c0_5 = arith.constant 0 : index
    %c0_6 = arith.constant 0 : index
    %5 = vector.load %arg3[%c0_5, %c0_6] : memref<128x384xbf16, #tpu.memory_space<vmem>>, vector<128x128xbf16>
    %cst = arith.constant dense<0.000000e+00> : vector<128x128xf32>
    %6 = tpu.matmul %1, %5, %cst {dimension_numbers = #tpu.dot_dimension_numbers<[1], [0], [0], [1], [0, 0, 1, 1], [], []>} : vector<128x128xbf16>, vector<128x128xbf16>, vector<128x128xf32> -> vector<128x128xf32>
    %c0_7 = arith.constant 0 : index
    %c0_8 = arith.constant 0 : index
    %7 = vector.load %arg4[%c0_7, %c0_8] : memref<1x384xf32, #tpu.memory_space<vmem>>, vector<1x128xf32>
    %8 = vector.broadcast %7 : vector<1x128xf32> to vector<128x128xf32>
    %9 = arith.addf %6, %8 : vector<128x128xf32>
    %10 = arith.truncf %9 : vector<128x128xf32> to vector<128x128xbf16>
    %c0_9 = arith.constant 0 : index
    %c128 = arith.constant 128 : index
    %11 = vector.load %arg3[%c0_9, %c128] : memref<128x384xbf16, #tpu.memory_space<vmem>>, vector<128x128xbf16>
    %cst_10 = arith.constant dense<0.000000e+00> : vector<128x128xf32>
    %12 = tpu.matmul %1, %11, %cst_10 {dimension_numbers = #tpu.dot_dimension_numbers<[1], [0], [0], [1], [0, 0, 1, 1], [], []>} : vector<128x128xbf16>, vector<128x128xbf16>, vector<128x128xf32> -> vector<128x128xf32>
    %c0_11 = arith.constant 0 : index
    %c128_12 = arith.constant 128 : index
    %13 = vector.load %arg4[%c0_11, %c128_12] : memref<1x384xf32, #tpu.memory_space<vmem>>, vector<1x128xf32>
    %14 = vector.broadcast %13 : vector<1x128xf32> to vector<128x128xf32>
    %15 = arith.addf %12, %14 : vector<128x128xf32>
    %16 = arith.truncf %15 : vector<128x128xf32> to vector<128x128xbf16>
    %c0_13 = arith.constant 0 : index
    %c256 = arith.constant 256 : index
    %17 = vector.load %arg3[%c0_13, %c256] : memref<128x384xbf16, #tpu.memory_space<vmem>>, vector<128x128xbf16>
    %cst_14 = arith.constant dense<0.000000e+00> : vector<128x128xf32>
    %18 = tpu.matmul %1, %17, %cst_14 {dimension_numbers = #tpu.dot_dimension_numbers<[1], [0], [0], [1], [0, 0, 1, 1], [], []>} : vector<128x128xbf16>, vector<128x128xbf16>, vector<128x128xf32> -> vector<128x128xf32>
    %c0_15 = arith.constant 0 : index
    %c256_16 = arith.constant 256 : index
    %19 = vector.load %arg4[%c0_15, %c256_16] : memref<1x384xf32, #tpu.memory_space<vmem>>, vector<1x128xf32>
    %20 = vector.broadcast %19 : vector<1x128xf32> to vector<128x128xf32>
    %21 = arith.addf %18, %20 : vector<128x128xf32>
    %22 = arith.truncf %21 : vector<128x128xf32> to vector<128x128xbf16>
    %cst_17 = arith.constant 0.000000e+00 : f32
    %23 = vector.broadcast %cst_17 : f32 to vector<128x128xf32>
    %24 = vector.extract_strided_slice %10 {offsets = [0, 0], sizes = [128, 32], strides = [1, 1]} : vector<128x128xbf16> to vector<128x32xbf16>
    %25 = vector.extract_strided_slice %16 {offsets = [0, 0], sizes = [128, 32], strides = [1, 1]} : vector<128x128xbf16> to vector<128x32xbf16>
    %cst_18 = arith.constant dense<0.000000e+00> : vector<128x128xf32>
    %26 = tpu.matmul %24, %25, %cst_18 {dimension_numbers = #tpu.dot_dimension_numbers<[1], [1], [0], [0], [0, 0, 1, 0], [], []>} : vector<128x32xbf16>, vector<128x32xbf16>, vector<128x128xf32> -> vector<128x128xf32>
    %27 = vector.broadcast %4 : vector<1x128xf32> to vector<128x128xf32>
    %28 = arith.addf %26, %27 : vector<128x128xf32>
    %cst_19 = arith.constant dense<0xFF800000> : vector<128xf32>
    %29 = vector.multi_reduction <maximumf>, %28, %cst_19 [1] : vector<128x128xf32> to vector<128xf32>
    %30 = vector.shape_cast %29 : vector<128xf32> to vector<128x1xf32>
    %31 = vector.broadcast %30 : vector<128x1xf32> to vector<128x128xf32>
    %32 = arith.subf %28, %31 : vector<128x128xf32>
    %33 = math.exp %32 : vector<128x128xf32>
    %cst_20 = arith.constant dense<0.000000e+00> : vector<128xf32>
    %34 = vector.multi_reduction <add>, %33, %cst_20 [1] : vector<128x128xf32> to vector<128xf32>
    %35 = vector.shape_cast %34 : vector<128xf32> to vector<128x1xf32>
    %36 = tpu.reciprocal %35 {approx = true} : vector<128x1xf32> -> vector<128x1xf32>
    %37 = vector.broadcast %36 : vector<128x1xf32> to vector<128x128xf32>
    %38 = arith.mulf %33, %37 : vector<128x128xf32>
    %39 = arith.truncf %38 : vector<128x128xf32> to vector<128x128xbf16>
    %40 = vector.extract_strided_slice %22 {offsets = [0, 0], sizes = [128, 32], strides = [1, 1]} : vector<128x128xbf16> to vector<128x32xbf16>
    %cst_21 = arith.constant dense<0.000000e+00> : vector<128x32xf32>
    %41 = tpu.matmul %39, %40, %cst_21 {dimension_numbers = #tpu.dot_dimension_numbers<[1], [0], [0], [1], [0, 0, 1, 1], [], []>} : vector<128x128xbf16>, vector<128x32xbf16>, vector<128x32xf32> -> vector<128x32xf32>
    %42 = arith.truncf %41 : vector<128x32xf32> to vector<128x32xbf16>
    %c0_22 = arith.constant 0 : index
    %c0_23 = arith.constant 0 : index
    %43 = vector.load %arg5[%c0_22, %c0_23] : memref<128x128xbf16, #tpu.memory_space<vmem>>, vector<32x128xbf16>
    %cst_24 = arith.constant dense<0.000000e+00> : vector<128x128xf32>
    %44 = tpu.matmul %42, %43, %cst_24 {dimension_numbers = #tpu.dot_dimension_numbers<[1], [0], [0], [1], [0, 0, 1, 1], [], []>} : vector<128x32xbf16>, vector<32x128xbf16>, vector<128x128xf32> -> vector<128x128xf32>
    %45 = arith.addf %23, %44 : vector<128x128xf32>
    %46 = vector.extract_strided_slice %10 {offsets = [0, 32], sizes = [128, 32], strides = [1, 1]} : vector<128x128xbf16> to vector<128x32xbf16>
    %47 = vector.extract_strided_slice %16 {offsets = [0, 32], sizes = [128, 32], strides = [1, 1]} : vector<128x128xbf16> to vector<128x32xbf16>
    %cst_25 = arith.constant dense<0.000000e+00> : vector<128x128xf32>
    %48 = tpu.matmul %46, %47, %cst_25 {dimension_numbers = #tpu.dot_dimension_numbers<[1], [1], [0], [0], [0, 0, 1, 0], [], []>} : vector<128x32xbf16>, vector<128x32xbf16>, vector<128x128xf32> -> vector<128x128xf32>
    %49 = vector.broadcast %4 : vector<1x128xf32> to vector<128x128xf32>
    %50 = arith.addf %48, %49 : vector<128x128xf32>
    %cst_26 = arith.constant dense<0xFF800000> : vector<128xf32>
    %51 = vector.multi_reduction <maximumf>, %50, %cst_26 [1] : vector<128x128xf32> to vector<128xf32>
    %52 = vector.shape_cast %51 : vector<128xf32> to vector<128x1xf32>
    %53 = vector.broadcast %52 : vector<128x1xf32> to vector<128x128xf32>
    %54 = arith.subf %50, %53 : vector<128x128xf32>
    %55 = math.exp %54 : vector<128x128xf32>
    %cst_27 = arith.constant dense<0.000000e+00> : vector<128xf32>
    %56 = vector.multi_reduction <add>, %55, %cst_27 [1] : vector<128x128xf32> to vector<128xf32>
    %57 = vector.shape_cast %56 : vector<128xf32> to vector<128x1xf32>
    %58 = tpu.reciprocal %57 {approx = true} : vector<128x1xf32> -> vector<128x1xf32>
    %59 = vector.broadcast %58 : vector<128x1xf32> to vector<128x128xf32>
    %60 = arith.mulf %55, %59 : vector<128x128xf32>
    %61 = arith.truncf %60 : vector<128x128xf32> to vector<128x128xbf16>
    %62 = vector.extract_strided_slice %22 {offsets = [0, 32], sizes = [128, 32], strides = [1, 1]} : vector<128x128xbf16> to vector<128x32xbf16>
    %cst_28 = arith.constant dense<0.000000e+00> : vector<128x32xf32>
    %63 = tpu.matmul %61, %62, %cst_28 {dimension_numbers = #tpu.dot_dimension_numbers<[1], [0], [0], [1], [0, 0, 1, 1], [], []>} : vector<128x128xbf16>, vector<128x32xbf16>, vector<128x32xf32> -> vector<128x32xf32>
    %64 = arith.truncf %63 : vector<128x32xf32> to vector<128x32xbf16>
    %c32 = arith.constant 32 : index
    %c0_29 = arith.constant 0 : index
    %65 = vector.load %arg5[%c32, %c0_29] : memref<128x128xbf16, #tpu.memory_space<vmem>>, vector<32x128xbf16>
    %cst_30 = arith.constant dense<0.000000e+00> : vector<128x128xf32>
    %66 = tpu.matmul %64, %65, %cst_30 {dimension_numbers = #tpu.dot_dimension_numbers<[1], [0], [0], [1], [0, 0, 1, 1], [], []>} : vector<128x32xbf16>, vector<32x128xbf16>, vector<128x128xf32> -> vector<128x128xf32>
    %67 = arith.addf %45, %66 : vector<128x128xf32>
    %68 = vector.extract_strided_slice %10 {offsets = [0, 64], sizes = [128, 32], strides = [1, 1]} : vector<128x128xbf16> to vector<128x32xbf16>
    %69 = vector.extract_strided_slice %16 {offsets = [0, 64], sizes = [128, 32], strides = [1, 1]} : vector<128x128xbf16> to vector<128x32xbf16>
    %cst_31 = arith.constant dense<0.000000e+00> : vector<128x128xf32>
    %70 = tpu.matmul %68, %69, %cst_31 {dimension_numbers = #tpu.dot_dimension_numbers<[1], [1], [0], [0], [0, 0, 1, 0], [], []>} : vector<128x32xbf16>, vector<128x32xbf16>, vector<128x128xf32> -> vector<128x128xf32>
    %71 = vector.broadcast %4 : vector<1x128xf32> to vector<128x128xf32>
    %72 = arith.addf %70, %71 : vector<128x128xf32>
    %cst_32 = arith.constant dense<0xFF800000> : vector<128xf32>
    %73 = vector.multi_reduction <maximumf>, %72, %cst_32 [1] : vector<128x128xf32> to vector<128xf32>
    %74 = vector.shape_cast %73 : vector<128xf32> to vector<128x1xf32>
    %75 = vector.broadcast %74 : vector<128x1xf32> to vector<128x128xf32>
    %76 = arith.subf %72, %75 : vector<128x128xf32>
    %77 = math.exp %76 : vector<128x128xf32>
    %cst_33 = arith.constant dense<0.000000e+00> : vector<128xf32>
    %78 = vector.multi_reduction <add>, %77, %cst_33 [1] : vector<128x128xf32> to vector<128xf32>
    %79 = vector.shape_cast %78 : vector<128xf32> to vector<128x1xf32>
    %80 = tpu.reciprocal %79 {approx = true} : vector<128x1xf32> -> vector<128x1xf32>
    %81 = vector.broadcast %80 : vector<128x1xf32> to vector<128x128xf32>
    %82 = arith.mulf %77, %81 : vector<128x128xf32>
    %83 = arith.truncf %82 : vector<128x128xf32> to vector<128x128xbf16>
    %84 = vector.extract_strided_slice %22 {offsets = [0, 64], sizes = [128, 32], strides = [1, 1]} : vector<128x128xbf16> to vector<128x32xbf16>
    %cst_34 = arith.constant dense<0.000000e+00> : vector<128x32xf32>
    %85 = tpu.matmul %83, %84, %cst_34 {dimension_numbers = #tpu.dot_dimension_numbers<[1], [0], [0], [1], [0, 0, 1, 1], [], []>} : vector<128x128xbf16>, vector<128x32xbf16>, vector<128x32xf32> -> vector<128x32xf32>
    %86 = arith.truncf %85 : vector<128x32xf32> to vector<128x32xbf16>
    %c64 = arith.constant 64 : index
    %c0_35 = arith.constant 0 : index
    %87 = vector.load %arg5[%c64, %c0_35] : memref<128x128xbf16, #tpu.memory_space<vmem>>, vector<32x128xbf16>
    %cst_36 = arith.constant dense<0.000000e+00> : vector<128x128xf32>
    %88 = tpu.matmul %86, %87, %cst_36 {dimension_numbers = #tpu.dot_dimension_numbers<[1], [0], [0], [1], [0, 0, 1, 1], [], []>} : vector<128x32xbf16>, vector<32x128xbf16>, vector<128x128xf32> -> vector<128x128xf32>
    %89 = arith.addf %67, %88 : vector<128x128xf32>
    %90 = vector.extract_strided_slice %10 {offsets = [0, 96], sizes = [128, 32], strides = [1, 1]} : vector<128x128xbf16> to vector<128x32xbf16>
    %91 = vector.extract_strided_slice %16 {offsets = [0, 96], sizes = [128, 32], strides = [1, 1]} : vector<128x128xbf16> to vector<128x32xbf16>
    %cst_37 = arith.constant dense<0.000000e+00> : vector<128x128xf32>
    %92 = tpu.matmul %90, %91, %cst_37 {dimension_numbers = #tpu.dot_dimension_numbers<[1], [1], [0], [0], [0, 0, 1, 0], [], []>} : vector<128x32xbf16>, vector<128x32xbf16>, vector<128x128xf32> -> vector<128x128xf32>
    %93 = vector.broadcast %4 : vector<1x128xf32> to vector<128x128xf32>
    %94 = arith.addf %92, %93 : vector<128x128xf32>
    %cst_38 = arith.constant dense<0xFF800000> : vector<128xf32>
    %95 = vector.multi_reduction <maximumf>, %94, %cst_38 [1] : vector<128x128xf32> to vector<128xf32>
    %96 = vector.shape_cast %95 : vector<128xf32> to vector<128x1xf32>
    %97 = vector.broadcast %96 : vector<128x1xf32> to vector<128x128xf32>
    %98 = arith.subf %94, %97 : vector<128x128xf32>
    %99 = math.exp %98 : vector<128x128xf32>
    %cst_39 = arith.constant dense<0.000000e+00> : vector<128xf32>
    %100 = vector.multi_reduction <add>, %99, %cst_39 [1] : vector<128x128xf32> to vector<128xf32>
    %101 = vector.shape_cast %100 : vector<128xf32> to vector<128x1xf32>
    %102 = tpu.reciprocal %101 {approx = true} : vector<128x1xf32> -> vector<128x1xf32>
    %103 = vector.broadcast %102 : vector<128x1xf32> to vector<128x128xf32>
    %104 = arith.mulf %99, %103 : vector<128x128xf32>
    %105 = arith.truncf %104 : vector<128x128xf32> to vector<128x128xbf16>
    %106 = vector.extract_strided_slice %22 {offsets = [0, 96], sizes = [128, 32], strides = [1, 1]} : vector<128x128xbf16> to vector<128x32xbf16>
    %cst_40 = arith.constant dense<0.000000e+00> : vector<128x32xf32>
    %107 = tpu.matmul %105, %106, %cst_40 {dimension_numbers = #tpu.dot_dimension_numbers<[1], [0], [0], [1], [0, 0, 1, 1], [], []>} : vector<128x128xbf16>, vector<128x32xbf16>, vector<128x32xf32> -> vector<128x32xf32>
    %108 = arith.truncf %107 : vector<128x32xf32> to vector<128x32xbf16>
    %c96 = arith.constant 96 : index
    %c0_41 = arith.constant 0 : index
    %109 = vector.load %arg5[%c96, %c0_41] : memref<128x128xbf16, #tpu.memory_space<vmem>>, vector<32x128xbf16>
    %cst_42 = arith.constant dense<0.000000e+00> : vector<128x128xf32>
    %110 = tpu.matmul %108, %109, %cst_42 {dimension_numbers = #tpu.dot_dimension_numbers<[1], [0], [0], [1], [0, 0, 1, 1], [], []>} : vector<128x32xbf16>, vector<32x128xbf16>, vector<128x128xf32> -> vector<128x128xf32>
    %111 = arith.addf %89, %110 : vector<128x128xf32>
    %112 = arith.addf %2, %111 : vector<128x128xf32>
    %c0_43 = arith.constant 0 : index
    %c0_44 = arith.constant 0 : index
    %113 = vector.load %arg6[%c0_43, %c0_44] : memref<1x128xf32, #tpu.memory_space<vmem>>, vector<1x128xf32>
    %114 = vector.broadcast %113 : vector<1x128xf32> to vector<128x128xf32>
    %115 = arith.addf %112, %114 : vector<128x128xf32>
    %cst_45 = arith.constant dense<0.000000e+00> : vector<128xf32>
    %116 = vector.multi_reduction <add>, %115, %cst_45 [1] : vector<128x128xf32> to vector<128xf32>
    %117 = vector.shape_cast %116 : vector<128xf32> to vector<128x1xf32>
    %cst_46 = arith.constant 1.280000e+02 : f32
    %118 = vector.broadcast %cst_46 : f32 to vector<128x1xf32>
    %119 = arith.divf %117, %118 : vector<128x1xf32>
    %120 = vector.broadcast %119 : vector<128x1xf32> to vector<128x128xf32>
    %121 = arith.subf %115, %120 : vector<128x128xf32>
    %122 = arith.mulf %121, %121 : vector<128x128xf32>
    %cst_47 = arith.constant dense<0.000000e+00> : vector<128xf32>
    %123 = vector.multi_reduction <add>, %122, %cst_47 [1] : vector<128x128xf32> to vector<128xf32>
    %124 = vector.shape_cast %123 : vector<128xf32> to vector<128x1xf32>
    %cst_48 = arith.constant 1.280000e+02 : f32
    %125 = vector.broadcast %cst_48 : f32 to vector<128x1xf32>
    %126 = arith.divf %124, %125 : vector<128x1xf32>
    %cst_49 = arith.constant 9.99999974E-6 : f32
    %127 = vector.broadcast %cst_49 : f32 to vector<128x1xf32>
    %128 = arith.addf %126, %127 : vector<128x1xf32>
    %129 = math.rsqrt %128 : vector<128x1xf32>
    %130 = vector.broadcast %129 : vector<128x1xf32> to vector<128x128xf32>
    %131 = arith.mulf %121, %130 : vector<128x128xf32>
    %c0_50 = arith.constant 0 : index
    %c0_51 = arith.constant 0 : index
    %132 = vector.load %arg7[%c0_50, %c0_51] : memref<1x128xf32, #tpu.memory_space<vmem>>, vector<1x128xf32>
    %133 = vector.broadcast %132 : vector<1x128xf32> to vector<128x128xf32>
    %134 = arith.mulf %131, %133 : vector<128x128xf32>
    %c0_52 = arith.constant 0 : index
    %c0_53 = arith.constant 0 : index
    %135 = vector.load %arg8[%c0_52, %c0_53] : memref<1x128xf32, #tpu.memory_space<vmem>>, vector<1x128xf32>
    %136 = vector.broadcast %135 : vector<1x128xf32> to vector<128x128xf32>
    %137 = arith.addf %134, %136 : vector<128x128xf32>
    %138 = arith.truncf %137 : vector<128x128xf32> to vector<128x128xbf16>
    %c0_54 = arith.constant 0 : index
    %c0_55 = arith.constant 0 : index
    %c0_56 = arith.constant 0 : index
    %139 = vector.load %arg9[%c0_54, %c0_55, %c0_56] : memref<1x128x128xbf16, #tpu.memory_space<vmem>>, vector<1x128x128xbf16>
    %140 = vector.shape_cast %139 : vector<1x128x128xbf16> to vector<128x128xbf16>
    %141 = vector.shape_cast %138 : vector<128x128xbf16> to vector<1x128x128xbf16>
    tpu.vector_store %arg9[%c0_54, %c0_55, %c0_56], %141 {strides = array<i32>} : memref<1x128x128xbf16, #tpu.memory_space<vmem>>, vector<1x128x128xbf16>,
    return
  }
  func.func @transform_0(%arg0: i32) -> (i32, i32, i32) {
    %c0_i32 = arith.constant 0 : i32
    %c0_i32_0 = arith.constant 0 : i32
    %c0_i32_1 = arith.constant 0 : i32
    return %arg0, %c0_i32, %c0_i32_0 : i32, i32, i32
  }
  func.func @transform_1(%arg0: i32) -> (i32, i32, i32) {
    %c0_i32 = arith.constant 0 : i32
    %c0_i32_0 = arith.constant 0 : i32
    %c0_i32_1 = arith.constant 0 : i32
    return %arg0, %c0_i32, %c0_i32_0 : i32, i32, i32
  }
  func.func @transform_2(%arg0: i32) -> (i32, i32) {
    %c0_i32 = arith.constant 0 : i32
    %c0_i32_0 = arith.constant 0 : i32
    %c0_i32_1 = arith.constant 0 : i32
    return %c0_i32, %c0_i32_0 : i32, i32
  }
  func.func @transform_3(%arg0: i32) -> (i32, i32) {
    %c0_i32 = arith.constant 0 : i32
    %c0_i32_0 = arith.constant 0 : i32
    %c0_i32_1 = arith.constant 0 : i32
    return %c0_i32, %c0_i32_0 : i32, i32
  }
  func.func @transform_4(%arg0: i32) -> (i32, i32) {
    %c0_i32 = arith.constant 0 : i32
    %c0_i32_0 = arith.constant 0 : i32
    %c0_i32_1 = arith.constant 0 : i32
    return %c0_i32, %c0_i32_0 : i32, i32
  }
  func.func @transform_5(%arg0: i32) -> (i32, i32) {
    %c0_i32 = arith.constant 0 : i32
    %c0_i32_0 = arith.constant 0 : i32
    %c0_i32_1 = arith.constant 0 : i32
    return %c0_i32, %c0_i32_0 : i32, i32
  }
  func.func @transform_6(%arg0: i32) -> (i32, i32) {
    %c0_i32 = arith.constant 0 : i32
    %c0_i32_0 = arith.constant 0 : i32
    %c0_i32_1 = arith.constant 0 : i32
    return %c0_i32, %c0_i32_0 : i32, i32
  }
  func.func @transform_7(%arg0: i32) -> (i32, i32) {
    %c0_i32 = arith.constant 0 : i32
    %c0_i32_0 = arith.constant 0 : i32
    %c0_i32_1 = arith.constant 0 : i32
    return %c0_i32, %c0_i32_0 : i32, i32
  }
  func.func @transform_8(%arg0: i32) -> (i32, i32, i32) {
    %c0_i32 = arith.constant 0 : i32
    %c0_i32_0 = arith.constant 0 : i32
    %c0_i32_1 = arith.constant 0 : i32
    return %arg0, %c0_i32, %c0_i32_0 : i32, i32, i32
  }
}

module attributes {stable_mosaic.version = 11 : i64} {
  func.func @_ffn_ln_kernel(%arg0: i32, %arg1: i32, %arg2: memref<256x128xbf16, #tpu.memory_space<vmem>>, %arg3: memref<128x512xbf16, #tpu.memory_space<vmem>>, %arg4: memref<1x512xf32, #tpu.memory_space<vmem>>, %arg5: memref<512x128xbf16, #tpu.memory_space<vmem>>, %arg6: memref<1x128xf32, #tpu.memory_space<vmem>>, %arg7: memref<1x128xf32, #tpu.memory_space<vmem>>, %arg8: memref<1x128xf32, #tpu.memory_space<vmem>>, %arg9: memref<256x128xbf16, #tpu.memory_space<vmem>>, %arg10: memref<256x128xf32, #tpu.memory_space<vmem>>) attributes {dimension_semantics = [#tpu.dimension_semantics<parallel>, #tpu.dimension_semantics<arbitrary>], iteration_bounds = array<i64: 1, 1>, scalar_prefetch = 0 : i64, scratch_operands = 1 : i64, tpu.core_type = #tpu.core_type<tc>, window_params = [{transform_indices = @transform_0, window_bounds = array<i64: 256, 128>}, {transform_indices = @transform_1, window_bounds = array<i64: 128, 512>}, {transform_indices = @transform_2, window_bounds = array<i64: 1, 512>}, {transform_indices = @transform_3, window_bounds = array<i64: 512, 128>}, {pipeline_mode = #tpu.pipeline_mode<synchronous>, transform_indices = @transform_4, window_bounds = array<i64: 1, 128>}, {pipeline_mode = #tpu.pipeline_mode<synchronous>, transform_indices = @transform_5, window_bounds = array<i64: 1, 128>}, {pipeline_mode = #tpu.pipeline_mode<synchronous>, transform_indices = @transform_6, window_bounds = array<i64: 1, 128>}, {transform_indices = @transform_7, window_bounds = array<i64: 256, 128>}]} {
    %c0_i32 = arith.constant 0 : i32
    %0 = arith.cmpi eq, %arg1, %c0_i32 : i32
    %1 = arith.extui %0 : i1 to i32
    %c0_i32_0 = arith.constant 0 : i32
    %2 = arith.cmpi ne, %1, %c0_i32_0 : i32
    scf.if %2 {
      %cst_16 = arith.constant 0.000000e+00 : f32
      %20 = vector.broadcast %cst_16 : f32 to vector<256x128xf32>
      %c0_17 = arith.constant 0 : index
      %c0_18 = arith.constant 0 : index
      %21 = vector.load %arg10[%c0_17, %c0_18] : memref<256x128xf32, #tpu.memory_space<vmem>>, vector<256x128xf32>
      tpu.vector_store %arg10[%c0_17, %c0_18], %20 {strides = array<i32>} : memref<256x128xf32, #tpu.memory_space<vmem>>, vector<256x128xf32>,
    } else {
    }
    %c0 = arith.constant 0 : index
    %c0_1 = arith.constant 0 : index
    %3 = vector.load %arg2[%c0, %c0_1] : memref<256x128xbf16, #tpu.memory_space<vmem>>, vector<256x128xbf16>
    %c0_2 = arith.constant 0 : index
    %c0_3 = arith.constant 0 : index
    %4 = vector.load %arg3[%c0_2, %c0_3] : memref<128x512xbf16, #tpu.memory_space<vmem>>, vector<128x512xbf16>
    %cst = arith.constant dense<0.000000e+00> : vector<256x512xf32>
    %5 = tpu.matmul %3, %4, %cst {dimension_numbers = #tpu.dot_dimension_numbers<[1], [0], [0], [1], [0, 0, 1, 1], [], []>} : vector<256x128xbf16>, vector<128x512xbf16>, vector<256x512xf32> -> vector<256x512xf32>
    %c0_4 = arith.constant 0 : index
    %c0_5 = arith.constant 0 : index
    %6 = vector.load %arg4[%c0_4, %c0_5] : memref<1x512xf32, #tpu.memory_space<vmem>>, vector<1x512xf32>
    %7 = vector.broadcast %6 : vector<1x512xf32> to vector<256x512xf32>
    %8 = arith.addf %5, %7 : vector<256x512xf32>
    %cst_6 = arith.constant 0.000000e+00 : f32
    %9 = vector.broadcast %cst_6 : f32 to vector<256x512xf32>
    %10 = arith.maximumf %8, %9 : vector<256x512xf32>
    %c0_7 = arith.constant 0 : index
    %c0_8 = arith.constant 0 : index
    %11 = vector.load %arg10[%c0_7, %c0_8] : memref<256x128xf32, #tpu.memory_space<vmem>>, vector<256x128xf32>
    %12 = arith.truncf %10 : vector<256x512xf32> to vector<256x512xbf16>
    %c0_9 = arith.constant 0 : index
    %c0_10 = arith.constant 0 : index
    %13 = vector.load %arg5[%c0_9, %c0_10] : memref<512x128xbf16, #tpu.memory_space<vmem>>, vector<512x128xbf16>
    %cst_11 = arith.constant dense<0.000000e+00> : vector<256x128xf32>
    %14 = tpu.matmul %12, %13, %cst_11 {dimension_numbers = #tpu.dot_dimension_numbers<[1], [0], [0], [1], [0, 0, 1, 1], [], []>} : vector<256x512xbf16>, vector<512x128xbf16>, vector<256x128xf32> -> vector<256x128xf32>
    %15 = arith.addf %11, %14 : vector<256x128xf32>
    %c0_12 = arith.constant 0 : index
    %c0_13 = arith.constant 0 : index
    %16 = vector.load %arg10[%c0_12, %c0_13] : memref<256x128xf32, #tpu.memory_space<vmem>>, vector<256x128xf32>
    tpu.vector_store %arg10[%c0_12, %c0_13], %15 {strides = array<i32>} : memref<256x128xf32, #tpu.memory_space<vmem>>, vector<256x128xf32>,
    %c0_i32_14 = arith.constant 0 : i32
    %17 = arith.cmpi eq, %arg1, %c0_i32_14 : i32
    %18 = arith.extui %17 : i1 to i32
    %c0_i32_15 = arith.constant 0 : i32
    %19 = arith.cmpi ne, %18, %c0_i32_15 : i32
    scf.if %19 {
      %20 = arith.extf %3 : vector<256x128xbf16> to vector<256x128xf32>
      %c0_16 = arith.constant 0 : index
      %c0_17 = arith.constant 0 : index
      %21 = vector.load %arg10[%c0_16, %c0_17] : memref<256x128xf32, #tpu.memory_space<vmem>>, vector<256x128xf32>
      %22 = arith.addf %20, %21 : vector<256x128xf32>
      %c0_18 = arith.constant 0 : index
      %c0_19 = arith.constant 0 : index
      %23 = vector.load %arg6[%c0_18, %c0_19] : memref<1x128xf32, #tpu.memory_space<vmem>>, vector<1x128xf32>
      %24 = vector.broadcast %23 : vector<1x128xf32> to vector<256x128xf32>
      %25 = arith.addf %22, %24 : vector<256x128xf32>
      %cst_20 = arith.constant dense<0.000000e+00> : vector<256xf32>
      %26 = vector.multi_reduction <add>, %25, %cst_20 [1] : vector<256x128xf32> to vector<256xf32>
      %27 = vector.shape_cast %26 : vector<256xf32> to vector<256x1xf32>
      %cst_21 = arith.constant 1.280000e+02 : f32
      %28 = vector.broadcast %cst_21 : f32 to vector<256x1xf32>
      %29 = arith.divf %27, %28 : vector<256x1xf32>
      %30 = vector.broadcast %29 : vector<256x1xf32> to vector<256x128xf32>
      %31 = arith.subf %25, %30 : vector<256x128xf32>
      %32 = arith.mulf %31, %31 : vector<256x128xf32>
      %cst_22 = arith.constant dense<0.000000e+00> : vector<256xf32>
      %33 = vector.multi_reduction <add>, %32, %cst_22 [1] : vector<256x128xf32> to vector<256xf32>
      %34 = vector.shape_cast %33 : vector<256xf32> to vector<256x1xf32>
      %cst_23 = arith.constant 1.280000e+02 : f32
      %35 = vector.broadcast %cst_23 : f32 to vector<256x1xf32>
      %36 = arith.divf %34, %35 : vector<256x1xf32>
      %cst_24 = arith.constant 9.99999974E-6 : f32
      %37 = vector.broadcast %cst_24 : f32 to vector<256x1xf32>
      %38 = arith.addf %36, %37 : vector<256x1xf32>
      %39 = math.rsqrt %38 : vector<256x1xf32>
      %40 = vector.broadcast %39 : vector<256x1xf32> to vector<256x128xf32>
      %41 = arith.mulf %31, %40 : vector<256x128xf32>
      %c0_25 = arith.constant 0 : index
      %c0_26 = arith.constant 0 : index
      %42 = vector.load %arg7[%c0_25, %c0_26] : memref<1x128xf32, #tpu.memory_space<vmem>>, vector<1x128xf32>
      %43 = vector.broadcast %42 : vector<1x128xf32> to vector<256x128xf32>
      %44 = arith.mulf %41, %43 : vector<256x128xf32>
      %c0_27 = arith.constant 0 : index
      %c0_28 = arith.constant 0 : index
      %45 = vector.load %arg8[%c0_27, %c0_28] : memref<1x128xf32, #tpu.memory_space<vmem>>, vector<1x128xf32>
      %46 = vector.broadcast %45 : vector<1x128xf32> to vector<256x128xf32>
      %47 = arith.addf %44, %46 : vector<256x128xf32>
      %48 = arith.truncf %47 : vector<256x128xf32> to vector<256x128xbf16>
      %c0_29 = arith.constant 0 : index
      %c0_30 = arith.constant 0 : index
      %49 = vector.load %arg9[%c0_29, %c0_30] : memref<256x128xbf16, #tpu.memory_space<vmem>>, vector<256x128xbf16>
      tpu.vector_store %arg9[%c0_29, %c0_30], %48 {strides = array<i32>} : memref<256x128xbf16, #tpu.memory_space<vmem>>, vector<256x128xbf16>,
    } else {
    }
    return
  }
  func.func @transform_0(%arg0: i32, %arg1: i32) -> (i32, i32) {
    %c0_i32 = arith.constant 0 : i32
    %c0_i32_0 = arith.constant 0 : i32
    return %arg0, %c0_i32 : i32, i32
  }
  func.func @transform_1(%arg0: i32, %arg1: i32) -> (i32, i32) {
    %c0_i32 = arith.constant 0 : i32
    %c0_i32_0 = arith.constant 0 : i32
    return %c0_i32, %arg1 : i32, i32
  }
  func.func @transform_2(%arg0: i32, %arg1: i32) -> (i32, i32) {
    %c0_i32 = arith.constant 0 : i32
    %c0_i32_0 = arith.constant 0 : i32
    return %c0_i32, %arg1 : i32, i32
  }
  func.func @transform_3(%arg0: i32, %arg1: i32) -> (i32, i32) {
    %c0_i32 = arith.constant 0 : i32
    %c0_i32_0 = arith.constant 0 : i32
    return %arg1, %c0_i32 : i32, i32
  }
  func.func @transform_4(%arg0: i32, %arg1: i32) -> (i32, i32) {
    %c0_i32 = arith.constant 0 : i32
    %c0_i32_0 = arith.constant 0 : i32
    %c0_i32_1 = arith.constant 0 : i32
    return %c0_i32, %c0_i32_0 : i32, i32
  }
  func.func @transform_5(%arg0: i32, %arg1: i32) -> (i32, i32) {
    %c0_i32 = arith.constant 0 : i32
    %c0_i32_0 = arith.constant 0 : i32
    %c0_i32_1 = arith.constant 0 : i32
    return %c0_i32, %c0_i32_0 : i32, i32
  }
  func.func @transform_6(%arg0: i32, %arg1: i32) -> (i32, i32) {
    %c0_i32 = arith.constant 0 : i32
    %c0_i32_0 = arith.constant 0 : i32
    %c0_i32_1 = arith.constant 0 : i32
    return %c0_i32, %c0_i32_0 : i32, i32
  }
  func.func @transform_7(%arg0: i32, %arg1: i32) -> (i32, i32) {
    %c0_i32 = arith.constant 0 : i32
    %c0_i32_0 = arith.constant 0 : i32
    return %arg0, %c0_i32 : i32, i32
  }
}

module attributes {stable_mosaic.version = 11 : i64} {
  func.func @_embed_kernel(%arg0: i32, %arg1: memref<256x32xf32, #tpu.memory_space<vmem>>, %arg2: memref<256x128xf32, #tpu.memory_space<vmem>>, %arg3: memref<32x128xbf16, #tpu.memory_space<vmem>>, %arg4: memref<1x128xf32, #tpu.memory_space<vmem>>, %arg5: memref<256x128xbf16, #tpu.memory_space<vmem>>) attributes {dimension_semantics = [#tpu.dimension_semantics<parallel>], iteration_bounds = array<i64: 1>, scalar_prefetch = 0 : i64, scratch_operands = 0 : i64, tpu.core_type = #tpu.core_type<tc>, window_params = [{transform_indices = @transform_0, window_bounds = array<i64: 256, 32>}, {transform_indices = @transform_1, window_bounds = array<i64: 256, 128>}, {pipeline_mode = #tpu.pipeline_mode<synchronous>, transform_indices = @transform_2, window_bounds = array<i64: 32, 128>}, {pipeline_mode = #tpu.pipeline_mode<synchronous>, transform_indices = @transform_3, window_bounds = array<i64: 1, 128>}, {transform_indices = @transform_4, window_bounds = array<i64: 256, 128>}]} {
    %c0 = arith.constant 0 : index
    %c0_0 = arith.constant 0 : index
    %0 = vector.load %arg1[%c0, %c0_0] : memref<256x32xf32, #tpu.memory_space<vmem>>, vector<256x32xf32>
    %1 = arith.truncf %0 : vector<256x32xf32> to vector<256x32xbf16>
    %c0_1 = arith.constant 0 : index
    %c0_2 = arith.constant 0 : index
    %2 = vector.load %arg3[%c0_1, %c0_2] : memref<32x128xbf16, #tpu.memory_space<vmem>>, vector<32x128xbf16>
    %cst = arith.constant dense<0.000000e+00> : vector<256x128xf32>
    %3 = tpu.matmul %1, %2, %cst {dimension_numbers = #tpu.dot_dimension_numbers<[1], [0], [0], [1], [0, 0, 1, 1], [], []>} : vector<256x32xbf16>, vector<32x128xbf16>, vector<256x128xf32> -> vector<256x128xf32>
    %c0_3 = arith.constant 0 : index
    %c0_4 = arith.constant 0 : index
    %4 = vector.load %arg4[%c0_3, %c0_4] : memref<1x128xf32, #tpu.memory_space<vmem>>, vector<1x128xf32>
    %5 = vector.broadcast %4 : vector<1x128xf32> to vector<256x128xf32>
    %6 = arith.addf %3, %5 : vector<256x128xf32>
    %c0_5 = arith.constant 0 : index
    %c0_6 = arith.constant 0 : index
    %7 = vector.load %arg2[%c0_5, %c0_6] : memref<256x128xf32, #tpu.memory_space<vmem>>, vector<256x128xf32>
    %8 = arith.addf %6, %7 : vector<256x128xf32>
    %9 = arith.truncf %8 : vector<256x128xf32> to vector<256x128xbf16>
    %c0_7 = arith.constant 0 : index
    %c0_8 = arith.constant 0 : index
    %10 = vector.load %arg5[%c0_7, %c0_8] : memref<256x128xbf16, #tpu.memory_space<vmem>>, vector<256x128xbf16>
    tpu.vector_store %arg5[%c0_7, %c0_8], %9 {strides = array<i32>} : memref<256x128xbf16, #tpu.memory_space<vmem>>, vector<256x128xbf16>,
    return
  }
  func.func @transform_0(%arg0: i32) -> (i32, i32) {
    %c0_i32 = arith.constant 0 : i32
    %c0_i32_0 = arith.constant 0 : i32
    return %arg0, %c0_i32 : i32, i32
  }
  func.func @transform_1(%arg0: i32) -> (i32, i32) {
    %c0_i32 = arith.constant 0 : i32
    %c0_i32_0 = arith.constant 0 : i32
    return %arg0, %c0_i32 : i32, i32
  }
  func.func @transform_2(%arg0: i32) -> (i32, i32) {
    %c0_i32 = arith.constant 0 : i32
    %c0_i32_0 = arith.constant 0 : i32
    %c0_i32_1 = arith.constant 0 : i32
    return %c0_i32, %c0_i32_0 : i32, i32
  }
  func.func @transform_3(%arg0: i32) -> (i32, i32) {
    %c0_i32 = arith.constant 0 : i32
    %c0_i32_0 = arith.constant 0 : i32
    %c0_i32_1 = arith.constant 0 : i32
    return %c0_i32, %c0_i32_0 : i32, i32
  }
  func.func @transform_4(%arg0: i32) -> (i32, i32) {
    %c0_i32 = arith.constant 0 : i32
    %c0_i32_0 = arith.constant 0 : i32
    return %arg0, %c0_i32 : i32, i32
  }
}

module attributes {stable_mosaic.version = 11 : i64} {
  func.func @_ffn_ln_kernel(%arg0: i32, %arg1: i32, %arg2: memref<256x128xbf16, #tpu.memory_space<vmem>>, %arg3: memref<128x512xbf16, #tpu.memory_space<vmem>>, %arg4: memref<1x512xf32, #tpu.memory_space<vmem>>, %arg5: memref<512x128xbf16, #tpu.memory_space<vmem>>, %arg6: memref<1x128xf32, #tpu.memory_space<vmem>>, %arg7: memref<1x128xf32, #tpu.memory_space<vmem>>, %arg8: memref<1x128xf32, #tpu.memory_space<vmem>>, %arg9: memref<256x128xbf16, #tpu.memory_space<vmem>>, %arg10: memref<256x128xf32, #tpu.memory_space<vmem>>) attributes {dimension_semantics = [#tpu.dimension_semantics<parallel>, #tpu.dimension_semantics<arbitrary>], iteration_bounds = array<i64: 1, 1>, scalar_prefetch = 0 : i64, scratch_operands = 1 : i64, tpu.core_type = #tpu.core_type<tc>, window_params = [{transform_indices = @transform_0, window_bounds = array<i64: 256, 128>}, {transform_indices = @transform_1, window_bounds = array<i64: 128, 512>}, {transform_indices = @transform_2, window_bounds = array<i64: 1, 512>}, {transform_indices = @transform_3, window_bounds = array<i64: 512, 128>}, {pipeline_mode = #tpu.pipeline_mode<synchronous>, transform_indices = @transform_4, window_bounds = array<i64: 1, 128>}, {pipeline_mode = #tpu.pipeline_mode<synchronous>, transform_indices = @transform_5, window_bounds = array<i64: 1, 128>}, {pipeline_mode = #tpu.pipeline_mode<synchronous>, transform_indices = @transform_6, window_bounds = array<i64: 1, 128>}, {transform_indices = @transform_7, window_bounds = array<i64: 256, 128>}]} {
    %c0_i32 = arith.constant 0 : i32
    %0 = arith.cmpi eq, %arg1, %c0_i32 : i32
    %1 = arith.extui %0 : i1 to i32
    %c0_i32_0 = arith.constant 0 : i32
    %2 = arith.cmpi ne, %1, %c0_i32_0 : i32
    scf.if %2 {
      %cst_16 = arith.constant 0.000000e+00 : f32
      %20 = vector.broadcast %cst_16 : f32 to vector<256x128xf32>
      %c0_17 = arith.constant 0 : index
      %c0_18 = arith.constant 0 : index
      %21 = vector.load %arg10[%c0_17, %c0_18] : memref<256x128xf32, #tpu.memory_space<vmem>>, vector<256x128xf32>
      tpu.vector_store %arg10[%c0_17, %c0_18], %20 {strides = array<i32>} : memref<256x128xf32, #tpu.memory_space<vmem>>, vector<256x128xf32>,
    } else {
    }
    %c0 = arith.constant 0 : index
    %c0_1 = arith.constant 0 : index
    %3 = vector.load %arg2[%c0, %c0_1] : memref<256x128xbf16, #tpu.memory_space<vmem>>, vector<256x128xbf16>
    %c0_2 = arith.constant 0 : index
    %c0_3 = arith.constant 0 : index
    %4 = vector.load %arg3[%c0_2, %c0_3] : memref<128x512xbf16, #tpu.memory_space<vmem>>, vector<128x512xbf16>
    %cst = arith.constant dense<0.000000e+00> : vector<256x512xf32>
    %5 = tpu.matmul %3, %4, %cst {dimension_numbers = #tpu.dot_dimension_numbers<[1], [0], [0], [1], [0, 0, 1, 1], [], []>} : vector<256x128xbf16>, vector<128x512xbf16>, vector<256x512xf32> -> vector<256x512xf32>
    %c0_4 = arith.constant 0 : index
    %c0_5 = arith.constant 0 : index
    %6 = vector.load %arg4[%c0_4, %c0_5] : memref<1x512xf32, #tpu.memory_space<vmem>>, vector<1x512xf32>
    %7 = vector.broadcast %6 : vector<1x512xf32> to vector<256x512xf32>
    %8 = arith.addf %5, %7 : vector<256x512xf32>
    %cst_6 = arith.constant 0.000000e+00 : f32
    %9 = vector.broadcast %cst_6 : f32 to vector<256x512xf32>
    %10 = arith.maximumf %8, %9 : vector<256x512xf32>
    %c0_7 = arith.constant 0 : index
    %c0_8 = arith.constant 0 : index
    %11 = vector.load %arg10[%c0_7, %c0_8] : memref<256x128xf32, #tpu.memory_space<vmem>>, vector<256x128xf32>
    %12 = arith.truncf %10 : vector<256x512xf32> to vector<256x512xbf16>
    %c0_9 = arith.constant 0 : index
    %c0_10 = arith.constant 0 : index
    %13 = vector.load %arg5[%c0_9, %c0_10] : memref<512x128xbf16, #tpu.memory_space<vmem>>, vector<512x128xbf16>
    %cst_11 = arith.constant dense<0.000000e+00> : vector<256x128xf32>
    %14 = tpu.matmul %12, %13, %cst_11 {dimension_numbers = #tpu.dot_dimension_numbers<[1], [0], [0], [1], [0, 0, 1, 1], [], []>} : vector<256x512xbf16>, vector<512x128xbf16>, vector<256x128xf32> -> vector<256x128xf32>
    %15 = arith.addf %11, %14 : vector<256x128xf32>
    %c0_12 = arith.constant 0 : index
    %c0_13 = arith.constant 0 : index
    %16 = vector.load %arg10[%c0_12, %c0_13] : memref<256x128xf32, #tpu.memory_space<vmem>>, vector<256x128xf32>
    tpu.vector_store %arg10[%c0_12, %c0_13], %15 {strides = array<i32>} : memref<256x128xf32, #tpu.memory_space<vmem>>, vector<256x128xf32>,
    %c0_i32_14 = arith.constant 0 : i32
    %17 = arith.cmpi eq, %arg1, %c0_i32_14 : i32
    %18 = arith.extui %17 : i1 to i32
    %c0_i32_15 = arith.constant 0 : i32
    %19 = arith.cmpi ne, %18, %c0_i32_15 : i32
    scf.if %19 {
      %20 = arith.extf %3 : vector<256x128xbf16> to vector<256x128xf32>
      %c0_16 = arith.constant 0 : index
      %c0_17 = arith.constant 0 : index
      %21 = vector.load %arg10[%c0_16, %c0_17] : memref<256x128xf32, #tpu.memory_space<vmem>>, vector<256x128xf32>
      %22 = arith.addf %20, %21 : vector<256x128xf32>
      %c0_18 = arith.constant 0 : index
      %c0_19 = arith.constant 0 : index
      %23 = vector.load %arg6[%c0_18, %c0_19] : memref<1x128xf32, #tpu.memory_space<vmem>>, vector<1x128xf32>
      %24 = vector.broadcast %23 : vector<1x128xf32> to vector<256x128xf32>
      %25 = arith.addf %22, %24 : vector<256x128xf32>
      %cst_20 = arith.constant dense<0.000000e+00> : vector<256xf32>
      %26 = vector.multi_reduction <add>, %25, %cst_20 [1] : vector<256x128xf32> to vector<256xf32>
      %27 = vector.shape_cast %26 : vector<256xf32> to vector<256x1xf32>
      %cst_21 = arith.constant 1.280000e+02 : f32
      %28 = vector.broadcast %cst_21 : f32 to vector<256x1xf32>
      %29 = arith.divf %27, %28 : vector<256x1xf32>
      %30 = vector.broadcast %29 : vector<256x1xf32> to vector<256x128xf32>
      %31 = arith.subf %25, %30 : vector<256x128xf32>
      %32 = arith.mulf %31, %31 : vector<256x128xf32>
      %cst_22 = arith.constant dense<0.000000e+00> : vector<256xf32>
      %33 = vector.multi_reduction <add>, %32, %cst_22 [1] : vector<256x128xf32> to vector<256xf32>
      %34 = vector.shape_cast %33 : vector<256xf32> to vector<256x1xf32>
      %cst_23 = arith.constant 1.280000e+02 : f32
      %35 = vector.broadcast %cst_23 : f32 to vector<256x1xf32>
      %36 = arith.divf %34, %35 : vector<256x1xf32>
      %cst_24 = arith.constant 9.99999974E-6 : f32
      %37 = vector.broadcast %cst_24 : f32 to vector<256x1xf32>
      %38 = arith.addf %36, %37 : vector<256x1xf32>
      %39 = math.rsqrt %38 : vector<256x1xf32>
      %40 = vector.broadcast %39 : vector<256x1xf32> to vector<256x128xf32>
      %41 = arith.mulf %31, %40 : vector<256x128xf32>
      %c0_25 = arith.constant 0 : index
      %c0_26 = arith.constant 0 : index
      %42 = vector.load %arg7[%c0_25, %c0_26] : memref<1x128xf32, #tpu.memory_space<vmem>>, vector<1x128xf32>
      %43 = vector.broadcast %42 : vector<1x128xf32> to vector<256x128xf32>
      %44 = arith.mulf %41, %43 : vector<256x128xf32>
      %c0_27 = arith.constant 0 : index
      %c0_28 = arith.constant 0 : index
      %45 = vector.load %arg8[%c0_27, %c0_28] : memref<1x128xf32, #tpu.memory_space<vmem>>, vector<1x128xf32>
      %46 = vector.broadcast %45 : vector<1x128xf32> to vector<256x128xf32>
      %47 = arith.addf %44, %46 : vector<256x128xf32>
      %48 = arith.truncf %47 : vector<256x128xf32> to vector<256x128xbf16>
      %c0_29 = arith.constant 0 : index
      %c0_30 = arith.constant 0 : index
      %49 = vector.load %arg9[%c0_29, %c0_30] : memref<256x128xbf16, #tpu.memory_space<vmem>>, vector<256x128xbf16>
      tpu.vector_store %arg9[%c0_29, %c0_30], %48 {strides = array<i32>} : memref<256x128xbf16, #tpu.memory_space<vmem>>, vector<256x128xbf16>,
    } else {
    }
    return
  }
  func.func @transform_0(%arg0: i32, %arg1: i32) -> (i32, i32) {
    %c0_i32 = arith.constant 0 : i32
    %c0_i32_0 = arith.constant 0 : i32
    return %arg0, %c0_i32 : i32, i32
  }
  func.func @transform_1(%arg0: i32, %arg1: i32) -> (i32, i32) {
    %c0_i32 = arith.constant 0 : i32
    %c0_i32_0 = arith.constant 0 : i32
    return %c0_i32, %arg1 : i32, i32
  }
  func.func @transform_2(%arg0: i32, %arg1: i32) -> (i32, i32) {
    %c0_i32 = arith.constant 0 : i32
    %c0_i32_0 = arith.constant 0 : i32
    return %c0_i32, %arg1 : i32, i32
  }
  func.func @transform_3(%arg0: i32, %arg1: i32) -> (i32, i32) {
    %c0_i32 = arith.constant 0 : i32
    %c0_i32_0 = arith.constant 0 : i32
    return %arg1, %c0_i32 : i32, i32
  }
  func.func @transform_4(%arg0: i32, %arg1: i32) -> (i32, i32) {
    %c0_i32 = arith.constant 0 : i32
    %c0_i32_0 = arith.constant 0 : i32
    %c0_i32_1 = arith.constant 0 : i32
    return %c0_i32, %c0_i32_0 : i32, i32
  }
  func.func @transform_5(%arg0: i32, %arg1: i32) -> (i32, i32) {
    %c0_i32 = arith.constant 0 : i32
    %c0_i32_0 = arith.constant 0 : i32
    %c0_i32_1 = arith.constant 0 : i32
    return %c0_i32, %c0_i32_0 : i32, i32
  }
  func.func @transform_6(%arg0: i32, %arg1: i32) -> (i32, i32) {
    %c0_i32 = arith.constant 0 : i32
    %c0_i32_0 = arith.constant 0 : i32
    %c0_i32_1 = arith.constant 0 : i32
    return %c0_i32, %c0_i32_0 : i32, i32
  }
  func.func @transform_7(%arg0: i32, %arg1: i32) -> (i32, i32) {
    %c0_i32 = arith.constant 0 : i32
    %c0_i32_0 = arith.constant 0 : i32
    return %arg0, %c0_i32 : i32, i32
  }
}

</mosaic_0001>

<bundles_post_ra>
// kernel: coordinate_transformer_forward.5
= control target key start
LH: loop header
LB: loop body
LE: loop exit
PB: predicated region body
PF: predicated region fallthrough
CT: control target
= control target key end

     0   :  { %vm89_vm0 = vcmask 261120   ;;  %s1089_s2 = inlined_call_operand.vmem [shape: bf16[32,128], index: 2, kind: input, shape index: {}]   ;;  %s1090_s0 = inlined_call_operand.vmem [shape: f32[256,32], index: 0, kind: input, shape index: {}]   ;;  %s1091_s3 = inlined_call_operand.vmem [shape: f32[1,128], index: 3, kind: input, shape index: {}]   ;;  %s1092_s1 = inlined_call_operand.vmem [shape: f32[256,128], index: 1, kind: input, shape index: {}]   ;;  %s1093_s4 = inlined_call_operand.vmem [shape: bf16[256,128], index: 4, kind: output, shape index: {}]  }
   0x1   :  { %v763_v0 = vld [vmem:[%s1089_s2] sm:$0xff]   ;;  %v764_v1 = vld [vmem:[%s1089_s2 + $0x8] sm:$0xff]   ;;  %v20_v7 = vld [vmem:[%s1090_s0 + $0x10] sm:$0xff] }
   0x2   :  { %723 = vmatprep.subr.bf16.mxu0 %v763_v0  ;;  %759 = vmatprep.subr.bf16.mxu1 %v763_v0  ;;  %v18_v2 = vld [vmem:[%s1090_s0] sm:$0xff]  ;;  %v19_v3 = vld [vmem:[%s1090_s0 + $0x8] sm:$0xff]  ;;  %v21_v8 = vld [vmem:[%s1090_s0 + $0x18] sm:$0xff] }
   0x3   :  { %v34_v4 = vld [vmem:[%s1090_s0 + $0x80] sm:$0xff]  ;;  %724 = vmatpush3.bf16.msra.mxu0 %v763_v0  ;;  %761 = vmatpush3.bf16.msra.mxu1 %v763_v0  ;;  %v50_v5 = vpack.c.bf16 %v19_v3, %v18_v2  ;;  %v35_v6 = vld [vmem:[%s1090_s0 + $0x88] sm:$0xff]  ;;  %v36_v10 = vld [vmem:[%s1090_s0 + $0x90] sm:$0xff]  ;;  %v51_v16 = vpack.c.bf16 %v21_v8, %v20_v7 }
   0x4   :  { %725 = vmatprep.subr.bf16.mxu0 %v764_v1  ;;  %760 = vmatprep.subr.bf16.mxu1 %v764_v1  ;;  %v58_v9 = vpack.c.bf16 %v35_v6, %v34_v4  ;;  %v37_v11 = vld [vmem:[%s1090_s0 + $0x98] sm:$0xff]  ;;  %v22_v12 = vld [vmem:[%s1090_s0 + $0x20] sm:$0xff]  ;;  %v23_v13 = vld [vmem:[%s1090_s0 + $0x28] sm:$0xff] }
   0x5   :  { %727 = vmatprep.mubr.msk.bf16.mxu0 %vm89_vm0, %v50_v5  ;;  %v38_v14 = vld [vmem:[%s1090_s0 + $0xa0] sm:$0xff]  ;;  %v39_v15 = vld [vmem:[%s1090_s0 + $0xa8] sm:$0xff]  ;;  %v59_v17 = vpack.c.bf16 %v37_v11, %v36_v10  ;;  %v52_v18 = vpack.c.bf16 %v23_v13, %v22_v12  ;;  %v24_v20 = vld [vmem:[%s1090_s0 + $0x30] sm:$0xff] }
   0x6   :  { %743 = vmatprep.mubr.msk.bf16.mxu1 %vm89_vm0, %v58_v9  ;;  %v60_v19 = vpack.c.bf16 %v39_v15, %v38_v14  ;;  %v25_v21 = vld [vmem:[%s1090_s0 + $0x38] sm:$0xff]  ;;  %v40_v22 = vld [vmem:[%s1090_s0 + $0xb0] sm:$0xff]  ;;  %v26_v24 = vld [vmem:[%s1090_s0 + $0x40] sm:$0xff] }
   0x7   :  { %726 = vmatpush3.bf16.msra.mxu0 %v764_v1  ;;  %762 = vmatpush3.bf16.msra.mxu1 %v764_v1  ;;  %v41_v23 = vld [vmem:[%s1090_s0 + $0xb8] sm:$0xff]  ;;  %v27_v25 = vld [vmem:[%s1090_s0 + $0x48] sm:$0xff]  ;;  %v42_v26 = vld [vmem:[%s1090_s0 + $0xc0] sm:$0xff]  ;;  %v53_v28 = vpack.c.bf16 %v25_v21, %v24_v20 }
   0x8   :  { %v43_v27 = vld [vmem:[%s1090_s0 + $0xc8] sm:$0xff]  ;;  %v61_v29 = vpack.c.bf16 %v41_v23, %v40_v22  ;;  %v54_v30 = vpack.c.bf16 %v27_v25, %v26_v24  ;;  %v28_v32 = vld [vmem:[%s1090_s0 + $0x50] sm:$0xff]  ;;  %v29_v33 = vld [vmem:[%s1090_s0 + $0x58] sm:$0xff] }
   0x9   :  { %v62_v31 = vpack.c.bf16 %v43_v27, %v42_v26  ;;  %v44_v34 = vld [vmem:[%s1090_s0 + $0xd0] sm:$0xff]  ;;  %v45_v35 = vld [vmem:[%s1090_s0 + $0xd8] sm:$0xff]  ;;  %v30_v36 = vld [vmem:[%s1090_s0 + $0x60] sm:$0xff]  ;;  %v55_v40 = vpack.c.bf16 %v29_v33, %v28_v32 }
   0xa   :  { %728 = vmatmul.mubr.msk.bf16.vlgmr.msra.gmra.mrb[0].mxu0 %vm89_vm0, %v51_v16  ;;  %744 = vmatmul.mubr.msk.bf16.vlgmr.msra.gmra.mrb[0].mxu1 %vm89_vm0, %v59_v17  ;;  %v31_v37 = vld [vmem:[%s1090_s0 + $0x68] sm:$0xff]  ;;  %v46_v38 = vld [vmem:[%s1090_s0 + $0xe0] sm:$0xff]  ;;  %v63_v41 = vpack.c.bf16 %v45_v35, %v44_v34  ;;  %v32_v44 = vld [vmem:[%s1090_s0 + $0x70] sm:$0xff] }
   0xb   :  { %731 = vmatprep.mubr.msk.bf16.mxu0 %vm89_vm0, %v52_v18  ;;  %747 = vmatprep.mubr.msk.bf16.mxu1 %vm89_vm0, %v60_v19  ;;  %v47_v39 = vld [vmem:[%s1090_s0 + $0xe8] sm:$0xff]  ;;  %v56_v42 = vpack.c.bf16 %v31_v37, %v30_v36  ;;  %v33_v45 = vld [vmem:[%s1090_s0 + $0x78] sm:$0xff]  ;;  %v48_v46 = vld [vmem:[%s1090_s0 + $0xf0] sm:$0xff] }
   0xc   :  { %v64_v43 = vpack.c.bf16 %v47_v39, %v46_v38  ;;  %v49_v47 = vld [vmem:[%s1090_s0 + $0xf8] sm:$0xff]  ;;  %v57_v48 = vpack.c.bf16 %v33_v45, %v32_v44  ;;  %v911_v50 = vld [vmem:[%s1091_s3] ss:$0 sm:$0xff]  ;;  %v301_v54 = vld [vmem:[%s1092_s1 + $0x10] sm:$0xff] }
   0xd   :  { %v65_v49 = vpack.c.bf16 %v49_v47, %v48_v46  ;;  %v317_v56 = vld [vmem:[%s1092_s1 + $0x90] sm:$0xff]  ;;  %v299_v60 = vld [vmem:[%s1092_s1] sm:$0xff]  ;;  %v302_v63 = vld [vmem:[%s1092_s1 + $0x18] sm:$0xff] }
   0xe   :  { %v318_v1 = vld [vmem:[%s1092_s1 + $0x98] sm:$0xff]  ;;  %v315_v2 = vld [vmem:[%s1092_s1 + $0x80] sm:$0xff]  ;;  %v300_v6 = vld [vmem:[%s1092_s1 + $0x8] sm:$0xff] }
   0xf   :  { %v316_v8 = vld [vmem:[%s1092_s1 + $0x88] sm:$0xff]  ;;  %v305_v26 = vld [vmem:[%s1092_s1 + $0x30] sm:$0xff]  ;;  %v303_v32 = vld [vmem:[%s1092_s1 + $0x20] sm:$0xff] }
  0x10   :  { %v306_v35 = vld [vmem:[%s1092_s1 + $0x38] sm:$0xff]  ;;  %v319_v38 = vld [vmem:[%s1092_s1 + $0xa0] sm:$0xff]  ;;  %v320_v44 = vld [vmem:[%s1092_s1 + $0xa8] sm:$0xff] }
  0x11   :  { %v322_v37 = vld [vmem:[%s1092_s1 + $0xb8] sm:$0xff] }
  0x12   :  { %732 = vmatmul.mubr.msk.bf16.gmra.mrb[4].mxu0 %vm89_vm0, %v53_v28  ;;  %748 = vmatmul.mubr.msk.bf16.gmra.mrb[4].mxu1 %vm89_vm0, %v61_v29  ;;  %v321_v28 = vld [vmem:[%s1092_s1 + $0xb0] sm:$0xff] }
  0x13   :  { %735 = vmatprep.mubr.msk.bf16.mxu0 %vm89_vm0, %v54_v30  ;;  %751 = vmatprep.mubr.msk.bf16.mxu1 %vm89_vm0, %v62_v31 }
  0x1a   :  { %736 = vmatmul.mubr.msk.bf16.gmra.mrb[8].mxu0 %vm89_vm0, %v55_v40  ;;  %752 = vmatmul.mubr.msk.bf16.gmra.mrb[8].mxu1 %vm89_vm0, %v63_v41 }
  0x1b   :  { %739 = vmatprep.mubr.msk.bf16.mxu0 %vm89_vm0, %v56_v42  ;;  %755 = vmatprep.mubr.msk.bf16.mxu1 %vm89_vm0, %v64_v43  ;;  %v304_v42 = vld [vmem:[%s1092_s1 + $0x28] sm:$0xff] }
  0x22   :  { %740 = vmatmul.mubr.msk.bf16.gmra.mrb[12].mxu0 %vm89_vm0, %v57_v48  ;;  %756 = vmatmul.mubr.msk.bf16.gmra.mrb[12].mxu1 %vm89_vm0, %v65_v49 }
  0xdd   :  { %v729_v51 = vpop.f32.mrb[0].mxu0  ;;  %v745_v52 = vpop.f32.mrb[0].mxu1 }
  0xde   :  { %v181_v53 = vadd.f32 %v729_v51, %v911_v50  ;;  %v245_v55 = vadd.f32 %v745_v52, %v911_v50  ;;  %v172_v57 = vpop.f32.mrb[1].mxu0  ;;  %v236_v58 = vpop.f32.mrb[1].mxu1 }
  0xdf   :  { %v173_v59 = vadd.f32 %v911_v50, %v172_v57  ;;  %v237_v61 = vadd.f32 %v911_v50, %v236_v58  ;;  %v730_v62 = vpop.f32.mrb[2].mxu0  ;;  %v746_v0 = vpop.f32.mrb[2].mxu1 }
  0xe0   :  { %v184_v3 = vadd.f32 %v730_v62, %v911_v50  ;;  %v248_v4 = vadd.f32 %v746_v0, %v911_v50  ;;  %v175_v5 = vpop.f32.mrb[3].mxu0  ;;  %v239_v7 = vpop.f32.mrb[3].mxu1  ;;  %v333_v11 = vadd.f32 %v301_v54, %v181_v53  ;;  %v349_v12 = vadd.f32 %v317_v56, %v245_v55 }
  0xe1   :  { %v176_v9 = vadd.f32 %v911_v50, %v175_v5  ;;  %v240_v10 = vadd.f32 %v911_v50, %v239_v7  ;;  %v331_v15 = vadd.f32 %v299_v60, %v173_v59  ;;  %v347_v16 = vadd.f32 %v315_v2, %v237_v61  ;;  %v307_v5 = vld [vmem:[%s1092_s1 + $0x40] sm:$0xff] }
  0xe2   :  { %v334_v13 = vadd.f32 %v302_v63, %v184_v3  ;;  %v350_v14 = vadd.f32 %v318_v1, %v248_v4  ;;  %v309_v63 = vld [vmem:[%s1092_s1 + $0x50] sm:$0xff] }
  0xe3   :  { %v332_v17 = vadd.f32 %v300_v6, %v176_v9  ;;  %v348_v18 = vadd.f32 %v316_v8, %v240_v10  ;;  %v325_v1 = vld [vmem:[%s1092_s1 + $0xd0] sm:$0xff]  ;;  %v310_v8 = vld [vmem:[%s1092_s1 + $0x58] sm:$0xff] }
  0xe4   :  { %v618_v19 = vpack.c.bf16 %v334_v13, %v333_v11  ;;  %v658_v20 = vpack.c.bf16 %v350_v14, %v349_v12  ;;  %v326_v10 = vld [vmem:[%s1092_s1 + $0xd8] sm:$0xff]  ;;  %v323_v11 = vld [vmem:[%s1092_s1 + $0xc0] sm:$0xff] }
  0xe5   :  { %v613_v21 = vpack.c.bf16 %v332_v17, %v331_v15  ;;  %v653_v22 = vpack.c.bf16 %v348_v18, %v347_v16  ;;  %v733_v23 = vpop.f32.mrb[4].mxu0  ;;  %v749_v24 = vpop.f32.mrb[4].mxu1  ;;  %v308_v15 = vld [vmem:[%s1092_s1 + $0x48] sm:$0xff] }
  0xe6   :  { %690 = vst [vmem:[%s1093_s4 + $0x8] sm:$0xff] %v618_v19   ;;  %698 = vst [vmem:[%s1093_s4 + $0x48] sm:$0xff] %v658_v20   ;;  %v197_v25 = vadd.f32 %v733_v23, %v911_v50  ;;  %v261_v27 = vadd.f32 %v749_v24, %v911_v50  ;;  %v188_v29 = vpop.f32.mrb[5].mxu0  ;;  %v252_v30 = vpop.f32.mrb[5].mxu1  ;;  %v324_v17 = vld [vmem:[%s1092_s1 + $0xc8] sm:$0xff] }
  0xe7   :  { %614 = vst [vmem:[%s1093_s4] sm:$0xff] %v613_v21   ;;  %697 = vst [vmem:[%s1093_s4 + $0x40] sm:$0xff] %v653_v22   ;;  %v189_v31 = vadd.f32 %v911_v50, %v188_v29  ;;  %v253_v33 = vadd.f32 %v911_v50, %v252_v30  ;;  %v734_v34 = vpop.f32.mrb[6].mxu0  ;;  %v750_v36 = vpop.f32.mrb[6].mxu1 }
  0xe8   :  { %v200_v39 = vadd.f32 %v734_v34, %v911_v50  ;;  %v264_v40 = vadd.f32 %v750_v36, %v911_v50  ;;  %v191_v41 = vpop.f32.mrb[7].mxu0  ;;  %v255_v43 = vpop.f32.mrb[7].mxu1  ;;  %v337_v47 = vadd.f32 %v305_v26, %v197_v25  ;;  %v353_v48 = vadd.f32 %v321_v28, %v261_v27 }
  0xe9   :  { %v192_v45 = vadd.f32 %v911_v50, %v191_v41  ;;  %v256_v46 = vadd.f32 %v911_v50, %v255_v43  ;;  %v335_v52 = vadd.f32 %v303_v32, %v189_v31  ;;  %v351_v53 = vadd.f32 %v319_v38, %v253_v33  ;;  %v311_v41 = vld [vmem:[%s1092_s1 + $0x60] sm:$0xff] }
  0xea   :  { %v338_v49 = vadd.f32 %v306_v35, %v200_v39  ;;  %v354_v51 = vadd.f32 %v322_v37, %v264_v40  ;;  %v313_v35 = vld [vmem:[%s1092_s1 + $0x70] sm:$0xff] }
  0xeb   :  { %v336_v54 = vadd.f32 %v304_v42, %v192_v45  ;;  %v352_v55 = vadd.f32 %v320_v44, %v256_v46  ;;  %v329_v37 = vld [vmem:[%s1092_s1 + $0xf0] sm:$0xff]  ;;  %v314_v44 = vld [vmem:[%s1092_s1 + $0x78] sm:$0xff] }
  0xec   :  { %v628_v56 = vpack.c.bf16 %v338_v49, %v337_v47  ;;  %v668_v57 = vpack.c.bf16 %v354_v51, %v353_v48  ;;  %v330_v46 = vld [vmem:[%s1092_s1 + $0xf8] sm:$0xff]  ;;  %v327_v47 = vld [vmem:[%s1092_s1 + $0xe0] sm:$0xff] }
  0xed   :  { %v623_v58 = vpack.c.bf16 %v336_v54, %v335_v52  ;;  %v663_v59 = vpack.c.bf16 %v352_v55, %v351_v53  ;;  %v737_v60 = vpop.f32.mrb[8].mxu0  ;;  %v753_v61 = vpop.f32.mrb[8].mxu1  ;;  %v312_v52 = vld [vmem:[%s1092_s1 + $0x68] sm:$0xff] }
  0xee   :  { %692 = vst [vmem:[%s1093_s4 + $0x18] sm:$0xff] %v628_v56   ;;  %700 = vst [vmem:[%s1093_s4 + $0x58] sm:$0xff] %v668_v57   ;;  %v213_v62 = vadd.f32 %v737_v60, %v911_v50  ;;  %v277_v0 = vadd.f32 %v753_v61, %v911_v50  ;;  %v204_v2 = vpop.f32.mrb[9].mxu0  ;;  %v268_v3 = vpop.f32.mrb[9].mxu1  ;;  %v328_v54 = vld [vmem:[%s1092_s1 + $0xe8] sm:$0xff] }
  0xef   :  { %691 = vst [vmem:[%s1093_s4 + $0x10] sm:$0xff] %v623_v58   ;;  %699 = vst [vmem:[%s1093_s4 + $0x50] sm:$0xff] %v663_v59   ;;  %v205_v4 = vadd.f32 %v911_v50, %v204_v2  ;;  %v269_v6 = vadd.f32 %v911_v50, %v268_v3  ;;  %v738_v7 = vpop.f32.mrb[10].mxu0  ;;  %v754_v9 = vpop.f32.mrb[10].mxu1 }
  0xf0   :  { %v216_v12 = vadd.f32 %v738_v7, %v911_v50  ;;  %v280_v13 = vadd.f32 %v754_v9, %v911_v50  ;;  %v207_v14 = vpop.f32.mrb[11].mxu0  ;;  %v271_v16 = vpop.f32.mrb[11].mxu1  ;;  %v341_v20 = vadd.f32 %v309_v63, %v213_v62  ;;  %v357_v21 = vadd.f32 %v325_v1, %v277_v0 }
  0xf1   :  { %v208_v18 = vadd.f32 %v911_v50, %v207_v14  ;;  %v272_v19 = vadd.f32 %v911_v50, %v271_v16  ;;  %v339_v24 = vadd.f32 %v307_v5, %v205_v4  ;;  %v355_v25 = vadd.f32 %v323_v11, %v269_v6 }
  0xf2   :  { %v342_v22 = vadd.f32 %v310_v8, %v216_v12  ;;  %v358_v23 = vadd.f32 %v326_v10, %v280_v13 }
  0xf3   :  { %v340_v26 = vadd.f32 %v308_v15, %v208_v18  ;;  %v356_v27 = vadd.f32 %v324_v17, %v272_v19 }
  0xf4   :  { %v638_v28 = vpack.c.bf16 %v342_v22, %v341_v20  ;;  %v678_v29 = vpack.c.bf16 %v358_v23, %v357_v21 }
  0xf5   :  { %v633_v30 = vpack.c.bf16 %v340_v26, %v339_v24  ;;  %v673_v31 = vpack.c.bf16 %v356_v27, %v355_v25  ;;  %v741_v32 = vpop.f32.mrb[12].mxu0  ;;  %v757_v33 = vpop.f32.mrb[12].mxu1 }
  0xf6   :  { %694 = vst [vmem:[%s1093_s4 + $0x28] sm:$0xff] %v638_v28   ;;  %702 = vst [vmem:[%s1093_s4 + $0x68] sm:$0xff] %v678_v29   ;;  %v229_v34 = vadd.f32 %v741_v32, %v911_v50  ;;  %v293_v36 = vadd.f32 %v757_v33, %v911_v50  ;;  %v220_v38 = vpop.f32.mrb[13].mxu0  ;;  %v284_v39 = vpop.f32.mrb[13].mxu1 }
  0xf7   :  { %693 = vst [vmem:[%s1093_s4 + $0x20] sm:$0xff] %v633_v30   ;;  %701 = vst [vmem:[%s1093_s4 + $0x60] sm:$0xff] %v673_v31   ;;  %v221_v40 = vadd.f32 %v911_v50, %v220_v38  ;;  %v285_v42 = vadd.f32 %v911_v50, %v284_v39  ;;  %v742_v43 = vpop.f32.mrb[14].mxu0  ;;  %v758_v45 = vpop.f32.mrb[14].mxu1 }
  0xf8   :  { %v232_v48 = vadd.f32 %v742_v43, %v911_v50  ;;  %v296_v49 = vadd.f32 %v758_v45, %v911_v50  ;;  %v223_v51 = vpop.f32.mrb[15].mxu0  ;;  %v287_v53 = vpop.f32.mrb[15].mxu1  ;;  %v345_v57 = vadd.f32 %v313_v35, %v229_v34  ;;  %v361_v58 = vadd.f32 %v329_v37, %v293_v36 }
  0xf9   :  { %v224_v55 = vadd.f32 %v911_v50, %v223_v51  ;;  %v288_v56 = vadd.f32 %v911_v50, %v287_v53  ;;  %v343_v61 = vadd.f32 %v311_v41, %v221_v40  ;;  %v359_v62 = vadd.f32 %v327_v47, %v285_v42 }
  0xfa   :  { %v346_v59 = vadd.f32 %v314_v44, %v232_v48  ;;  %v362_v60 = vadd.f32 %v330_v46, %v296_v49 }
  0xfb   :  { %v344_v63 = vadd.f32 %v312_v52, %v224_v55  ;;  %v360_v0 = vadd.f32 %v328_v54, %v288_v56 }
  0xfc   :  { %v648_v1 = vpack.c.bf16 %v346_v59, %v345_v57  ;;  %v688_v2 = vpack.c.bf16 %v362_v60, %v361_v58 }
  0xfd   :  { %v643_v3 = vpack.c.bf16 %v344_v63, %v343_v61  ;;  %v683_v4 = vpack.c.bf16 %v360_v0, %v359_v62 }
  0xfe   :  { %696 = vst [vmem:[%s1093_s4 + $0x38] sm:$0xff] %v648_v1   ;;  %704 = vst [vmem:[%s1093_s4 + $0x78] sm:$0xff] %v688_v2  }
  0xff   :  { %695 = vst [vmem:[%s1093_s4 + $0x30] sm:$0xff] %v643_v3   ;;  %703 = vst [vmem:[%s1093_s4 + $0x70] sm:$0xff] %v683_v4  }

// kernel: coordinate_transformer_forward.6
= control target key start
LH: loop header
LB: loop body
LE: loop exit
PB: predicated region body
PF: predicated region fallthrough
CT: control target
= control target key end

     0   :  { %s5082_s27 = smov 0   ;;  %s6576_s0 = inlined_call_operand.vmem [shape: bf16[2,128,128], index: 0, kind: input, shape index: {}]   ;;  %s6577_s1 = inlined_call_operand.vmem [shape: f32[2,1,128], index: 1, kind: input, shape index: {}]   ;;  %s6578_s2 = inlined_call_operand.vmem [shape: bf16[128,384], index: 2, kind: input, shape index: {}]   ;;  %s6579_s3 = inlined_call_operand.vmem [shape: f32[1,384], index: 3, kind: input, shape index: {}]   ;;  %s6580_s4 = inlined_call_operand.vmem [shape: bf16[128,128], index: 4, kind: input, shape index: {}]   ;;  %s6581_s5 = inlined_call_operand.vmem [shape: f32[1,128], index: 5, kind: input, shape index: {}]   ;;  %s6582_s6 = inlined_call_operand.vmem [shape: f32[1,128], index: 6, kind: input, shape index: {}]   ;;  %s6583_s7 = inlined_call_operand.vmem [shape: f32[1,128], index: 7, kind: input, shape index: {}]   ;;  %s6584_s8 = inlined_call_operand.vmem [shape: bf16[2,128,128], index: 8, kind: output, shape index: {}]  }
   0x1 LB: > { %s3723_s28 = sadd.s32 4294967295, %s5032_s27   ;;  %p3727_p0 = scmp.ge.s32.totalorder %s5032_s27, 1  ;;  %s5032_s27 = sphi %s5082_s27, %s18_s27  }
   0x2   : > { %p270_p1 = scmp.lt.s32.totalorder %s5032_s27, 3 }
   0x4   : > { %p271_p2 = pnand %p3727_p0, %p270_p1 }
   0x6   : > { %274 = sbr.rel (%p271_p2) target bundleno = 2991 (0xbaf), region = 52 }
   0xd   : > { %v4681_v0 = vld [vmem:[%s6578_s2 + $0x4] ss:$12 sps:$4 sm:$0xff]   ;;  %v4682_v1 = vld [vmem:[%s6578_s2 + $0x1c] ss:$12 sps:$4 sm:$0xff]   ;;  %v4683_v2 = vld [vmem:[%s6578_s2 + $0x34] ss:$12 sps:$4 sm:$0xff]  }
   0xe   : > { %4174 = vmatprep.subr.bf16.mxu1 %v4681_v0  ;;  %v4684_v3 = vld [vmem:[%s6578_s2 + $0x4c] ss:$12 sps:$4 sm:$0xff]   ;;  %p307_p3 = scmp.lt.s32.totalorder %s3723_s28, 1  ;;  %v4685_v6 = vld [vmem:[%s6578_s2 + $0x64] ss:$12 sps:$4 sm:$0xff]   ;;  %vm936_vm0 = vcmask 261120  }
   0xf   : > { %4175 = vmatpush3.bf16.msra.mxu1 %v4681_v0  ;;  %v4693_v4 = vld [vmem:[%s6578_s2] ss:$12 sps:$4 sm:$0xff]   ;;  %v4694_v5 = vld [vmem:[%s6578_s2 + $0x18] ss:$12 sps:$4 sm:$0xff]   ;;  %v4696_v7 = vld [vmem:[%s6578_s2 + $0x30] ss:$12 sps:$4 sm:$0xff]  }
  0x10   : > { %4176 = vmatprep.subr.bf16.mxu1 %v4682_v1  ;;  %s6662_s28 = smov (!%p307_p3, %s3723_s28), 1  ;;  %4142 = vmatprep.subr.bf16.mxu0 %v4693_v4  ;;  %v4686_v9 = vld [vmem:[%s6578_s2 + $0x7c] ss:$12 sps:$4 sm:$0xff]   ;;  %v4687_v11 = vld [vmem:[%s6578_s2 + $0x94] ss:$12 sps:$4 sm:$0xff]   ;;  %s5034_s25 = smov 96  }
  0x11   : > { %s3861_s21 = sshll.u32 %s6662_s28, 6  ;;  %4143 = vmatpush3.bf16.msra.mxu0 %v4693_v4  ;;  %v4698_v10 = vld [vmem:[%s6578_s2 + $0x48] ss:$12 sps:$4 sm:$0xff]   ;;  %v4699_v12 = vld [vmem:[%s6578_s2 + $0x60] ss:$12 sps:$4 sm:$0xff]   ;;  %s5354_s12 = scalar_lea.vmem %s6577_s1, %s6662_s28 }
  0x12   : > { %s5119_s24 = scalar_lea.vmem %s6576_s0, %s3861_s21  ;;  %4144 = vmatprep.subr.bf16.mxu0 %v4694_v5  ;;  %v4688_v13 = vld [vmem:[%s6578_s2 + $0xac] ss:$12 sps:$4 sm:$0xff]   ;;  %v4702_v17 = vld [vmem:[%s6578_s2 + $0x90] ss:$12 sps:$4 sm:$0xff]   ;;  %v4704_v18 = vld [vmem:[%s6578_s2 + $0xa8] ss:$12 sps:$4 sm:$0xff]   ;;  %s6523_s20 = scalar_lea.vmem %s6584_s8, %s3861_s21 }
  0x13   : > { %4177 = vmatpush3.bf16.msra.mxu1 %v4682_v1  ;;  %v5125_v8 = vld [vmem:[%s5119_s24] sm:$0xff]   ;;  %v323_v14 = vld [vmem:[%s5119_s24 + $0x8] sm:$0xff]   ;;  %v325_v16 = vld [vmem:[%s5119_s24 + $0x10] sm:$0xff]   ;;  %s5035_s13 = smov 64   ;;  %s5036_s14 = smov 32  }
  0x14   : > { %4178 = vmatprep.subr.bf16.mxu1 %v4683_v2  ;;  %4190 = vmatprep.mubr.bf16.mxu1 %v5125_v8  ;;  %v4700_v15 = vld [vmem:[%s6578_s2 + $0x78] ss:$12 sps:$4 sm:$0xff]   ;;  %v4705_v21 = vld [vmem:[%s6578_s2 + $0x8] ss:$12 sps:$4 sm:$0xff]   ;;  %v4706_v22 = vld [vmem:[%s6578_s2 + $0x20] ss:$12 sps:$4 sm:$0xff]  }
  0x15   : > { %4145 = vmatpush3.bf16.msra.mxu0 %v4694_v5  ;;  %4158 = vmatprep.mubr.bf16.mxu0 %v5125_v8  ;;  %v327_v19 = vld [vmem:[%s5119_s24 + $0x18] sm:$0xff]   ;;  %v329_v20 = vld [vmem:[%s5119_s24 + $0x20] sm:$0xff]   ;;  %v331_v23 = vld [vmem:[%s5119_s24 + $0x28] sm:$0xff]  }
  0x16   : > { %4146 = vmatprep.subr.bf16.mxu0 %v4696_v7  ;;  %v333_v24 = vld [vmem:[%s5119_s24 + $0x30] sm:$0xff]   ;;  %v4707_v25 = vld [vmem:[%s6578_s2 + $0x38] ss:$12 sps:$4 sm:$0xff]   ;;  %v4710_v29 = vld [vmem:[%s6578_s2 + $0x80] ss:$12 sps:$4 sm:$0xff]  }
  0x17   : > { %4179 = vmatpush3.bf16.msra.mxu1 %v4683_v2  ;;  %v4708_v26 = vld [vmem:[%s6578_s2 + $0x50] ss:$12 sps:$4 sm:$0xff]   ;;  %v4709_v28 = vld [vmem:[%s6578_s2 + $0x68] ss:$12 sps:$4 sm:$0xff]   ;;  %v4711_v30 = vld [vmem:[%s6578_s2 + $0x98] ss:$12 sps:$4 sm:$0xff]  }
  0x18   : > { %4180 = vmatprep.subr.bf16.mxu1 %v4684_v3  ;;  %v335_v27 = vld [vmem:[%s5119_s24 + $0x38] sm:$0xff]   ;;  %v5188_v33 = vld [vmem:[%s6579_s3 + $0x1] ss:$0 sm:$0xff]  ;;  %v5203_v43 = vld [vmem:[%s6579_s3] ss:$0 sm:$0xff] }
  0x19   : > { %4147 = vmatpush3.bf16.msra.mxu0 %v4696_v7  ;;  %v4712_v31 = vld [vmem:[%s6578_s2 + $0xb0] ss:$12 sps:$4 sm:$0xff]  }
  0x1a   : > { %4148 = vmatprep.subr.bf16.mxu0 %v4698_v10 }
  0x1b   : > { %4181 = vmatpush3.bf16.msra.mxu1 %v4684_v3 }
  0x1c   : > { %4182 = vmatprep.subr.bf16.mxu1 %v4685_v6 }
  0x1d   : > { %4149 = vmatpush3.bf16.msra.mxu0 %v4698_v10 }
  0x1e   : > { %4150 = vmatprep.subr.bf16.mxu0 %v4699_v12 }
  0x1f   : > { %4183 = vmatpush3.bf16.msra.mxu1 %v4685_v6 }
  0x20   : > { %4184 = vmatprep.subr.bf16.mxu1 %v4686_v9 }
  0x21   : > { %4151 = vmatpush3.bf16.msra.mxu0 %v4699_v12 }
  0x22   : > { %4152 = vmatprep.subr.bf16.mxu0 %v4700_v15 }
  0x23   : > { %4185 = vmatpush3.bf16.msra.mxu1 %v4686_v9 }
  0x24   : > { %4186 = vmatprep.subr.bf16.mxu1 %v4687_v11 }
  0x25   : > { %4153 = vmatpush3.bf16.msra.mxu0 %v4700_v15 }
  0x26   : > { %4154 = vmatprep.subr.bf16.mxu0 %v4702_v17 }
  0x27   : > { %4187 = vmatpush3.bf16.msra.mxu1 %v4687_v11 }
  0x28   : > { %4188 = vmatprep.subr.bf16.mxu1 %v4688_v13 }
  0x29   : > { %4155 = vmatpush3.bf16.msra.mxu0 %v4702_v17 }
  0x2a   : > { %4156 = vmatprep.subr.bf16.mxu0 %v4704_v18 }
  0x2b   : > { %4189 = vmatpush3.bf16.msra.mxu1 %v4688_v13 }
  0x2d   : > { %4157 = vmatpush3.bf16.msra.mxu0 %v4704_v18 }
  0x2e   : > { %4191 = vmatmul.mubr.bf16.vlgmr.msra.gmra.mrb[0].mxu1 %v323_v14  ;;  %4206 = vmatprep.subr.bf16.mxu0 %v4705_v21 }
  0x2f   : > { %4194 = vmatprep.mubr.bf16.mxu1 %v325_v16 }
  0x30   : > { %4159 = vmatmul.mubr.bf16.vlgmr.msra.gmra.mrb[0].mxu0 %v323_v14 }
  0x31   : > { %4207 = vmatpush3.bf16.msra.mxu0 %v4705_v21  ;;  %4162 = vmatprep.mubr.bf16.mxu0 %v325_v16 }
  0x32   : > { %4208 = vmatprep.subr.bf16.mxu0 %v4706_v22 }
  0x35   : > { %4209 = vmatpush3.bf16.msra.mxu0 %v4706_v22 }
  0x36   : > { %4195 = vmatmul.mubr.bf16.gmra.mrb[4].mxu1 %v327_v19  ;;  %4210 = vmatprep.subr.bf16.mxu0 %v4707_v25 }
  0x37   : > { %4198 = vmatprep.mubr.bf16.mxu1 %v329_v20 }
  0x38   : > { %4163 = vmatmul.mubr.bf16.gmra.mrb[4].mxu0 %v327_v19 }
  0x39   : > { %4211 = vmatpush3.bf16.msra.mxu0 %v4707_v25  ;;  %4166 = vmatprep.mubr.bf16.mxu0 %v329_v20 }
  0x3a   : > { %4212 = vmatprep.subr.bf16.mxu0 %v4708_v26 }
  0x3d   : > { %4213 = vmatpush3.bf16.msra.mxu0 %v4708_v26 }
  0x3e   : > { %4199 = vmatmul.mubr.bf16.gmra.mrb[8].mxu1 %v331_v23  ;;  %4214 = vmatprep.subr.bf16.mxu0 %v4709_v28 }
  0x3f   : > { %4202 = vmatprep.mubr.bf16.mxu1 %v333_v24 }
  0x40   : > { %4167 = vmatmul.mubr.bf16.gmra.mrb[8].mxu0 %v331_v23 }
  0x41   : > { %4215 = vmatpush3.bf16.msra.mxu0 %v4709_v28  ;;  %4170 = vmatprep.mubr.bf16.mxu0 %v333_v24 }
  0x42   : > { %4216 = vmatprep.subr.bf16.mxu0 %v4710_v29 }
  0x45   : > { %4217 = vmatpush3.bf16.msra.mxu0 %v4710_v29 }
  0x46   : > { %4203 = vmatmul.mubr.bf16.gmra.mrb[12].mxu1 %v335_v27  ;;  %4218 = vmatprep.subr.bf16.mxu0 %v4711_v30 }
  0x48   : > { %4171 = vmatmul.mubr.bf16.gmra.mrb[12].mxu0 %v335_v27 }
  0x49   : > { %4219 = vmatpush3.bf16.msra.mxu0 %v4711_v30  ;;  %4222 = vmatprep.mubr.bf16.mxu0 %v5125_v8 }
  0x4a   : > { %4220 = vmatprep.subr.bf16.mxu0 %v4712_v31 }
  0x4d   : > { %4221 = vmatpush3.bf16.msra.mxu0 %v4712_v31 }
  0x50   : > { %4223 = vmatmul.mubr.bf16.vlgmr.msra.gmra.mrb[16].mxu0 %v323_v14 }
  0x51   : > { %4226 = vmatprep.mubr.bf16.mxu0 %v325_v16 }
  0x58   : > { %4227 = vmatmul.mubr.bf16.gmra.mrb[20].mxu0 %v327_v19 }
  0x59   : > { %4230 = vmatprep.mubr.bf16.mxu0 %v329_v20 }
  0x60   : > { %4231 = vmatmul.mubr.bf16.gmra.mrb[24].mxu0 %v331_v23 }
  0x61   : > { %4234 = vmatprep.mubr.bf16.mxu0 %v333_v24 }
  0x68   : > { %4235 = vmatmul.mubr.bf16.gmra.mrb[28].mxu0 %v335_v27 }
 0x101   : > { %v4192_v32 = vpop.f32.mrb[0].mxu1 }
 0x102   : > { %v683_v34 = vpop.f32.mrb[1].mxu1  ;;  %v692_v36 = vadd.f32 %v4192_v32, %v5188_v33 }
 0x103   : > { %v4193_v35 = vpop.f32.mrb[2].mxu1  ;;  %v684_v39 = vadd.f32 %v5188_v33, %v683_v34  ;;  %v4160_v48 = vpop.f32.mrb[0].mxu0 }
 0x104   : > { %v695_v37 = vadd.f32 %v4193_v35, %v5188_v33  ;;  %v686_v38 = vpop.f32.mrb[3].mxu1  ;;  %v516_v51 = vadd.f32 %v4160_v48, %v5203_v43  ;;  %v507_v52 = vpop.f32.mrb[1].mxu0 }
 0x105   : > { %v687_v40 = vadd.f32 %v5188_v33, %v686_v38  ;;  %v508_v55 = vadd.f32 %v5203_v43, %v507_v52  ;;  %v4161_v56 = vpop.f32.mrb[2].mxu0 }
 0x106   : > { %v5194_v41 = vpack.c.bf16 %v695_v37, %v692_v36  ;;  %v519_v58 = vadd.f32 %v4161_v56, %v5203_v43  ;;  %v510_v59 = vpop.f32.mrb[3].mxu0 }
 0x107   : > { %v5196_v42 = vpack.c.bf16 %v687_v40, %v684_v39  ;;  %v511_v61 = vadd.f32 %v5203_v43, %v510_v59 }
 0x108   : > { %1377 = vrot.lane.b32.xlu1 %v5194_v41, %s5034_s25  ;;  %v5225_v63 = vpack.c.bf16 %v519_v58, %v516_v51  ;;  %v965_v1 = vsel %vm936_vm0, %v5194_v41, 0  ;;  %v3758_v58 = vld [vmem:[%s6579_s3 + $0x2] ss:$0 sm:$0xff] }
 0x109   : > { %1375 = vrot.lane.b32.xlu0 %v5196_v42, %s5034_s25  ;;  %4638 = vmatprep.subr.msk.bf16.mxu1 %vm936_vm0, %v5196_v42  ;;  %v962_v44 = vsel %vm936_vm0, %v5196_v42, 0  ;;  %v4196_v45 = vpop.f32.mrb[4].mxu1  ;;  %v5227_v0 = vpack.c.bf16 %v511_v61, %v508_v55 }
 0x10a   : > { %4239 = vmatpush3.bf16.xpose.msra.mxu1 %v962_v44  ;;  %v708_v46 = vadd.f32 %v4196_v45, %v5188_v33  ;;  %v699_v47 = vpop.f32.mrb[5].mxu1 }
 0x10b   : > { %4639 = vmatprep.subr.msk.bf16.mxu1 %vm936_vm0, %v5194_v41  ;;  %v700_v49 = vadd.f32 %v5188_v33, %v699_v47  ;;  %v4197_v50 = vpop.f32.mrb[6].mxu1  ;;  %4254 = vmatprep.mubr.msk.bf16.mxu1 %vm936_vm0, %v5227_v0  ;;  %v4164_v5 = vpop.f32.mrb[4].mxu0 }
 0x10c   : > { %v711_v53 = vadd.f32 %v4197_v50, %v5188_v33  ;;  %v702_v54 = vpop.f32.mrb[7].mxu1  ;;  %v532_v8 = vadd.f32 %v4164_v5, %v5203_v43  ;;  %v523_v9 = vpop.f32.mrb[5].mxu0 }
 0x10d   : > { %v703_v57 = vadd.f32 %v5188_v33, %v702_v54  ;;  %v524_v12 = vadd.f32 %v5203_v43, %v523_v9  ;;  %v4165_v13 = vpop.f32.mrb[6].mxu0 }
 0x10e   : > { %v5220_v60 = vpack.c.bf16 %v711_v53, %v708_v46  ;;  %v535_v15 = vadd.f32 %v4165_v13, %v5203_v43  ;;  %v526_v16 = vpop.f32.mrb[7].mxu0 }
 0x10f   : > { %v5223_v62 = vpack.c.bf16 %v703_v57, %v700_v49  ;;  %v527_v18 = vadd.f32 %v5203_v43, %v526_v16 }
 0x110   : > { %v5247_v20 = vpack.c.bf16 %v535_v15, %v532_v8  ;;  %v971_v47 = vsel %vm936_vm0, %v5220_v60, 0 }
 0x111   : > { %v4200_v2 = vpop.f32.mrb[8].mxu1  ;;  %v5249_v21 = vpack.c.bf16 %v527_v18, %v524_v12  ;;  %v968_v22 = vsel %vm936_vm0, %v5223_v62, 0 }
 0x112   : > { %4241 = vmatpush3.bf16.xpose.msra.mxu1 %v965_v1  ;;  %v724_v3 = vadd.f32 %v4200_v2, %v5188_v33  ;;  %v715_v4 = vpop.f32.mrb[9].mxu1 }
 0x113   : > { %4640 = vmatprep.subr.msk.bf16.mxu1 %vm936_vm0, %v5223_v62  ;;  %v716_v6 = vadd.f32 %v5188_v33, %v715_v4  ;;  %v4201_v7 = vpop.f32.mrb[10].mxu1  ;;  %v4168_v26 = vpop.f32.mrb[8].mxu0 }
 0x114   : > { %v727_v10 = vadd.f32 %v4201_v7, %v5188_v33  ;;  %v718_v11 = vpop.f32.mrb[11].mxu1  ;;  %v548_v29 = vadd.f32 %v4168_v26, %v5203_v43  ;;  %v539_v30 = vpop.f32.mrb[9].mxu0 }
 0x115   : > { %v719_v14 = vadd.f32 %v5188_v33, %v718_v11  ;;  %v540_v34 = vadd.f32 %v5203_v43, %v539_v30  ;;  %v4169_v35 = vpop.f32.mrb[10].mxu0 }
 0x116   : > { %v5242_v17 = vpack.c.bf16 %v727_v10, %v724_v3  ;;  %v551_v37 = vadd.f32 %v4169_v35, %v5203_v43  ;;  %v542_v38 = vpop.f32.mrb[11].mxu0 }
 0x117   : > { %v5245_v19 = vpack.c.bf16 %v719_v14, %v716_v6  ;;  %v543_v40 = vadd.f32 %v5203_v43, %v542_v38 }
 0x118   : > { %v5267_v45 = vpack.c.bf16 %v551_v37, %v548_v29  ;;  %v977_v8 = vsel %vm936_vm0, %v5242_v17, 0 }
 0x119   : > { %v4204_v23 = vpop.f32.mrb[12].mxu1  ;;  %v5269_v46 = vpack.c.bf16 %v543_v40, %v540_v34  ;;  %v974_v57 = vsel %vm936_vm0, %v5245_v19, 0 }
 0x11a   : > { %4243 = vmatpush3.bf16.xpose.msra.mxu1 %v968_v22  ;;  %v740_v24 = vadd.f32 %v4204_v23, %v5188_v33  ;;  %v731_v25 = vpop.f32.mrb[13].mxu1 }
 0x11b   : > { %4641 = vmatprep.subr.msk.bf16.mxu1 %vm936_vm0, %v5220_v60  ;;  %v732_v27 = vadd.f32 %v5188_v33, %v731_v25  ;;  %v4205_v28 = vpop.f32.mrb[14].mxu1  ;;  %v4172_v48 = vpop.f32.mrb[12].mxu0 }
 0x11c   : > { %v743_v31 = vadd.f32 %v4205_v28, %v5188_v33  ;;  %v734_v32 = vpop.f32.mrb[15].mxu1  ;;  %v555_v49 = vpop.f32.mrb[13].mxu0 }
 0x11d   : > { %v735_v36 = vadd.f32 %v5188_v33, %v734_v32  ;;  %v564_v33 = vadd.f32 %v4172_v48, %v5203_v43  ;;  %v556_v50 = vadd.f32 %v5203_v43, %v555_v49  ;;  %v4173_v51 = vpop.f32.mrb[14].mxu0 }
 0x11e   : > { %v5262_v39 = vpack.c.bf16 %v743_v31, %v740_v24  ;;  %v567_v52 = vadd.f32 %v4173_v51, %v5203_v43  ;;  %v558_v53 = vpop.f32.mrb[15].mxu0 }
 0x11f   : > { %v5265_v44 = vpack.c.bf16 %v735_v36, %v732_v27  ;;  %v559_v54 = vadd.f32 %v5203_v43, %v558_v53  ;;  %v5357_v53 = vld [vmem:[%s5354_s12] ss:$0 sm:$0xff] }
 0x120   : > { %v5279_v55 = vpack.c.bf16 %v567_v52, %v564_v33  ;;  %v983_v35 = vsel %vm936_vm0, %v5262_v39, 0 }
 0x121   : > { %v5281_v56 = vpack.c.bf16 %v559_v54, %v556_v50  ;;  %v980_v23 = vsel %vm936_vm0, %v5265_v44, 0 }
 0x122   : > { %4245 = vmatpush3.bf16.xpose.msra.mxu1 %v971_v47 }
 0x123   : > { %4642 = vmatprep.subr.msk.bf16.mxu1 %vm936_vm0, %v5245_v19  ;;  %v4224_v59 = vpop.f32.mrb[16].mxu0 }
 0x124   : > { %v868_v61 = vadd.f32 %v4224_v59, %v3758_v58  ;;  %v859_v1 = vpop.f32.mrb[17].mxu0 }
 0x125   : > { %v860_v2 = vadd.f32 %v3758_v58, %v859_v1  ;;  %v4225_v43 = vpop.f32.mrb[18].mxu0 }
 0x126   : > { %v871_v3 = vadd.f32 %v4225_v43, %v3758_v58  ;;  %v862_v4 = vpop.f32.mrb[19].mxu0 }
 0x127   : > { %v863_v5 = vadd.f32 %v3758_v58, %v862_v4 }
 0x128   : > { %v5290_v6 = vpack.c.bf16 %v871_v3, %v868_v61 }
 0x129   : > { %v5292_v7 = vpack.c.bf16 %v863_v5, %v860_v2 }
 0x12a   : > { %4247 = vmatpush3.bf16.xpose.msra.mxu1 %v974_v57 }
 0x12b   : > { %4643 = vmatprep.subr.msk.bf16.mxu1 %vm936_vm0, %v5242_v17  ;;  %6607 = vst [vmem:[#allocation2_spill] sm:$0xff] %v5292_v7  ;;  %v4228_v9 = vpop.f32.mrb[20].mxu0  ;;  %4270 = vmatprep.subr.bf16.mxu0 %v5292_v7 }
 0x12c   : > { %v884_v10 = vadd.f32 %v4228_v9, %v3758_v58  ;;  %v875_v11 = vpop.f32.mrb[21].mxu0  ;;  %4271 = vmatpush3.bf16.msra.mxu0 %v5292_v7 }
 0x12d   : > { %v876_v12 = vadd.f32 %v3758_v58, %v875_v11  ;;  %v4229_v13 = vpop.f32.mrb[22].mxu0  ;;  %4272 = vmatprep.subr.bf16.mxu0 %v5290_v6 }
 0x12e   : > { %v887_v14 = vadd.f32 %v4229_v13, %v3758_v58  ;;  %v878_v15 = vpop.f32.mrb[23].mxu0 }
 0x12f   : > { %v879_v16 = vadd.f32 %v3758_v58, %v878_v15 }
 0x130   : > { %v5301_v18 = vpack.c.bf16 %v887_v14, %v884_v10  ;;  %4273 = vmatpush3.bf16.msra.mxu0 %v5290_v6 }
 0x131   : > { %v5304_v22 = vpack.c.bf16 %v879_v16, %v876_v12 }
 0x132   : > { %4249 = vmatpush3.bf16.xpose.msra.mxu1 %v977_v8  ;;  %6608 = vst [vmem:[#allocation3_spill] sm:$0xff] %v5301_v18 }
 0x133   : > { %4644 = vmatprep.subr.msk.bf16.mxu1 %vm936_vm0, %v5265_v44  ;;  %6609 = vst [vmem:[#allocation4_spill] sm:$0xff] %v5304_v22  ;;  %v4232_v24 = vpop.f32.mrb[24].mxu0  ;;  %4274 = vmatprep.subr.bf16.mxu0 %v5304_v22 }
 0x134   : > { %v900_v25 = vadd.f32 %v4232_v24, %v3758_v58  ;;  %v891_v26 = vpop.f32.mrb[25].mxu0  ;;  %4275 = vmatpush3.bf16.msra.mxu0 %v5304_v22 }
 0x135   : > { %v892_v27 = vadd.f32 %v3758_v58, %v891_v26  ;;  %v4233_v28 = vpop.f32.mrb[26].mxu0  ;;  %4276 = vmatprep.subr.bf16.mxu0 %v5301_v18 }
 0x136   : > { %v903_v29 = vadd.f32 %v4233_v28, %v3758_v58  ;;  %v894_v30 = vpop.f32.mrb[27].mxu0 }
 0x137   : > { %v895_v31 = vadd.f32 %v3758_v58, %v894_v30 }
 0x138   : > { %v5313_v32 = vpack.c.bf16 %v903_v29, %v900_v25  ;;  %4277 = vmatpush3.bf16.msra.mxu0 %v5301_v18 }
 0x139   : > { %v5316_v34 = vpack.c.bf16 %v895_v31, %v892_v27 }
 0x13a   : > { %4251 = vmatpush3.bf16.xpose.msra.mxu1 %v980_v23 }
 0x13b   : > { %4645 = vmatprep.subr.msk.bf16.mxu1 %vm936_vm0, %v5262_v39  ;;  %v4236_v36 = vpop.f32.mrb[28].mxu0  ;;  %4278 = vmatprep.subr.bf16.mxu0 %v5316_v34 }
 0x13c   : > { %v916_v37 = vadd.f32 %v4236_v36, %v3758_v58  ;;  %v907_v38 = vpop.f32.mrb[29].mxu0  ;;  %4279 = vmatpush3.bf16.msra.mxu0 %v5316_v34 }
 0x13d   : > { %v908_v40 = vadd.f32 %v3758_v58, %v907_v38  ;;  %v4237_v47 = vpop.f32.mrb[30].mxu0  ;;  %4280 = vmatprep.subr.bf16.mxu0 %v5313_v32 }
 0x13e   : > { %v919_v48 = vadd.f32 %v4237_v47, %v3758_v58  ;;  %v910_v33 = vpop.f32.mrb[31].mxu0 }
 0x13f   : > { %v911_v49 = vadd.f32 %v3758_v58, %v910_v33 }
 0x140   : > { %v5323_v50 = vpack.c.bf16 %v919_v48, %v916_v37  ;;  %4281 = vmatpush3.bf16.msra.mxu0 %v5313_v32 }
 0x141   : > { %v5326_v51 = vpack.c.bf16 %v911_v49, %v908_v40 }
 0x142   : > { %4253 = vmatpush3.bf16.xpose.msra.mxu1 %v983_v35 }
 0x143   : > { %4282 = vmatprep.subr.bf16.mxu0 %v5326_v51 }
 0x144   : > { %4283 = vmatpush3.bf16.msra.mxu0 %v5326_v51 }
 0x145   : > { %4284 = vmatprep.subr.bf16.mxu0 %v5323_v50 }
 0x148   : > { %4285 = vmatpush3.bf16.msra.mxu0 %v5323_v50 }
 0x149   : > { %4255 = vmatmul.mubr.msk.bf16.vlgmr.msra.gmra.mrb[16].mxu1 %vm936_vm0, %v5225_v63 }
 0x14a   : > { %4258 = vmatprep.mubr.msk.bf16.mxu1 %vm936_vm0, %v5249_v21 }
 0x151   : > { %4259 = vmatmul.mubr.msk.bf16.gmra.mrb[20].mxu1 %vm936_vm0, %v5247_v20 }
 0x152   : > { %4262 = vmatprep.mubr.msk.bf16.mxu1 %vm936_vm0, %v5269_v46 }
 0x159   : > { %4263 = vmatmul.mubr.msk.bf16.gmra.mrb[24].mxu1 %vm936_vm0, %v5267_v45 }
 0x15a   : > { %4266 = vmatprep.mubr.msk.bf16.mxu1 %vm936_vm0, %v5281_v56 }
 0x161   : > { %4267 = vmatmul.mubr.msk.bf16.gmra.mrb[28].mxu1 %vm936_vm0, %v5279_v55 }
 0x17a   : > { %v5415_v38 = vpop.permute.xlu1 %1377 }
 0x17b   : > { %v5346_v52 = vpop.permute.xlu0 %1375 }
 0x17c   : > { %4646 = vmatprep.subr.msk.bf16.mxu0 %vm936_vm0, %v5346_v52 }
 0x21c   : > { %v4256_v54 = vpop.f32.mrb[16].mxu1 }
 0x21d   : > { %v1028_v57 = vadd.f32 %v4256_v54, %v5357_v53  ;;  %v1019_v58 = vpop.f32.mrb[17].mxu1 }
 0x21e   : > { %v1020_v59 = vadd.f32 %v5357_v53, %v1019_v58  ;;  %v4257_v61 = vpop.f32.mrb[18].mxu1 }
 0x21f   : > { %1086 = vmax.xlane.f32.xlu1 %v1028_v57  ;;  %v1022_v1 = vpop.f32.mrb[19].mxu1  ;;  %v1031_v2 = vadd.f32 %v4257_v61, %v5357_v53 }
 0x220   : > { %1082 = vmax.xlane.f32.xlu0 %v1020_v59  ;;  %v1023_v43 = vadd.f32 %v5357_v53, %v1022_v1 }
 0x223   : > { %1088 = vmax.xlane.f32.xlu1 %v1031_v2 }
 0x224   : > { %v4260_v3 = vpop.f32.mrb[20].mxu1  ;;  %1084 = vmax.xlane.f32.xlu0 %v1023_v43 }
 0x225   : > { %v5364_v4 = vadd.f32 %v4260_v3, %v5357_v53  ;;  %v1035_v5 = vpop.f32.mrb[21].mxu1 }
 0x226   : > { %v4261_v8 = vpop.f32.mrb[22].mxu1  ;;  %v5370_v11 = vadd.f32 %v5357_v53, %v1035_v5 }
 0x227   : > { %v5367_v9 = vadd.f32 %v4261_v8, %v5357_v53  ;;  %v1038_v10 = vpop.f32.mrb[23].mxu1 }
 0x228   : > { %1094 = vmax.xlane.f32.xlu0 %v5364_v4  ;;  %v5375_v12 = vadd.f32 %v5357_v53, %v1038_v10 }
 0x229   : > { %1096 = vmax.xlane.f32.xlu1 %v5367_v9 }
 0x22c   : > { %v4264_v13 = vpop.f32.mrb[24].mxu1  ;;  %1090 = vmax.xlane.f32.xlu0 %v5370_v11 }
 0x22d   : > { %v5379_v14 = vadd.f32 %v4264_v13, %v5357_v53  ;;  %v1051_v15 = vpop.f32.mrb[25].mxu1  ;;  %1092 = vmax.xlane.f32.xlu1 %v5375_v12 }
 0x22e   : > { %v4265_v16 = vpop.f32.mrb[26].mxu1  ;;  %v5386_v25 = vadd.f32 %v5357_v53, %v1051_v15 }
 0x22f   : > { %v5383_v23 = vadd.f32 %v4265_v16, %v5357_v53  ;;  %v1054_v24 = vpop.f32.mrb[27].mxu1 }
 0x230   : > { %1102 = vmax.xlane.f32.xlu0 %v5379_v14  ;;  %v5391_v26 = vadd.f32 %v5357_v53, %v1054_v24 }
 0x231   : > { %1104 = vmax.xlane.f32.xlu1 %v5383_v23 }
 0x234   : > { %1098 = vmax.xlane.f32.xlu0 %v5386_v25  ;;  %v4268_v27 = vpop.f32.mrb[28].mxu1 }
 0x235   : > { %v5395_v28 = vadd.f32 %v4268_v27, %v5357_v53  ;;  %1100 = vmax.xlane.f32.xlu1 %v5391_v26  ;;  %v1067_v29 = vpop.f32.mrb[29].mxu1 }
 0x236   : > { %v4269_v30 = vpop.f32.mrb[30].mxu1  ;;  %v5400_v35 = vadd.f32 %v5357_v53, %v1067_v29 }
 0x237   : > { %v1070_v31 = vpop.f32.mrb[31].mxu1  ;;  %v5408_v36 = vadd.f32 %v4269_v30, %v5357_v53 }
 0x238   : > { %1110 = vmax.xlane.f32.xlu0 %v5395_v28  ;;  %v5411_v37 = vadd.f32 %v5357_v53, %v1070_v31 }
 0x23c   : > { %1106 = vmax.xlane.f32.xlu0 %v5400_v35 }
 0x246   : > { %1381 = vrot.lane.b32.xlu1 %v5220_v60, %s5034_s25 }
 0x252   : > { %1379 = vrot.lane.b32.xlu0 %v5223_v62, %s5034_s25 }
 0x26a   : > { %1112 = vmax.xlane.f32.xlu1 %v5408_v36 }
 0x26e   : > { %1108 = vmax.xlane.f32.xlu1 %v5411_v37 }
 0x2ac   : > { %v1087_v40 = vpop.xlane.xlu1 %1086 }
 0x2ad   : > { %v1116_v47 = vsub.f32 %v1028_v57, %v1087_v40  ;;  %v1083_v48 = vpop.xlane.xlu0 %1082 }
 0x2ae   : > { %v1114_v33 = vsub.f32 %v1020_v59, %v1083_v48 }
 0x2af   : > { %v1134_v49 = vmul.f32 1.442695, %v1116_v47 }
 0x2b0   : > { %v1130_v54 = vmul.f32 1.442695, %v1114_v33  ;;  %v1089_v58 = vpop.xlane.xlu1 %1088 }
 0x2b1   : > { %4729 = vpow2.f32 %v1134_v49  ;;  %v1117_v61 = vsub.f32 %v1031_v2, %v1089_v58  ;;  %v1085_v1 = vpop.xlane.xlu0 %1084 }
 0x2b2   : > { %v1115_v3 = vsub.f32 %v1023_v43, %v1085_v1  ;;  %4731 = vpow2.f32 %v1130_v54 }
 0x2b3   : > { %v1136_v5 = vmul.f32 1.442695, %v1117_v61 }
 0x2b4   : > { %v1132_v8 = vmul.f32 1.442695, %v1115_v3 }
 0x2b5   : > { %4733 = vpow2.f32 %v1136_v5  ;;  %v1095_v2 = vpop.xlane.xlu0 %1094 }
 0x2b6   : > { %4735 = vpow2.f32 %v1132_v8  ;;  %v1097_v16 = vpop.xlane.xlu1 %1096  ;;  %v1120_v29 = vsub.f32 %v5364_v4, %v1095_v2 }
 0x2b7   : > { %v1121_v33 = vsub.f32 %v5367_v9, %v1097_v16 }
 0x2b8   : > { %v1142_v40 = vmul.f32 1.442695, %v1120_v29 }
 0x2b9   : > { %v1091_v43 = vpop.xlane.xlu0 %1090  ;;  %v1144_v1 = vmul.f32 1.442695, %v1121_v33 }
 0x2ba   : > { %v1093_v27 = vpop.xlane.xlu1 %1092  ;;  %v1118_v30 = vsub.f32 %v5370_v11, %v1091_v43  ;;  %4737 = vpow2.f32 %v1142_v40 }
 0x2bb   : > { %v5417_v10 = vpop.eup %4729  ;;  %v1119_v47 = vsub.f32 %v5375_v12, %v1093_v27 }
 0x2bc   : > { %1166 = vadd.xlane.f32.xlu0 %v5417_v10  ;;  %v5420_v13 = vpop.eup %4731  ;;  %v1138_v49 = vmul.f32 1.442695, %v1118_v30 }
 0x2bd   : > { %v1103_v15 = vpop.xlane.xlu0 %1102  ;;  %v1140_v54 = vmul.f32 1.442695, %v1119_v47 }
 0x2be   : > { %v1105_v48 = vpop.xlane.xlu1 %1104  ;;  %4739 = vpow2.f32 %v1138_v49  ;;  %v1124_v3 = vsub.f32 %v5379_v14, %v1103_v15 }
 0x2bf   : > { %v5422_v57 = vpop.eup %4733  ;;  %4741 = vpow2.f32 %v1140_v54  ;;  %v1125_v14 = vsub.f32 %v5383_v23, %v1105_v48 }
 0x2c0   : > { %1168 = vadd.xlane.f32.xlu1 %v5422_v57  ;;  %1162 = vadd.xlane.f32.xlu0 %v5420_v13  ;;  %v5426_v59 = vpop.eup %4735  ;;  %4743 = vpow2.f32 %v1144_v1  ;;  %v1150_v12 = vmul.f32 1.442695, %v1124_v3 }
 0x2c1   : > { %v1099_v24 = vpop.xlane.xlu0 %1098 }
 0x2c2   : > { %v1101_v4 = vpop.xlane.xlu1 %1100  ;;  %v1122_v8 = vsub.f32 %v5386_v25, %v1099_v24  ;;  %v1152_v24 = vmul.f32 1.442695, %v1125_v14 }
 0x2c3   : > { %v1123_v27 = vsub.f32 %v5391_v26, %v1101_v4 }
 0x2c4   : > { %1164 = vadd.xlane.f32.xlu1 %v5426_v59  ;;  %v5443_v43 = vpop.eup %4737 }
 0x2c5   : > { %v1111_v31 = vpop.xlane.xlu0 %1110 }
 0x2c6   : > { %v1128_v58 = vsub.f32 %v5395_v28, %v1111_v31  ;;  %v5441_v2 = vpop.permute.xlu1 %1381  ;;  %v1146_v28 = vmul.f32 1.442695, %v1122_v8 }
 0x2c8   : > { %v1158_v11 = vmul.f32 1.442695, %v1128_v58  ;;  %v5447_v15 = vpop.eup %4739 }
 0x2c9   : > { %v1107_v61 = vpop.xlane.xlu0 %1106  ;;  %v5449_v16 = vpop.eup %4741 }
 0x2ca   : > { %v1126_v5 = vsub.f32 %v5400_v35, %v1107_v61  ;;  %4745 = vpow2.f32 %v1158_v11  ;;  %v5455_v30 = vpop.eup %4743 }
 0x2cb   : > { %4747 = vpow2.f32 %v1150_v12 }
 0x2cc   : > { %v1154_v9 = vmul.f32 1.442695, %v1126_v5 }
 0x2cd   : > { %v1380_v61 = vpop.permute.xlu0 %1379 }
 0x2ce   : > { %4749 = vpow2.f32 %v1154_v9 }
 0x2cf   : > { %4751 = vpow2.f32 %v1146_v28 }
 0x2d4   : > { %v5457_v31 = vpop.eup %4745 }
 0x2d5   : > { %1385 = vrot.lane.b32.xlu1 %v5242_v17, %s5034_s25  ;;  %v5462_v47 = vpop.eup %4747 }
 0x2d6   : > { %1383 = vrot.lane.b32.xlu0 %v5245_v19, %s5034_s25 }
 0x2d8   : > { %v5464_v48 = vpop.eup %4749 }
 0x2d9   : > { %v5468_v33 = vpop.eup %4751 }
 0x2f5   : > { %1174 = vadd.xlane.f32.xlu0 %v5443_v43 }
 0x2f7   : > { %v1113_v35 = vpop.xlane.xlu1 %1112 }
 0x2f8   : > { %v1129_v25 = vsub.f32 %v5408_v36, %v1113_v35  ;;  %v1148_v36 = vmul.f32 1.442695, %v1123_v27 }
 0x2f9   : > { %1172 = vadd.xlane.f32.xlu0 %v5449_v16  ;;  %1170 = vadd.xlane.f32.xlu1 %v5447_v15 }
 0x2fa   : > { %v1160_v29 = vmul.f32 1.442695, %v1129_v25 }
 0x2fb   : > { %v1109_v23 = vpop.xlane.xlu1 %1108 }
 0x2fc   : > { %4753 = vpow2.f32 %v1160_v29  ;;  %v1127_v40 = vsub.f32 %v5411_v37, %v1109_v23  ;;  %v1416_v29 = vsel %vm936_vm0, %v5346_v52, 0 }
 0x2fd   : > { %1176 = vadd.xlane.f32.xlu1 %v5455_v30  ;;  %1190 = vadd.xlane.f32.xlu0 %v5457_v31  ;;  %4755 = vpow2.f32 %v1152_v24 }
 0x2fe   : > { %4757 = vpow2.f32 %v1148_v36  ;;  %v1156_v26 = vmul.f32 1.442695, %v1127_v40 }
 0x300   : > { %4759 = vpow2.f32 %v1156_v26 }
 0x301   : > { %1182 = vadd.xlane.f32.xlu1 %v5462_v47  ;;  %1186 = vadd.xlane.f32.xlu0 %v5464_v48 }
 0x305   : > { %1178 = vadd.xlane.f32.xlu1 %v5468_v33 }
 0x306   : > { %v5471_v49 = vpop.eup %4753 }
 0x307   : > { %1192 = vadd.xlane.f32.xlu0 %v5471_v49  ;;  %v5474_v37 = vpop.eup %4755 }
 0x308   : > { %v5477_v54 = vpop.eup %4757 }
 0x309   : > { %1184 = vadd.xlane.f32.xlu1 %v5474_v37 }
 0x30a   : > { %v5480_v58 = vpop.eup %4759 }
 0x30d   : > { %1180 = vadd.xlane.f32.xlu1 %v5477_v54 }
 0x311   : > { %1188 = vadd.xlane.f32.xlu1 %v5480_v58 }
 0x31d   : > { %1387 = vrot.lane.b32.xlu0 %v5265_v44, %s5034_s25 }
 0x321   : > { %1351 = vrot.lane.b32.xlu0 %v5227_v0, %s5034_s25 }
 0x322   : > { %1389 = vrot.lane.b32.xlu1 %v5262_v39, %s5034_s25 }
 0x325   : > { %1355 = vrot.lane.b32.xlu0 %v5249_v21, %s5034_s25 }
 0x326   : > { %1353 = vrot.lane.b32.xlu1 %v5225_v63, %s5034_s25 }
 0x329   : > { %1359 = vrot.lane.b32.xlu0 %v5269_v46, %s5034_s25 }
 0x32a   : > { %1357 = vrot.lane.b32.xlu1 %v5247_v20, %s5034_s25 }
 0x32d   : > { %1363 = vrot.lane.b32.xlu0 %v5281_v56, %s5034_s25 }
 0x32e   : > { %1361 = vrot.lane.b32.xlu1 %v5267_v45, %s5034_s25 }
 0x331   : > { %2111 = vrot.lane.b32.xlu0 %v5196_v42, %s5035_s13 }
 0x332   : > { %1365 = vrot.lane.b32.xlu1 %v5279_v55, %s5034_s25 }
 0x335   : > { %2115 = vrot.lane.b32.xlu0 %v5223_v62, %s5035_s13 }
 0x336   : > { %2113 = vrot.lane.b32.xlu1 %v5194_v41, %s5035_s13 }
 0x339   : > { %2119 = vrot.lane.b32.xlu0 %v5245_v19, %s5035_s13 }
 0x33a   : > { %2117 = vrot.lane.b32.xlu1 %v5220_v60, %s5035_s13 }
 0x33d   : > { %2123 = vrot.lane.b32.xlu0 %v5265_v44, %s5035_s13 }
 0x33e   : > { %2121 = vrot.lane.b32.xlu1 %v5242_v17, %s5035_s13 }
 0x341   : > { %2095 = vrot.lane.b32.xlu0 %v5227_v0, %s5035_s13 }
 0x342   : > { %2125 = vrot.lane.b32.xlu1 %v5262_v39, %s5035_s13 }
 0x345   : > { %2099 = vrot.lane.b32.xlu0 %v5249_v21, %s5035_s13 }
 0x346   : > { %2097 = vrot.lane.b32.xlu1 %v5225_v63, %s5035_s13 }
 0x349   : > { %2103 = vrot.lane.b32.xlu0 %v5269_v46, %s5035_s13  ;;  %v1167_v1 = vpop.xlane.xlu0 %1166 }
 0x34a   : > { %2101 = vrot.lane.b32.xlu1 %v5247_v20, %s5035_s13 }
 0x34d   : > { %v1169_v3 = vpop.xlane.xlu1 %1168  ;;  %2107 = vrot.lane.b32.xlu0 %v5281_v56, %s5035_s13  ;;  %v1163_v4 = vpop.xlane.xlu0 %1162 }
 0x34e   : > { %2105 = vrot.lane.b32.xlu1 %v5267_v45, %s5035_s13  ;;  %4761 = vrcp.f32 %v1169_v3 }
 0x34f   : > { %4763 = vrcp.f32 %v1163_v4 }
 0x350   : > { %4765 = vrcp.f32 %v1167_v1 }
 0x351   : > { %v1165_v11 = vpop.xlane.xlu1 %1164  ;;  %1700 = vrot.lane.b32.xlu0 %v5304_v22, %s5034_s25  ;;  %v1384_v52 = vpop.permute.xlu0 %1383 }
 0x352   : > { %4767 = vrcp.f32 %v1165_v11  ;;  %2109 = vrot.lane.b32.xlu1 %v5279_v55, %s5035_s13  ;;  %v1428_v23 = vsel %vm936_vm0, %v1384_v52, 0 }
 0x356   : > { %1696 = vrot.lane.b32.xlu1 %v5292_v7, %s5034_s25 }
 0x358   : > { %v4762_v5 = vpop.eup %4761 }
 0x359   : > { %v4764_v12 = vpop.eup %4763  ;;  %v1213_v14 = vmul.f32 %v4762_v5, %v5422_v57  ;;  %v1425_v57 = vsel %vm936_vm0, %v5441_v2, 0 }
 0x35a   : > { %1698 = vrot.lane.b32.xlu1 %v5290_v6, %s5034_s25  ;;  %v4766_v8 = vpop.eup %4765  ;;  %v1210_v28 = vmul.f32 %v4764_v12, %v5420_v13  ;;  %v1419_v13 = vsel %vm936_vm0, %v5415_v38, 0 }
 0x35b   : > { %v1212_v25 = vmul.f32 %v4766_v8, %v5417_v10  ;;  %v1422_v10 = vsel %vm936_vm0, %v1380_v61, 0 }
 0x35c   : > { %v4768_v9 = vpop.eup %4767 }
 0x35d   : > { %v1211_v35 = vmul.f32 %v4768_v9, %v5426_v59  ;;  %v1227_v27 = vpack.c.bf16 %v1213_v14, %v1212_v25  ;;  %v1386_v59 = vpop.permute.xlu1 %1385 }
 0x35e   : > { %1702 = vrot.lane.b32.xlu1 %v5301_v18, %s5034_s25 }
 0x35f   : > { %v1226_v24 = vpack.c.bf16 %v1211_v35, %v1210_v28 }
 0x361   : > { %4286 = vmatprep.mubr.bf16.mxu0 %v1226_v24 }
 0x362   : > { %4287 = vmatmul.mubr.bf16.vlgmr.msra.gmra.mrb[32].mxu0 %v1227_v27 }
 0x363   : > { %4303 = vmatpush3.bf16.xpose.msra.mxu0 %v1416_v29 }
 0x364   : > { %4647 = vmatprep.subr.msk.bf16.mxu0 %vm936_vm0, %v5415_v38 }
 0x36b   : > { %4305 = vmatpush3.bf16.xpose.msra.mxu0 %v1419_v13 }
 0x36c   : > { %4648 = vmatprep.subr.msk.bf16.mxu0 %vm936_vm0, %v1380_v61  ;;  %v1431_v61 = vsel %vm936_vm0, %v1386_v59, 0 }
 0x373   : > { %4307 = vmatpush3.bf16.xpose.msra.mxu0 %v1422_v10 }
 0x374   : > { %4649 = vmatprep.subr.msk.bf16.mxu0 %vm936_vm0, %v5441_v2 }
 0x37b   : > { %4309 = vmatpush3.bf16.xpose.msra.mxu0 %v1425_v57 }
 0x37c   : > { %4650 = vmatprep.subr.msk.bf16.mxu0 %vm936_vm0, %v1384_v52 }
 0x382   : > { %v1175_v38 = vpop.xlane.xlu0 %1174 }
 0x383   : > { %4311 = vmatpush3.bf16.xpose.msra.mxu0 %v1428_v23 }
 0x384   : > { %4651 = vmatprep.subr.msk.bf16.mxu0 %vm936_vm0, %v1386_v59 }
 0x386   : > { %v1171_v36 = vpop.xlane.xlu1 %1170  ;;  %v1173_v40 = vpop.xlane.xlu0 %1172 }
 0x387   : > { %4769 = vrcp.f32 %v1171_v36 }
 0x388   : > { %4771 = vrcp.f32 %v1173_v40 }
 0x389   : > { %4773 = vrcp.f32 %v1175_v38 }
 0x38a   : > { %v1177_v26 = vpop.xlane.xlu1 %1176  ;;  %v1191_v2 = vpop.xlane.xlu0 %1190 }
 0x38b   : > { %4775 = vrcp.f32 %v1177_v26  ;;  %4313 = vmatpush3.bf16.xpose.msra.mxu0 %v1431_v61 }
 0x38e   : > { %v1183_v1 = vpop.xlane.xlu1 %1182  ;;  %v1187_v3 = vpop.xlane.xlu0 %1186 }
 0x391   : > { %v4770_v4 = vpop.eup %4769 }
 0x392   : > { %v4772_v11 = vpop.eup %4771  ;;  %v1179_v5 = vpop.xlane.xlu1 %1178  ;;  %v1214_v12 = vmul.f32 %v4770_v4, %v5447_v15 }
 0x393   : > { %v4774_v8 = vpop.eup %4773  ;;  %v1215_v9 = vmul.f32 %v4772_v11, %v5449_v16 }
 0x394   : > { %v1193_v14 = vpop.xlane.xlu0 %1192  ;;  %v1216_v24 = vmul.f32 %v4774_v8, %v5443_v43 }
 0x395   : > { %v4776_v28 = vpop.eup %4775  ;;  %v1228_v35 = vpack.c.bf16 %v1215_v9, %v1214_v12 }
 0x396   : > { %v1185_v25 = vpop.xlane.xlu1 %1184  ;;  %v1217_v27 = vmul.f32 %v4776_v28, %v5455_v30 }
 0x397   : > { %4290 = vmatprep.mubr.bf16.mxu0 %v1228_v35  ;;  %4777 = vrcp.f32 %v1185_v25 }
 0x398   : > { %v1388_v29 = vpop.permute.xlu0 %1387  ;;  %v1229_v13 = vpack.c.bf16 %v1217_v27, %v1216_v24  ;;  %4779 = vrcp.f32 %v1179_v5 }
 0x399   : > { %4652 = vmatprep.subr.msk.bf16.mxu0 %vm936_vm0, %v1388_v29  ;;  %v1434_v15 = vsel %vm936_vm0, %v1388_v29, 0  ;;  %4781 = vrcp.f32 %v1183_v1 }
 0x39a   : > { %v1181_v10 = vpop.xlane.xlu1 %1180  ;;  %4291 = vmatmul.mubr.bf16.gmra.mrb[36].mxu0 %v1229_v13 }
 0x39b   : > { %4783 = vrcp.f32 %v1181_v10  ;;  %4315 = vmatpush3.bf16.xpose.msra.mxu0 %v1434_v15 }
 0x39c   : > { %v1352_v16 = vpop.permute.xlu0 %1351  ;;  %4785 = vrcp.f32 %v1187_v3 }
 0x39e   : > { %v1189_v57 = vpop.xlane.xlu1 %1188 }
 0x39f   : > { %4787 = vrcp.f32 %v1189_v57 }
 0x3a0   : > { %4789 = vrcp.f32 %v1193_v14  ;;  %v1356_v43 = vpop.permute.xlu0 %1355 }
 0x3a1   : > { %v4778_v30 = vpop.eup %4777  ;;  %4791 = vrcp.f32 %v1191_v2 }
 0x3a2   : > { %v1390_v52 = vpop.permute.xlu1 %1389  ;;  %v4780_v59 = vpop.eup %4779  ;;  %v1221_v26 = vmul.f32 %v4778_v30, %v5474_v37 }
 0x3a3   : > { %4653 = vmatprep.subr.msk.bf16.mxu0 %vm936_vm0, %v1390_v52  ;;  %v1437_v23 = vsel %vm936_vm0, %v1390_v52, 0  ;;  %v4782_v38 = vpop.eup %4781  ;;  %v1218_v1 = vmul.f32 %v4780_v59, %v5468_v33 }
 0x3a4   : > { %4317 = vmatpush3.bf16.xpose.msra.mxu0 %v1437_v23  ;;  %v1360_v36 = vpop.permute.xlu0 %1359  ;;  %v1220_v2 = vmul.f32 %v4782_v38, %v5462_v47 }
 0x3a5   : > { %v4784_v40 = vpop.eup %4783 }
 0x3a6   : > { %v1354_v61 = vpop.permute.xlu1 %1353  ;;  %v1219_v3 = vmul.f32 %v4784_v40, %v5477_v54  ;;  %v4786_v4 = vpop.eup %4785  ;;  %v1231_v8 = vpack.c.bf16 %v1221_v26, %v1220_v2 }
 0x3a7   : > { %v1222_v28 = vmul.f32 %v4786_v4, %v5464_v48 }
 0x3a8   : > { %v1364_v11 = vpop.permute.xlu0 %1363  ;;  %v1230_v5 = vpack.c.bf16 %v1219_v3, %v1218_v1 }
 0x3a9   : > { %v4788_v12 = vpop.eup %4787 }
 0x3aa   : > { %v4790_v9 = vpop.eup %4789  ;;  %v1358_v14 = vpop.permute.xlu1 %1357  ;;  %4294 = vmatprep.mubr.bf16.mxu0 %v1230_v5  ;;  %v1223_v35 = vmul.f32 %v4788_v12, %v5480_v58 }
 0x3ab   : > { %4295 = vmatmul.mubr.bf16.gmra.mrb[40].mxu0 %v1231_v8  ;;  %v4792_v37 = vpop.eup %4791  ;;  %v1225_v54 = vmul.f32 %v4790_v9, %v5471_v49 }
 0x3ac   : > { %v2112_v25 = vpop.permute.xlu0 %2111  ;;  %v1232_v33 = vpack.c.bf16 %v1223_v35, %v1222_v28  ;;  %v1224_v24 = vmul.f32 %v4792_v37, %v5457_v31 }
 0x3ad   : > { %4654 = vmatprep.subr.msk.bf16.mxu0 %vm936_vm0, %v2112_v25  ;;  %v2152_v10 = vsel %vm936_vm0, %v2112_v25, 0 }
 0x3ae   : > { %v1362_v47 = vpop.permute.xlu1 %1361  ;;  %4298 = vmatprep.mubr.bf16.mxu0 %v1232_v33  ;;  %v1233_v27 = vpack.c.bf16 %v1225_v54, %v1224_v24 }
 0x3b0   : > { %v2116_v29 = vpop.permute.xlu0 %2115 }
 0x3b2   : > { %v1366_v13 = vpop.permute.xlu1 %1365 }
 0x3b3   : > { %4299 = vmatmul.mubr.bf16.gmra.mrb[44].mxu0 %v1233_v27 }
 0x3b4   : > { %4318 = vmatprep.mubr.msk.bf16.mxu0 %vm936_vm0, %v1352_v16  ;;  %v2120_v58 = vpop.permute.xlu0 %2119 }
 0x3b5   : > { %v2164_v4 = vsel %vm936_vm0, %v2120_v58, 0 }
 0x3b6   : > { %v2114_v48 = vpop.permute.xlu1 %2113 }
 0x3b7   : > { %v2155_v30 = vsel %vm936_vm0, %v2114_v48, 0 }
 0x3b8   : > { %v2124_v49 = vpop.permute.xlu0 %2123 }
 0x3b9   : > { %v2170_v12 = vsel %vm936_vm0, %v2124_v49, 0 }
 0x3ba   : > { %v2118_v15 = vpop.permute.xlu1 %2117 }
 0x3bb   : > { %4319 = vmatmul.mubr.msk.bf16.vlgmr.msra.gmra.mrb[48].mxu0 %vm936_vm0, %v1354_v61 }
 0x3bc   : > { %4407 = vmatpush3.bf16.xpose.msra.mxu0 %v2152_v10  ;;  %4322 = vmatprep.mubr.msk.bf16.mxu0 %vm936_vm0, %v1356_v43  ;;  %v2096_v16 = vpop.permute.xlu0 %2095  ;;  %v2158_v43 = vsel %vm936_vm0, %v2116_v29, 0 }
 0x3bd   : > { %4655 = vmatprep.subr.msk.bf16.mxu0 %vm936_vm0, %v2114_v48 }
 0x3be   : > { %v2122_v31 = vpop.permute.xlu1 %2121 }
 0x3bf   : > { %v2167_v5 = vsel %vm936_vm0, %v2122_v31, 0 }
 0x3c0   : > { %v2100_v59 = vpop.permute.xlu0 %2099 }
 0x3c2   : > { %v2126_v57 = vpop.permute.xlu1 %2125 }
 0x3c3   : > { %4323 = vmatmul.mubr.msk.bf16.gmra.mrb[52].mxu0 %vm936_vm0, %v1358_v14  ;;  %v2173_v8 = vsel %vm936_vm0, %v2126_v57, 0 }
 0x3c4   : > { %4409 = vmatpush3.bf16.xpose.msra.mxu0 %v2155_v30  ;;  %4326 = vmatprep.mubr.msk.bf16.mxu0 %vm936_vm0, %v1360_v36  ;;  %v2104_v40 = vpop.permute.xlu0 %2103  ;;  %v2161_v36 = vsel %vm936_vm0, %v2118_v15, 0 }
 0x3c5   : > { %4656 = vmatprep.subr.msk.bf16.mxu0 %vm936_vm0, %v2116_v29 }
 0x3c6   : > { %v2098_v52 = vpop.permute.xlu1 %2097 }
 0x3c8   : > { %v2108_v61 = vpop.permute.xlu0 %2107 }
 0x3ca   : > { %v2102_v23 = vpop.permute.xlu1 %2101 }
 0x3cb   : > { %4327 = vmatmul.mubr.msk.bf16.gmra.mrb[56].mxu0 %vm936_vm0, %v1362_v47 }
 0x3cc   : > { %4411 = vmatpush3.bf16.xpose.msra.mxu0 %v2158_v43  ;;  %4330 = vmatprep.mubr.msk.bf16.mxu0 %vm936_vm0, %v1364_v11  ;;  %v1701_v2 = vpop.permute.xlu0 %1700 }
 0x3cd   : > { %4657 = vmatprep.subr.msk.bf16.mxu0 %vm936_vm0, %v2118_v15 }
 0x3ce   : > { %v2106_v38 = vpop.permute.xlu1 %2105 }
 0x3d2   : > { %v2110_v26 = vpop.permute.xlu1 %2109 }
 0x3d3   : > { %4331 = vmatmul.mubr.msk.bf16.gmra.mrb[60].mxu0 %vm936_vm0, %v1366_v13 }
 0x3d4   : > { %4413 = vmatpush3.bf16.xpose.msra.mxu0 %v2161_v36  ;;  %4422 = vmatprep.mubr.msk.bf16.mxu0 %vm936_vm0, %v2096_v16 }
 0x3d5   : > { %4658 = vmatprep.subr.msk.bf16.mxu0 %vm936_vm0, %v2120_v58 }
 0x3d6   : > { %v1697_v1 = vpop.permute.xlu1 %1696 }
 0x3d7   : > { %4334 = vmatprep.subr.bf16.mxu1 %v1697_v1 }
 0x3d8   : > { %4335 = vmatpush3.bf16.msra.mxu1 %v1697_v1 }
 0x3da   : > { %v1699_v3 = vpop.permute.xlu1 %1698 }
 0x3db   : > { %4336 = vmatprep.subr.bf16.mxu1 %v1699_v3 }
 0x3dc   : > { %4415 = vmatpush3.bf16.xpose.msra.mxu0 %v2164_v4  ;;  %4337 = vmatpush3.bf16.msra.mxu1 %v1699_v3 }
 0x3dd   : > { %4659 = vmatprep.subr.msk.bf16.mxu0 %vm936_vm0, %v2122_v31  ;;  %4338 = vmatprep.subr.bf16.mxu1 %v1701_v2 }
 0x3de   : > { %v1703_v11 = vpop.permute.xlu1 %1702 }
 0x3e0   : > { %4339 = vmatpush3.bf16.msra.mxu1 %v1701_v2 }
 0x3e1   : > { %4340 = vmatprep.subr.bf16.mxu1 %v1703_v11 }
 0x3e4   : > { %4417 = vmatpush3.bf16.xpose.msra.mxu0 %v2167_v5  ;;  %4341 = vmatpush3.bf16.msra.mxu1 %v1703_v11 }
 0x3e5   : > { %4660 = vmatprep.subr.msk.bf16.mxu0 %vm936_vm0, %v2124_v49 }
 0x3ec   : > { %4419 = vmatpush3.bf16.xpose.msra.mxu0 %v2170_v12 }
 0x3ed   : > { %4661 = vmatprep.subr.msk.bf16.mxu0 %vm936_vm0, %v2126_v57 }
 0x3f4   : > { %4421 = vmatpush3.bf16.xpose.msra.mxu0 %v2173_v8 }
 0x3fb   : > { %4423 = vmatmul.mubr.msk.bf16.vlgmr.msra.gmra.mrb[64].mxu0 %vm936_vm0, %v2098_v52 }
 0x3fc   : > { %4426 = vmatprep.mubr.msk.bf16.mxu0 %vm936_vm0, %v2100_v59 }
 0x403   : > { %4427 = vmatmul.mubr.msk.bf16.gmra.mrb[68].mxu0 %vm936_vm0, %v2102_v23 }
 0x404   : > { %4430 = vmatprep.mubr.msk.bf16.mxu0 %vm936_vm0, %v2104_v40 }
 0x40b   : > { %4431 = vmatmul.mubr.msk.bf16.gmra.mrb[72].mxu0 %vm936_vm0, %v2106_v38 }
 0x40c   : > { %4434 = vmatprep.mubr.msk.bf16.mxu0 %vm936_vm0, %v2108_v61 }
 0x413   : > { %4435 = vmatmul.mubr.msk.bf16.gmra.mrb[76].mxu0 %vm936_vm0, %v2110_v26 }
 0x435   : > { %v5611_v9 = vpop.f32.mrb[32].mxu0 }
 0x436   : > { %6610 = vst [vmem:[#allocation5_spill] sm:$0xff] %v5611_v9  ;;  %v5613_v14 = vpop.f32.mrb[33].mxu0 }
 0x437   : > { %6611 = vst [vmem:[#allocation6_spill] sm:$0xff] %v5613_v14  ;;  %v5615_v28 = vpop.f32.mrb[34].mxu0 }
 0x438   : > { %6612 = vst [vmem:[#allocation7_spill] sm:$0xff] %v5615_v28  ;;  %v5619_v37 = vpop.f32.mrb[35].mxu0 }
 0x439   : > { %6613 = vst [vmem:[#allocation8_spill] sm:$0xff] %v5619_v37 }
 0x46d   : > { %v5623_v33 = vpop.f32.mrb[36].mxu0 }
 0x46e   : > { %6614 = vst [vmem:[#allocation9_spill] sm:$0xff] %v5623_v33  ;;  %v5625_v54 = vpop.f32.mrb[37].mxu0 }
 0x46f   : > { %6615 = vst [vmem:[#allocation10_spill] sm:$0xff] %v5625_v54  ;;  %v5627_v47 = vpop.f32.mrb[38].mxu0 }
 0x470   : > { %6616 = vst [vmem:[#allocation11_spill] sm:$0xff] %v5627_v47  ;;  %v5631_v27 = vpop.f32.mrb[39].mxu0 }
 0x471   : > { %6617 = vst [vmem:[#allocation12_spill] sm:$0xff] %v5631_v27 }
 0x47e   : > { %v5635_v13 = vpop.f32.mrb[40].mxu0 }
 0x47f   : > { %6618 = vst [vmem:[#allocation13_spill] sm:$0xff] %v5635_v13  ;;  %v5637_v48 = vpop.f32.mrb[41].mxu0 }
 0x480   : > { %6619 = vst [vmem:[#allocation14_spill] sm:$0xff] %v5637_v48  ;;  %v5639_v58 = vpop.f32.mrb[42].mxu0 }
 0x481   : > { %6620 = vst [vmem:[#allocation15_spill] sm:$0xff] %v5639_v58  ;;  %v5643_v10 = vpop.f32.mrb[43].mxu0 }
 0x482   : > { %6621 = vst [vmem:[#allocation16_spill] sm:$0xff] %v5643_v10 }
 0x486   : > { %v5647_v31 = vpop.f32.mrb[44].mxu0 }
 0x487   : > { %6622 = vst [vmem:[#allocation17_spill] sm:$0xff] %v5647_v31  ;;  %v5649_v57 = vpop.f32.mrb[45].mxu0 }
 0x488   : > { %6623 = vst [vmem:[#allocation18_spill] sm:$0xff] %v5649_v57  ;;  %v5651_v30 = vpop.f32.mrb[46].mxu0 }
 0x489   : > { %6624 = vst [vmem:[#allocation19_spill] sm:$0xff] %v5651_v30  ;;  %v5655_v52 = vpop.f32.mrb[47].mxu0 }
 0x48a   : > { %6625 = vst [vmem:[#allocation20_spill] sm:$0xff] %v5655_v52 }
 0x48e   : > { %v4320_v23 = vpop.f32.mrb[48].mxu0 }
 0x48f   : > { %v5660_v43 = vadd.f32 %v4320_v23, %v5357_v53  ;;  %v1473_v38 = vpop.f32.mrb[49].mxu0 }
 0x490   : > { %v4321_v40 = vpop.f32.mrb[50].mxu0  ;;  %v5667_v61 = vadd.f32 %v5357_v53, %v1473_v38 }
 0x491   : > { %1540 = vmax.xlane.f32.xlu0 %v5660_v43  ;;  %v1476_v26 = vpop.f32.mrb[51].mxu0  ;;  %v5672_v3 = vadd.f32 %v4321_v40, %v5357_v53 }
 0x492   : > { %v5664_v36 = vadd.f32 %v5357_v53, %v1476_v26 }
 0x494   : > { %1538 = vmax.xlane.f32.xlu1 %v5664_v36 }
 0x495   : > { %1536 = vmax.xlane.f32.xlu0 %v5667_v61 }
 0x496   : > { %v4324_v1 = vpop.f32.mrb[52].mxu0 }
 0x497   : > { %v1489_v4 = vpop.f32.mrb[53].mxu0  ;;  %v5680_v12 = vadd.f32 %v4324_v1, %v5357_v53 }
 0x498   : > { %v5675_v2 = vadd.f32 %v5357_v53, %v1489_v4  ;;  %v4325_v11 = vpop.f32.mrb[54].mxu0 }
 0x499   : > { %1542 = vmax.xlane.f32.xlu0 %v5672_v3  ;;  %v1492_v5 = vpop.f32.mrb[55].mxu0  ;;  %v5683_v8 = vadd.f32 %v4325_v11, %v5357_v53 }
 0x49a   : > { %1544 = vmax.xlane.f32.xlu1 %v5675_v2  ;;  %v5688_v38 = vadd.f32 %v5357_v53, %v1492_v5 }
 0x49d   : > { %1548 = vmax.xlane.f32.xlu0 %v5680_v12 }
 0x49e   : > { %1550 = vmax.xlane.f32.xlu1 %v5683_v8  ;;  %v4328_v23 = vpop.f32.mrb[56].mxu0 }
 0x49f   : > { %v1505_v40 = vpop.f32.mrb[57].mxu0  ;;  %v5696_v11 = vadd.f32 %v4328_v23, %v5357_v53 }
 0x4a0   : > { %v5691_v26 = vadd.f32 %v5357_v53, %v1505_v40  ;;  %v4329_v4 = vpop.f32.mrb[58].mxu0 }
 0x4a1   : > { %1546 = vmax.xlane.f32.xlu0 %v5688_v38  ;;  %v1508_v1 = vpop.f32.mrb[59].mxu0  ;;  %v5699_v16 = vadd.f32 %v4329_v4, %v5357_v53 }
 0x4a2   : > { %1552 = vmax.xlane.f32.xlu1 %v5691_v26  ;;  %v5704_v40 = vadd.f32 %v5357_v53, %v1508_v1 }
 0x4a5   : > { %1556 = vmax.xlane.f32.xlu0 %v5696_v11 }
 0x4a6   : > { %1558 = vmax.xlane.f32.xlu1 %v5699_v16  ;;  %v4332_v5 = vpop.f32.mrb[60].mxu0 }
 0x4a7   : > { %v1521_v59 = vpop.f32.mrb[61].mxu0  ;;  %v5712_v4 = vadd.f32 %v4332_v5, %v5357_v53 }
 0x4a8   : > { %v5707_v15 = vadd.f32 %v5357_v53, %v1521_v59  ;;  %v4333_v49 = vpop.f32.mrb[62].mxu0 }
 0x4a9   : > { %1554 = vmax.xlane.f32.xlu0 %v5704_v40  ;;  %v1524_v23 = vpop.f32.mrb[63].mxu0  ;;  %v5715_v24 = vadd.f32 %v4333_v49, %v5357_v53 }
 0x4aa   : > { %1560 = vmax.xlane.f32.xlu1 %v5707_v15  ;;  %v5720_v1 = vadd.f32 %v5357_v53, %v1524_v23 }
 0x4ad   : > { %1564 = vmax.xlane.f32.xlu0 %v5712_v4 }
 0x4ae   : > { %1566 = vmax.xlane.f32.xlu1 %v5715_v24 }
 0x4b1   : > { %1562 = vmax.xlane.f32.xlu0 %v5720_v1 }
 0x4bf   : > { %1706 = vrot.lane.b32.xlu1 %v5313_v32, %s5034_s25 }
 0x4c7   : > { %1704 = vrot.lane.b32.xlu0 %v5316_v34, %s5034_s25 }
 0x4ce   : > { %v5727_v59 = vpop.f32.mrb[64].mxu0 }
 0x4cf   : > { %v5729_v5 = vpop.f32.mrb[65].mxu0 }
 0x4d0   : > { %v5731_v49 = vpop.f32.mrb[66].mxu0 }
 0x4d1   : > { %v5733_v29 = vpop.f32.mrb[67].mxu0 }
 0x4d6   : > { %v5735_v35 = vpop.f32.mrb[68].mxu0 }
 0x4d7   : > { %v5737_v53 = vpop.f32.mrb[69].mxu0 }
 0x4d8   : > { %v5739_v23 = vpop.f32.mrb[70].mxu0 }
 0x4d9   : > { %v5741_v25 = vpop.f32.mrb[71].mxu0 }
 0x4de   : > { %v5743_v31 = vpop.f32.mrb[72].mxu0 }
 0x4df   : > { %6626 = vst [vmem:[#allocation21_spill] sm:$0xff] %v5743_v31  ;;  %v5745_v30 = vpop.f32.mrb[73].mxu0 }
 0x4e0   : > { %6627 = vst [vmem:[#allocation22_spill] sm:$0xff] %v5745_v30  ;;  %v5747_v57 = vpop.f32.mrb[74].mxu0 }
 0x4e1   : > { %v5749_v52 = vpop.f32.mrb[75].mxu0 }
 0x4e6   : > { %v5751_v13 = vpop.f32.mrb[76].mxu0 }
 0x4e7   : > { %6628 = vst [vmem:[#allocation23_spill] sm:$0xff] %v5751_v13  ;;  %v5753_v58 = vpop.f32.mrb[77].mxu0 }
 0x4e8   : > { %6629 = vst [vmem:[#allocation24_spill] sm:$0xff] %v5753_v58  ;;  %v5755_v48 = vpop.f32.mrb[78].mxu0 }
 0x4e9   : > { %v5757_v10 = vpop.f32.mrb[79].mxu0 }
 0x51e   : > { %v1541_v33 = vpop.xlane.xlu0 %1540 }
 0x51f   : > { %v1570_v47 = vsub.f32 %v5660_v43, %v1541_v33 }
 0x521   : > { %v1588_v54 = vmul.f32 1.442695, %v1570_v47  ;;  %v1539_v9 = vpop.xlane.xlu1 %1538 }
 0x522   : > { %v1537_v27 = vpop.xlane.xlu0 %1536  ;;  %v1569_v37 = vsub.f32 %v5664_v36, %v1539_v9 }
 0x523   : > { %4793 = vpow2.f32 %v1588_v54  ;;  %v1568_v28 = vsub.f32 %v5667_v61, %v1537_v27 }
 0x524   : > { %v1586_v58 = vmul.f32 1.442695, %v1569_v37 }
 0x525   : > { %v1584_v14 = vmul.f32 1.442695, %v1568_v28 }
 0x526   : > { %v1543_v18 = vpop.xlane.xlu0 %1542 }
 0x527   : > { %4795 = vpow2.f32 %v1584_v14  ;;  %v1571_v22 = vsub.f32 %v5672_v3, %v1543_v18  ;;  %v1545_v7 = vpop.xlane.xlu1 %1544 }
 0x528   : > { %v1572_v31 = vsub.f32 %v5675_v2, %v1545_v7 }
 0x529   : > { %v1590_v13 = vmul.f32 1.442695, %v1571_v22 }
 0x52a   : > { %v1549_v30 = vpop.xlane.xlu0 %1548  ;;  %v1592_v9 = vmul.f32 1.442695, %v1572_v31 }
 0x52b   : > { %4797 = vpow2.f32 %v1590_v13  ;;  %v1574_v33 = vsub.f32 %v5680_v12, %v1549_v30  ;;  %v1551_v54 = vpop.xlane.xlu1 %1550 }
 0x52c   : > { %v1575_v47 = vsub.f32 %v5683_v8, %v1551_v54  ;;  %4799 = vpow2.f32 %v1586_v58 }
 0x52d   : > { %v5766_v27 = vpop.eup %4793  ;;  %v1596_v28 = vmul.f32 1.442695, %v1574_v33 }
 0x52e   : > { %1620 = vadd.xlane.f32.xlu0 %v5766_v27  ;;  %v1547_v18 = vpop.xlane.xlu0 %1546  ;;  %v1598_v22 = vmul.f32 1.442695, %v1575_v47 }
 0x52f   : > { %4801 = vpow2.f32 %v1596_v28  ;;  %v1573_v14 = vsub.f32 %v5688_v38, %v1547_v18  ;;  %v1553_v7 = vpop.xlane.xlu1 %1552 }
 0x530   : > { %4803 = vpow2.f32 %v1592_v9  ;;  %v1576_v30 = vsub.f32 %v5691_v26, %v1553_v7 }
 0x531   : > { %v5770_v37 = vpop.eup %4795  ;;  %v1594_v13 = vmul.f32 1.442695, %v1573_v14  ;;  %4805 = vpow2.f32 %v1598_v22 }
 0x532   : > { %1616 = vadd.xlane.f32.xlu1 %v5770_v37  ;;  %v1557_v43 = vpop.xlane.xlu0 %1556  ;;  %v1600_v2 = vmul.f32 1.442695, %v1576_v30 }
 0x533   : > { %v1578_v58 = vsub.f32 %v5696_v11, %v1557_v43  ;;  %v1559_v31 = vpop.xlane.xlu1 %1558  ;;  %4807 = vpow2.f32 %v1594_v13 }
 0x534   : > { %v1579_v36 = vsub.f32 %v5699_v16, %v1559_v31 }
 0x535   : > { %v5776_v61 = vpop.eup %4797  ;;  %v1604_v3 = vmul.f32 1.442695, %v1578_v58 }
 0x536   : > { %1622 = vadd.xlane.f32.xlu0 %v5776_v61  ;;  %v1555_v12 = vpop.xlane.xlu0 %1554  ;;  %v1606_v8 = vmul.f32 1.442695, %v1579_v36  ;;  %v5780_v26 = vpop.eup %4799 }
 0x537   : > { %4809 = vpow2.f32 %v1604_v3  ;;  %v1577_v38 = vsub.f32 %v5704_v40, %v1555_v12  ;;  %v1561_v33 = vpop.xlane.xlu1 %1560 }
 0x538   : > { %4811 = vpow2.f32 %v1600_v2  ;;  %v1580_v47 = vsub.f32 %v5707_v15, %v1561_v33 }
 0x539   : > { %v5782_v54 = vpop.eup %4801  ;;  %v1602_v11 = vmul.f32 1.442695, %v1577_v38  ;;  %4813 = vpow2.f32 %v1606_v8 }
 0x53a   : > { %1618 = vadd.xlane.f32.xlu0 %v5780_v26  ;;  %1628 = vadd.xlane.f32.xlu1 %v5782_v54  ;;  %v1565_v16 = vpop.xlane.xlu0 %1564  ;;  %v5788_v9 = vpop.eup %4803  ;;  %v1608_v7 = vmul.f32 1.442695, %v1580_v47 }
 0x53b   : > { %v1582_v28 = vsub.f32 %v5712_v4, %v1565_v16  ;;  %v5790_v40 = vpop.eup %4805  ;;  %4815 = vpow2.f32 %v1602_v11  ;;  %v1567_v22 = vpop.xlane.xlu1 %1566 }
 0x53c   : > { %v1583_v12 = vsub.f32 %v5715_v24, %v1567_v22 }
 0x53d   : > { %v1612_v18 = vmul.f32 1.442695, %v1582_v28  ;;  %v5794_v13 = vpop.eup %4807 }
 0x53e   : > { %1630 = vadd.xlane.f32.xlu0 %v5790_v40  ;;  %1624 = vadd.xlane.f32.xlu1 %v5788_v9  ;;  %v1563_v14 = vpop.xlane.xlu0 %1562  ;;  %v1614_v38 = vmul.f32 1.442695, %v1583_v12 }
 0x53f   : > { %4817 = vpow2.f32 %v1612_v18  ;;  %v1707_v43 = vpop.permute.xlu1 %1706  ;;  %v1581_v2 = vsub.f32 %v5720_v1, %v1563_v14 }
 0x540   : > { %4819 = vpow2.f32 %v1608_v7 }
 0x541   : > { %v5796_v30 = vpop.eup %4809  ;;  %v1610_v8 = vmul.f32 1.442695, %v1581_v2 }
 0x542   : > { %1626 = vadd.xlane.f32.xlu0 %v5794_v13  ;;  %1636 = vadd.xlane.f32.xlu1 %v5796_v30  ;;  %v1705_v15 = vpop.permute.xlu0 %1704  ;;  %v5800_v4 = vpop.eup %4811 }
 0x543   : > { %4342 = vmatprep.subr.bf16.mxu1 %v1705_v15  ;;  %v5802_v58 = vpop.eup %4813  ;;  %4821 = vpow2.f32 %v1610_v8 }
 0x544   : > { %4343 = vmatpush3.bf16.msra.mxu1 %v1705_v15  ;;  %4823 = vpow2.f32 %v1614_v38 }
 0x545   : > { %4344 = vmatprep.subr.bf16.mxu1 %v1707_v43  ;;  %v5806_v31 = vpop.eup %4815 }
 0x546   : > { %1638 = vadd.xlane.f32.xlu0 %v5802_v58  ;;  %1632 = vadd.xlane.f32.xlu1 %v5800_v4 }
 0x548   : > { %4345 = vmatpush3.bf16.msra.mxu1 %v1707_v43 }
 0x549   : > { %v5808_v36 = vpop.eup %4817 }
 0x54a   : > { %1634 = vadd.xlane.f32.xlu0 %v5806_v31  ;;  %1644 = vadd.xlane.f32.xlu1 %v5808_v36  ;;  %v5812_v3 = vpop.eup %4819 }
 0x54e   : > { %1640 = vadd.xlane.f32.xlu1 %v5812_v3 }
 0x55f   : > { %1710 = vrot.lane.b32.xlu1 %v5323_v50, %s5034_s25 }
 0x560   : > { %1708 = vrot.lane.b32.xlu0 %v5326_v51, %s5034_s25 }
 0x563   : > { %2724 = vrot.lane.b32.xlu1 %v5194_v41, %s5036_s14  ;;  %v5835_v41 = vpop.eup %4821 }
 0x567   : > { %2726 = vrot.lane.b32.xlu1 %v5223_v62, %s5036_s14  ;;  %v5852_v62 = vld [vmem:[%s5354_s12] ss:$0 sm:$0xff] }
 0x568   : > { %v5899_v24 = vadd.f32 %v5852_v62, %v5729_v5  ;;  %v5930_v15 = vadd.f32 %v5852_v62, %v5735_v35 }
 0x56b   : > { %2728 = vrot.lane.b32.xlu1 %v5220_v60, %s5036_s14  ;;  %v5840_v60 = vpop.eup %4823 }
 0x56f   : > { %2732 = vrot.lane.b32.xlu1 %v5242_v17, %s5036_s14  ;;  %v5870_v17 = vadd.f32 %v5852_v62, %v5739_v23 }
 0x573   : > { %2736 = vrot.lane.b32.xlu1 %v5262_v39, %s5036_s14 }
 0x577   : > { %2708 = vrot.lane.b32.xlu1 %v5225_v63, %s5036_s14  ;;  %v5856_v63 = vadd.f32 %v5852_v62, %v5733_v29 }
 0x57b   : > { %2712 = vrot.lane.b32.xlu1 %v5247_v20, %s5036_s14  ;;  %v5889_v20 = vadd.f32 %v5852_v62, %v5757_v10 }
 0x57f   : > { %2716 = vrot.lane.b32.xlu1 %v5267_v45, %s5036_s14  ;;  %1642 = vadd.xlane.f32.xlu0 %v5835_v41 }
 0x583   : > { %2720 = vrot.lane.b32.xlu1 %v5279_v55, %s5036_s14  ;;  %1646 = vadd.xlane.f32.xlu0 %v5840_v60 }
 0x599   : > { %2722 = vrot.lane.b32.xlu0 %v5196_v42, %s5036_s14  ;;  %v5863_v42 = vadd.f32 %v5852_v62, %v5741_v25 }
 0x59d   : > { %2730 = vrot.lane.b32.xlu0 %v5245_v19, %s5036_s14  ;;  %v5884_v19 = vadd.f32 %v5852_v62, %v5747_v57  ;;  %v5906_v57 = vadd.f32 %v5852_v62, %v5727_v59  ;;  %v5915_v59 = vadd.f32 %v5852_v62, %v5731_v49 }
 0x5a1   : > { %2734 = vrot.lane.b32.xlu0 %v5265_v44, %s5036_s14 }
 0x5a5   : > { %2706 = vrot.lane.b32.xlu0 %v5227_v0, %s5036_s14  ;;  %v5877_v0 = vadd.f32 %v5852_v62, %v5749_v52 }
 0x5a7   : > { %2274 = vmax.xlane.f32.xlu1 %v5856_v63 }
 0x5a9   : > { %2710 = vrot.lane.b32.xlu0 %v5249_v21, %s5036_s14  ;;  %v5894_v21 = vadd.f32 %v5852_v62, %v5755_v48 }
 0x5ab   : > { %2282 = vmax.xlane.f32.xlu1 %v5863_v42 }
 0x5ad   : > { %2714 = vrot.lane.b32.xlu0 %v5269_v46, %s5036_s14 }
 0x5af   : > { %2286 = vmax.xlane.f32.xlu1 %v5870_v17 }
 0x5b1   : > { %2718 = vrot.lane.b32.xlu0 %v5281_v56, %s5036_s14 }
 0x5b3   : > { %2290 = vmax.xlane.f32.xlu1 %v5877_v0 }
 0x5b7   : > { %2294 = vmax.xlane.f32.xlu1 %v5884_v19 }
 0x5bb   : > { %2298 = vmax.xlane.f32.xlu1 %v5889_v20  ;;  %v1621_v39 = vpop.xlane.xlu0 %1620 }
 0x5bf   : > { %2302 = vmax.xlane.f32.xlu1 %v5894_v21  ;;  %v1617_v44 = vpop.xlane.xlu1 %1616 }
 0x5c0   : > { %4825 = vrcp.f32 %v1617_v44 }
 0x5c3   : > { %v1623_v45 = vpop.xlane.xlu0 %1622 }
 0x5c7   : > { %v1629_v46 = vpop.xlane.xlu1 %1628  ;;  %v1619_v55 = vpop.xlane.xlu0 %1618 }
 0x5c8   : > { %4827 = vrcp.f32 %v1619_v55 }
 0x5c9   : > { %4829 = vrcp.f32 %v1623_v45 }
 0x5ca   : > { %v4826_v48 = vpop.eup %4825 }
 0x5cb   : > { %v1625_v56 = vpop.xlane.xlu1 %1624  ;;  %v1631_v25 = vpop.xlane.xlu0 %1630  ;;  %v1664_v5 = vmul.f32 %v4826_v48, %v5770_v37  ;;  %v5924_v37 = vadd.f32 %v5852_v62, %v5737_v53  ;;  %v6632_v48 = vld [vmem:[#allocation24_spill] sm:$0xff] }
 0x5cf   : > { %v1637_v29 = vpop.xlane.xlu1 %1636  ;;  %v1627_v10 = vpop.xlane.xlu0 %1626 }
 0x5d0   : > { %2426 = vrot.lane.b32.xlu1 %v5290_v6, %s5035_s13  ;;  %2272 = vmax.xlane.f32.xlu0 %v5899_v24  ;;  %4831 = vrcp.f32 %v1627_v10 }
 0x5d1   : > { %4833 = vrcp.f32 %v1621_v39  ;;  %v6630_v39 = vld [vmem:[#allocation22_spill] sm:$0xff] }
 0x5d2   : > { %v4828_v52 = vpop.eup %4827  ;;  %4835 = vrcp.f32 %v1625_v56 }
 0x5d3   : > { %v1633_v1 = vpop.xlane.xlu1 %1632  ;;  %v1639_v23 = vpop.xlane.xlu0 %1638  ;;  %v1665_v33 = vmul.f32 %v4828_v52, %v5780_v26  ;;  %4837 = vrcp.f32 %v1631_v25  ;;  %v5952_v52 = vadd.f32 %v5852_v62, %v6632_v48 }
 0x5d4   : > { %2432 = vrot.lane.b32.xlu1 %v5316_v34, %s5035_s13  ;;  %2276 = vmax.xlane.f32.xlu0 %v5906_v57  ;;  %v4830_v28 = vpop.eup %4829 }
 0x5d5   : > { %v1680_v11 = vpack.c.bf16 %v1665_v33, %v1664_v5  ;;  %v1667_v7 = vmul.f32 %v4830_v28, %v5776_v61  ;;  %v5938_v61 = vadd.f32 %v5852_v62, %v6630_v39  ;;  %v6634_v33 = vld [vmem:[#allocation2_spill] sm:$0xff] }
 0x5d7   : > { %v5917_v16 = vpop.xlane.xlu1 %1644  ;;  %v1635_v47 = vpop.xlane.xlu0 %1634  ;;  %4350 = vmatprep.mubr.bf16.mxu1 %v1680_v11  ;;  %v6635_v11 = vld [vmem:[#allocation4_spill] sm:$0xff] }
 0x5d8   : > { %2434 = vrot.lane.b32.xlu1 %v5313_v32, %s5035_s13  ;;  %2278 = vmax.xlane.f32.xlu0 %v5915_v59  ;;  %4839 = vrcp.f32 %v1635_v47 }
 0x5d9   : > { %4841 = vrcp.f32 %v1629_v46  ;;  %v6631_v46 = vld [vmem:[#allocation21_spill] sm:$0xff] }
 0x5da   : > { %v4832_v18 = vpop.eup %4831  ;;  %4843 = vrcp.f32 %v1633_v1 }
 0x5db   : > { %v1641_v26 = vpop.xlane.xlu1 %1640  ;;  %v1709_v49 = vpop.permute.xlu0 %1708  ;;  %v1669_v53 = vmul.f32 %v4832_v18, %v5794_v13  ;;  %4845 = vrcp.f32 %v1639_v23  ;;  %v6633_v23 = vld [vmem:[#allocation23_spill] sm:$0xff] }
 0x5dc   : > { %4346 = vmatprep.subr.bf16.mxu1 %v1709_v49  ;;  %v4834_v22 = vpop.eup %4833  ;;  %2280 = vmax.xlane.f32.xlu0 %v5924_v37  ;;  %4847 = vrcp.f32 %v1637_v29 }
 0x5dd   : > { %4347 = vmatpush3.bf16.msra.mxu1 %v1709_v49  ;;  %v4836_v14 = vpop.eup %4835  ;;  %v1666_v2 = vmul.f32 %v4834_v22, %v5766_v27  ;;  %4849 = vrcp.f32 %v1641_v26 }
 0x5de   : > { %v1668_v12 = vmul.f32 %v4836_v14, %v5788_v9  ;;  %v4838_v38 = vpop.eup %4837  ;;  %v5944_v9 = vadd.f32 %v5852_v62, %v6631_v46  ;;  %v4714_v46 = vld [vmem:[%s6580_s4 + $0x18] sm:$0xff]  }
 0x5df   : > { %v1711_v43 = vpop.permute.xlu1 %1710  ;;  %v1681_v8 = vpack.c.bf16 %v1667_v7, %v1666_v2  ;;  %v1671_v45 = vmul.f32 %v4838_v38, %v5790_v40 }
 0x5e0   : > { %4348 = vmatprep.subr.bf16.mxu1 %v1711_v43  ;;  %2284 = vmax.xlane.f32.xlu0 %v5930_v15  ;;  %v1682_v35 = vpack.c.bf16 %v1669_v53, %v1668_v12 }
 0x5e1   : > { %4349 = vmatpush3.bf16.msra.mxu1 %v1711_v43 }
 0x5e2   : > { %v4840_v44 = vpop.eup %4839 }
 0x5e3   : > { %v4842_v13 = vpop.eup %4841  ;;  %v1673_v55 = vmul.f32 %v4840_v44, %v5806_v31  ;;  %v2725_v22 = vpop.permute.xlu1 %2724 }
 0x5e4   : > { %4351 = vmatmul.mubr.bf16.vlgmr.msra.gmra.mrb[32].mxu1 %v1681_v8  ;;  %2288 = vmax.xlane.f32.xlu0 %v5938_v61  ;;  %v4844_v27 = vpop.eup %4843  ;;  %v1670_v56 = vmul.f32 %v4842_v13, %v5782_v54  ;;  %v5958_v54 = vadd.f32 %v5852_v62, %v6633_v23  ;;  %v2766_v39 = vsel %vm936_vm0, %v2725_v22, 0 }
 0x5e5   : > { %4354 = vmatprep.mubr.bf16.mxu1 %v1682_v35  ;;  %v1672_v25 = vmul.f32 %v4844_v27, %v5800_v4  ;;  %v4846_v10 = vpop.eup %4845 }
 0x5e6   : > { %v1683_v29 = vpack.c.bf16 %v1671_v45, %v1670_v56  ;;  %v4848_v40 = vpop.eup %4847  ;;  %v1675_v31 = vmul.f32 %v4846_v10, %v5802_v58  ;;  %v6636_v58 = vld [vmem:[#allocation3_spill] sm:$0xff] }
 0x5e7   : > { %v1684_v1 = vpack.c.bf16 %v1673_v55, %v1672_v25  ;;  %v1674_v4 = vmul.f32 %v4848_v40, %v5796_v30  ;;  %v4850_v49 = vpop.eup %4849  ;;  %v2727_v35 = vpop.permute.xlu1 %2726  ;;  %v5994_v55 = vld [vmem:[%s6580_s4] sm:$0xff]  }
 0x5e8   : > { %2292 = vmax.xlane.f32.xlu0 %v5944_v9  ;;  %v1676_v7 = vmul.f32 %v4850_v49, %v5812_v3 }
 0x5e9   : > { %v1685_v5 = vpack.c.bf16 %v1675_v31, %v1674_v4 }
 0x5eb   : > { %v2729_v13 = vpop.permute.xlu1 %2728 }
 0x5ec   : > { %4355 = vmatmul.mubr.bf16.gmra.mrb[36].mxu1 %v1683_v29  ;;  %2296 = vmax.xlane.f32.xlu0 %v5952_v52 }
 0x5ed   : > { %4358 = vmatprep.mubr.bf16.mxu1 %v1684_v1 }
 0x5ef   : > { %v2733_v45 = vpop.permute.xlu1 %2732 }
 0x5f0   : > { %2300 = vmax.xlane.f32.xlu0 %v5958_v54  ;;  %v2778_v56 = vsel %vm936_vm0, %v2733_v45, 0 }
 0x5f3   : > { %v2737_v25 = vpop.permute.xlu1 %2736 }
 0x5f4   : > { %4359 = vmatmul.mubr.bf16.gmra.mrb[40].mxu1 %v1685_v5  ;;  %v2784_v1 = vsel %vm936_vm0, %v2737_v25, 0 }
 0x5f7   : > { %v2709_v10 = vpop.permute.xlu1 %2708 }
 0x5fb   : > { %v2713_v40 = vpop.permute.xlu1 %2712 }
 0x5ff   : > { %v2717_v23 = vpop.permute.xlu1 %2716 }
 0x603   : > { %v2721_v5 = vpop.permute.xlu1 %2720 }
 0x606   : > { %2424 = vrot.lane.b32.xlu0 %v6634_v33, %s5035_s13 }
 0x60a   : > { %2428 = vrot.lane.b32.xlu0 %v6635_v11, %s5035_s13 }
 0x60c   : > { %v1643_v47 = vpop.xlane.xlu0 %1642 }
 0x60d   : > { %4851 = vrcp.f32 %v1643_v47 }
 0x60e   : > { %4853 = vrcp.f32 %v5917_v16  ;;  %2430 = vrot.lane.b32.xlu0 %v6636_v58, %s5035_s13 }
 0x610   : > { %v1647_v28 = vpop.xlane.xlu0 %1646 }
 0x611   : > { %4855 = vrcp.f32 %v1647_v28 }
 0x614   : > { %v2723_v30 = vpop.permute.xlu0 %2722 }
 0x615   : > { %4662 = vmatprep.subr.msk.bf16.mxu0 %vm936_vm0, %v2723_v30  ;;  %v2763_v18 = vsel %vm936_vm0, %v2723_v30, 0 }
 0x616   : > { %4491 = vmatpush3.bf16.xpose.msra.mxu0 %v2763_v18 }
 0x617   : > { %v4852_v26 = vpop.eup %4851  ;;  %4663 = vmatprep.subr.msk.bf16.mxu0 %vm936_vm0, %v2725_v22 }
 0x618   : > { %v2731_v14 = vpop.permute.xlu0 %2730  ;;  %v1677_v16 = vmul.f32 %v4852_v26, %v5835_v41  ;;  %v4854_v43 = vpop.eup %4853  ;;  %v2769_v41 = vsel %vm936_vm0, %v2727_v35, 0 }
 0x619   : > { %v1678_v8 = vmul.f32 %v4854_v43, %v5808_v36  ;;  %v4713_v36 = vld [vmem:[%s6580_s4 + $0x10] sm:$0xff]   ;;  %v2775_v27 = vsel %vm936_vm0, %v2731_v14, 0 }
 0x61a   : > { %v1686_v53 = vpack.c.bf16 %v1677_v16, %v1676_v7  ;;  %4366 = vmatprep.subr.bf16.mxu1 %v4713_v36 }
 0x61b   : > { %v4856_v2 = vpop.eup %4855  ;;  %4367 = vmatpush3.bf16.msra.mxu1 %v4713_v36 }
 0x61c   : > { %4362 = vmatprep.mubr.bf16.mxu1 %v1686_v53  ;;  %v2735_v12 = vpop.permute.xlu0 %2734  ;;  %v1679_v38 = vmul.f32 %v4856_v2, %v5840_v60  ;;  %v2772_v60 = vsel %vm936_vm0, %v2729_v13, 0  ;;  %4368 = vmatprep.subr.bf16.mxu1 %v4714_v46 }
 0x61d   : > { %v2781_v29 = vsel %vm936_vm0, %v2735_v12, 0 }
 0x61e   : > { %4493 = vmatpush3.bf16.xpose.msra.mxu0 %v2766_v39  ;;  %v1687_v44 = vpack.c.bf16 %v1679_v38, %v1678_v8 }
 0x61f   : > { %4664 = vmatprep.subr.msk.bf16.mxu0 %vm936_vm0, %v2727_v35  ;;  %4369 = vmatpush3.bf16.msra.mxu1 %v4714_v46 }
 0x620   : > { %4363 = vmatmul.mubr.bf16.gmra.mrb[44].mxu1 %v1687_v44  ;;  %v2707_v3 = vpop.permute.xlu0 %2706  ;;  %4386 = vmatprep.subr.bf16.mxu1 %v5994_v55 }
 0x621   : > { %4506 = vmatprep.mubr.msk.bf16.mxu0 %vm936_vm0, %v2707_v3 }
 0x624   : > { %v2711_v48 = vpop.permute.xlu0 %2710 }
 0x626   : > { %4495 = vmatpush3.bf16.xpose.msra.mxu0 %v2769_v41 }
 0x627   : > { %4665 = vmatprep.subr.msk.bf16.mxu0 %vm936_vm0, %v2729_v13 }
 0x628   : > { %v2715_v31 = vpop.permute.xlu0 %2714 }
 0x62c   : > { %v2719_v4 = vpop.permute.xlu0 %2718 }
 0x62e   : > { %4497 = vmatpush3.bf16.xpose.msra.mxu0 %v2772_v60 }
 0x62f   : > { %4666 = vmatprep.subr.msk.bf16.mxu0 %vm936_vm0, %v2731_v14 }
 0x634   : > { %v2275_v28 = vpop.xlane.xlu1 %2274 }
 0x635   : > { %v2305_v43 = vsub.f32 %v5856_v63, %v2275_v28 }
 0x636   : > { %4499 = vmatpush3.bf16.xpose.msra.mxu0 %v2775_v27 }
 0x637   : > { %4667 = vmatprep.subr.msk.bf16.mxu0 %vm936_vm0, %v2733_v45 }
 0x638   : > { %v2283_v26 = vpop.xlane.xlu1 %2282 }
 0x63e   : > { %4501 = vmatpush3.bf16.xpose.msra.mxu0 %v2778_v56 }
 0x63f   : > { %4668 = vmatprep.subr.msk.bf16.mxu0 %vm936_vm0, %v2735_v12  ;;  %v2287_v12 = vpop.xlane.xlu1 %2286 }
 0x640   : > { %v2311_v41 = vsub.f32 %v5870_v17, %v2287_v12 }
 0x642   : > { %v2334_v60 = vmul.f32 1.442695, %v2311_v41 }
 0x646   : > { %4503 = vmatpush3.bf16.xpose.msra.mxu0 %v2781_v29 }
 0x647   : > { %4669 = vmatprep.subr.msk.bf16.mxu0 %vm936_vm0, %v2737_v25 }
 0x64e   : > { %4505 = vmatpush3.bf16.xpose.msra.mxu0 %v2784_v1 }
 0x655   : > { %4507 = vmatmul.mubr.msk.bf16.vlgmr.msra.gmra.mrb[80].mxu0 %vm936_vm0, %v2709_v10 }
 0x656   : > { %4510 = vmatprep.mubr.msk.bf16.mxu0 %vm936_vm0, %v2711_v48 }
 0x65d   : > { %4511 = vmatmul.mubr.msk.bf16.gmra.mrb[84].mxu0 %vm936_vm0, %v2713_v40  ;;  %v2273_v47 = vpop.xlane.xlu0 %2272 }
 0x65e   : > { %4514 = vmatprep.mubr.msk.bf16.mxu0 %vm936_vm0, %v2715_v31  ;;  %v2304_v49 = vsub.f32 %v5899_v24, %v2273_v47  ;;  %v2322_v24 = vmul.f32 1.442695, %v2305_v43 }
 0x660   : > { %v2320_v14 = vmul.f32 1.442695, %v2304_v49 }
 0x661   : > { %v2277_v30 = vpop.xlane.xlu0 %2276 }
 0x662   : > { %v2306_v18 = vsub.f32 %v5906_v57, %v2277_v30  ;;  %v2309_v57 = vsub.f32 %v5863_v42, %v2283_v26 }
 0x664   : > { %v2324_v22 = vmul.f32 1.442695, %v2306_v18  ;;  %v2330_v63 = vmul.f32 1.442695, %v2309_v57 }
 0x665   : > { %4515 = vmatmul.mubr.msk.bf16.gmra.mrb[88].mxu0 %vm936_vm0, %v2717_v23  ;;  %v2279_v7 = vpop.xlane.xlu0 %2278 }
 0x666   : > { %4857 = vpow2.f32 %v2324_v22  ;;  %4518 = vmatprep.mubr.msk.bf16.mxu0 %vm936_vm0, %v2719_v4  ;;  %v2307_v16 = vsub.f32 %v5915_v59, %v2279_v7  ;;  %v2291_v59 = vpop.xlane.xlu1 %2290 }
 0x667   : > { %4859 = vpow2.f32 %v2320_v14  ;;  %v2313_v10 = vsub.f32 %v5877_v0, %v2291_v59 }
 0x668   : > { %v2326_v53 = vmul.f32 1.442695, %v2307_v16 }
 0x669   : > { %v2281_v2 = vpop.xlane.xlu0 %2280  ;;  %v2338_v4 = vmul.f32 1.442695, %v2313_v10 }
 0x66a   : > { %4861 = vpow2.f32 %v2326_v53  ;;  %v2308_v38 = vsub.f32 %v5924_v37, %v2281_v2  ;;  %v2295_v27 = vpop.xlane.xlu1 %2294 }
 0x66b   : > { %4863 = vpow2.f32 %v2322_v24  ;;  %v2315_v17 = vsub.f32 %v5884_v19, %v2295_v27 }
 0x66c   : > { %v2328_v13 = vmul.f32 1.442695, %v2308_v38 }
 0x66d   : > { %4519 = vmatmul.mubr.msk.bf16.gmra.mrb[92].mxu0 %vm936_vm0, %v2721_v5  ;;  %v2285_v8 = vpop.xlane.xlu0 %2284  ;;  %v2342_v48 = vmul.f32 1.442695, %v2315_v17 }
 0x66e   : > { %v2310_v39 = vsub.f32 %v5930_v15, %v2285_v8  ;;  %v2299_v18 = vpop.xlane.xlu1 %2298  ;;  %v4716_v8 = vld [vmem:[%s6580_s4 + $0x8] sm:$0xff]  }
 0x66f   : > { %v2317_v22 = vsub.f32 %v5889_v20, %v2299_v18 }
 0x670   : > { %v6016_v35 = vpop.eup %4857  ;;  %v2332_v44 = vmul.f32 1.442695, %v2310_v39 }
 0x671   : > { %2356 = vadd.xlane.f32.xlu1 %v6016_v35  ;;  %v2289_v3 = vpop.xlane.xlu0 %2288  ;;  %v6021_v36 = vpop.eup %4859  ;;  %v2346_v7 = vmul.f32 1.442695, %v2317_v22  ;;  %v6640_v22 = vld [vmem:[#allocation7_spill] sm:$0xff] }
 0x672   : > { %4865 = vpow2.f32 %v2332_v44  ;;  %v2312_v42 = vsub.f32 %v5938_v61, %v2289_v3  ;;  %v2303_v26 = vpop.xlane.xlu1 %2302 }
 0x673   : > { %4867 = vpow2.f32 %v2330_v63  ;;  %v2319_v16 = vsub.f32 %v5894_v21, %v2303_v26  ;;  %v6641_v26 = vld [vmem:[#allocation5_spill] sm:$0xff] }
 0x674   : > { %v2336_v37 = vmul.f32 1.442695, %v2312_v42  ;;  %4869 = vpow2.f32 %v2328_v13  ;;  %v6025_v46 = vpop.eup %4861 }
 0x675   : > { %2352 = vadd.xlane.f32.xlu1 %v6021_v36  ;;  %v2293_v15 = vpop.xlane.xlu0 %2292  ;;  %v6029_v25 = vpop.eup %4863  ;;  %v2350_v57 = vmul.f32 1.442695, %v2319_v16  ;;  %v6643_v16 = vld [vmem:[#allocation12_spill] sm:$0xff] }
 0x676   : > { %v2314_v45 = vsub.f32 %v5944_v9, %v2293_v15  ;;  %4871 = vpow2.f32 %v2336_v37  ;;  %v2427_v27 = vpop.permute.xlu1 %2426 }
 0x677   : > { %4873 = vpow2.f32 %v2334_v60 }
 0x678   : > { %v2340_v56 = vmul.f32 1.442695, %v2314_v45 }
 0x679   : > { %2358 = vadd.xlane.f32.xlu1 %v6025_v46  ;;  %v2297_v61 = vpop.xlane.xlu0 %2296 }
 0x67a   : > { %4875 = vpow2.f32 %v2340_v56  ;;  %v2316_v1 = vsub.f32 %v5952_v52, %v2297_v61  ;;  %v2433_v17 = vpop.permute.xlu1 %2432 }
 0x67b   : > { %4877 = vpow2.f32 %v2342_v48 }
 0x67c   : > { %v6031_v29 = vpop.eup %4865  ;;  %v2344_v0 = vmul.f32 1.442695, %v2316_v1 }
 0x67d   : > { %2354 = vadd.xlane.f32.xlu1 %v6029_v25  ;;  %2364 = vadd.xlane.f32.xlu0 %v6031_v29  ;;  %v2301_v9 = vpop.xlane.xlu0 %2300  ;;  %v6038_v40 = vpop.eup %4867 }
 0x67e   : > { %v2318_v19 = vsub.f32 %v5958_v54, %v2301_v9  ;;  %v6040_v31 = vpop.eup %4869  ;;  %v2435_v1 = vpop.permute.xlu1 %2434 }
 0x680   : > { %v2348_v23 = vmul.f32 1.442695, %v2318_v19  ;;  %v6044_v5 = vpop.eup %4871  ;;  %v6637_v19 = vld [vmem:[#allocation8_spill] sm:$0xff] }
 0x681   : > { %2362 = vadd.xlane.f32.xlu1 %v6038_v40  ;;  %2360 = vadd.xlane.f32.xlu0 %v6040_v31  ;;  %v6046_v47 = vpop.eup %4873  ;;  %v2425_v44 = vpop.permute.xlu0 %2424 }
 0x682   : > { %4879 = vpow2.f32 %v2348_v23  ;;  %v6638_v23 = vld [vmem:[#allocation6_spill] sm:$0xff] }
 0x683   : > { %4881 = vpow2.f32 %v2338_v4  ;;  %v6639_v4 = vpack.c.bf16 %v6637_v19, %v6638_v23  ;;  %v6659_v23 = vld [vmem:[#allocation17_spill] sm:$0xff] }
 0x684   : > { %4883 = vpow2.f32 %v2344_v0  ;;  %v6050_v52 = vpop.eup %4875 }
 0x685   : > { %2368 = vadd.xlane.f32.xlu1 %v6044_v5  ;;  %2366 = vadd.xlane.f32.xlu0 %v6046_v47  ;;  %v6053_v54 = vpop.eup %4877  ;;  %4885 = vpow2.f32 %v2346_v7  ;;  %v2429_v18 = vpop.permute.xlu0 %2428 }
 0x686   : > { %4887 = vpow2.f32 %v2350_v57  ;;  %v6647_v57 = vld [vmem:[#allocation9_spill] sm:$0xff] }
 0x689   : > { %2372 = vadd.xlane.f32.xlu0 %v6050_v52 }
 0x68c   : > { %v6055_v28 = vpop.eup %4879 }
 0x68d   : > { %2374 = vadd.xlane.f32.xlu0 %v6053_v54  ;;  %2380 = vadd.xlane.f32.xlu1 %v6055_v28  ;;  %v6059_v30 = vpop.eup %4881 }
 0x68e   : > { %v6061_v49 = vpop.eup %4883 }
 0x68f   : > { %v6078_v3 = vpop.eup %4885 }
 0x690   : > { %v6082_v42 = vpop.eup %4887 }
 0x691   : > { %2370 = vadd.xlane.f32.xlu0 %v6059_v30  ;;  %2376 = vadd.xlane.f32.xlu1 %v6061_v49 }
 0x6a2   : > { %2438 = vrot.lane.b32.xlu1 %v5323_v50, %s5035_s13 }
 0x6a7   : > { %2436 = vrot.lane.b32.xlu0 %v5326_v51, %s5035_s13 }
 0x6b7   : > { %v4352_v14 = vpop.f32.mrb[32].mxu1 }
 0x6b8   : > { %v1754_v43 = vpop.f32.mrb[33].mxu1 }
 0x6b9   : > { %v4353_v53 = vpop.f32.mrb[34].mxu1 }
 0x6ba   : > { %v1818_v2 = vpack.c.bf16 %v4353_v53, %v4352_v14  ;;  %v1757_v12 = vpop.f32.mrb[35].mxu1  ;;  %v6642_v14 = vpack.c.bf16 %v6640_v22, %v6641_v26 }
 0x6bb   : > { %v1817_v24 = vpack.c.bf16 %v1757_v12, %v1754_v43  ;;  %v6644_v43 = vld [vmem:[#allocation10_spill] sm:$0xff]  ;;  %v2431_v12 = vpop.permute.xlu0 %2430 }
 0x6bc   : > { %v6645_v53 = vpack.c.bf16 %v6643_v16, %v6644_v43 }
 0x6bd   : > { %4370 = vmatprep.mubr.msk.bf16.mxu1 %vm936_vm0, %v1817_v24  ;;  %v6646_v24 = vld [vmem:[#allocation11_spill] sm:$0xff] }
 0x6be   : > { %4371 = vmatmul.mubr.msk.bf16.vlgmr.msra.gmra.mrb[48].mxu1 %vm936_vm0, %v1818_v2 }
 0x6bf   : > { %4387 = vmatpush3.bf16.msra.mxu1 %v5994_v55  ;;  %v4356_v20 = vpop.f32.mrb[36].mxu1 }
 0x6c0   : > { %v1770_v21 = vpop.f32.mrb[37].mxu1  ;;  %4388 = vmatprep.subr.bf16.mxu1 %v4716_v8 }
 0x6c1   : > { %v4357_v38 = vpop.f32.mrb[38].mxu1 }
 0x6c2   : > { %v1820_v39 = vpack.c.bf16 %v4357_v38, %v4356_v20  ;;  %v1773_v59 = vpop.f32.mrb[39].mxu1  ;;  %v6649_v38 = vld [vmem:[#allocation16_spill] sm:$0xff] }
 0x6c3   : > { %v1819_v63 = vpack.c.bf16 %v1773_v59, %v1770_v21  ;;  %4389 = vmatpush3.bf16.msra.mxu1 %v4716_v8  ;;  %v6648_v8 = vpack.c.bf16 %v6646_v24, %v6647_v57 }
 0x6c4   : > { %4438 = vmatprep.subr.bf16.mxu1 %v2425_v44 }
 0x6c5   : > { %4374 = vmatprep.mubr.msk.bf16.mxu1 %vm936_vm0, %v1819_v63 }
 0x6c6   : > { %4375 = vmatmul.mubr.msk.bf16.gmra.mrb[52].mxu1 %vm936_vm0, %v1820_v39  ;;  %2378 = vadd.xlane.f32.xlu0 %v6078_v3  ;;  %v6650_v39 = vld [vmem:[#allocation14_spill] sm:$0xff] }
 0x6c7   : > { %v4360_v55 = vpop.f32.mrb[40].mxu1  ;;  %v6651_v59 = vpack.c.bf16 %v6649_v38, %v6650_v39 }
 0x6c8   : > { %v1786_v41 = vpop.f32.mrb[41].mxu1 }
 0x6c9   : > { %v4361_v13 = vpop.f32.mrb[42].mxu1 }
 0x6ca   : > { %v1822_v37 = vpack.c.bf16 %v4361_v13, %v4360_v55  ;;  %v1789_v15 = vpop.f32.mrb[43].mxu1  ;;  %2382 = vadd.xlane.f32.xlu0 %v6082_v42  ;;  %v6652_v55 = vld [vmem:[#allocation15_spill] sm:$0xff] }
 0x6cb   : > { %v1821_v60 = vpack.c.bf16 %v1789_v15, %v1786_v41  ;;  %v6653_v41 = vld [vmem:[#allocation13_spill] sm:$0xff] }
 0x6cc   : > { %v6654_v13 = vpack.c.bf16 %v6652_v55, %v6653_v41 }
 0x6cd   : > { %4378 = vmatprep.mubr.msk.bf16.mxu1 %vm936_vm0, %v1821_v60  ;;  %v6655_v60 = vld [vmem:[#allocation20_spill] sm:$0xff] }
 0x6ce   : > { %4379 = vmatmul.mubr.msk.bf16.gmra.mrb[56].mxu1 %vm936_vm0, %v1822_v37 }
 0x6f3   : > { %v4364_v45 = vpop.f32.mrb[44].mxu1 }
 0x6f4   : > { %v1802_v61 = vpop.f32.mrb[45].mxu1 }
 0x6f5   : > { %v4365_v56 = vpop.f32.mrb[46].mxu1 }
 0x6f6   : > { %v1824_v10 = vpack.c.bf16 %v4365_v56, %v4364_v45  ;;  %v1805_v48 = vpop.f32.mrb[47].mxu1 }
 0x6f7   : > { %v1823_v9 = vpack.c.bf16 %v1805_v48, %v1802_v61 }
 0x6f9   : > { %4382 = vmatprep.mubr.msk.bf16.mxu1 %vm936_vm0, %v1823_v9 }
 0x6fa   : > { %4383 = vmatmul.mubr.msk.bf16.gmra.mrb[60].mxu1 %vm936_vm0, %v1824_v10 }
 0x6fb   : > { %4390 = vmatprep.mubr.msk.bf16.mxu1 %vm936_vm0, %v6639_v4 }
 0x6fe   : > { %v2357_v0 = vpop.xlane.xlu1 %2356 }
 0x702   : > { %4391 = vmatmul.mubr.msk.bf16.vlgmr.msra.gmra.mrb[48].mxu1 %vm936_vm0, %v6642_v14  ;;  %v2353_v7 = vpop.xlane.xlu1 %2352 }
 0x703   : > { %4439 = vmatpush3.bf16.msra.mxu1 %v2425_v44  ;;  %4394 = vmatprep.mubr.msk.bf16.mxu1 %vm936_vm0, %v6645_v53  ;;  %4889 = vrcp.f32 %v2353_v7 }
 0x704   : > { %4440 = vmatprep.subr.bf16.mxu1 %v2427_v27 }
 0x706   : > { %v2359_v2 = vpop.xlane.xlu1 %2358 }
 0x707   : > { %4441 = vmatpush3.bf16.msra.mxu1 %v2427_v27  ;;  %v6656_v27 = vld [vmem:[#allocation18_spill] sm:$0xff] }
 0x708   : > { %4442 = vmatprep.subr.bf16.mxu1 %v2429_v18  ;;  %v6657_v45 = vpack.c.bf16 %v6655_v60, %v6656_v27 }
 0x70a   : > { %4395 = vmatmul.mubr.msk.bf16.gmra.mrb[52].mxu1 %vm936_vm0, %v6648_v8  ;;  %v2355_v20 = vpop.xlane.xlu1 %2354  ;;  %v2365_v21 = vpop.xlane.xlu0 %2364 }
 0x70b   : > { %4891 = vrcp.f32 %v2355_v20  ;;  %4443 = vmatpush3.bf16.msra.mxu1 %v2429_v18  ;;  %4398 = vmatprep.mubr.msk.bf16.mxu1 %vm936_vm0, %v6651_v59 }
 0x70c   : > { %4444 = vmatprep.subr.bf16.mxu1 %v2431_v12  ;;  %4893 = vrcp.f32 %v2359_v2 }
 0x70d   : > { %v4890_v37 = vpop.eup %4889 }
 0x70e   : > { %v2361_v44 = vpop.xlane.xlu0 %2360  ;;  %v2363_v63 = vpop.xlane.xlu1 %2362  ;;  %v2400_v56 = vmul.f32 %v4890_v37, %v6021_v36 }
 0x70f   : > { %4445 = vmatpush3.bf16.msra.mxu1 %v2431_v12  ;;  %4895 = vrcp.f32 %v2363_v63 }
 0x710   : > { %4446 = vmatprep.subr.bf16.mxu1 %v2433_v17  ;;  %4897 = vrcp.f32 %v2361_v44 }
 0x711   : > { %4899 = vrcp.f32 %v2357_v0 }
 0x712   : > { %4399 = vmatmul.mubr.msk.bf16.gmra.mrb[56].mxu1 %vm936_vm0, %v6654_v13  ;;  %v2367_v15 = vpop.xlane.xlu0 %2366  ;;  %v2369_v48 = vpop.xlane.xlu1 %2368 }
 0x713   : > { %4447 = vmatpush3.bf16.msra.mxu1 %v2433_v17  ;;  %4402 = vmatprep.mubr.msk.bf16.mxu1 %vm936_vm0, %v6657_v45  ;;  %v6658_v17 = vld [vmem:[#allocation19_spill] sm:$0xff]  ;;  %4901 = vrcp.f32 %v2367_v15 }
 0x714   : > { %4448 = vmatprep.subr.bf16.mxu1 %v2435_v1  ;;  %v6660_v4 = vpack.c.bf16 %v6658_v17, %v6659_v23 }
 0x715   : > { %v4892_v61 = vpop.eup %4891 }
 0x716   : > { %v2401_v10 = vmul.f32 %v4892_v61, %v6029_v25  ;;  %v2373_v9 = vpop.xlane.xlu0 %2372 }
 0x717   : > { %4449 = vmatpush3.bf16.msra.mxu1 %v2435_v1  ;;  %v4894_v1 = vpop.eup %4893 }
 0x718   : > { %v2416_v19 = vpack.c.bf16 %v2401_v10, %v2400_v56  ;;  %v2403_v0 = vmul.f32 %v4894_v1, %v6025_v46 }
 0x719   : > { %v4896_v26 = vpop.eup %4895 }
 0x71a   : > { %4403 = vmatmul.mubr.msk.bf16.gmra.mrb[60].mxu1 %vm936_vm0, %v6660_v4  ;;  %v6123_v18 = vpop.xlane.xlu1 %2380  ;;  %v2375_v22 = vpop.xlane.xlu0 %2374  ;;  %v2405_v2 = vmul.f32 %v4896_v26, %v6038_v40 }
 0x71b   : > { %4454 = vmatprep.mubr.bf16.mxu1 %v2416_v19  ;;  %v4898_v7 = vpop.eup %4897 }
 0x71c   : > { %v4900_v16 = vpop.eup %4899  ;;  %v2404_v53 = vmul.f32 %v4898_v7, %v6040_v31 }
 0x71d   : > { %v2402_v12 = vmul.f32 %v4900_v16, %v6016_v35  ;;  %v4902_v38 = vpop.eup %4901 }
 0x71e   : > { %v6125_v36 = vpop.xlane.xlu1 %2376  ;;  %v2371_v25 = vpop.xlane.xlu0 %2370  ;;  %v2418_v46 = vpack.c.bf16 %v2405_v2, %v2404_v53  ;;  %v2407_v44 = vmul.f32 %v4902_v38, %v6046_v47  ;;  %v4718_v2 = vld [vmem:[%s6580_s4 + $0x28] sm:$0xff]  }
 0x71f   : > { %4903 = vrcp.f32 %v2371_v25 }
 0x720   : > { %4905 = vrcp.f32 %v2365_v21  ;;  %v2417_v21 = vpack.c.bf16 %v2403_v0, %v2402_v12  ;;  %v4717_v0 = vld [vmem:[%s6580_s4 + $0x20] sm:$0xff]  }
 0x721   : > { %4907 = vrcp.f32 %v2369_v48 }
 0x722   : > { %v2437_v14 = vpop.permute.xlu0 %2436  ;;  %v2439_v43 = vpop.permute.xlu1 %2438  ;;  %4909 = vrcp.f32 %v2375_v22 }
 0x723   : > { %4450 = vmatprep.subr.bf16.mxu1 %v2437_v14  ;;  %4911 = vrcp.f32 %v2373_v9 }
 0x724   : > { %4451 = vmatpush3.bf16.msra.mxu1 %v2437_v14  ;;  %4913 = vrcp.f32 %v6125_v36 }
 0x725   : > { %4452 = vmatprep.subr.bf16.mxu1 %v2439_v43 }
 0x728   : > { %v4508_v24 = vpop.f32.mrb[80].mxu0  ;;  %4453 = vmatpush3.bf16.msra.mxu1 %v2439_v43 }
 0x729   : > { %v2820_v57 = vpop.f32.mrb[81].mxu0  ;;  %v4904_v59 = vpop.eup %4903  ;;  %v6144_v15 = vadd.f32 %v5852_v62, %v4508_v24  ;;  %4470 = vmatprep.subr.bf16.mxu1 %v4717_v0 }
 0x72a   : > { %v6132_v8 = vadd.f32 %v5852_v62, %v2820_v57  ;;  %v4509_v20 = vpop.f32.mrb[82].mxu0  ;;  %v4906_v40 = vpop.eup %4905  ;;  %v2409_v63 = vmul.f32 %v4904_v59, %v6059_v30 }
 0x72b   : > { %v2823_v39 = vpop.f32.mrb[83].mxu0  ;;  %4455 = vmatmul.mubr.bf16.vlgmr.msra.gmra.mrb[64].mxu1 %v2417_v21  ;;  %v4908_v35 = vpop.eup %4907  ;;  %v2406_v41 = vmul.f32 %v4906_v40, %v6031_v29  ;;  %v6152_v29 = vadd.f32 %v5852_v62, %v4509_v20 }
 0x72c   : > { %2883 = vmax.xlane.f32.xlu0 %v6132_v8  ;;  %4458 = vmatprep.mubr.bf16.mxu1 %v2418_v46  ;;  %v6136_v31 = vadd.f32 %v5852_v62, %v2823_v39  ;;  %v2408_v37 = vmul.f32 %v4908_v35, %v6044_v5  ;;  %v4910_v61 = vpop.eup %4909 }
 0x72d   : > { %v2419_v45 = vpack.c.bf16 %v2407_v44, %v2406_v41  ;;  %v4912_v30 = vpop.eup %4911  ;;  %v2411_v5 = vmul.f32 %v4910_v61, %v6053_v54  ;;  %4471 = vmatpush3.bf16.msra.mxu1 %v4717_v0 }
 0x72e   : > { %v2420_v56 = vpack.c.bf16 %v2409_v63, %v2408_v37  ;;  %v2410_v48 = vmul.f32 %v4912_v30, %v6050_v52  ;;  %4472 = vmatprep.subr.bf16.mxu1 %v4718_v2 }
 0x730   : > { %v4512_v55 = vpop.f32.mrb[84].mxu0  ;;  %2885 = vmax.xlane.f32.xlu0 %v6136_v31  ;;  %v2421_v23 = vpack.c.bf16 %v2411_v5, %v2410_v48 }
 0x731   : > { %v2836_v13 = vpop.f32.mrb[85].mxu0  ;;  %v6162_v22 = vadd.f32 %v5852_v62, %v4512_v55  ;;  %4473 = vmatpush3.bf16.msra.mxu1 %v4718_v2 }
 0x732   : > { %v6147_v60 = vadd.f32 %v5852_v62, %v2836_v13  ;;  %v4513_v27 = vpop.f32.mrb[86].mxu0 }
 0x733   : > { %v2839_v47 = vpop.f32.mrb[87].mxu0  ;;  %4459 = vmatmul.mubr.bf16.gmra.mrb[68].mxu1 %v2419_v45  ;;  %v6169_v1 = vadd.f32 %v5852_v62, %v4513_v27 }
 0x734   : > { %2887 = vmax.xlane.f32.xlu0 %v6144_v15  ;;  %2891 = vmax.xlane.f32.xlu1 %v6147_v60  ;;  %v6158_v19 = vadd.f32 %v5852_v62, %v2839_v47 }
 0x735   : > { %4462 = vmatprep.mubr.bf16.mxu1 %v2420_v56 }
 0x738   : > { %v4516_v10 = vpop.f32.mrb[88].mxu0  ;;  %2889 = vmax.xlane.f32.xlu0 %v6152_v29 }
 0x739   : > { %v2852_v9 = vpop.f32.mrb[89].mxu0  ;;  %v6182_v43 = vadd.f32 %v5852_v62, %v4516_v10 }
 0x73a   : > { %v4517_v17 = vpop.f32.mrb[90].mxu0  ;;  %v6174_v7 = vadd.f32 %v5852_v62, %v2852_v9 }
 0x73b   : > { %v2855_v4 = vpop.f32.mrb[91].mxu0  ;;  %4463 = vmatmul.mubr.bf16.gmra.mrb[72].mxu1 %v2421_v23  ;;  %v6189_v53 = vadd.f32 %v5852_v62, %v4517_v17 }
 0x73c   : > { %2893 = vmax.xlane.f32.xlu0 %v6158_v19  ;;  %v6178_v16 = vadd.f32 %v5852_v62, %v2855_v4 }
 0x740   : > { %v4520_v25 = vpop.f32.mrb[92].mxu0  ;;  %2895 = vmax.xlane.f32.xlu0 %v6162_v22 }
 0x741   : > { %v6166_v54 = vadd.f32 %v5852_v62, %v4520_v25  ;;  %v2868_v52 = vpop.f32.mrb[93].mxu0 }
 0x742   : > { %v4521_v26 = vpop.f32.mrb[94].mxu0  ;;  %v6199_v24 = vadd.f32 %v5852_v62, %v2868_v52 }
 0x743   : > { %v2871_v14 = vpop.f32.mrb[95].mxu0  ;;  %2911 = vmax.xlane.f32.xlu1 %v6166_v54  ;;  %v6212_v20 = vadd.f32 %v5852_v62, %v4521_v26 }
 0x744   : > { %2897 = vmax.xlane.f32.xlu0 %v6169_v1  ;;  %v6206_v36 = vadd.f32 %v5852_v62, %v2871_v14 }
 0x748   : > { %2899 = vmax.xlane.f32.xlu0 %v6174_v7 }
 0x74c   : > { %2901 = vmax.xlane.f32.xlu0 %v6178_v16 }
 0x750   : > { %2903 = vmax.xlane.f32.xlu0 %v6182_v43 }
 0x753   : > { %v2379_v12 = vpop.xlane.xlu0 %2378 }
 0x754   : > { %2905 = vmax.xlane.f32.xlu0 %v6189_v53  ;;  %3035 = vrot.lane.b32.xlu1 %v6634_v33, %s5036_s14  ;;  %4915 = vrcp.f32 %v2379_v12  ;;  %v4914_v33 = vpop.eup %4913 }
 0x755   : > { %4917 = vrcp.f32 %v6123_v18 }
 0x757   : > { %v2383_v57 = vpop.xlane.xlu0 %2382 }
 0x758   : > { %2907 = vmax.xlane.f32.xlu0 %v6199_v24  ;;  %3037 = vrot.lane.b32.xlu1 %v5290_v6, %s5036_s14  ;;  %4919 = vrcp.f32 %v2383_v57  ;;  %v2412_v6 = vmul.f32 %v4914_v33, %v6061_v49 }
 0x75c   : > { %2909 = vmax.xlane.f32.xlu0 %v6206_v36  ;;  %3041 = vrot.lane.b32.xlu1 %v6636_v58, %s5036_s14 }
 0x75e   : > { %v4916_v18 = vpop.eup %4915 }
 0x75f   : > { %v2413_v21 = vmul.f32 %v4916_v18, %v6078_v3  ;;  %v4918_v38 = vpop.eup %4917 }
 0x760   : > { %2913 = vmax.xlane.f32.xlu0 %v6212_v20  ;;  %3047 = vrot.lane.b32.xlu1 %v5326_v51, %s5036_s14  ;;  %v2414_v58 = vmul.f32 %v4918_v38, %v6055_v28 }
 0x761   : > { %v2422_v39 = vpack.c.bf16 %v2413_v21, %v2412_v6 }
 0x762   : > { %v4920_v46 = vpop.eup %4919 }
 0x763   : > { %4466 = vmatprep.mubr.bf16.mxu1 %v2422_v39  ;;  %v2415_v59 = vmul.f32 %v4920_v46, %v6082_v42 }
 0x765   : > { %v2423_v62 = vpack.c.bf16 %v2415_v59, %v2414_v58 }
 0x767   : > { %4467 = vmatmul.mubr.bf16.gmra.mrb[76].mxu1 %v2423_v62 }
 0x776   : > { %3039 = vrot.lane.b32.xlu0 %v6635_v11, %s5036_s14 }
 0x77a   : > { %3043 = vrot.lane.b32.xlu0 %v5316_v34, %s5036_s14 }
 0x77e   : > { %3045 = vrot.lane.b32.xlu0 %v5313_v32, %s5036_s14 }
 0x7b9   : > { %v2884_v51 = vpop.xlane.xlu0 %2883 }
 0x7ba   : > { %v2915_v28 = vsub.f32 %v6132_v8, %v2884_v51 }
 0x7bc   : > { %v2931_v44 = vmul.f32 1.442695, %v2915_v28 }
 0x7bd   : > { %v2886_v49 = vpop.xlane.xlu0 %2885 }
 0x7be   : > { %v2916_v34 = vsub.f32 %v6136_v31, %v2886_v49 }
 0x7c1   : > { %v2888_v3 = vpop.xlane.xlu0 %2887  ;;  %v2892_v55 = vpop.xlane.xlu1 %2891 }
 0x7c2   : > { %v2917_v40 = vsub.f32 %v6144_v15, %v2888_v3  ;;  %v2919_v13 = vsub.f32 %v6147_v60, %v2892_v55  ;;  %v2933_v15 = vmul.f32 1.442695, %v2916_v34 }
 0x7c4   : > { %v2935_v35 = vmul.f32 1.442695, %v2917_v40  ;;  %v2939_v56 = vmul.f32 1.442695, %v2919_v13 }
 0x7c5   : > { %v2890_v42 = vpop.xlane.xlu0 %2889 }
 0x7c6   : > { %4921 = vpow2.f32 %v2935_v35  ;;  %v2918_v63 = vsub.f32 %v6152_v29, %v2890_v42 }
 0x7c7   : > { %4923 = vpow2.f32 %v2931_v44 }
 0x7c8   : > { %v2937_v41 = vmul.f32 1.442695, %v2918_v63 }
 0x7c9   : > { %v2894_v11 = vpop.xlane.xlu0 %2893 }
 0x7ca   : > { %4925 = vpow2.f32 %v2937_v41  ;;  %v2920_v8 = vsub.f32 %v6158_v19, %v2894_v11 }
 0x7cc   : > { %v2941_v30 = vmul.f32 1.442695, %v2920_v8 }
 0x7cd   : > { %v2896_v32 = vpop.xlane.xlu0 %2895 }
 0x7ce   : > { %v2921_v37 = vsub.f32 %v6162_v22, %v2896_v32 }
 0x7d0   : > { %v6234_v27 = vpop.eup %4921  ;;  %v2943_v45 = vmul.f32 1.442695, %v2921_v37  ;;  %v2912_v61 = vpop.xlane.xlu1 %2911 }
 0x7d1   : > { %2967 = vadd.xlane.f32.xlu0 %v6234_v27  ;;  %v2898_v47 = vpop.xlane.xlu0 %2897  ;;  %v6240_v29 = vpop.eup %4923  ;;  %v2929_v19 = vsub.f32 %v6166_v54, %v2912_v61 }
 0x7d2   : > { %4927 = vpow2.f32 %v2943_v45  ;;  %v2922_v31 = vsub.f32 %v6169_v1, %v2898_v47 }
 0x7d3   : > { %4929 = vpow2.f32 %v2933_v15  ;;  %v2959_v52 = vmul.f32 1.442695, %v2929_v19 }
 0x7d4   : > { %v6238_v60 = vpop.permute.xlu1 %3035  ;;  %4931 = vpow2.f32 %v2939_v56  ;;  %v2945_v10 = vmul.f32 1.442695, %v2922_v31  ;;  %v6248_v9 = vpop.eup %4925 }
 0x7d5   : > { %4522 = vmatprep.subr.bf16.mxu0 %v6238_v60  ;;  %4574 = vmatprep.subr.bf16.mxu1 %v6238_v60  ;;  %v2900_v5 = vpop.xlane.xlu0 %2899  ;;  %4933 = vpow2.f32 %v2941_v30 }
 0x7d6   : > { %2963 = vadd.xlane.f32.xlu0 %v6240_v29  ;;  %4523 = vmatpush3.bf16.msra.mxu0 %v6238_v60  ;;  %4935 = vpow2.f32 %v2945_v10  ;;  %v2923_v54 = vsub.f32 %v6174_v7, %v2900_v5 }
 0x7d8   : > { %v6246_v48 = vpop.permute.xlu1 %3037  ;;  %v2947_v12 = vmul.f32 1.442695, %v2923_v54 }
 0x7d9   : > { %4524 = vmatprep.subr.bf16.mxu0 %v6246_v48  ;;  %v2902_v17 = vpop.xlane.xlu0 %2901 }
 0x7da   : > { %2969 = vadd.xlane.f32.xlu0 %v6248_v9  ;;  %v2924_v23 = vsub.f32 %v6178_v16, %v2902_v17  ;;  %4525 = vmatpush3.bf16.msra.mxu0 %v6246_v48 }
 0x7dc   : > { %v6255_v4 = vpop.eup %4927  ;;  %v2949_v22 = vmul.f32 1.442695, %v2924_v23  ;;  %v3042_v49 = vpop.permute.xlu1 %3041 }
 0x7dd   : > { %v6257_v25 = vpop.eup %4929  ;;  %2975 = vadd.xlane.f32.xlu1 %v6255_v4  ;;  %v2904_v1 = vpop.xlane.xlu0 %2903 }
 0x7de   : > { %4937 = vpow2.f32 %v2949_v22  ;;  %2965 = vadd.xlane.f32.xlu0 %v6257_v25  ;;  %v2925_v26 = vsub.f32 %v6182_v43, %v2904_v1  ;;  %v6263_v14 = vpop.eup %4931 }
 0x7df   : > { %v6265_v0 = vpop.eup %4933  ;;  %4939 = vpow2.f32 %v2959_v52 }
 0x7e0   : > { %v2951_v16 = vmul.f32 1.442695, %v2925_v26  ;;  %v6270_v57 = vpop.eup %4935  ;;  %v3048_v44 = vpop.permute.xlu1 %3047 }
 0x7e1   : > { %2971 = vadd.xlane.f32.xlu1 %v6263_v14  ;;  %v2906_v2 = vpop.xlane.xlu0 %2905 }
 0x7e2   : > { %4941 = vpow2.f32 %v2951_v16  ;;  %2973 = vadd.xlane.f32.xlu0 %v6265_v0  ;;  %v2926_v7 = vsub.f32 %v6189_v53, %v2906_v2 }
 0x7e3   : > { %4943 = vpow2.f32 %v2947_v12 }
 0x7e4   : > { %v2953_v33 = vmul.f32 1.442695, %v2926_v7 }
 0x7e5   : > { %2977 = vadd.xlane.f32.xlu1 %v6270_v57  ;;  %v2908_v43 = vpop.xlane.xlu0 %2907 }
 0x7e6   : > { %v2927_v18 = vsub.f32 %v6199_v24, %v2908_v43  ;;  %4945 = vpow2.f32 %v2953_v33 }
 0x7e8   : > { %v6274_v6 = vpop.eup %4937  ;;  %v2955_v21 = vmul.f32 1.442695, %v2927_v18 }
 0x7e9   : > { %2981 = vadd.xlane.f32.xlu0 %v6274_v6  ;;  %v2910_v38 = vpop.xlane.xlu0 %2909  ;;  %v6278_v46 = vpop.eup %4939 }
 0x7ea   : > { %v2928_v39 = vsub.f32 %v6206_v36, %v2910_v38  ;;  %4947 = vpow2.f32 %v2955_v21 }
 0x7ec   : > { %v6280_v53 = vpop.eup %4941  ;;  %v2957_v58 = vmul.f32 1.442695, %v2928_v39 }
 0x7ed   : > { %2991 = vadd.xlane.f32.xlu0 %v6278_v46  ;;  %2983 = vadd.xlane.f32.xlu1 %v6280_v53  ;;  %v2914_v24 = vpop.xlane.xlu0 %2913  ;;  %v6285_v62 = vpop.eup %4943 }
 0x7ee   : > { %4949 = vpow2.f32 %v2957_v58  ;;  %v2930_v59 = vsub.f32 %v6212_v20, %v2914_v24 }
 0x7f0   : > { %v2961_v51 = vmul.f32 1.442695, %v2930_v59  ;;  %v6288_v3 = vpop.eup %4945 }
 0x7f1   : > { %2979 = vadd.xlane.f32.xlu1 %v6285_v62  ;;  %v3040_v36 = vpop.permute.xlu0 %3039 }
 0x7f2   : > { %4951 = vpow2.f32 %v2961_v51  ;;  %4526 = vmatprep.subr.bf16.mxu0 %v3040_v36 }
 0x7f3   : > { %4527 = vmatpush3.bf16.msra.mxu0 %v3040_v36 }
 0x7f4   : > { %4528 = vmatprep.subr.bf16.mxu0 %v3042_v49  ;;  %v6291_v28 = vpop.eup %4947 }
 0x7f5   : > { %2985 = vadd.xlane.f32.xlu1 %v6288_v3  ;;  %v3044_v40 = vpop.permute.xlu0 %3043 }
 0x7f7   : > { %4529 = vmatpush3.bf16.msra.mxu0 %v3042_v49 }
 0x7f8   : > { %v6293_v20 = vpop.eup %4949  ;;  %4530 = vmatprep.subr.bf16.mxu0 %v3044_v40 }
 0x7f9   : > { %2987 = vadd.xlane.f32.xlu1 %v6291_v28  ;;  %2989 = vadd.xlane.f32.xlu0 %v6293_v20  ;;  %v3046_v35 = vpop.permute.xlu0 %3045 }
 0x7fb   : > { %4531 = vmatpush3.bf16.msra.mxu0 %v3044_v40 }
 0x7fc   : > { %v6297_v42 = vpop.eup %4951  ;;  %4532 = vmatprep.subr.bf16.mxu0 %v3046_v35 }
 0x7fd   : > { %2993 = vadd.xlane.f32.xlu1 %v6297_v42 }
 0x7fe   : > { %v4456_v63 = vpop.f32.mrb[64].mxu1 }
 0x7ff   : > { %4533 = vmatpush3.bf16.msra.mxu0 %v3046_v35  ;;  %v2482_v11 = vpop.f32.mrb[65].mxu1 }
 0x800   : > { %4534 = vmatprep.subr.bf16.mxu0 %v3048_v44  ;;  %v4457_v34 = vpop.f32.mrb[66].mxu1 }
 0x801   : > { %v2546_v55 = vpack.c.bf16 %v4457_v34, %v4456_v63  ;;  %v2485_v41 = vpop.f32.mrb[67].mxu1 }
 0x802   : > { %v2545_v32 = vpack.c.bf16 %v2485_v41, %v2482_v11  ;;  %v4719_v11 = vld [vmem:[%s6580_s4 + $0x30] sm:$0xff]  }
 0x803   : > { %4535 = vmatpush3.bf16.msra.mxu0 %v3048_v44 }
 0x804   : > { %4474 = vmatprep.mubr.msk.bf16.mxu1 %vm936_vm0, %v2545_v32 }
 0x805   : > { %4475 = vmatmul.mubr.msk.bf16.vlgmr.msra.gmra.mrb[48].mxu1 %vm936_vm0, %v2546_v55 }
 0x806   : > { %4582 = vmatpush3.bf16.msra.mxu1 %v6238_v60  ;;  %v4460_v13 = vpop.f32.mrb[68].mxu1 }
 0x807   : > { %4575 = vmatprep.subr.bf16.mxu1 %v6246_v48  ;;  %v2498_v37 = vpop.f32.mrb[69].mxu1 }
 0x808   : > { %v4461_v15 = vpop.f32.mrb[70].mxu1 }
 0x809   : > { %v2548_v8 = vpack.c.bf16 %v4461_v15, %v4460_v13  ;;  %v2501_v45 = vpop.f32.mrb[71].mxu1 }
 0x80a   : > { %v2547_v61 = vpack.c.bf16 %v2501_v45, %v2498_v37  ;;  %4583 = vmatpush3.bf16.msra.mxu1 %v6246_v48 }
 0x80b   : > { %4576 = vmatprep.subr.bf16.mxu1 %v3040_v36 }
 0x80c   : > { %4478 = vmatprep.mubr.msk.bf16.mxu1 %vm936_vm0, %v2547_v61 }
 0x80d   : > { %4479 = vmatmul.mubr.msk.bf16.gmra.mrb[52].mxu1 %vm936_vm0, %v2548_v8 }
 0x80e   : > { %4584 = vmatpush3.bf16.msra.mxu1 %v3040_v36  ;;  %v4464_v47 = vpop.f32.mrb[72].mxu1 }
 0x80f   : > { %3049 = vrot.lane.b32.xlu0 %v5323_v50, %s5036_s14  ;;  %4577 = vmatprep.subr.bf16.mxu1 %v3042_v49  ;;  %v2514_v56 = vpop.f32.mrb[73].mxu1 }
 0x810   : > { %v4465_v31 = vpop.f32.mrb[74].mxu1 }
 0x811   : > { %v2550_v30 = vpack.c.bf16 %v4465_v31, %v4464_v47  ;;  %v2517_v60 = vpop.f32.mrb[75].mxu1 }
 0x812   : > { %v2549_v5 = vpack.c.bf16 %v2517_v60, %v2514_v56  ;;  %4585 = vmatpush3.bf16.msra.mxu1 %v3042_v49  ;;  %v4720_v56 = vld [vmem:[%s6580_s4 + $0x38] sm:$0xff]  }
 0x813   : > { %4578 = vmatprep.subr.bf16.mxu1 %v3044_v40 }
 0x814   : > { %4482 = vmatprep.mubr.msk.bf16.mxu1 %vm936_vm0, %v2549_v5 }
 0x815   : > { %4483 = vmatmul.mubr.msk.bf16.gmra.mrb[56].mxu1 %vm936_vm0, %v2550_v30 }
 0x816   : > { %4586 = vmatpush3.bf16.msra.mxu1 %v3044_v40 }
 0x817   : > { %4579 = vmatprep.subr.bf16.mxu1 %v3046_v35 }
 0x81a   : > { %4587 = vmatpush3.bf16.msra.mxu1 %v3046_v35 }
 0x81b   : > { %4580 = vmatprep.subr.bf16.mxu1 %v3048_v44 }
 0x81e   : > { %4588 = vmatpush3.bf16.msra.mxu1 %v3048_v44 }
 0x83a   : > { %v4468_v10 = vpop.f32.mrb[76].mxu1 }
 0x83b   : > { %v2530_v48 = vpop.f32.mrb[77].mxu1 }
 0x83c   : > { %v4469_v50 = vpop.f32.mrb[78].mxu1 }
 0x83d   : > { %v2552_v19 = vpack.c.bf16 %v4469_v50, %v4468_v10  ;;  %v2533_v17 = vpop.f32.mrb[79].mxu1 }
 0x83e   : > { %v2551_v23 = vpack.c.bf16 %v2533_v17, %v2530_v48 }
 0x840   : > { %4486 = vmatprep.mubr.msk.bf16.mxu1 %vm936_vm0, %v2551_v23 }
 0x841   : > { %4487 = vmatmul.mubr.msk.bf16.gmra.mrb[60].mxu1 %vm936_vm0, %v2552_v19 }
 0x85e   : > { %v2968_v22 = vpop.xlane.xlu0 %2967 }
 0x863   : > { %v2964_v52 = vpop.xlane.xlu0 %2963 }
 0x864   : > { %4953 = vrcp.f32 %v2964_v52 }
 0x867   : > { %v2970_v1 = vpop.xlane.xlu0 %2969 }
 0x86a   : > { %v2976_v54 = vpop.xlane.xlu1 %2975 }
 0x86b   : > { %v2966_v26 = vpop.xlane.xlu0 %2965 }
 0x86c   : > { %4955 = vrcp.f32 %v2966_v26 }
 0x86d   : > { %4957 = vrcp.f32 %v2970_v1 }
 0x86e   : > { %v2972_v16 = vpop.xlane.xlu1 %2971  ;;  %v4954_v2 = vpop.eup %4953 }
 0x86f   : > { %v2974_v7 = vpop.xlane.xlu0 %2973  ;;  %v3011_v33 = vmul.f32 %v4954_v2, %v6240_v29  ;;  %4959 = vrcp.f32 %v2972_v16 }
 0x870   : > { %4961 = vrcp.f32 %v2974_v7 }
 0x872   : > { %v2978_v43 = vpop.xlane.xlu1 %2977 }
 0x876   : > { %v4956_v12 = vpop.eup %4955  ;;  %v2982_v38 = vpop.xlane.xlu0 %2981 }
 0x877   : > { %v3012_v18 = vmul.f32 %v4956_v12, %v6257_v25  ;;  %4963 = vrcp.f32 %v2982_v38  ;;  %v4958_v51 = vpop.eup %4957 }
 0x878   : > { %4965 = vrcp.f32 %v2968_v22  ;;  %v3014_v63 = vmul.f32 %v4958_v51, %v6248_v9 }
 0x879   : > { %v3027_v21 = vpack.c.bf16 %v3012_v18, %v3011_v33  ;;  %v4960_v29 = vpop.eup %4959 }
 0x87a   : > { %v2984_v39 = vpop.xlane.xlu1 %2983  ;;  %v2992_v24 = vpop.xlane.xlu0 %2991  ;;  %v3015_v13 = vmul.f32 %v4960_v29, %v6263_v14  ;;  %v5018_v29 = vld [vmem:[%s5119_s24 + $0x8] sm:$0xff]  }
 0x87b   : > { %4538 = vmatprep.mubr.bf16.mxu0 %v3027_v21  ;;  %v4962_v36 = vpop.eup %4961 }
 0x87c   : > { %v3016_v37 = vmul.f32 %v4962_v36, %v6265_v0  ;;  %v339_v36 = vunpack.c.l.bf16 %v5018_v29 }
 0x87e   : > { %v2980_v58 = vpop.xlane.xlu1 %2979  ;;  %v3029_v14 = vpack.c.bf16 %v3016_v37, %v3015_v13  ;;  %v5020_v13 = vld [vmem:[%s5119_s24 + $0x18] sm:$0xff]  }
 0x87f   : > { %4967 = vrcp.f32 %v2980_v58  ;;  %v343_v37 = vunpack.c.l.bf16 %v5020_v13 }
 0x880   : > { %4969 = vrcp.f32 %v2984_v39 }
 0x881   : > { %v4964_v40 = vpop.eup %4963 }
 0x882   : > { %v2986_v59 = vpop.xlane.xlu1 %2985  ;;  %v4966_v35 = vpop.eup %4965  ;;  %v3020_v32 = vmul.f32 %v4964_v40, %v6274_v6 }
 0x883   : > { %4971 = vrcp.f32 %v2986_v59  ;;  %v3013_v8 = vmul.f32 %v4966_v35, %v6234_v27  ;;  %v6348_v35 = vld [vmem:[%s6581_s5] ss:$0 sm:$0xff] }
 0x884   : > { %4973 = vrcp.f32 %v2978_v43 }
 0x885   : > { %4975 = vrcp.f32 %v2976_v54  ;;  %v3028_v61 = vpack.c.bf16 %v3014_v63, %v3013_v8 }
 0x886   : > { %v2988_v25 = vpop.xlane.xlu1 %2987  ;;  %v2990_v49 = vpop.xlane.xlu0 %2989 }
 0x887   : > { %4977 = vrcp.f32 %v2988_v25  ;;  %v5019_v25 = vld [vmem:[%s5119_s24] sm:$0xff]  }
 0x888   : > { %4979 = vrcp.f32 %v2990_v49  ;;  %v337_v49 = vunpack.c.l.bf16 %v5019_v25 }
 0x889   : > { %v4968_v44 = vpop.eup %4967  ;;  %4981 = vrcp.f32 %v2992_v24 }
 0x88a   : > { %v2994_v34 = vpop.xlane.xlu1 %2993  ;;  %v3050_v55 = vpop.permute.xlu0 %3049  ;;  %v3019_v41 = vmul.f32 %v4968_v44, %v6285_v62 }
 0x88b   : > { %v4970_v15 = vpop.eup %4969  ;;  %4983 = vrcp.f32 %v2994_v34  ;;  %4536 = vmatprep.subr.bf16.mxu0 %v3050_v55  ;;  %4581 = vmatprep.subr.bf16.mxu1 %v3050_v55 }
 0x88c   : > { %4537 = vmatpush3.bf16.msra.mxu0 %v3050_v55  ;;  %4589 = vmatpush3.bf16.msra.mxu1 %v3050_v55  ;;  %v3031_v9 = vpack.c.bf16 %v3020_v32, %v3019_v41  ;;  %v3021_v62 = vmul.f32 %v4970_v15, %v6280_v53  ;;  %v340_v41 = vunpack.c.h.bf16 %v5018_v29 }
 0x88d   : > { %v4972_v45 = vpop.eup %4971  ;;  %4554 = vmatprep.subr.bf16.mxu1 %v4719_v11 }
 0x88e   : > { %v4974_v47 = vpop.eup %4973  ;;  %v3022_v6 = vmul.f32 %v4972_v45, %v6288_v3  ;;  %4546 = vmatprep.mubr.bf16.mxu1 %v3031_v9  ;;  %v338_v9 = vunpack.c.h.bf16 %v5019_v25 }
 0x88f   : > { %4539 = vmatmul.mubr.bf16.vlgmr.msra.gmra.mrb[96].mxu0 %v3028_v61  ;;  %v4976_v0 = vpop.eup %4975  ;;  %v3018_v30 = vmul.f32 %v4974_v47, %v6270_v57 }
 0x890   : > { %4542 = vmatprep.mubr.bf16.mxu0 %v3029_v14  ;;  %v3032_v27 = vpack.c.bf16 %v3022_v6, %v3021_v62  ;;  %v3017_v10 = vmul.f32 %v4976_v0, %v6255_v4 }
 0x891   : > { %v4978_v31 = vpop.eup %4977 }
 0x892   : > { %v4980_v60 = vpop.eup %4979  ;;  %4547 = vmatmul.mubr.bf16.vlgmr.msra.gmra.mrb[80].mxu1 %v3032_v27  ;;  %v3023_v5 = vmul.f32 %v4978_v31, %v6291_v28  ;;  %v3030_v19 = vpack.c.bf16 %v3018_v30, %v3017_v10  ;;  %v5021_v27 = vld [vmem:[%s5119_s24 + $0x10] sm:$0xff]  }
 0x893   : > { %v4982_v53 = vpop.eup %4981  ;;  %v3024_v3 = vmul.f32 %v4980_v60, %v6293_v20  ;;  %4555 = vmatpush3.bf16.msra.mxu1 %v4719_v11 }
 0x894   : > { %4556 = vmatprep.subr.bf16.mxu1 %v4720_v56  ;;  %v3025_v17 = vmul.f32 %v4982_v53, %v6278_v46 }
 0x895   : > { %v4984_v48 = vpop.eup %4983  ;;  %v3033_v50 = vpack.c.bf16 %v3024_v3, %v3023_v5  ;;  %v344_v5 = vunpack.c.h.bf16 %v5020_v13 }
 0x896   : > { %v3026_v23 = vmul.f32 %v4984_v48, %v6297_v42 }
 0x897   : > { %4550 = vmatprep.mubr.bf16.mxu1 %v3033_v50  ;;  %4543 = vmatmul.mubr.bf16.gmra.mrb[100].mxu0 %v3030_v19  ;;  %v342_v19 = vunpack.c.h.bf16 %v5021_v27 }
 0x898   : > { %v3034_v57 = vpack.c.bf16 %v3026_v23, %v3025_v17  ;;  %4557 = vmatpush3.bf16.msra.mxu1 %v4720_v56  ;;  %v341_v56 = vunpack.c.l.bf16 %v5021_v27  ;;  %v5022_v23 = vld [vmem:[%s5119_s24 + $0x38] sm:$0xff]  }
 0x89a   : > { %4551 = vmatmul.mubr.bf16.gmra.mrb[84].mxu1 %v3034_v57  ;;  %v351_v57 = vunpack.c.l.bf16 %v5022_v23 }
 0x962   : > { %v4540_v28 = vpop.f32.mrb[96].mxu0 }
 0x963   : > { %v3093_v22 = vpop.f32.mrb[97].mxu0 }
 0x964   : > { %v4541_v52 = vpop.f32.mrb[98].mxu0 }
 0x965   : > { %v3157_v20 = vpack.c.bf16 %v4541_v52, %v4540_v28  ;;  %v3096_v1 = vpop.f32.mrb[99].mxu0  ;;  %v4548_v4 = vpop.f32.mrb[80].mxu1  ;;  %v5023_v52 = vld [vmem:[%s5119_s24 + $0x28] sm:$0xff]  }
 0x966   : > { %v3156_v54 = vpack.c.bf16 %v3096_v1, %v3093_v22  ;;  %v3125_v26 = vpop.f32.mrb[81].mxu1 }
 0x967   : > { %v4549_v16 = vpop.f32.mrb[82].mxu1 }
 0x968   : > { %v3161_v2 = vpack.c.bf16 %v4549_v16, %v4548_v4  ;;  %v3128_v12 = vpop.f32.mrb[83].mxu1  ;;  %4558 = vmatprep.mubr.msk.bf16.mxu1 %vm936_vm0, %v3156_v54 }
 0x969   : > { %v3160_v46 = vpack.c.bf16 %v3128_v12, %v3125_v26  ;;  %4559 = vmatmul.mubr.msk.bf16.vlgmr.msra.gmra.mrb[48].mxu1 %vm936_vm0, %v3157_v20  ;;  %v347_v20 = vunpack.c.l.bf16 %v5023_v52  ;;  %v5024_v12 = vld [vmem:[%s5119_s24 + $0x20] sm:$0xff]  }
 0x96a   : > { %v4544_v42 = vpop.f32.mrb[100].mxu0 }
 0x96b   : > { %v3109_v7 = vpop.f32.mrb[101].mxu0 }
 0x96c   : > { %v4545_v43 = vpop.f32.mrb[102].mxu0 }
 0x96d   : > { %v3159_v33 = vpack.c.bf16 %v4545_v43, %v4544_v42  ;;  %v3112_v18 = vpop.f32.mrb[103].mxu0  ;;  %v4552_v21 = vpop.f32.mrb[84].mxu1 }
 0x96e   : > { %v3158_v38 = vpack.c.bf16 %v3112_v18, %v3109_v7  ;;  %v3141_v39 = vpop.f32.mrb[85].mxu1  ;;  %v348_v18 = vunpack.c.h.bf16 %v5023_v52 }
 0x96f   : > { %v4553_v58 = vpop.f32.mrb[86].mxu1 }
 0x970   : > { %v3163_v24 = vpack.c.bf16 %v4553_v58, %v4552_v21  ;;  %v3144_v59 = vpop.f32.mrb[87].mxu1  ;;  %4562 = vmatprep.mubr.msk.bf16.mxu1 %vm936_vm0, %v3158_v38 }
 0x971   : > { %v3162_v51 = vpack.c.bf16 %v3144_v59, %v3141_v39  ;;  %4563 = vmatmul.mubr.msk.bf16.gmra.mrb[52].mxu1 %vm936_vm0, %v3159_v33  ;;  %v346_v39 = vunpack.c.h.bf16 %v5024_v12  ;;  %v5025_v59 = vld [vmem:[%s5119_s24 + $0x30] sm:$0xff]  }
 0x972   : > { %4566 = vmatprep.mubr.msk.bf16.mxu1 %vm936_vm0, %v3160_v46  ;;  %v345_v46 = vunpack.c.l.bf16 %v5024_v12  ;;  %v350_v25 = vunpack.c.h.bf16 %v5025_v59 }
 0x979   : > { %4567 = vmatmul.mubr.msk.bf16.gmra.mrb[56].mxu1 %vm936_vm0, %v3161_v2 }
 0x97a   : > { %4570 = vmatprep.mubr.msk.bf16.mxu1 %vm936_vm0, %v3162_v51  ;;  %v349_v51 = vunpack.c.l.bf16 %v5025_v59 }
 0x981   : > { %4571 = vmatmul.mubr.msk.bf16.gmra.mrb[60].mxu1 %vm936_vm0, %v3163_v24 }
 0xa3c   : > { %v4560_v40 = vpop.f32.mrb[48].mxu1 }
 0xa3d   : > { %v3319_v44 = vadd.f32 %v4560_v40, %v339_v36  ;;  %v3238_v63 = vpop.f32.mrb[49].mxu1  ;;  %v352_v40 = vunpack.c.h.bf16 %v5022_v23 }
 0xa3e   : > { %v4561_v11 = vpop.f32.mrb[50].mxu1  ;;  %v3317_v55 = vadd.f32 %v3238_v63, %v337_v49 }
 0xa3f   : > { %v6351_v34 = vadd.f32 %v6348_v35, %v3319_v44  ;;  %v3241_v32 = vpop.f32.mrb[51].mxu1  ;;  %v3320_v8 = vadd.f32 %v4561_v11, %v340_v41 }
 0xa40   : > { %v6356_v15 = vadd.f32 %v6348_v35, %v3317_v55  ;;  %v3318_v14 = vadd.f32 %v3241_v32, %v338_v9 }
 0xa41   : > { %3360 = vadd.xlane.f32.xlu1 %v6351_v34  ;;  %v6360_v6 = vadd.f32 %v6348_v35, %v3320_v8 }
 0xa42   : > { %v6369_v30 = vadd.f32 %v6348_v35, %v3318_v14 }
 0xa44   : > { %v4564_v45 = vpop.f32.mrb[52].mxu1 }
 0xa45   : > { %v3323_v61 = vadd.f32 %v4564_v45, %v343_v37  ;;  %v3254_v47 = vpop.f32.mrb[53].mxu1  ;;  %3356 = vadd.xlane.f32.xlu1 %v6356_v15 }
 0xa46   : > { %v4565_v62 = vpop.f32.mrb[54].mxu1  ;;  %v3321_v60 = vadd.f32 %v3254_v47, %v341_v56 }
 0xa47   : > { %v6363_v0 = vadd.f32 %v6348_v35, %v3323_v61  ;;  %v3257_v31 = vpop.f32.mrb[55].mxu1  ;;  %v3324_v50 = vadd.f32 %v4565_v62, %v344_v5 }
 0xa48   : > { %v6373_v48 = vadd.f32 %v6348_v35, %v3321_v60  ;;  %v3322_v22 = vadd.f32 %v3257_v31, %v342_v19 }
 0xa49   : > { %3368 = vadd.xlane.f32.xlu0 %v6363_v0  ;;  %3362 = vadd.xlane.f32.xlu1 %v6360_v6  ;;  %v6378_v28 = vadd.f32 %v6348_v35, %v3324_v50 }
 0xa4a   : > { %v6383_v16 = vadd.f32 %v6348_v35, %v3322_v22 }
 0xa4c   : > { %v4568_v53 = vpop.f32.mrb[56].mxu1 }
 0xa4d   : > { %v3270_v3 = vpop.f32.mrb[57].mxu1  ;;  %3358 = vadd.xlane.f32.xlu1 %v6369_v30  ;;  %v3327_v2 = vadd.f32 %v4568_v53, %v347_v20 }
 0xa4e   : > { %v4569_v10 = vpop.f32.mrb[58].mxu1  ;;  %v3325_v33 = vadd.f32 %v3270_v3, %v345_v46 }
 0xa4f   : > { %v3273_v17 = vpop.f32.mrb[59].mxu1  ;;  %v6392_v43 = vadd.f32 %v6348_v35, %v3327_v2  ;;  %v3328_v38 = vadd.f32 %v4569_v10, %v348_v18 }
 0xa50   : > { %v6396_v21 = vadd.f32 %v6348_v35, %v3325_v33  ;;  %v3326_v24 = vadd.f32 %v3273_v17, %v346_v39 }
 0xa51   : > { %3364 = vadd.xlane.f32.xlu1 %v6373_v48  ;;  %v6400_v58 = vadd.f32 %v6348_v35, %v3328_v38 }
 0xa52   : > { %v6405_v29 = vadd.f32 %v6348_v35, %v3326_v24 }
 0xa54   : > { %v4572_v1 = vpop.f32.mrb[60].mxu1 }
 0xa55   : > { %v3331_v4 = vadd.f32 %v4572_v1, %v351_v57  ;;  %v3286_v54 = vpop.f32.mrb[61].mxu1  ;;  %3370 = vadd.xlane.f32.xlu1 %v6378_v28 }
 0xa56   : > { %v4573_v26 = vpop.f32.mrb[62].mxu1  ;;  %v3329_v36 = vadd.f32 %v3286_v54, %v349_v51 }
 0xa57   : > { %v6387_v42 = vadd.f32 %v6348_v35, %v3331_v4  ;;  %v3289_v7 = vpop.f32.mrb[63].mxu1  ;;  %v3332_v63 = vadd.f32 %v4573_v26, %v352_v40 }
 0xa58   : > { %v6409_v49 = vadd.f32 %v6348_v35, %v3329_v36  ;;  %v3330_v44 = vadd.f32 %v3289_v7, %v350_v25 }
 0xa59   : > { %3384 = vadd.xlane.f32.xlu0 %v6387_v42  ;;  %3366 = vadd.xlane.f32.xlu1 %v6383_v16  ;;  %v6417_v55 = vadd.f32 %v6348_v35, %v3332_v63 }
 0xa5a   : > { %v6413_v11 = vadd.f32 %v6348_v35, %v3330_v44 }
 0xa5d   : > { %3376 = vadd.xlane.f32.xlu1 %v6392_v43 }
 0xa61   : > { %3372 = vadd.xlane.f32.xlu1 %v6396_v21 }
 0xa65   : > { %3378 = vadd.xlane.f32.xlu1 %v6400_v58 }
 0xa69   : > { %3374 = vadd.xlane.f32.xlu1 %v6405_v29 }
 0xa6d   : > { %3380 = vadd.xlane.f32.xlu1 %v6409_v49 }
 0xa71   : > { %3382 = vadd.xlane.f32.xlu1 %v6413_v11 }
 0xa75   : > { %3386 = vadd.xlane.f32.xlu1 %v6417_v55 }
 0xace   : > { %v3361_v41 = vpop.xlane.xlu1 %3360 }
 0xacf   : > { %v3391_v13 = vmul.f32 0.0078125, %v3361_v41 }
 0xad1   : > { %v6424_v45 = vsub.f32 %v6351_v34, %v3391_v13 }
 0xad2   : > { %v3357_v32 = vpop.xlane.xlu1 %3356 }
 0xad3   : > { %v3389_v37 = vmul.f32 0.0078125, %v3357_v32  ;;  %v3423_v14 = vmul.f32 %v6424_v45, %v6424_v45 }
 0xad5   : > { %v6421_v8 = vsub.f32 %v6356_v15, %v3389_v37 }
 0xad6   : > { %v3363_v9 = vpop.xlane.xlu1 %3362  ;;  %v3369_v27 = vpop.xlane.xlu0 %3368 }
 0xad7   : > { %v3421_v61 = vmul.f32 %v6421_v8, %v6421_v8  ;;  %v3392_v35 = vmul.f32 0.0078125, %v3363_v9  ;;  %v3395_v31 = vmul.f32 0.0078125, %v3369_v27 }
 0xad9   : > { %3437 = vadd.xlane.f32.xlu0 %v3421_v61  ;;  %v6434_v34 = vsub.f32 %v6360_v6, %v3392_v35  ;;  %v6442_v10 = vsub.f32 %v6363_v0, %v3395_v31 }
 0xada   : > { %v3359_v47 = vpop.xlane.xlu1 %3358 }
 0xadb   : > { %v3390_v62 = vmul.f32 0.0078125, %v3359_v47 }
 0xadd   : > { %v6431_v56 = vsub.f32 %v6369_v30, %v3390_v62  ;;  %3441 = vadd.xlane.f32.xlu0 %v3423_v14  ;;  %v3424_v30 = vmul.f32 %v6434_v34, %v6434_v34 }
 0xade   : > { %v3365_v15 = vpop.xlane.xlu1 %3364 }
 0xadf   : > { %v3393_v60 = vmul.f32 0.0078125, %v3365_v15  ;;  %v3422_v5 = vmul.f32 %v6431_v56, %v6431_v56 }
 0xae1   : > { %v6439_v53 = vsub.f32 %v6373_v48, %v3393_v60  ;;  %3439 = vadd.xlane.f32.xlu1 %v3422_v5  ;;  %v3427_v48 = vmul.f32 %v6442_v10, %v6442_v10 }
 0xae2   : > { %v3371_v3 = vpop.xlane.xlu1 %3370 }
 0xae3   : > { %v3425_v50 = vmul.f32 %v6439_v53, %v6439_v53  ;;  %v3396_v19 = vmul.f32 0.0078125, %v3371_v3 }
 0xae5   : > { %3443 = vadd.xlane.f32.xlu1 %v3424_v30  ;;  %3445 = vadd.xlane.f32.xlu0 %v3425_v50  ;;  %v6454_v57 = vsub.f32 %v6378_v28, %v3396_v19 }
 0xae6   : > { %v3367_v6 = vpop.xlane.xlu1 %3366  ;;  %v3385_v18 = vpop.xlane.xlu0 %3384 }
 0xae7   : > { %v3394_v17 = vmul.f32 0.0078125, %v3367_v6  ;;  %v3428_v54 = vmul.f32 %v6454_v57, %v6454_v57  ;;  %v3403_v39 = vmul.f32 0.0078125, %v3385_v18 }
 0xae9   : > { %v6451_v23 = vsub.f32 %v6383_v16, %v3394_v17  ;;  %3449 = vadd.xlane.f32.xlu0 %v3427_v48  ;;  %v6484_v36 = vsub.f32 %v6387_v42, %v3403_v39  ;;  %v6504_v48 = vld [vmem:[%s6582_s6] ss:$0 sm:$0xff] }
 0xaea   : > { %v3377_v0 = vpop.xlane.xlu1 %3376 }
 0xaeb   : > { %v3399_v22 = vmul.f32 0.0078125, %v3377_v0  ;;  %v3426_v52 = vmul.f32 %v6451_v23, %v6451_v23  ;;  %v3435_v41 = vmul.f32 %v6484_v36, %v6484_v36 }
 0xaed   : > { %v6459_v20 = vsub.f32 %v6392_v43, %v3399_v22  ;;  %3447 = vadd.xlane.f32.xlu1 %v3426_v52 }
 0xaee   : > { %v3373_v1 = vpop.xlane.xlu1 %3372 }
 0xaef   : > { %v3397_v4 = vmul.f32 0.0078125, %v3373_v1  ;;  %v3431_v26 = vmul.f32 %v6459_v20, %v6459_v20 }
 0xaf1   : > { %v6466_v16 = vsub.f32 %v6396_v21, %v3397_v4  ;;  %3451 = vadd.xlane.f32.xlu1 %v3428_v54  ;;  %3457 = vadd.xlane.f32.xlu0 %v3431_v26 }
 0xaf2   : > { %v3379_v28 = vpop.xlane.xlu1 %3378 }
 0xaf3   : > { %v3400_v2 = vmul.f32 0.0078125, %v3379_v28  ;;  %v3429_v12 = vmul.f32 %v6466_v16, %v6466_v16 }
 0xaf5   : > { %v6471_v46 = vsub.f32 %v6400_v58, %v3400_v2  ;;  %3453 = vadd.xlane.f32.xlu0 %v3429_v12 }
 0xaf6   : > { %v3375_v7 = vpop.xlane.xlu1 %3374 }
 0xaf7   : > { %v3398_v43 = vmul.f32 0.0078125, %v3375_v7  ;;  %v3432_v33 = vmul.f32 %v6471_v46, %v6471_v46 }
 0xaf9   : > { %v6476_v21 = vsub.f32 %v6405_v29, %v3398_v43  ;;  %3459 = vadd.xlane.f32.xlu1 %v3432_v33 }
 0xafa   : > { %v3381_v38 = vpop.xlane.xlu1 %3380 }
 0xafb   : > { %v3401_v24 = vmul.f32 0.0078125, %v3381_v38  ;;  %v3430_v59 = vmul.f32 %v6476_v21, %v6476_v21 }
 0xafd   : > { %v6481_v58 = vsub.f32 %v6409_v49, %v3401_v24  ;;  %3455 = vadd.xlane.f32.xlu1 %v3430_v59 }
 0xafe   : > { %v3383_v51 = vpop.xlane.xlu1 %3382 }
 0xaff   : > { %v3402_v25 = vmul.f32 0.0078125, %v3383_v51  ;;  %v3433_v29 = vmul.f32 %v6481_v58, %v6481_v58 }
 0xb01   : > { %v6489_v40 = vsub.f32 %v6413_v11, %v3402_v25  ;;  %3461 = vadd.xlane.f32.xlu0 %v3433_v29 }
 0xb02   : > { %v3387_v44 = vpop.xlane.xlu1 %3386 }
 0xb03   : > { %v3404_v63 = vmul.f32 0.0078125, %v3387_v44  ;;  %v3434_v49 = vmul.f32 %v6489_v40, %v6489_v40 }
 0xb05   : > { %v6496_v32 = vsub.f32 %v6417_v55, %v3404_v63  ;;  %3465 = vadd.xlane.f32.xlu0 %v3435_v41  ;;  %3463 = vadd.xlane.f32.xlu1 %v3434_v49 }
 0xb07   : > { %v3436_v42 = vmul.f32 %v6496_v32, %v6496_v32 }
 0xb09   : > { %3467 = vadd.xlane.f32.xlu1 %v3436_v42 }
 0xb66   : > { %v3438_v11 = vpop.xlane.xlu0 %3437 }
 0xb67   : > { %v3469_v13 = vmul.f32 0.0078125, %v3438_v11 }
 0xb69   : > { %v3485_v37 = vadd.f32 1e-05, %v3469_v13 }
 0xb6a   : > { %v3442_v9 = vpop.xlane.xlu0 %3441 }
 0xb6b   : > { %v3471_v61 = vmul.f32 0.0078125, %v3442_v9  ;;  %4985 = vrsqrt.f32 %v3485_v37 }
 0xb6d   : > { %v3487_v47 = vadd.f32 1e-05, %v3471_v61 }
 0xb6e   : > { %v3440_v35 = vpop.xlane.xlu1 %3439 }
 0xb6f   : > { %v3470_v62 = vmul.f32 0.0078125, %v3440_v35  ;;  %4987 = vrsqrt.f32 %v3487_v47 }
 0xb71   : > { %v3486_v14 = vadd.f32 1e-05, %v3470_v62 }
 0xb72   : > { %v3446_v27 = vpop.xlane.xlu0 %3445  ;;  %v3444_v55 = vpop.xlane.xlu1 %3443 }
 0xb73   : > { %4989 = vrsqrt.f32 %v3486_v14  ;;  %v3473_v15 = vmul.f32 0.0078125, %v3446_v27  ;;  %v3472_v31 = vmul.f32 0.0078125, %v3444_v55 }
 0xb75   : > { %v3489_v60 = vadd.f32 1e-05, %v3473_v15  ;;  %v3488_v5 = vadd.f32 1e-05, %v3472_v31  ;;  %v4986_v30 = vpop.eup %4985 }
 0xb76   : > { %v3450_v3 = vpop.xlane.xlu0 %3449  ;;  %v3517_v19 = vmul.f32 %v4986_v30, %v6421_v8  ;;  %v6511_v8 = vld [vmem:[%s6583_s7] ss:$0 sm:$0xff] }
 0xb77   : > { %v3475_v50 = vmul.f32 0.0078125, %v3450_v3  ;;  %4991 = vrsqrt.f32 %v3488_v5 }
 0xb78   : > { %4993 = vrsqrt.f32 %v3489_v60  ;;  %v3540_v4 = vmul.f32 %v6504_v48, %v3517_v19 }
 0xb79   : > { %v3491_v6 = vadd.f32 1e-05, %v3475_v50  ;;  %v4988_v22 = vpop.eup %4987 }
 0xb7a   : > { %v3448_v17 = vpop.xlane.xlu1 %3447  ;;  %v3519_v2 = vmul.f32 %v4988_v22, %v6424_v45 }
 0xb7b   : > { %v3474_v0 = vmul.f32 0.0078125, %v3448_v17  ;;  %4995 = vrsqrt.f32 %v3491_v6 }
 0xb7c   : > { %v3542_v51 = vmul.f32 %v6504_v48, %v3519_v2 }
 0xb7d   : > { %v4990_v52 = vpop.eup %4989  ;;  %v3490_v1 = vadd.f32 1e-05, %v3474_v0 }
 0xb7e   : > { %v3518_v54 = vmul.f32 %v4990_v52, %v6431_v56  ;;  %v3458_v26 = vpop.xlane.xlu0 %3457  ;;  %v3452_v28 = vpop.xlane.xlu1 %3451  ;;  %v3563_v56 = vadd.f32 %v6511_v8, %v3540_v4  ;;  %v3565_v11 = vadd.f32 %v6511_v8, %v3542_v51 }
 0xb7f   : > { %4997 = vrsqrt.f32 %v3490_v1  ;;  %v3479_v12 = vmul.f32 0.0078125, %v3458_v26  ;;  %v3476_v7 = vmul.f32 0.0078125, %v3452_v28 }
 0xb80   : > { %v3541_v43 = vmul.f32 %v6504_v48, %v3518_v54 }
 0xb81   : > { %v3495_v33 = vadd.f32 1e-05, %v3479_v12  ;;  %v3492_v18 = vadd.f32 1e-05, %v3476_v7  ;;  %v4992_v38 = vpop.eup %4991 }
 0xb82   : > { %v3564_v39 = vadd.f32 %v6511_v8, %v3541_v43  ;;  %v3454_v24 = vpop.xlane.xlu0 %3453  ;;  %v4994_v59 = vpop.eup %4993  ;;  %v3520_v45 = vmul.f32 %v4992_v38, %v6434_v34 }
 0xb83   : > { %v3477_v25 = vmul.f32 0.0078125, %v3454_v24  ;;  %4999 = vrsqrt.f32 %v3492_v18  ;;  %v3521_v41 = vmul.f32 %v4994_v59, %v6439_v53 }
 0xb84   : > { %v3882_v29 = vpack.c.bf16 %v3564_v39, %v3563_v56  ;;  %v3543_v44 = vmul.f32 %v6504_v48, %v3520_v45  ;;  %5001 = vrsqrt.f32 %v3495_v33 }
 0xb85   : > { %v3493_v63 = vadd.f32 1e-05, %v3477_v25  ;;  %v4996_v42 = vpop.eup %4995  ;;  %v3544_v47 = vmul.f32 %v6504_v48, %v3521_v41 }
 0xb86   : > { %3883 = vst [vmem:[%s6523_s20] sm:$0xff] %v3882_v29   ;;  %v3460_v49 = vpop.xlane.xlu1 %3459  ;;  %v3566_v13 = vadd.f32 %v6511_v8, %v3543_v44  ;;  %v3523_v35 = vmul.f32 %v4996_v42, %v6442_v10 }
 0xb87   : > { %v3480_v37 = vmul.f32 0.0078125, %v3460_v49  ;;  %5003 = vrsqrt.f32 %v3493_v63  ;;  %v3567_v31 = vadd.f32 %v6511_v8, %v3544_v47 }
 0xb88   : > { %v3887_v34 = vpack.c.bf16 %v3566_v13, %v3565_v11  ;;  %v3546_v60 = vmul.f32 %v6504_v48, %v3523_v35 }
 0xb89   : > { %v4998_v9 = vpop.eup %4997  ;;  %v3496_v61 = vadd.f32 1e-05, %v3480_v37 }
 0xb8a   : > { %v3522_v62 = vmul.f32 %v4998_v9, %v6451_v23  ;;  %v3456_v14 = vpop.xlane.xlu1 %3455  ;;  %3919 = vst [vmem:[%s6523_s20 + $0x8] sm:$0xff] %v3887_v34   ;;  %v3569_v17 = vadd.f32 %v6511_v8, %v3546_v60 }
 0xb8b   : > { %5005 = vrsqrt.f32 %v3496_v61  ;;  %v3478_v53 = vmul.f32 0.0078125, %v3456_v14 }
 0xb8c   : > { %v3545_v27 = vmul.f32 %v6504_v48, %v3522_v62 }
 0xb8d   : > { %v3494_v55 = vadd.f32 1e-05, %v3478_v53  ;;  %v5000_v15 = vpop.eup %4999 }
 0xb8e   : > { %v3568_v5 = vadd.f32 %v6511_v8, %v3545_v27  ;;  %v3462_v3 = vpop.xlane.xlu0 %3461  ;;  %v5002_v30 = vpop.eup %5001  ;;  %v3524_v10 = vmul.f32 %v5000_v15, %v6454_v57 }
 0xb8f   : > { %5007 = vrsqrt.f32 %v3494_v55  ;;  %v3481_v23 = vmul.f32 0.0078125, %v3462_v3  ;;  %v3527_v0 = vmul.f32 %v5002_v30, %v6459_v20 }
 0xb90   : > { %v3892_v50 = vpack.c.bf16 %v3568_v5, %v3567_v31  ;;  %v3547_v6 = vmul.f32 %v6504_v48, %v3524_v10 }
 0xb91   : > { %v3497_v19 = vadd.f32 1e-05, %v3481_v23  ;;  %v5004_v1 = vpop.eup %5003  ;;  %v3550_v7 = vmul.f32 %v6504_v48, %v3527_v0 }
 0xb92   : > { %3920 = vst [vmem:[%s6523_s20 + $0x10] sm:$0xff] %v3892_v50   ;;  %v3466_v22 = vpop.xlane.xlu0 %3465  ;;  %v3464_v52 = vpop.xlane.xlu1 %3463  ;;  %v3570_v4 = vadd.f32 %v6511_v8, %v3547_v6  ;;  %v3525_v43 = vmul.f32 %v5004_v1, %v6466_v16 }
 0xb93   : > { %5009 = vrsqrt.f32 %v3497_v19  ;;  %v3483_v54 = vmul.f32 0.0078125, %v3466_v22  ;;  %v3482_v57 = vmul.f32 0.0078125, %v3464_v52  ;;  %v3573_v24 = vadd.f32 %v6511_v8, %v3550_v7 }
 0xb94   : > { %v3897_v28 = vpack.c.bf16 %v3570_v4, %v3569_v17  ;;  %v3548_v59 = vmul.f32 %v6504_v48, %v3525_v43 }
 0xb95   : > { %v5006_v26 = vpop.eup %5005  ;;  %v3499_v2 = vadd.f32 1e-05, %v3483_v54  ;;  %v3498_v12 = vadd.f32 1e-05, %v3482_v57 }
 0xb96   : > { %v3528_v33 = vmul.f32 %v5006_v26, %v6471_v46  ;;  %v3468_v20 = vpop.xlane.xlu1 %3467  ;;  %3921 = vst [vmem:[%s6523_s20 + $0x18] sm:$0xff] %v3897_v28   ;;  %v3571_v29 = vadd.f32 %v6511_v8, %v3548_v59 }
 0xb97   : > { %5011 = vrsqrt.f32 %v3499_v2  ;;  %v3484_v18 = vmul.f32 0.0078125, %v3468_v20 }
 0xb98   : > { %v3551_v38 = vmul.f32 %v6504_v48, %v3528_v33  ;;  %5013 = vrsqrt.f32 %v3498_v12 }
 0xb99   : > { %v5008_v56 = vpop.eup %5007  ;;  %v3500_v39 = vadd.f32 1e-05, %v3484_v18 }
 0xb9a   : > { %v3574_v51 = vadd.f32 %v6511_v8, %v3551_v38  ;;  %v3526_v16 = vmul.f32 %v5008_v56, %v6476_v21 }
 0xb9b   : > { %5015 = vrsqrt.f32 %v3500_v39 }
 0xb9c   : > { %v3907_v46 = vpack.c.bf16 %v3574_v51, %v3573_v24  ;;  %v3549_v45 = vmul.f32 %v6504_v48, %v3526_v16 }
 0xb9d   : > { %v5010_v25 = vpop.eup %5009 }
 0xb9e   : > { %3923 = vst [vmem:[%s6523_s20 + $0x28] sm:$0xff] %v3907_v46   ;;  %v3572_v44 = vadd.f32 %v6511_v8, %v3549_v45  ;;  %v3529_v63 = vmul.f32 %v5010_v25, %v6481_v58 }
 0xba0   : > { %v3902_v41 = vpack.c.bf16 %v3572_v44, %v3571_v29  ;;  %v3552_v11 = vmul.f32 %v6504_v48, %v3529_v63 }
 0xba1   : > { %v5012_v49 = vpop.eup %5011 }
 0xba2   : > { %v5014_v42 = vpop.eup %5013  ;;  %3922 = vst [vmem:[%s6523_s20 + $0x20] sm:$0xff] %v3902_v41   ;;  %v3531_v21 = vmul.f32 %v5012_v49, %v6484_v36  ;;  %v3575_v58 = vadd.f32 %v6511_v8, %v3552_v11 }
 0xba3   : > { %v3530_v13 = vmul.f32 %v5014_v42, %v6489_v40 }
 0xba4   : > { %v3554_v34 = vmul.f32 %v6504_v48, %v3531_v21 }
 0xba5   : > { %v5016_v37 = vpop.eup %5015  ;;  %v3553_v9 = vmul.f32 %v6504_v48, %v3530_v13 }
 0xba6   : > { %v3532_v61 = vmul.f32 %v5016_v37, %v6496_v32  ;;  %v3577_v36 = vadd.f32 %v6511_v8, %v3554_v34 }
 0xba7   : > { %v3576_v47 = vadd.f32 %v6511_v8, %v3553_v9 }
 0xba8   : > { %v3555_v35 = vmul.f32 %v6504_v48, %v3532_v61 }
 0xba9   : > { %v3912_v62 = vpack.c.bf16 %v3576_v47, %v3575_v58 }
 0xbaa   : > { %v3578_v14 = vadd.f32 %v6511_v8, %v3555_v35 }
 0xbab   : > { %3924 = vst [vmem:[%s6523_s20 + $0x30] sm:$0xff] %v3912_v62  }
 0xbac   : > { %v3917_v40 = vpack.c.bf16 %v3578_v14, %v3577_v36 }
 0xbae   : > { %3925 = vst [vmem:[%s6523_s20 + $0x38] sm:$0xff] %v3917_v40  }
 0xbaf PF: > { %s18_s27 = sadd.s32 1, %s5032_s27  }
 0xbb0   : > { %p15_p4 = scmp.ge.s32.totalorder %s18_s27, 4  }
 0xbb2   :  { %17 = sbr.rel (!%p15_p4) target bundleno = 1 (0x1), region = 85 }

// kernel: coordinate_transformer_forward.7
= control target key start
LH: loop header
LB: loop body
LE: loop exit
PB: predicated region body
PF: predicated region fallthrough
CT: control target
= control target key end

     0   :  { %v3049_v1 = vmov 0   ;;  %s3996_s1 = inlined_call_operand.vmem [shape: bf16[128,512], index: 1, kind: input, shape index: {}]   ;;  %s3997_s3 = inlined_call_operand.vmem [shape: bf16[512,128], index: 3, kind: input, shape index: {}]   ;;  %s3998_s0 = inlined_call_operand.vmem [shape: bf16[256,128], index: 0, kind: input, shape index: {}]   ;;  %s3999_s2 = inlined_call_operand.vmem [shape: f32[1,512], index: 2, kind: input, shape index: {}]   ;;  %s4000_s4 = inlined_call_operand.vmem [shape: f32[1,128], index: 4, kind: input, shape index: {}]   ;;  %s4001_s5 = inlined_call_operand.vmem [shape: f32[1,128], index: 5, kind: input, shape index: {}]   ;;  %s4002_s6 = inlined_call_operand.vmem [shape: f32[1,128], index: 6, kind: input, shape index: {}]   ;;  %s4003_s7 = inlined_call_operand.vmem [shape: bf16[256,128], index: 7, kind: output, shape index: {}]  }
   0x1   :  { %v2857_v0 = vld [vmem:[%s3996_s1 + $0x4] ss:$16 sps:$4 sm:$0xff]   ;;  %437 = vmatprep.mubr.bf16.mxu0 %v3049_v1  ;;  %630 = vmatprep.mubr.bf16.mxu1 %v3049_v1  ;;  %v2859_v2 = vld [vmem:[%s3996_s1 + $0xc] ss:$16 sps:$4 sm:$0xff]   ;;  %v2861_v3 = vld [vmem:[%s3996_s1] ss:$16 sps:$4 sm:$0xff]  }
   0x2   :  { %405 = vmatprep.subr.bf16.mxu0 %v2857_v0  ;;  %v2862_v4 = vld [vmem:[%s3996_s1 + $0x8] ss:$16 sps:$4 sm:$0xff]   ;;  %598 = vmatprep.subr.bf16.mxu1 %v2859_v2  ;;  %v2863_v5 = vld [vmem:[%s3996_s1 + $0x24] ss:$16 sps:$4 sm:$0xff]   ;;  %v2865_v6 = vld [vmem:[%s3996_s1 + $0x2c] ss:$16 sps:$4 sm:$0xff]  }
   0x3   :  { %406 = vmatpush1.bf16.msra.mxu0 %v2861_v3  ;;  %599 = vmatpush1.bf16.msra.mxu1 %v2862_v4  ;;  %v2867_v7 = vld [vmem:[%s3996_s1 + $0x20] ss:$16 sps:$4 sm:$0xff]   ;;  %v2868_v8 = vld [vmem:[%s3996_s1 + $0x28] ss:$16 sps:$4 sm:$0xff]   ;;  %v2869_v9 = vld [vmem:[%s3996_s1 + $0x44] ss:$16 sps:$4 sm:$0xff]  }
   0x4   :  { %407 = vmatprep.subr.bf16.mxu0 %v2863_v5  ;;  %600 = vmatprep.subr.bf16.mxu1 %v2865_v6  ;;  %v2871_v10 = vld [vmem:[%s3996_s1 + $0x4c] ss:$16 sps:$4 sm:$0xff]   ;;  %v2873_v11 = vld [vmem:[%s3996_s1 + $0x40] ss:$16 sps:$4 sm:$0xff]   ;;  %v2874_v12 = vld [vmem:[%s3996_s1 + $0x48] ss:$16 sps:$4 sm:$0xff]  }
   0x5   :  { %v2875_v13 = vld [vmem:[%s3996_s1 + $0x64] ss:$16 sps:$4 sm:$0xff]   ;;  %v2877_v14 = vld [vmem:[%s3996_s1 + $0x6c] ss:$16 sps:$4 sm:$0xff]   ;;  %v2879_v15 = vld [vmem:[%s3996_s1 + $0x60] ss:$16 sps:$4 sm:$0xff]  }
   0x6   :  { %v2880_v16 = vld [vmem:[%s3996_s1 + $0x68] ss:$16 sps:$4 sm:$0xff]   ;;  %v2881_v17 = vld [vmem:[%s3996_s1 + $0x84] ss:$16 sps:$4 sm:$0xff]   ;;  %v2883_v18 = vld [vmem:[%s3996_s1 + $0x8c] ss:$16 sps:$4 sm:$0xff]  }
   0x7   :  { %408 = vmatpush1.bf16.msra.mxu0 %v2867_v7  ;;  %601 = vmatpush1.bf16.msra.mxu1 %v2868_v8  ;;  %v2885_v19 = vld [vmem:[%s3996_s1 + $0x80] ss:$16 sps:$4 sm:$0xff]   ;;  %v2886_v20 = vld [vmem:[%s3996_s1 + $0x88] ss:$16 sps:$4 sm:$0xff]   ;;  %v2887_v21 = vld [vmem:[%s3996_s1 + $0xa4] ss:$16 sps:$4 sm:$0xff]  }
   0x8   :  { %409 = vmatprep.subr.bf16.mxu0 %v2869_v9  ;;  %602 = vmatprep.subr.bf16.mxu1 %v2871_v10  ;;  %v2889_v22 = vld [vmem:[%s3996_s1 + $0xac] ss:$16 sps:$4 sm:$0xff]   ;;  %v2891_v23 = vld [vmem:[%s3996_s1 + $0xa0] ss:$16 sps:$4 sm:$0xff]   ;;  %v2892_v24 = vld [vmem:[%s3996_s1 + $0xa8] ss:$16 sps:$4 sm:$0xff]  }
   0x9   :  { %v2893_v25 = vld [vmem:[%s3996_s1 + $0xc4] ss:$16 sps:$4 sm:$0xff]   ;;  %v2895_v26 = vld [vmem:[%s3996_s1 + $0xcc] ss:$16 sps:$4 sm:$0xff]   ;;  %v2897_v27 = vld [vmem:[%s3996_s1 + $0xc0] ss:$16 sps:$4 sm:$0xff]  }
   0xa   :  { %v2898_v28 = vld [vmem:[%s3996_s1 + $0xc8] ss:$16 sps:$4 sm:$0xff]   ;;  %v2899_v29 = vld [vmem:[%s3996_s1 + $0xe4] ss:$16 sps:$4 sm:$0xff]   ;;  %v2901_v30 = vld [vmem:[%s3996_s1 + $0xec] ss:$16 sps:$4 sm:$0xff]  }
   0xb   :  { %410 = vmatpush1.bf16.msra.mxu0 %v2873_v11  ;;  %603 = vmatpush1.bf16.msra.mxu1 %v2874_v12  ;;  %v2903_v31 = vld [vmem:[%s3996_s1 + $0xe0] ss:$16 sps:$4 sm:$0xff]   ;;  %v2904_v32 = vld [vmem:[%s3996_s1 + $0xe8] ss:$16 sps:$4 sm:$0xff]  }
   0xc   :  { %411 = vmatprep.subr.bf16.mxu0 %v2875_v13  ;;  %604 = vmatprep.subr.bf16.mxu1 %v2877_v14  ;;  %v63_v33 = vld [vmem:[%s3998_s0] sm:$0xff]   ;;  %v65_v38 = vld [vmem:[%s3998_s0 + $0x8] sm:$0xff]   ;;  %v2929_v43 = vld [vmem:[%s3997_s3 + $0x50] sm:$0xff]  }
   0xd   :  { %v2917_v34 = vld [vmem:[%s3997_s3 + $0x40] sm:$0xff]   ;;  %v2923_v39 = vld [vmem:[%s3997_s3 + $0x48] sm:$0xff]   ;;  %v2930_v44 = vld [vmem:[%s3997_s3 + $0xd0] sm:$0xff]  }
   0xe   :  { %v2918_v35 = vld [vmem:[%s3997_s3 + $0xc0] sm:$0xff]   ;;  %v2924_v40 = vld [vmem:[%s3997_s3 + $0xc8] sm:$0xff]   ;;  %v2931_v45 = vld [vmem:[%s3997_s3 + $0x10] sm:$0xff]  }
   0xf   :  { %412 = vmatpush1.bf16.msra.mxu0 %v2879_v15  ;;  %605 = vmatpush1.bf16.msra.mxu1 %v2880_v16  ;;  %v2919_v36 = vld [vmem:[%s3997_s3] sm:$0xff]   ;;  %v2925_v41 = vld [vmem:[%s3997_s3 + $0x8] sm:$0xff]   ;;  %v2932_v46 = vld [vmem:[%s3997_s3 + $0x90] sm:$0xff]  }
  0x10   :  { %413 = vmatprep.subr.bf16.mxu0 %v2881_v17  ;;  %606 = vmatprep.subr.bf16.mxu1 %v2883_v18  ;;  %v2920_v37 = vld [vmem:[%s3997_s3 + $0x80] sm:$0xff]   ;;  %v2926_v42 = vld [vmem:[%s3997_s3 + $0x88] sm:$0xff]   ;;  %v2933_v47 = vld [vmem:[%s3997_s3 + $0x58] sm:$0xff]   ;;  %v129_v18 = vlaneseq }
  0x11   :  { %v67_v48 = vld [vmem:[%s3998_s0 + $0x10] sm:$0xff]   ;;  %v2934_v49 = vld [vmem:[%s3997_s3 + $0xd8] sm:$0xff]   ;;  %v2937_v52 = vld [vmem:[%s3997_s3 + $0x60] sm:$0xff]  }
  0x12   :  { %v2935_v50 = vld [vmem:[%s3997_s3 + $0x18] sm:$0xff]   ;;  %v2938_v53 = vld [vmem:[%s3997_s3 + $0xe0] sm:$0xff]   ;;  %v2941_v56 = vld [vmem:[%s3997_s3 + $0x68] sm:$0xff]  }
  0x13   :  { %414 = vmatpush1.bf16.msra.mxu0 %v2885_v19  ;;  %607 = vmatpush1.bf16.msra.mxu1 %v2886_v20  ;;  %v2936_v51 = vld [vmem:[%s3997_s3 + $0x98] sm:$0xff]   ;;  %v2939_v54 = vld [vmem:[%s3997_s3 + $0x20] sm:$0xff]   ;;  %v2942_v58 = vld [vmem:[%s3997_s3 + $0xe8] sm:$0xff]   ;;  %v130_v19 = vshrl.u32 %v129_v18, 7 }
  0x14   :  { %415 = vmatprep.subr.bf16.mxu0 %v2887_v21  ;;  %608 = vmatprep.subr.bf16.mxu1 %v2889_v22  ;;  %v2940_v55 = vld [vmem:[%s3997_s3 + $0xa0] sm:$0xff]   ;;  %v69_v57 = vld [vmem:[%s3998_s0 + $0x18] sm:$0xff]   ;;  %v2943_v59 = vld [vmem:[%s3997_s3 + $0x28] sm:$0xff]  }
  0x15   :  { %v2944_v60 = vld [vmem:[%s3997_s3 + $0xa8] sm:$0xff]   ;;  %v2945_v61 = vld [vmem:[%s3997_s3 + $0x70] sm:$0xff]   ;;  %v2949_v2 = vld [vmem:[%s3997_s3 + $0x78] sm:$0xff]   ;;  %v131_v20 = vsub.s32 0, %v130_v19  ;;  %v139_v21 = vsub.s32 2, %v130_v19 }
  0x16   :  { %v2946_v62 = vld [vmem:[%s3997_s3 + $0xf0] sm:$0xff]   ;;  %v2950_v3 = vld [vmem:[%s3997_s3 + $0xf8] sm:$0xff]   ;;  %v71_v4 = vld [vmem:[%s3998_s0 + $0x20] sm:$0xff]  }
  0x17   :  { %416 = vmatpush1.bf16.msra.mxu0 %v2891_v23  ;;  %609 = vmatpush1.bf16.msra.mxu1 %v2892_v24  ;;  %v2947_v63 = vld [vmem:[%s3997_s3 + $0x30] sm:$0xff]   ;;  %v2951_v5 = vld [vmem:[%s3997_s3 + $0x38] sm:$0xff]   ;;  %v73_v7 = vld [vmem:[%s3998_s0 + $0x28] sm:$0xff]   ;;  %v135_v23 = vsub.s32 1, %v130_v19  ;;  %v143_v24 = vsub.s32 3, %v130_v19 }
  0x18   :  { %417 = vmatprep.subr.bf16.mxu0 %v2893_v25  ;;  %610 = vmatprep.subr.bf16.mxu1 %v2895_v26  ;;  %v2948_v0 = vld [vmem:[%s3997_s3 + $0xb0] sm:$0xff]   ;;  %v2952_v6 = vld [vmem:[%s3997_s3 + $0xb8] sm:$0xff]   ;;  %v79_v10 = vld [vmem:[%s3998_s0 + $0x40] sm:$0xff]  }
  0x19   :  { %v75_v8 = vld [vmem:[%s3998_s0 + $0x30] sm:$0xff]   ;;  %v77_v9 = vld [vmem:[%s3998_s0 + $0x38] sm:$0xff]   ;;  %v81_v11 = vld [vmem:[%s3998_s0 + $0x48] sm:$0xff]  }
  0x1a   :  { %v83_v12 = vld [vmem:[%s3998_s0 + $0x50] sm:$0xff]   ;;  %v85_v13 = vld [vmem:[%s3998_s0 + $0x58] sm:$0xff]   ;;  %v87_v14 = vld [vmem:[%s3998_s0 + $0x60] sm:$0xff]  }
  0x1b   :  { %418 = vmatpush1.bf16.msra.mxu0 %v2897_v27  ;;  %611 = vmatpush1.bf16.msra.mxu1 %v2898_v28  ;;  %v89_v15 = vld [vmem:[%s3998_s0 + $0x68] sm:$0xff]   ;;  %v91_v16 = vld [vmem:[%s3998_s0 + $0x70] sm:$0xff]   ;;  %v93_v17 = vld [vmem:[%s3998_s0 + $0x78] sm:$0xff]  }
  0x1c   :  { %419 = vmatprep.subr.bf16.mxu0 %v2899_v29  ;;  %612 = vmatprep.subr.bf16.mxu1 %v2901_v30  ;;  %v127_v22 = vld [vmem:[%s3999_s2] sm:$0xf] }
  0x1d   :  { %v3365_v25 = vrot.slane %v127_v22, %v131_v20  ;;  %v3367_v26 = vrot.slane %v127_v22, %v139_v21  ;;  %v3371_v27 = vrot.slane %v127_v22, %v143_v24 }
  0x1f   :  { %420 = vmatpush1.bf16.msra.mxu0 %v2903_v31  ;;  %613 = vmatpush1.bf16.msra.mxu1 %v2904_v32 }
  0x20   :  { %2632 = vmatprep.subr.bf16.mxu0 %v2917_v34  ;;  %2744 = vmatprep.subr.bf16.mxu1 %v2918_v35 }
  0x22   :  { %438 = vmatmul.mubr.bf16.vlgmr.msra.gmra.mrb[0].mxu0 %v63_v33  ;;  %631 = vmatmul.mubr.bf16.vlgmr.msra.gmra.mrb[0].mxu1 %v63_v33 }
  0x23   :  { %447 = vmatprep.mubr.bf16.mxu0 %v3049_v1  ;;  %640 = vmatprep.mubr.bf16.mxu1 %v3049_v1 }
  0x24   :  { %2633 = vmatpush3.bf16.msra.mxu0 %v2919_v36  ;;  %2745 = vmatpush3.bf16.msra.mxu1 %v2920_v37 }
  0x25   :  { %2634 = vmatprep.subr.bf16.mxu0 %v2923_v39  ;;  %2746 = vmatprep.subr.bf16.mxu1 %v2924_v40 }
  0x28   :  { %2635 = vmatpush3.bf16.msra.mxu0 %v2925_v41  ;;  %2747 = vmatpush3.bf16.msra.mxu1 %v2926_v42 }
  0x29   :  { %2636 = vmatprep.subr.bf16.mxu0 %v2929_v43  ;;  %2748 = vmatprep.subr.bf16.mxu1 %v2930_v44 }
  0x2a   :  { %448 = vmatmul.mubr.bf16.gmra.mrb[4].mxu0 %v65_v38  ;;  %641 = vmatmul.mubr.bf16.gmra.mrb[4].mxu1 %v65_v38 }
  0x2b   :  { %457 = vmatprep.mubr.bf16.mxu0 %v3049_v1  ;;  %650 = vmatprep.mubr.bf16.mxu1 %v3049_v1 }
  0x2c   :  { %2637 = vmatpush3.bf16.msra.mxu0 %v2931_v45  ;;  %2749 = vmatpush3.bf16.msra.mxu1 %v2932_v46 }
  0x2d   :  { %2638 = vmatprep.subr.bf16.mxu0 %v2933_v47  ;;  %2750 = vmatprep.subr.bf16.mxu1 %v2934_v49 }
  0x30   :  { %2639 = vmatpush3.bf16.msra.mxu0 %v2935_v50  ;;  %2751 = vmatpush3.bf16.msra.mxu1 %v2936_v51 }
  0x31   :  { %2640 = vmatprep.subr.bf16.mxu0 %v2937_v52  ;;  %2752 = vmatprep.subr.bf16.mxu1 %v2938_v53 }
  0x32   :  { %458 = vmatmul.mubr.bf16.gmra.mrb[8].mxu0 %v67_v48  ;;  %651 = vmatmul.mubr.bf16.gmra.mrb[8].mxu1 %v67_v48 }
  0x33   :  { %467 = vmatprep.mubr.bf16.mxu0 %v3049_v1  ;;  %660 = vmatprep.mubr.bf16.mxu1 %v3049_v1 }
  0x34   :  { %2641 = vmatpush3.bf16.msra.mxu0 %v2939_v54  ;;  %2753 = vmatpush3.bf16.msra.mxu1 %v2940_v55 }
  0x35   :  { %2642 = vmatprep.subr.bf16.mxu0 %v2941_v56  ;;  %2754 = vmatprep.subr.bf16.mxu1 %v2942_v58 }
  0x38   :  { %2643 = vmatpush3.bf16.msra.mxu0 %v2943_v59  ;;  %2755 = vmatpush3.bf16.msra.mxu1 %v2944_v60 }
  0x39   :  { %2644 = vmatprep.subr.bf16.mxu0 %v2945_v61  ;;  %2756 = vmatprep.subr.bf16.mxu1 %v2946_v62 }
  0x3a   :  { %468 = vmatmul.mubr.bf16.gmra.mrb[12].mxu0 %v69_v57  ;;  %661 = vmatmul.mubr.bf16.gmra.mrb[12].mxu1 %v69_v57 }
  0x3b   :  { %477 = vmatprep.mubr.bf16.mxu0 %v3049_v1  ;;  %670 = vmatprep.mubr.bf16.mxu1 %v3049_v1 }
  0x3c   :  { %2645 = vmatpush3.bf16.msra.mxu0 %v2947_v63  ;;  %2757 = vmatpush3.bf16.msra.mxu1 %v2948_v0 }
  0x3d   :  { %2646 = vmatprep.subr.bf16.mxu0 %v2949_v2  ;;  %2758 = vmatprep.subr.bf16.mxu1 %v2950_v3 }
  0x40   :  { %2647 = vmatpush3.bf16.msra.mxu0 %v2951_v5  ;;  %2759 = vmatpush3.bf16.msra.mxu1 %v2952_v6 }
  0x42   :  { %478 = vmatmul.mubr.bf16.gmra.mrb[16].mxu0 %v71_v4  ;;  %671 = vmatmul.mubr.bf16.gmra.mrb[16].mxu1 %v71_v4 }
  0x43   :  { %487 = vmatprep.mubr.bf16.mxu0 %v3049_v1  ;;  %680 = vmatprep.mubr.bf16.mxu1 %v3049_v1 }
  0x4a   :  { %488 = vmatmul.mubr.bf16.gmra.mrb[20].mxu0 %v73_v7  ;;  %681 = vmatmul.mubr.bf16.gmra.mrb[20].mxu1 %v73_v7 }
  0x4b   :  { %497 = vmatprep.mubr.bf16.mxu0 %v3049_v1  ;;  %690 = vmatprep.mubr.bf16.mxu1 %v3049_v1 }
  0x52   :  { %498 = vmatmul.mubr.bf16.gmra.mrb[24].mxu0 %v75_v8  ;;  %691 = vmatmul.mubr.bf16.gmra.mrb[24].mxu1 %v75_v8 }
  0x53   :  { %507 = vmatprep.mubr.bf16.mxu0 %v3049_v1  ;;  %700 = vmatprep.mubr.bf16.mxu1 %v3049_v1 }
  0x5a   :  { %508 = vmatmul.mubr.bf16.gmra.mrb[28].mxu0 %v77_v9  ;;  %701 = vmatmul.mubr.bf16.gmra.mrb[28].mxu1 %v77_v9 }
  0x5b   :  { %517 = vmatprep.mubr.bf16.mxu0 %v3049_v1  ;;  %710 = vmatprep.mubr.bf16.mxu1 %v3049_v1 }
  0x62   :  { %518 = vmatmul.mubr.bf16.gmra.mrb[32].mxu0 %v79_v10  ;;  %711 = vmatmul.mubr.bf16.gmra.mrb[32].mxu1 %v79_v10 }
  0x63   :  { %527 = vmatprep.mubr.bf16.mxu0 %v3049_v1  ;;  %720 = vmatprep.mubr.bf16.mxu1 %v3049_v1 }
  0x6a   :  { %528 = vmatmul.mubr.bf16.gmra.mrb[36].mxu0 %v81_v11  ;;  %721 = vmatmul.mubr.bf16.gmra.mrb[36].mxu1 %v81_v11 }
  0x6b   :  { %537 = vmatprep.mubr.bf16.mxu0 %v3049_v1  ;;  %730 = vmatprep.mubr.bf16.mxu1 %v3049_v1 }
  0x72   :  { %538 = vmatmul.mubr.bf16.gmra.mrb[40].mxu0 %v83_v12  ;;  %731 = vmatmul.mubr.bf16.gmra.mrb[40].mxu1 %v83_v12 }
  0x73   :  { %547 = vmatprep.mubr.bf16.mxu0 %v3049_v1  ;;  %740 = vmatprep.mubr.bf16.mxu1 %v3049_v1 }
  0x7a   :  { %548 = vmatmul.mubr.bf16.gmra.mrb[44].mxu0 %v85_v13  ;;  %741 = vmatmul.mubr.bf16.gmra.mrb[44].mxu1 %v85_v13 }
  0x7b   :  { %557 = vmatprep.mubr.bf16.mxu0 %v3049_v1  ;;  %750 = vmatprep.mubr.bf16.mxu1 %v3049_v1 }
  0x82   :  { %558 = vmatmul.mubr.bf16.gmra.mrb[48].mxu0 %v87_v14  ;;  %751 = vmatmul.mubr.bf16.gmra.mrb[48].mxu1 %v87_v14 }
  0x83   :  { %567 = vmatprep.mubr.bf16.mxu0 %v3049_v1  ;;  %760 = vmatprep.mubr.bf16.mxu1 %v3049_v1 }
  0x8a   :  { %568 = vmatmul.mubr.bf16.gmra.mrb[52].mxu0 %v89_v15  ;;  %761 = vmatmul.mubr.bf16.gmra.mrb[52].mxu1 %v89_v15 }
  0x8b   :  { %577 = vmatprep.mubr.bf16.mxu0 %v3049_v1  ;;  %770 = vmatprep.mubr.bf16.mxu1 %v3049_v1 }
  0x92   :  { %578 = vmatmul.mubr.bf16.gmra.mrb[56].mxu0 %v91_v16  ;;  %771 = vmatmul.mubr.bf16.gmra.mrb[56].mxu1 %v91_v16 }
  0x93   :  { %587 = vmatprep.mubr.bf16.mxu0 %v3049_v1  ;;  %780 = vmatprep.mubr.bf16.mxu1 %v3049_v1  ;;  %v3369_v1 = vrot.slane %v127_v22, %v135_v23 }
  0x9a   :  { %588 = vmatmul.mubr.bf16.gmra.mrb[60].mxu0 %v93_v17  ;;  %781 = vmatmul.mubr.bf16.gmra.mrb[60].mxu1 %v93_v17 }
  0xf5   :  { %v439_v28 = vpop.f32.mrb[0].mxu0  ;;  %v632_v29 = vpop.f32.mrb[0].mxu1 }
  0xf6   :  { %v440_v30 = vadd.f32 %v439_v28, %v3365_v25  ;;  %v633_v31 = vadd.f32 %v632_v29, %v3367_v26  ;;  %v441_v32 = vpop.f32.mrb[1].mxu0  ;;  %v634_v33 = vpop.f32.mrb[1].mxu1 }
  0xf7   :  { %v442_v34 = vadd.f32 %v441_v32, %v3369_v1  ;;  %v635_v35 = vadd.f32 %v634_v33, %v3371_v27  ;;  %v443_v36 = vpop.f32.mrb[2].mxu0  ;;  %v636_v37 = vpop.f32.mrb[2].mxu1 }
  0xf8   :  { %v444_v38 = vadd.f32 %v443_v36, %v3365_v25  ;;  %v637_v39 = vadd.f32 %v636_v37, %v3367_v26  ;;  %v445_v40 = vpop.f32.mrb[3].mxu0  ;;  %v638_v41 = vpop.f32.mrb[3].mxu1  ;;  %v791_v44 = vmax.f32 %v440_v30, 0.0  ;;  %v793_v45 = vmax.f32 %v633_v31, 0.0 }
  0xf9   :  { %v446_v42 = vadd.f32 %v445_v40, %v3369_v1  ;;  %v639_v43 = vadd.f32 %v638_v41, %v3371_v27  ;;  %v792_v48 = vmax.f32 %v442_v34, 0.0  ;;  %v794_v49 = vmax.f32 %v635_v35, 0.0 }
  0xfa   :  { %v795_v46 = vmax.f32 %v444_v38, 0.0  ;;  %v797_v47 = vmax.f32 %v637_v39, 0.0 }
  0xfb   :  { %v796_v50 = vmax.f32 %v446_v42, 0.0  ;;  %v798_v51 = vmax.f32 %v639_v43, 0.0 }
  0xfc   :  { %v951_v52 = vpack.c.bf16 %v795_v46, %v791_v44  ;;  %v953_v53 = vpack.c.bf16 %v797_v47, %v793_v45 }
  0xfd   :  { %v952_v54 = vpack.c.bf16 %v796_v50, %v792_v48  ;;  %v954_v55 = vpack.c.bf16 %v798_v51, %v794_v49  ;;  %v449_v56 = vpop.f32.mrb[4].mxu0  ;;  %v642_v57 = vpop.f32.mrb[4].mxu1 }
  0xfe   :  { %v450_v58 = vadd.f32 %v449_v56, %v3365_v25  ;;  %v643_v59 = vadd.f32 %v642_v57, %v3367_v26  ;;  %v451_v60 = vpop.f32.mrb[5].mxu0  ;;  %v644_v61 = vpop.f32.mrb[5].mxu1 }
  0xff   :  { %v452_v62 = vadd.f32 %v451_v60, %v3369_v1  ;;  %v645_v63 = vadd.f32 %v644_v61, %v3371_v27  ;;  %v453_v0 = vpop.f32.mrb[6].mxu0  ;;  %v646_v2 = vpop.f32.mrb[6].mxu1  ;;  %1303 = vmatprep.mubr.bf16.mxu0 %v952_v54  ;;  %1464 = vmatprep.mubr.bf16.mxu1 %v954_v55 }
 0x100   :  { %v454_v3 = vadd.f32 %v453_v0, %v3365_v25  ;;  %v647_v4 = vadd.f32 %v646_v2, %v3367_v26  ;;  %v455_v5 = vpop.f32.mrb[7].mxu0  ;;  %v648_v6 = vpop.f32.mrb[7].mxu1  ;;  %1304 = vmatmul.mubr.bf16.vlgmr.msra.gmra.mrb[64].mxu0 %v951_v52  ;;  %1465 = vmatmul.mubr.bf16.vlgmr.msra.gmra.mrb[64].mxu1 %v953_v53  ;;  %v799_v9 = vmax.f32 %v450_v58, 0.0  ;;  %v801_v10 = vmax.f32 %v643_v59, 0.0 }
 0x101   :  { %v456_v7 = vadd.f32 %v455_v5, %v3369_v1  ;;  %v649_v8 = vadd.f32 %v648_v6, %v3371_v27  ;;  %v800_v13 = vmax.f32 %v452_v62, 0.0  ;;  %v802_v14 = vmax.f32 %v645_v63, 0.0 }
 0x102   :  { %v803_v11 = vmax.f32 %v454_v3, 0.0  ;;  %v805_v12 = vmax.f32 %v647_v4, 0.0 }
 0x103   :  { %v804_v15 = vmax.f32 %v456_v7, 0.0  ;;  %v806_v16 = vmax.f32 %v649_v8, 0.0 }
 0x104   :  { %v955_v17 = vpack.c.bf16 %v803_v11, %v799_v9  ;;  %v957_v18 = vpack.c.bf16 %v805_v12, %v801_v10 }
 0x105   :  { %v956_v19 = vpack.c.bf16 %v804_v15, %v800_v13  ;;  %v958_v20 = vpack.c.bf16 %v806_v16, %v802_v14  ;;  %v459_v21 = vpop.f32.mrb[8].mxu0  ;;  %v652_v22 = vpop.f32.mrb[8].mxu1 }
 0x106   :  { %v460_v23 = vadd.f32 %v459_v21, %v3365_v25  ;;  %v653_v24 = vadd.f32 %v652_v22, %v3367_v26  ;;  %v461_v28 = vpop.f32.mrb[9].mxu0  ;;  %v654_v29 = vpop.f32.mrb[9].mxu1 }
 0x107   :  { %v462_v30 = vadd.f32 %v461_v28, %v3369_v1  ;;  %v655_v31 = vadd.f32 %v654_v29, %v3371_v27  ;;  %v463_v32 = vpop.f32.mrb[10].mxu0  ;;  %v656_v33 = vpop.f32.mrb[10].mxu1  ;;  %1311 = vmatprep.mubr.bf16.mxu0 %v956_v19  ;;  %1472 = vmatprep.mubr.bf16.mxu1 %v958_v20 }
 0x108   :  { %v464_v34 = vadd.f32 %v463_v32, %v3365_v25  ;;  %v657_v35 = vadd.f32 %v656_v33, %v3367_v26  ;;  %v465_v36 = vpop.f32.mrb[11].mxu0  ;;  %v658_v37 = vpop.f32.mrb[11].mxu1  ;;  %1312 = vmatmul.mubr.bf16.gmra.mrb[68].mxu0 %v955_v17  ;;  %1473 = vmatmul.mubr.bf16.gmra.mrb[68].mxu1 %v957_v18  ;;  %v807_v40 = vmax.f32 %v460_v23, 0.0  ;;  %v809_v41 = vmax.f32 %v653_v24, 0.0 }
 0x109   :  { %v466_v38 = vadd.f32 %v465_v36, %v3369_v1  ;;  %v659_v39 = vadd.f32 %v658_v37, %v3371_v27  ;;  %v808_v44 = vmax.f32 %v462_v30, 0.0  ;;  %v810_v45 = vmax.f32 %v655_v31, 0.0 }
 0x10a   :  { %v811_v42 = vmax.f32 %v464_v34, 0.0  ;;  %v813_v43 = vmax.f32 %v657_v35, 0.0 }
 0x10b   :  { %v812_v46 = vmax.f32 %v466_v38, 0.0  ;;  %v814_v47 = vmax.f32 %v659_v39, 0.0 }
 0x10c   :  { %v959_v48 = vpack.c.bf16 %v811_v42, %v807_v40  ;;  %v961_v49 = vpack.c.bf16 %v813_v43, %v809_v41 }
 0x10d   :  { %v960_v50 = vpack.c.bf16 %v812_v46, %v808_v44  ;;  %v962_v51 = vpack.c.bf16 %v814_v47, %v810_v45  ;;  %v469_v52 = vpop.f32.mrb[12].mxu0  ;;  %v662_v53 = vpop.f32.mrb[12].mxu1 }
 0x10e   :  { %v470_v54 = vadd.f32 %v469_v52, %v3365_v25  ;;  %v663_v55 = vadd.f32 %v662_v53, %v3367_v26  ;;  %v471_v56 = vpop.f32.mrb[13].mxu0  ;;  %v664_v57 = vpop.f32.mrb[13].mxu1 }
 0x10f   :  { %v472_v58 = vadd.f32 %v471_v56, %v3369_v1  ;;  %v665_v59 = vadd.f32 %v664_v57, %v3371_v27  ;;  %v473_v60 = vpop.f32.mrb[14].mxu0  ;;  %v666_v61 = vpop.f32.mrb[14].mxu1  ;;  %1319 = vmatprep.mubr.bf16.mxu0 %v960_v50  ;;  %1480 = vmatprep.mubr.bf16.mxu1 %v962_v51 }
 0x110   :  { %v474_v62 = vadd.f32 %v473_v60, %v3365_v25  ;;  %v667_v63 = vadd.f32 %v666_v61, %v3367_v26  ;;  %v475_v0 = vpop.f32.mrb[15].mxu0  ;;  %v668_v2 = vpop.f32.mrb[15].mxu1  ;;  %1320 = vmatmul.mubr.bf16.gmra.mrb[72].mxu0 %v959_v48  ;;  %1481 = vmatmul.mubr.bf16.gmra.mrb[72].mxu1 %v961_v49  ;;  %v815_v5 = vmax.f32 %v470_v54, 0.0  ;;  %v817_v6 = vmax.f32 %v663_v55, 0.0 }
 0x111   :  { %v476_v3 = vadd.f32 %v475_v0, %v3369_v1  ;;  %v669_v4 = vadd.f32 %v668_v2, %v3371_v27  ;;  %v816_v9 = vmax.f32 %v472_v58, 0.0  ;;  %v818_v10 = vmax.f32 %v665_v59, 0.0 }
 0x112   :  { %v819_v7 = vmax.f32 %v474_v62, 0.0  ;;  %v821_v8 = vmax.f32 %v667_v63, 0.0 }
 0x113   :  { %v820_v11 = vmax.f32 %v476_v3, 0.0  ;;  %v822_v12 = vmax.f32 %v669_v4, 0.0 }
 0x114   :  { %v963_v13 = vpack.c.bf16 %v819_v7, %v815_v5  ;;  %v965_v14 = vpack.c.bf16 %v821_v8, %v817_v6 }
 0x115   :  { %v964_v15 = vpack.c.bf16 %v820_v11, %v816_v9  ;;  %v966_v16 = vpack.c.bf16 %v822_v12, %v818_v10  ;;  %v479_v17 = vpop.f32.mrb[16].mxu0  ;;  %v672_v18 = vpop.f32.mrb[16].mxu1 }
 0x116   :  { %v480_v19 = vadd.f32 %v479_v17, %v3365_v25  ;;  %v673_v20 = vadd.f32 %v672_v18, %v3367_v26  ;;  %v481_v21 = vpop.f32.mrb[17].mxu0  ;;  %v674_v22 = vpop.f32.mrb[17].mxu1 }
 0x117   :  { %v482_v23 = vadd.f32 %v481_v21, %v3369_v1  ;;  %v675_v24 = vadd.f32 %v674_v22, %v3371_v27  ;;  %v483_v28 = vpop.f32.mrb[18].mxu0  ;;  %v676_v29 = vpop.f32.mrb[18].mxu1  ;;  %1327 = vmatprep.mubr.bf16.mxu0 %v964_v15  ;;  %1488 = vmatprep.mubr.bf16.mxu1 %v966_v16 }
 0x118   :  { %v484_v30 = vadd.f32 %v483_v28, %v3365_v25  ;;  %v677_v31 = vadd.f32 %v676_v29, %v3367_v26  ;;  %v485_v32 = vpop.f32.mrb[19].mxu0  ;;  %v678_v33 = vpop.f32.mrb[19].mxu1  ;;  %1328 = vmatmul.mubr.bf16.gmra.mrb[76].mxu0 %v963_v13  ;;  %1489 = vmatmul.mubr.bf16.gmra.mrb[76].mxu1 %v965_v14  ;;  %v823_v36 = vmax.f32 %v480_v19, 0.0  ;;  %v825_v37 = vmax.f32 %v673_v20, 0.0 }
 0x119   :  { %v486_v34 = vadd.f32 %v485_v32, %v3369_v1  ;;  %v679_v35 = vadd.f32 %v678_v33, %v3371_v27  ;;  %v824_v40 = vmax.f32 %v482_v23, 0.0  ;;  %v826_v41 = vmax.f32 %v675_v24, 0.0 }
 0x11a   :  { %v827_v38 = vmax.f32 %v484_v30, 0.0  ;;  %v829_v39 = vmax.f32 %v677_v31, 0.0 }
 0x11b   :  { %v828_v42 = vmax.f32 %v486_v34, 0.0  ;;  %v830_v43 = vmax.f32 %v679_v35, 0.0 }
 0x11c   :  { %v967_v44 = vpack.c.bf16 %v827_v38, %v823_v36  ;;  %v969_v45 = vpack.c.bf16 %v829_v39, %v825_v37 }
 0x11d   :  { %v968_v46 = vpack.c.bf16 %v828_v42, %v824_v40  ;;  %v970_v47 = vpack.c.bf16 %v830_v43, %v826_v41  ;;  %v489_v48 = vpop.f32.mrb[20].mxu0  ;;  %v682_v49 = vpop.f32.mrb[20].mxu1 }
 0x11e   :  { %v490_v50 = vadd.f32 %v489_v48, %v3365_v25  ;;  %v683_v51 = vadd.f32 %v682_v49, %v3367_v26  ;;  %v491_v52 = vpop.f32.mrb[21].mxu0  ;;  %v684_v53 = vpop.f32.mrb[21].mxu1 }
 0x11f   :  { %v492_v54 = vadd.f32 %v491_v52, %v3369_v1  ;;  %v685_v55 = vadd.f32 %v684_v53, %v3371_v27  ;;  %v493_v56 = vpop.f32.mrb[22].mxu0  ;;  %v686_v57 = vpop.f32.mrb[22].mxu1  ;;  %1335 = vmatprep.mubr.bf16.mxu0 %v968_v46  ;;  %1496 = vmatprep.mubr.bf16.mxu1 %v970_v47 }
 0x120   :  { %v494_v58 = vadd.f32 %v493_v56, %v3365_v25  ;;  %v687_v59 = vadd.f32 %v686_v57, %v3367_v26  ;;  %v495_v60 = vpop.f32.mrb[23].mxu0  ;;  %v688_v61 = vpop.f32.mrb[23].mxu1  ;;  %1336 = vmatmul.mubr.bf16.gmra.mrb[80].mxu0 %v967_v44  ;;  %1497 = vmatmul.mubr.bf16.gmra.mrb[80].mxu1 %v969_v45  ;;  %v831_v0 = vmax.f32 %v490_v50, 0.0  ;;  %v833_v2 = vmax.f32 %v683_v51, 0.0 }
 0x121   :  { %v496_v62 = vadd.f32 %v495_v60, %v3369_v1  ;;  %v689_v63 = vadd.f32 %v688_v61, %v3371_v27  ;;  %v832_v5 = vmax.f32 %v492_v54, 0.0  ;;  %v834_v6 = vmax.f32 %v685_v55, 0.0 }
 0x122   :  { %v835_v3 = vmax.f32 %v494_v58, 0.0  ;;  %v837_v4 = vmax.f32 %v687_v59, 0.0 }
 0x123   :  { %v836_v7 = vmax.f32 %v496_v62, 0.0  ;;  %v838_v8 = vmax.f32 %v689_v63, 0.0 }
 0x124   :  { %v971_v9 = vpack.c.bf16 %v835_v3, %v831_v0  ;;  %v973_v10 = vpack.c.bf16 %v837_v4, %v833_v2 }
 0x125   :  { %v972_v11 = vpack.c.bf16 %v836_v7, %v832_v5  ;;  %v974_v12 = vpack.c.bf16 %v838_v8, %v834_v6  ;;  %v499_v13 = vpop.f32.mrb[24].mxu0  ;;  %v692_v14 = vpop.f32.mrb[24].mxu1 }
 0x126   :  { %v500_v15 = vadd.f32 %v499_v13, %v3365_v25  ;;  %v693_v16 = vadd.f32 %v692_v14, %v3367_v26  ;;  %v501_v17 = vpop.f32.mrb[25].mxu0  ;;  %v694_v18 = vpop.f32.mrb[25].mxu1 }
 0x127   :  { %v502_v19 = vadd.f32 %v501_v17, %v3369_v1  ;;  %v695_v20 = vadd.f32 %v694_v18, %v3371_v27  ;;  %v503_v21 = vpop.f32.mrb[26].mxu0  ;;  %v696_v22 = vpop.f32.mrb[26].mxu1  ;;  %1343 = vmatprep.mubr.bf16.mxu0 %v972_v11  ;;  %1504 = vmatprep.mubr.bf16.mxu1 %v974_v12 }
 0x128   :  { %v504_v23 = vadd.f32 %v503_v21, %v3365_v25  ;;  %v697_v24 = vadd.f32 %v696_v22, %v3367_v26  ;;  %v505_v28 = vpop.f32.mrb[27].mxu0  ;;  %v698_v29 = vpop.f32.mrb[27].mxu1  ;;  %1344 = vmatmul.mubr.bf16.gmra.mrb[84].mxu0 %v971_v9  ;;  %1505 = vmatmul.mubr.bf16.gmra.mrb[84].mxu1 %v973_v10  ;;  %v839_v32 = vmax.f32 %v500_v15, 0.0  ;;  %v841_v33 = vmax.f32 %v693_v16, 0.0 }
 0x129   :  { %v506_v30 = vadd.f32 %v505_v28, %v3369_v1  ;;  %v699_v31 = vadd.f32 %v698_v29, %v3371_v27  ;;  %v840_v36 = vmax.f32 %v502_v19, 0.0  ;;  %v842_v37 = vmax.f32 %v695_v20, 0.0 }
 0x12a   :  { %v843_v34 = vmax.f32 %v504_v23, 0.0  ;;  %v845_v35 = vmax.f32 %v697_v24, 0.0 }
 0x12b   :  { %v844_v38 = vmax.f32 %v506_v30, 0.0  ;;  %v846_v39 = vmax.f32 %v699_v31, 0.0 }
 0x12c   :  { %v975_v40 = vpack.c.bf16 %v843_v34, %v839_v32  ;;  %v977_v41 = vpack.c.bf16 %v845_v35, %v841_v33 }
 0x12d   :  { %v976_v42 = vpack.c.bf16 %v844_v38, %v840_v36  ;;  %v978_v43 = vpack.c.bf16 %v846_v39, %v842_v37  ;;  %v509_v44 = vpop.f32.mrb[28].mxu0  ;;  %v702_v45 = vpop.f32.mrb[28].mxu1 }
 0x12e   :  { %v510_v46 = vadd.f32 %v509_v44, %v3365_v25  ;;  %v703_v47 = vadd.f32 %v702_v45, %v3367_v26  ;;  %v511_v48 = vpop.f32.mrb[29].mxu0  ;;  %v704_v49 = vpop.f32.mrb[29].mxu1 }
 0x12f   :  { %v512_v50 = vadd.f32 %v511_v48, %v3369_v1  ;;  %v705_v51 = vadd.f32 %v704_v49, %v3371_v27  ;;  %v513_v52 = vpop.f32.mrb[30].mxu0  ;;  %v706_v53 = vpop.f32.mrb[30].mxu1  ;;  %1351 = vmatprep.mubr.bf16.mxu0 %v976_v42  ;;  %1512 = vmatprep.mubr.bf16.mxu1 %v978_v43 }
 0x130   :  { %v514_v54 = vadd.f32 %v513_v52, %v3365_v25  ;;  %v707_v55 = vadd.f32 %v706_v53, %v3367_v26  ;;  %v515_v56 = vpop.f32.mrb[31].mxu0  ;;  %v708_v57 = vpop.f32.mrb[31].mxu1  ;;  %1352 = vmatmul.mubr.bf16.gmra.mrb[88].mxu0 %v975_v40  ;;  %1513 = vmatmul.mubr.bf16.gmra.mrb[88].mxu1 %v977_v41  ;;  %v847_v60 = vmax.f32 %v510_v46, 0.0  ;;  %v849_v61 = vmax.f32 %v703_v47, 0.0 }
 0x131   :  { %v516_v58 = vadd.f32 %v515_v56, %v3369_v1  ;;  %v709_v59 = vadd.f32 %v708_v57, %v3371_v27  ;;  %v848_v0 = vmax.f32 %v512_v50, 0.0  ;;  %v850_v2 = vmax.f32 %v705_v51, 0.0 }
 0x132   :  { %v851_v62 = vmax.f32 %v514_v54, 0.0  ;;  %v853_v63 = vmax.f32 %v707_v55, 0.0 }
 0x133   :  { %v852_v3 = vmax.f32 %v516_v58, 0.0  ;;  %v854_v4 = vmax.f32 %v709_v59, 0.0 }
 0x134   :  { %v979_v5 = vpack.c.bf16 %v851_v62, %v847_v60  ;;  %v981_v6 = vpack.c.bf16 %v853_v63, %v849_v61 }
 0x135   :  { %v980_v7 = vpack.c.bf16 %v852_v3, %v848_v0  ;;  %v982_v8 = vpack.c.bf16 %v854_v4, %v850_v2  ;;  %v519_v9 = vpop.f32.mrb[32].mxu0  ;;  %v712_v10 = vpop.f32.mrb[32].mxu1 }
 0x136   :  { %v520_v11 = vadd.f32 %v519_v9, %v3365_v25  ;;  %v713_v12 = vadd.f32 %v712_v10, %v3367_v26  ;;  %v521_v13 = vpop.f32.mrb[33].mxu0  ;;  %v714_v14 = vpop.f32.mrb[33].mxu1 }
 0x137   :  { %v522_v15 = vadd.f32 %v521_v13, %v3369_v1  ;;  %v715_v16 = vadd.f32 %v714_v14, %v3371_v27  ;;  %v523_v17 = vpop.f32.mrb[34].mxu0  ;;  %v716_v18 = vpop.f32.mrb[34].mxu1  ;;  %1359 = vmatprep.mubr.bf16.mxu0 %v980_v7  ;;  %1520 = vmatprep.mubr.bf16.mxu1 %v982_v8 }
 0x138   :  { %v524_v19 = vadd.f32 %v523_v17, %v3365_v25  ;;  %v717_v20 = vadd.f32 %v716_v18, %v3367_v26  ;;  %v525_v21 = vpop.f32.mrb[35].mxu0  ;;  %v718_v22 = vpop.f32.mrb[35].mxu1  ;;  %1360 = vmatmul.mubr.bf16.gmra.mrb[92].mxu0 %v979_v5  ;;  %1521 = vmatmul.mubr.bf16.gmra.mrb[92].mxu1 %v981_v6  ;;  %v855_v28 = vmax.f32 %v520_v11, 0.0  ;;  %v857_v29 = vmax.f32 %v713_v12, 0.0 }
 0x139   :  { %v526_v23 = vadd.f32 %v525_v21, %v3369_v1  ;;  %v719_v24 = vadd.f32 %v718_v22, %v3371_v27  ;;  %v856_v32 = vmax.f32 %v522_v15, 0.0  ;;  %v858_v33 = vmax.f32 %v715_v16, 0.0 }
 0x13a   :  { %v859_v30 = vmax.f32 %v524_v19, 0.0  ;;  %v861_v31 = vmax.f32 %v717_v20, 0.0 }
 0x13b   :  { %v860_v34 = vmax.f32 %v526_v23, 0.0  ;;  %v862_v35 = vmax.f32 %v719_v24, 0.0 }
 0x13c   :  { %v983_v36 = vpack.c.bf16 %v859_v30, %v855_v28  ;;  %v985_v37 = vpack.c.bf16 %v861_v31, %v857_v29 }
 0x13d   :  { %v984_v38 = vpack.c.bf16 %v860_v34, %v856_v32  ;;  %v986_v39 = vpack.c.bf16 %v862_v35, %v858_v33  ;;  %v529_v40 = vpop.f32.mrb[36].mxu0  ;;  %v722_v41 = vpop.f32.mrb[36].mxu1 }
 0x13e   :  { %v530_v42 = vadd.f32 %v529_v40, %v3365_v25  ;;  %v723_v43 = vadd.f32 %v722_v41, %v3367_v26  ;;  %v531_v44 = vpop.f32.mrb[37].mxu0  ;;  %v724_v45 = vpop.f32.mrb[37].mxu1 }
 0x13f   :  { %v532_v46 = vadd.f32 %v531_v44, %v3369_v1  ;;  %v725_v47 = vadd.f32 %v724_v45, %v3371_v27  ;;  %v533_v48 = vpop.f32.mrb[38].mxu0  ;;  %v726_v49 = vpop.f32.mrb[38].mxu1  ;;  %1367 = vmatprep.mubr.bf16.mxu0 %v984_v38  ;;  %1528 = vmatprep.mubr.bf16.mxu1 %v986_v39 }
 0x140   :  { %v534_v50 = vadd.f32 %v533_v48, %v3365_v25  ;;  %v727_v51 = vadd.f32 %v726_v49, %v3367_v26  ;;  %v535_v52 = vpop.f32.mrb[39].mxu0  ;;  %v728_v53 = vpop.f32.mrb[39].mxu1  ;;  %1368 = vmatmul.mubr.bf16.gmra.mrb[96].mxu0 %v983_v36  ;;  %1529 = vmatmul.mubr.bf16.gmra.mrb[96].mxu1 %v985_v37  ;;  %v863_v56 = vmax.f32 %v530_v42, 0.0  ;;  %v865_v57 = vmax.f32 %v723_v43, 0.0 }
 0x141   :  { %v536_v54 = vadd.f32 %v535_v52, %v3369_v1  ;;  %v729_v55 = vadd.f32 %v728_v53, %v3371_v27  ;;  %v864_v60 = vmax.f32 %v532_v46, 0.0  ;;  %v866_v61 = vmax.f32 %v725_v47, 0.0 }
 0x142   :  { %v867_v58 = vmax.f32 %v534_v50, 0.0  ;;  %v869_v59 = vmax.f32 %v727_v51, 0.0 }
 0x143   :  { %v868_v62 = vmax.f32 %v536_v54, 0.0  ;;  %v870_v63 = vmax.f32 %v729_v55, 0.0 }
 0x144   :  { %v987_v0 = vpack.c.bf16 %v867_v58, %v863_v56  ;;  %v989_v2 = vpack.c.bf16 %v869_v59, %v865_v57 }
 0x145   :  { %v988_v3 = vpack.c.bf16 %v868_v62, %v864_v60  ;;  %v990_v4 = vpack.c.bf16 %v870_v63, %v866_v61  ;;  %v539_v5 = vpop.f32.mrb[40].mxu0  ;;  %v732_v6 = vpop.f32.mrb[40].mxu1 }
 0x146   :  { %v540_v7 = vadd.f32 %v539_v5, %v3365_v25  ;;  %v733_v8 = vadd.f32 %v732_v6, %v3367_v26  ;;  %v541_v9 = vpop.f32.mrb[41].mxu0  ;;  %v734_v10 = vpop.f32.mrb[41].mxu1 }
 0x147   :  { %v542_v11 = vadd.f32 %v541_v9, %v3369_v1  ;;  %v735_v12 = vadd.f32 %v734_v10, %v3371_v27  ;;  %v543_v13 = vpop.f32.mrb[42].mxu0  ;;  %v736_v14 = vpop.f32.mrb[42].mxu1  ;;  %1375 = vmatprep.mubr.bf16.mxu0 %v988_v3  ;;  %1536 = vmatprep.mubr.bf16.mxu1 %v990_v4 }
 0x148   :  { %v544_v15 = vadd.f32 %v543_v13, %v3365_v25  ;;  %v737_v16 = vadd.f32 %v736_v14, %v3367_v26  ;;  %v545_v17 = vpop.f32.mrb[43].mxu0  ;;  %v738_v18 = vpop.f32.mrb[43].mxu1  ;;  %1376 = vmatmul.mubr.bf16.gmra.mrb[100].mxu0 %v987_v0  ;;  %1537 = vmatmul.mubr.bf16.gmra.mrb[100].mxu1 %v989_v2  ;;  %v871_v21 = vmax.f32 %v540_v7, 0.0  ;;  %v873_v22 = vmax.f32 %v733_v8, 0.0 }
 0x149   :  { %v546_v19 = vadd.f32 %v545_v17, %v3369_v1  ;;  %v739_v20 = vadd.f32 %v738_v18, %v3371_v27  ;;  %v872_v28 = vmax.f32 %v542_v11, 0.0  ;;  %v874_v29 = vmax.f32 %v735_v12, 0.0 }
 0x14a   :  { %v875_v23 = vmax.f32 %v544_v15, 0.0  ;;  %v877_v24 = vmax.f32 %v737_v16, 0.0 }
 0x14b   :  { %v876_v30 = vmax.f32 %v546_v19, 0.0  ;;  %v878_v31 = vmax.f32 %v739_v20, 0.0 }
 0x14c   :  { %v991_v32 = vpack.c.bf16 %v875_v23, %v871_v21  ;;  %v993_v33 = vpack.c.bf16 %v877_v24, %v873_v22 }
 0x14d   :  { %v992_v34 = vpack.c.bf16 %v876_v30, %v872_v28  ;;  %v994_v35 = vpack.c.bf16 %v878_v31, %v874_v29  ;;  %v549_v36 = vpop.f32.mrb[44].mxu0  ;;  %v742_v37 = vpop.f32.mrb[44].mxu1 }
 0x14e   :  { %v550_v38 = vadd.f32 %v549_v36, %v3365_v25  ;;  %v743_v39 = vadd.f32 %v742_v37, %v3367_v26  ;;  %v551_v40 = vpop.f32.mrb[45].mxu0  ;;  %v744_v41 = vpop.f32.mrb[45].mxu1 }
 0x14f   :  { %v552_v42 = vadd.f32 %v551_v40, %v3369_v1  ;;  %v745_v43 = vadd.f32 %v744_v41, %v3371_v27  ;;  %v553_v44 = vpop.f32.mrb[46].mxu0  ;;  %v746_v45 = vpop.f32.mrb[46].mxu1  ;;  %1383 = vmatprep.mubr.bf16.mxu0 %v992_v34  ;;  %1544 = vmatprep.mubr.bf16.mxu1 %v994_v35 }
 0x150   :  { %v554_v46 = vadd.f32 %v553_v44, %v3365_v25  ;;  %v747_v47 = vadd.f32 %v746_v45, %v3367_v26  ;;  %v555_v48 = vpop.f32.mrb[47].mxu0  ;;  %v748_v49 = vpop.f32.mrb[47].mxu1  ;;  %1384 = vmatmul.mubr.bf16.gmra.mrb[104].mxu0 %v991_v32  ;;  %1545 = vmatmul.mubr.bf16.gmra.mrb[104].mxu1 %v993_v33  ;;  %v879_v52 = vmax.f32 %v550_v38, 0.0  ;;  %v881_v53 = vmax.f32 %v743_v39, 0.0 }
 0x151   :  { %v556_v50 = vadd.f32 %v555_v48, %v3369_v1  ;;  %v749_v51 = vadd.f32 %v748_v49, %v3371_v27  ;;  %v880_v56 = vmax.f32 %v552_v42, 0.0  ;;  %v882_v57 = vmax.f32 %v745_v43, 0.0 }
 0x152   :  { %v883_v54 = vmax.f32 %v554_v46, 0.0  ;;  %v885_v55 = vmax.f32 %v747_v47, 0.0 }
 0x153   :  { %v884_v58 = vmax.f32 %v556_v50, 0.0  ;;  %v886_v59 = vmax.f32 %v749_v51, 0.0 }
 0x154   :  { %v995_v60 = vpack.c.bf16 %v883_v54, %v879_v52  ;;  %v997_v61 = vpack.c.bf16 %v885_v55, %v881_v53 }
 0x155   :  { %v996_v62 = vpack.c.bf16 %v884_v58, %v880_v56  ;;  %v998_v63 = vpack.c.bf16 %v886_v59, %v882_v57  ;;  %v559_v0 = vpop.f32.mrb[48].mxu0  ;;  %v752_v2 = vpop.f32.mrb[48].mxu1 }
 0x156   :  { %v560_v3 = vadd.f32 %v559_v0, %v3365_v25  ;;  %v753_v4 = vadd.f32 %v752_v2, %v3367_v26  ;;  %v561_v5 = vpop.f32.mrb[49].mxu0  ;;  %v754_v6 = vpop.f32.mrb[49].mxu1 }
 0x157   :  { %v562_v7 = vadd.f32 %v561_v5, %v3369_v1  ;;  %v755_v8 = vadd.f32 %v754_v6, %v3371_v27  ;;  %v563_v9 = vpop.f32.mrb[50].mxu0  ;;  %v756_v10 = vpop.f32.mrb[50].mxu1  ;;  %1391 = vmatprep.mubr.bf16.mxu0 %v996_v62  ;;  %1552 = vmatprep.mubr.bf16.mxu1 %v998_v63 }
 0x158   :  { %v564_v11 = vadd.f32 %v563_v9, %v3365_v25  ;;  %v757_v12 = vadd.f32 %v756_v10, %v3367_v26  ;;  %v565_v13 = vpop.f32.mrb[51].mxu0  ;;  %v758_v14 = vpop.f32.mrb[51].mxu1  ;;  %1392 = vmatmul.mubr.bf16.gmra.mrb[108].mxu0 %v995_v60  ;;  %1553 = vmatmul.mubr.bf16.gmra.mrb[108].mxu1 %v997_v61  ;;  %v887_v17 = vmax.f32 %v560_v3, 0.0  ;;  %v889_v18 = vmax.f32 %v753_v4, 0.0 }
 0x159   :  { %v566_v15 = vadd.f32 %v565_v13, %v3369_v1  ;;  %v759_v16 = vadd.f32 %v758_v14, %v3371_v27  ;;  %v888_v21 = vmax.f32 %v562_v7, 0.0  ;;  %v890_v22 = vmax.f32 %v755_v8, 0.0 }
 0x15a   :  { %v891_v19 = vmax.f32 %v564_v11, 0.0  ;;  %v893_v20 = vmax.f32 %v757_v12, 0.0 }
 0x15b   :  { %v892_v23 = vmax.f32 %v566_v15, 0.0  ;;  %v894_v24 = vmax.f32 %v759_v16, 0.0 }
 0x15c   :  { %v999_v28 = vpack.c.bf16 %v891_v19, %v887_v17  ;;  %v1001_v29 = vpack.c.bf16 %v893_v20, %v889_v18 }
 0x15d   :  { %v1000_v30 = vpack.c.bf16 %v892_v23, %v888_v21  ;;  %v1002_v31 = vpack.c.bf16 %v894_v24, %v890_v22  ;;  %v569_v32 = vpop.f32.mrb[52].mxu0  ;;  %v762_v33 = vpop.f32.mrb[52].mxu1 }
 0x15e   :  { %v570_v34 = vadd.f32 %v569_v32, %v3365_v25  ;;  %v763_v35 = vadd.f32 %v762_v33, %v3367_v26  ;;  %v571_v36 = vpop.f32.mrb[53].mxu0  ;;  %v764_v37 = vpop.f32.mrb[53].mxu1 }
 0x15f   :  { %v572_v38 = vadd.f32 %v571_v36, %v3369_v1  ;;  %v765_v39 = vadd.f32 %v764_v37, %v3371_v27  ;;  %v573_v40 = vpop.f32.mrb[54].mxu0  ;;  %v766_v41 = vpop.f32.mrb[54].mxu1  ;;  %1399 = vmatprep.mubr.bf16.mxu0 %v1000_v30  ;;  %1560 = vmatprep.mubr.bf16.mxu1 %v1002_v31 }
 0x160   :  { %v574_v42 = vadd.f32 %v573_v40, %v3365_v25  ;;  %v767_v43 = vadd.f32 %v766_v41, %v3367_v26  ;;  %v575_v44 = vpop.f32.mrb[55].mxu0  ;;  %v768_v45 = vpop.f32.mrb[55].mxu1  ;;  %1400 = vmatmul.mubr.bf16.gmra.mrb[112].mxu0 %v999_v28  ;;  %1561 = vmatmul.mubr.bf16.gmra.mrb[112].mxu1 %v1001_v29  ;;  %v895_v48 = vmax.f32 %v570_v34, 0.0  ;;  %v897_v49 = vmax.f32 %v763_v35, 0.0 }
 0x161   :  { %v576_v46 = vadd.f32 %v575_v44, %v3369_v1  ;;  %v769_v47 = vadd.f32 %v768_v45, %v3371_v27  ;;  %v896_v52 = vmax.f32 %v572_v38, 0.0  ;;  %v898_v53 = vmax.f32 %v765_v39, 0.0 }
 0x162   :  { %v899_v50 = vmax.f32 %v574_v42, 0.0  ;;  %v901_v51 = vmax.f32 %v767_v43, 0.0 }
 0x163   :  { %v900_v54 = vmax.f32 %v576_v46, 0.0  ;;  %v902_v55 = vmax.f32 %v769_v47, 0.0 }
 0x164   :  { %v1003_v56 = vpack.c.bf16 %v899_v50, %v895_v48  ;;  %v1005_v57 = vpack.c.bf16 %v901_v51, %v897_v49 }
 0x165   :  { %v1004_v58 = vpack.c.bf16 %v900_v54, %v896_v52  ;;  %v1006_v59 = vpack.c.bf16 %v902_v55, %v898_v53  ;;  %v579_v60 = vpop.f32.mrb[56].mxu0  ;;  %v772_v61 = vpop.f32.mrb[56].mxu1 }
 0x166   :  { %v580_v62 = vadd.f32 %v579_v60, %v3365_v25  ;;  %v773_v63 = vadd.f32 %v772_v61, %v3367_v26  ;;  %v581_v0 = vpop.f32.mrb[57].mxu0  ;;  %v774_v2 = vpop.f32.mrb[57].mxu1  ;;  %v3033_v60 = vld [vmem:[%s3998_s0] sm:$0xff]  }
 0x167   :  { %v582_v3 = vadd.f32 %v581_v0, %v3369_v1  ;;  %v775_v4 = vadd.f32 %v774_v2, %v3371_v27  ;;  %v583_v5 = vpop.f32.mrb[58].mxu0  ;;  %v776_v6 = vpop.f32.mrb[58].mxu1  ;;  %1407 = vmatprep.mubr.bf16.mxu0 %v1004_v58  ;;  %1568 = vmatprep.mubr.bf16.mxu1 %v1006_v59  ;;  %v1660_v61 = vunpack.c.l.bf16 %v3033_v60 }
 0x168   :  { %v584_v7 = vadd.f32 %v583_v5, %v3365_v25  ;;  %v777_v8 = vadd.f32 %v776_v6, %v3367_v26  ;;  %v585_v9 = vpop.f32.mrb[59].mxu0  ;;  %v778_v10 = vpop.f32.mrb[59].mxu1  ;;  %1408 = vmatmul.mubr.bf16.gmra.mrb[116].mxu0 %v1003_v56  ;;  %1569 = vmatmul.mubr.bf16.gmra.mrb[116].mxu1 %v1005_v57  ;;  %v903_v13 = vmax.f32 %v580_v62, 0.0  ;;  %v905_v14 = vmax.f32 %v773_v63, 0.0  ;;  %v3507_v5 = vld [vmem:[%s4000_s4] ss:$0 sm:$0xff] }
 0x169   :  { %v586_v11 = vadd.f32 %v585_v9, %v3369_v1  ;;  %v779_v12 = vadd.f32 %v778_v10, %v3371_v27  ;;  %v904_v17 = vmax.f32 %v582_v3, 0.0  ;;  %v906_v18 = vmax.f32 %v775_v4, 0.0 }
 0x16a   :  { %v907_v15 = vmax.f32 %v584_v7, 0.0  ;;  %v909_v16 = vmax.f32 %v777_v8, 0.0  ;;  %v1661_v4 = vunpack.c.h.bf16 %v3033_v60  ;;  %v3036_v60 = vld [vmem:[%s3998_s0 + $0x18] sm:$0xff]  }
 0x16b   :  { %v908_v19 = vmax.f32 %v586_v11, 0.0  ;;  %v910_v20 = vmax.f32 %v779_v12, 0.0 }
 0x16c   :  { %v1007_v21 = vpack.c.bf16 %v907_v15, %v903_v13  ;;  %v1009_v22 = vpack.c.bf16 %v909_v16, %v905_v14 }
 0x16d   :  { %v1008_v23 = vpack.c.bf16 %v908_v19, %v904_v17  ;;  %v1010_v24 = vpack.c.bf16 %v910_v20, %v906_v18  ;;  %v589_v28 = vpop.f32.mrb[60].mxu0  ;;  %v782_v29 = vpop.f32.mrb[60].mxu1  ;;  %v3034_v18 = vld [vmem:[%s3998_s0 + $0x8] sm:$0xff]  }
 0x16e   :  { %v590_v30 = vadd.f32 %v589_v28, %v3365_v25  ;;  %v783_v31 = vadd.f32 %v782_v29, %v3367_v26  ;;  %v591_v32 = vpop.f32.mrb[61].mxu0  ;;  %v784_v33 = vpop.f32.mrb[61].mxu1  ;;  %v1662_v19 = vunpack.c.l.bf16 %v3034_v18 }
 0x16f   :  { %v592_v34 = vadd.f32 %v591_v32, %v3369_v1  ;;  %v785_v35 = vadd.f32 %v784_v33, %v3371_v27  ;;  %v593_v36 = vpop.f32.mrb[62].mxu0  ;;  %v786_v37 = vpop.f32.mrb[62].mxu1  ;;  %1415 = vmatprep.mubr.bf16.mxu0 %v1008_v23  ;;  %1576 = vmatprep.mubr.bf16.mxu1 %v1010_v24 }
 0x170   :  { %v594_v38 = vadd.f32 %v593_v36, %v3365_v25  ;;  %v787_v39 = vadd.f32 %v786_v37, %v3367_v26  ;;  %v595_v40 = vpop.f32.mrb[63].mxu0  ;;  %v788_v41 = vpop.f32.mrb[63].mxu1  ;;  %1416 = vmatmul.mubr.bf16.gmra.mrb[120].mxu0 %v1007_v21  ;;  %1577 = vmatmul.mubr.bf16.gmra.mrb[120].mxu1 %v1009_v22  ;;  %v911_v44 = vmax.f32 %v590_v30, 0.0  ;;  %v913_v45 = vmax.f32 %v783_v31, 0.0 }
 0x171   :  { %v596_v42 = vadd.f32 %v595_v40, %v3369_v1  ;;  %v789_v43 = vadd.f32 %v788_v41, %v3371_v27  ;;  %v912_v48 = vmax.f32 %v592_v34, 0.0  ;;  %v914_v49 = vmax.f32 %v785_v35, 0.0 }
 0x172   :  { %v915_v46 = vmax.f32 %v594_v38, 0.0  ;;  %v917_v47 = vmax.f32 %v787_v39, 0.0  ;;  %v1663_v22 = vunpack.c.h.bf16 %v3034_v18 }
 0x173   :  { %v916_v50 = vmax.f32 %v596_v42, 0.0  ;;  %v918_v51 = vmax.f32 %v789_v43, 0.0  ;;  %v3035_v42 = vld [vmem:[%s3998_s0 + $0x10] sm:$0xff]  }
 0x174   :  { %v1011_v52 = vpack.c.bf16 %v915_v46, %v911_v44  ;;  %v1013_v25 = vpack.c.bf16 %v917_v47, %v913_v45  ;;  %v1664_v43 = vunpack.c.l.bf16 %v3035_v42  ;;  %v1665_v46 = vunpack.c.h.bf16 %v3035_v42 }
 0x175   :  { %v1012_v53 = vpack.c.bf16 %v916_v50, %v912_v48  ;;  %v1014_v26 = vpack.c.bf16 %v918_v51, %v914_v49 }
 0x177   :  { %1423 = vmatprep.mubr.bf16.mxu0 %v1012_v53  ;;  %1584 = vmatprep.mubr.bf16.mxu1 %v1014_v26 }
 0x178   :  { %1424 = vmatmul.mubr.bf16.gmra.mrb[124].mxu0 %v1011_v52  ;;  %1585 = vmatmul.mubr.bf16.gmra.mrb[124].mxu1 %v1013_v25 }
 0x1d3   :  { %v2648_v54 = vpop.f32.mrb[64].mxu0  ;;  %v2760_v1 = vpop.f32.mrb[64].mxu1 }
 0x1d4   :  { %v2649_v55 = vpop.f32.mrb[65].mxu0  ;;  %v2761_v27 = vpop.f32.mrb[65].mxu1 }
 0x1d5   :  { %v2650_v56 = vadd.f32 %v2649_v55, %v2648_v54  ;;  %v2762_v57 = vadd.f32 %v2761_v27, %v2760_v1  ;;  %v2651_v58 = vpop.f32.mrb[66].mxu0  ;;  %v2763_v59 = vpop.f32.mrb[66].mxu1 }
 0x1d6   :  { %v2652_v62 = vpop.f32.mrb[67].mxu0  ;;  %v2764_v63 = vpop.f32.mrb[67].mxu1 }
 0x1d7   :  { %v1467_v0 = vadd.f32 %v2762_v57, %v2650_v56  ;;  %v2653_v2 = vadd.f32 %v2652_v62, %v2651_v58  ;;  %v2765_v3 = vadd.f32 %v2764_v63, %v2763_v59 }
 0x1d9   :  { %v1470_v6 = vadd.f32 %v2765_v3, %v2653_v2  ;;  %v1724_v7 = vadd.f32 %v1660_v61, %v1467_v0  ;;  %v1666_v61 = vunpack.c.l.bf16 %v3036_v60 }
 0x1db   :  { %v2654_v8 = vpop.f32.mrb[68].mxu0  ;;  %v2766_v9 = vpop.f32.mrb[68].mxu1  ;;  %v3510_v10 = vadd.f32 %v3507_v5, %v1724_v7  ;;  %v1725_v11 = vadd.f32 %v1661_v4, %v1470_v6  ;;  %v1667_v4 = vunpack.c.h.bf16 %v3036_v60 }
 0x1dc   :  { %v2655_v12 = vpop.f32.mrb[69].mxu0  ;;  %v2767_v13 = vpop.f32.mrb[69].mxu1 }
 0x1dd   :  { %v2656_v14 = vadd.f32 %v2655_v12, %v2654_v8  ;;  %v2768_v15 = vadd.f32 %v2767_v13, %v2766_v9  ;;  %v2657_v16 = vpop.f32.mrb[70].mxu0  ;;  %v2769_v17 = vpop.f32.mrb[70].mxu1  ;;  %1795 = vadd.xlane.f32.xlu0 %v3510_v10  ;;  %v3517_v29 = vadd.f32 %v3507_v5, %v1725_v11 }
 0x1de   :  { %v2658_v20 = vpop.f32.mrb[71].mxu0  ;;  %v2770_v21 = vpop.f32.mrb[71].mxu1 }
 0x1df   :  { %v1475_v23 = vadd.f32 %v2768_v15, %v2656_v14  ;;  %v2659_v24 = vadd.f32 %v2658_v20, %v2657_v16  ;;  %v2771_v28 = vadd.f32 %v2770_v21, %v2769_v17  ;;  %v3037_v20 = vld [vmem:[%s3998_s0 + $0x20] sm:$0xff]  }
 0x1e0   :  { %v1668_v21 = vunpack.c.l.bf16 %v3037_v20 }
 0x1e1   :  { %v1478_v30 = vadd.f32 %v2771_v28, %v2659_v24  ;;  %1797 = vadd.xlane.f32.xlu0 %v3517_v29  ;;  %v1726_v31 = vadd.f32 %v1662_v19, %v1475_v23 }
 0x1e3   :  { %v2660_v32 = vpop.f32.mrb[72].mxu0  ;;  %v2772_v33 = vpop.f32.mrb[72].mxu1  ;;  %v3521_v34 = vadd.f32 %v3507_v5, %v1726_v31  ;;  %v1727_v35 = vadd.f32 %v1663_v22, %v1478_v30  ;;  %v1669_v31 = vunpack.c.h.bf16 %v3037_v20 }
 0x1e4   :  { %v2661_v36 = vpop.f32.mrb[73].mxu0  ;;  %v2773_v37 = vpop.f32.mrb[73].mxu1 }
 0x1e5   :  { %v2662_v38 = vadd.f32 %v2661_v36, %v2660_v32  ;;  %v2774_v39 = vadd.f32 %v2773_v37, %v2772_v33  ;;  %v2663_v40 = vpop.f32.mrb[74].mxu0  ;;  %v2775_v41 = vpop.f32.mrb[74].mxu1  ;;  %1799 = vadd.xlane.f32.xlu1 %v3521_v34  ;;  %v3528_v50 = vadd.f32 %v3507_v5, %v1727_v35 }
 0x1e6   :  { %v2664_v44 = vpop.f32.mrb[75].mxu0  ;;  %v2776_v45 = vpop.f32.mrb[75].mxu1 }
 0x1e7   :  { %v1483_v47 = vadd.f32 %v2774_v39, %v2662_v38  ;;  %v2665_v48 = vadd.f32 %v2664_v44, %v2663_v40  ;;  %v2777_v49 = vadd.f32 %v2776_v45, %v2775_v41 }
 0x1e9   :  { %v1486_v51 = vadd.f32 %v2777_v49, %v2665_v48  ;;  %1801 = vadd.xlane.f32.xlu1 %v3528_v50  ;;  %v1728_v52 = vadd.f32 %v1664_v43, %v1483_v47 }
 0x1eb   :  { %v2666_v25 = vpop.f32.mrb[76].mxu0  ;;  %v2778_v53 = vpop.f32.mrb[76].mxu1  ;;  %v3532_v26 = vadd.f32 %v3507_v5, %v1728_v52  ;;  %v1729_v54 = vadd.f32 %v1665_v46, %v1486_v51  ;;  %v3038_v46 = vld [vmem:[%s3998_s0 + $0x28] sm:$0xff]  }
 0x1ec   :  { %v2667_v1 = vpop.f32.mrb[77].mxu0  ;;  %v2779_v55 = vpop.f32.mrb[77].mxu1  ;;  %v1670_v47 = vunpack.c.l.bf16 %v3038_v46 }
 0x1ed   :  { %v2668_v27 = vadd.f32 %v2667_v1, %v2666_v25  ;;  %v2780_v56 = vadd.f32 %v2779_v55, %v2778_v53  ;;  %v2669_v57 = vpop.f32.mrb[78].mxu0  ;;  %v2781_v58 = vpop.f32.mrb[78].mxu1  ;;  %1803 = vadd.xlane.f32.xlu0 %v3532_v26  ;;  %v3536_v59 = vadd.f32 %v3507_v5, %v1729_v54  ;;  %v1671_v53 = vunpack.c.h.bf16 %v3038_v46 }
 0x1ee   :  { %v2670_v62 = vpop.f32.mrb[79].mxu0  ;;  %v2782_v63 = vpop.f32.mrb[79].mxu1 }
 0x1ef   :  { %v1491_v0 = vadd.f32 %v2780_v56, %v2668_v27  ;;  %v2671_v2 = vadd.f32 %v2670_v62, %v2669_v57  ;;  %v2783_v3 = vadd.f32 %v2782_v63, %v2781_v58  ;;  %1805 = vadd.xlane.f32.xlu1 %v3536_v59 }
 0x1f1   :  { %v1494_v6 = vadd.f32 %v2783_v3, %v2671_v2  ;;  %v1730_v7 = vadd.f32 %v1666_v61, %v1491_v0  ;;  %v3039_v3 = vld [vmem:[%s3998_s0 + $0x30] sm:$0xff]  }
 0x1f3   :  { %v2672_v8 = vpop.f32.mrb[80].mxu0  ;;  %v2784_v9 = vpop.f32.mrb[80].mxu1  ;;  %v3543_v11 = vadd.f32 %v3507_v5, %v1730_v7  ;;  %v1731_v12 = vadd.f32 %v1667_v4, %v1494_v6  ;;  %v1672_v4 = vunpack.c.l.bf16 %v3039_v3 }
 0x1f4   :  { %v2673_v13 = vpop.f32.mrb[81].mxu0  ;;  %v2785_v14 = vpop.f32.mrb[81].mxu1 }
 0x1f5   :  { %v2674_v15 = vadd.f32 %v2673_v13, %v2672_v8  ;;  %v2786_v16 = vadd.f32 %v2785_v14, %v2784_v9  ;;  %v2675_v17 = vpop.f32.mrb[82].mxu0  ;;  %v2787_v18 = vpop.f32.mrb[82].mxu1  ;;  %1807 = vadd.xlane.f32.xlu0 %v3543_v11  ;;  %v3547_v19 = vadd.f32 %v3507_v5, %v1731_v12  ;;  %v1673_v13 = vunpack.c.h.bf16 %v3039_v3 }
 0x1f6   :  { %v2676_v22 = vpop.f32.mrb[83].mxu0  ;;  %v2788_v23 = vpop.f32.mrb[83].mxu1 }
 0x1f7   :  { %v1499_v24 = vadd.f32 %v2786_v16, %v2674_v15  ;;  %v2677_v28 = vadd.f32 %v2676_v22, %v2675_v17  ;;  %v2789_v30 = vadd.f32 %v2788_v23, %v2787_v18  ;;  %1809 = vadd.xlane.f32.xlu1 %v3547_v19 }
 0x1f9   :  { %v1502_v32 = vadd.f32 %v2789_v30, %v2677_v28  ;;  %v1732_v33 = vadd.f32 %v1668_v21, %v1499_v24 }
 0x1fb   :  { %v2678_v35 = vpop.f32.mrb[84].mxu0  ;;  %v2790_v36 = vpop.f32.mrb[84].mxu1  ;;  %v3554_v37 = vadd.f32 %v3507_v5, %v1732_v33  ;;  %v1733_v38 = vadd.f32 %v1669_v31, %v1502_v32  ;;  %v3040_v32 = vld [vmem:[%s3998_s0 + $0x38] sm:$0xff]  }
 0x1fc   :  { %v2679_v39 = vpop.f32.mrb[85].mxu0  ;;  %v2791_v40 = vpop.f32.mrb[85].mxu1  ;;  %v1674_v33 = vunpack.c.l.bf16 %v3040_v32 }
 0x1fd   :  { %v2680_v41 = vadd.f32 %v2679_v39, %v2678_v35  ;;  %v2792_v42 = vadd.f32 %v2791_v40, %v2790_v36  ;;  %v2681_v43 = vpop.f32.mrb[86].mxu0  ;;  %v2793_v44 = vpop.f32.mrb[86].mxu1  ;;  %1811 = vadd.xlane.f32.xlu0 %v3554_v37  ;;  %v3558_v45 = vadd.f32 %v3507_v5, %v1733_v38 }
 0x1fe   :  { %v2682_v48 = vpop.f32.mrb[87].mxu0  ;;  %v2794_v49 = vpop.f32.mrb[87].mxu1 }
 0x1ff   :  { %v1507_v51 = vadd.f32 %v2792_v42, %v2680_v41  ;;  %v2683_v52 = vadd.f32 %v2682_v48, %v2681_v43  ;;  %v2795_v25 = vadd.f32 %v2794_v49, %v2793_v44  ;;  %1813 = vadd.xlane.f32.xlu1 %v3558_v45  ;;  %v1675_v41 = vunpack.c.h.bf16 %v3040_v32 }
 0x201   :  { %v1510_v54 = vadd.f32 %v2795_v25, %v2683_v52  ;;  %v1734_v1 = vadd.f32 %v1670_v47, %v1507_v51 }
 0x203   :  { %v2684_v55 = vpop.f32.mrb[88].mxu0  ;;  %v2796_v27 = vpop.f32.mrb[88].mxu1  ;;  %v3565_v56 = vadd.f32 %v3507_v5, %v1734_v1  ;;  %v1735_v57 = vadd.f32 %v1671_v53, %v1510_v54 }
 0x204   :  { %v2685_v58 = vpop.f32.mrb[89].mxu0  ;;  %v2797_v60 = vpop.f32.mrb[89].mxu1 }
 0x205   :  { %v2686_v61 = vadd.f32 %v2685_v58, %v2684_v55  ;;  %v2798_v62 = vadd.f32 %v2797_v60, %v2796_v27  ;;  %v2687_v63 = vpop.f32.mrb[90].mxu0  ;;  %v2799_v0 = vpop.f32.mrb[90].mxu1  ;;  %1815 = vadd.xlane.f32.xlu0 %v3565_v56  ;;  %v3569_v2 = vadd.f32 %v3507_v5, %v1735_v57  ;;  %v3041_v55 = vld [vmem:[%s3998_s0 + $0x40] sm:$0xff]  }
 0x206   :  { %v2688_v6 = vpop.f32.mrb[91].mxu0  ;;  %v2800_v7 = vpop.f32.mrb[91].mxu1  ;;  %v1676_v27 = vunpack.c.l.bf16 %v3041_v55 }
 0x207   :  { %v1515_v8 = vadd.f32 %v2798_v62, %v2686_v61  ;;  %v2689_v9 = vadd.f32 %v2688_v6, %v2687_v63  ;;  %v2801_v12 = vadd.f32 %v2800_v7, %v2799_v0  ;;  %1817 = vadd.xlane.f32.xlu1 %v3569_v2  ;;  %v1677_v63 = vunpack.c.h.bf16 %v3041_v55 }
 0x209   :  { %v1518_v14 = vadd.f32 %v2801_v12, %v2689_v9  ;;  %v1736_v15 = vadd.f32 %v1672_v4, %v1515_v8 }
 0x20b   :  { %v2690_v16 = vpop.f32.mrb[92].mxu0  ;;  %v2802_v17 = vpop.f32.mrb[92].mxu1  ;;  %v3576_v18 = vadd.f32 %v3507_v5, %v1736_v15  ;;  %v1737_v20 = vadd.f32 %v1673_v13, %v1518_v14 }
 0x20c   :  { %v2691_v21 = vpop.f32.mrb[93].mxu0  ;;  %v2803_v22 = vpop.f32.mrb[93].mxu1 }
 0x20d   :  { %v2692_v23 = vadd.f32 %v2691_v21, %v2690_v16  ;;  %v2804_v24 = vadd.f32 %v2803_v22, %v2802_v17  ;;  %v2693_v28 = vpop.f32.mrb[94].mxu0  ;;  %v2805_v30 = vpop.f32.mrb[94].mxu1  ;;  %1819 = vadd.xlane.f32.xlu0 %v3576_v18  ;;  %v3580_v31 = vadd.f32 %v3507_v5, %v1737_v20  ;;  %v3042_v20 = vld [vmem:[%s3998_s0 + $0x48] sm:$0xff]  }
 0x20e   :  { %v2694_v35 = vpop.f32.mrb[95].mxu0  ;;  %v2806_v36 = vpop.f32.mrb[95].mxu1  ;;  %v1678_v21 = vunpack.c.l.bf16 %v3042_v20  ;;  %v1679_v32 = vunpack.c.h.bf16 %v3042_v20 }
 0x20f   :  { %v1523_v38 = vadd.f32 %v2804_v24, %v2692_v23  ;;  %v2695_v39 = vadd.f32 %v2694_v35, %v2693_v28  ;;  %v2807_v40 = vadd.f32 %v2806_v36, %v2805_v30  ;;  %1821 = vadd.xlane.f32.xlu1 %v3580_v31 }
 0x211   :  { %v1526_v42 = vadd.f32 %v2807_v40, %v2695_v39  ;;  %v1738_v43 = vadd.f32 %v1674_v33, %v1523_v38 }
 0x213   :  { %v2696_v44 = vpop.f32.mrb[96].mxu0  ;;  %v2808_v46 = vpop.f32.mrb[96].mxu1  ;;  %v3587_v47 = vadd.f32 %v3507_v5, %v1738_v43  ;;  %v1739_v48 = vadd.f32 %v1675_v41, %v1526_v42 }
 0x214   :  { %v2697_v49 = vpop.f32.mrb[97].mxu0  ;;  %v2809_v51 = vpop.f32.mrb[97].mxu1 }
 0x215   :  { %v2698_v52 = vadd.f32 %v2697_v49, %v2696_v44  ;;  %v2810_v25 = vadd.f32 %v2809_v51, %v2808_v46  ;;  %v2699_v53 = vpop.f32.mrb[98].mxu0  ;;  %v2811_v54 = vpop.f32.mrb[98].mxu1  ;;  %1823 = vadd.xlane.f32.xlu0 %v3587_v47  ;;  %v3591_v1 = vadd.f32 %v3507_v5, %v1739_v48  ;;  %v3043_v51 = vld [vmem:[%s3998_s0 + $0x50] sm:$0xff]  }
 0x216   :  { %v2700_v57 = vpop.f32.mrb[99].mxu0  ;;  %v2812_v58 = vpop.f32.mrb[99].mxu1 }
 0x217   :  { %v1531_v60 = vadd.f32 %v2810_v25, %v2698_v52  ;;  %v2701_v61 = vadd.f32 %v2700_v57, %v2699_v53  ;;  %v2813_v62 = vadd.f32 %v2812_v58, %v2811_v54  ;;  %1825 = vadd.xlane.f32.xlu1 %v3591_v1  ;;  %v1680_v52 = vunpack.c.l.bf16 %v3043_v51 }
 0x218   :  { %v1681_v57 = vunpack.c.h.bf16 %v3043_v51 }
 0x219   :  { %v1534_v0 = vadd.f32 %v2813_v62, %v2701_v61  ;;  %v1740_v3 = vadd.f32 %v1676_v27, %v1531_v60 }
 0x21b   :  { %v2702_v4 = vpop.f32.mrb[100].mxu0  ;;  %v2814_v6 = vpop.f32.mrb[100].mxu1  ;;  %v3598_v7 = vadd.f32 %v3507_v5, %v1740_v3  ;;  %v1741_v8 = vadd.f32 %v1677_v63, %v1534_v0 }
 0x21c   :  { %v2703_v9 = vpop.f32.mrb[101].mxu0  ;;  %v2815_v12 = vpop.f32.mrb[101].mxu1 }
 0x21d   :  { %v2704_v13 = vadd.f32 %v2703_v9, %v2702_v4  ;;  %v2816_v14 = vadd.f32 %v2815_v12, %v2814_v6  ;;  %v2705_v15 = vpop.f32.mrb[102].mxu0  ;;  %v2817_v16 = vpop.f32.mrb[102].mxu1  ;;  %1827 = vadd.xlane.f32.xlu0 %v3598_v7  ;;  %v3602_v17 = vadd.f32 %v3507_v5, %v1741_v8 }
 0x21e   :  { %v2706_v22 = vpop.f32.mrb[103].mxu0  ;;  %v2818_v23 = vpop.f32.mrb[103].mxu1 }
 0x21f   :  { %v1539_v24 = vadd.f32 %v2816_v14, %v2704_v13  ;;  %v2707_v28 = vadd.f32 %v2706_v22, %v2705_v15  ;;  %v2819_v30 = vadd.f32 %v2818_v23, %v2817_v16  ;;  %1829 = vadd.xlane.f32.xlu1 %v3602_v17  ;;  %v3044_v14 = vld [vmem:[%s3998_s0 + $0x58] sm:$0xff]  }
 0x220   :  { %v1682_v15 = vunpack.c.l.bf16 %v3044_v14 }
 0x221   :  { %v1542_v33 = vadd.f32 %v2819_v30, %v2707_v28  ;;  %v1742_v35 = vadd.f32 %v1678_v21, %v1539_v24  ;;  %v1683_v24 = vunpack.c.h.bf16 %v3044_v14 }
 0x223   :  { %v2708_v36 = vpop.f32.mrb[104].mxu0  ;;  %v2820_v38 = vpop.f32.mrb[104].mxu1  ;;  %v3609_v39 = vadd.f32 %v3507_v5, %v1742_v35  ;;  %v1743_v40 = vadd.f32 %v1679_v32, %v1542_v33 }
 0x224   :  { %v2709_v41 = vpop.f32.mrb[105].mxu0  ;;  %v2821_v42 = vpop.f32.mrb[105].mxu1 }
 0x225   :  { %v2710_v43 = vadd.f32 %v2709_v41, %v2708_v36  ;;  %v2822_v44 = vadd.f32 %v2821_v42, %v2820_v38  ;;  %v2711_v46 = vpop.f32.mrb[106].mxu0  ;;  %v2823_v48 = vpop.f32.mrb[106].mxu1  ;;  %1831 = vadd.xlane.f32.xlu0 %v3609_v39  ;;  %v3613_v49 = vadd.f32 %v3507_v5, %v1743_v40 }
 0x226   :  { %v2712_v25 = vpop.f32.mrb[107].mxu0  ;;  %v2824_v53 = vpop.f32.mrb[107].mxu1 }
 0x227   :  { %v1547_v54 = vadd.f32 %v2822_v44, %v2710_v43  ;;  %v2713_v55 = vadd.f32 %v2712_v25, %v2711_v46  ;;  %v2825_v27 = vadd.f32 %v2824_v53, %v2823_v48  ;;  %1833 = vadd.xlane.f32.xlu1 %v3613_v49  ;;  %v3045_v48 = vld [vmem:[%s3998_s0 + $0x60] sm:$0xff]  }
 0x228   :  { %v1684_v51 = vunpack.c.l.bf16 %v3045_v48 }
 0x229   :  { %v1550_v58 = vadd.f32 %v2825_v27, %v2713_v55  ;;  %v1744_v60 = vadd.f32 %v1680_v52, %v1547_v54  ;;  %v1685_v27 = vunpack.c.h.bf16 %v3045_v48 }
 0x22b   :  { %v2714_v61 = vpop.f32.mrb[108].mxu0  ;;  %v2826_v62 = vpop.f32.mrb[108].mxu1  ;;  %v3620_v63 = vadd.f32 %v3507_v5, %v1744_v60  ;;  %v1745_v0 = vadd.f32 %v1681_v57, %v1550_v58 }
 0x22c   :  { %v2715_v3 = vpop.f32.mrb[109].mxu0  ;;  %v2827_v4 = vpop.f32.mrb[109].mxu1 }
 0x22d   :  { %v2716_v6 = vadd.f32 %v2715_v3, %v2714_v61  ;;  %v2828_v8 = vadd.f32 %v2827_v4, %v2826_v62  ;;  %v2717_v9 = vpop.f32.mrb[110].mxu0  ;;  %v2829_v12 = vpop.f32.mrb[110].mxu1  ;;  %1835 = vadd.xlane.f32.xlu0 %v3620_v63  ;;  %v3624_v13 = vadd.f32 %v3507_v5, %v1745_v0 }
 0x22e   :  { %v2718_v16 = vpop.f32.mrb[111].mxu0  ;;  %v2830_v20 = vpop.f32.mrb[111].mxu1 }
 0x22f   :  { %v1555_v21 = vadd.f32 %v2828_v8, %v2716_v6  ;;  %v2719_v22 = vadd.f32 %v2718_v16, %v2717_v9  ;;  %v2831_v23 = vadd.f32 %v2830_v20, %v2829_v12  ;;  %1837 = vadd.xlane.f32.xlu1 %v3624_v13 }
 0x231   :  { %v1558_v28 = vadd.f32 %v2831_v23, %v2719_v22  ;;  %v1746_v30 = vadd.f32 %v1682_v15, %v1555_v21  ;;  %v3046_v15 = vld [vmem:[%s3998_s0 + $0x68] sm:$0xff]  }
 0x232   :  { %v1686_v16 = vunpack.c.l.bf16 %v3046_v15 }
 0x233   :  { %v2720_v32 = vpop.f32.mrb[112].mxu0  ;;  %v2832_v33 = vpop.f32.mrb[112].mxu1  ;;  %v3631_v35 = vadd.f32 %v3507_v5, %v1746_v30  ;;  %v1747_v36 = vadd.f32 %v1683_v24, %v1558_v28  ;;  %v1687_v28 = vunpack.c.h.bf16 %v3046_v15 }
 0x234   :  { %v2721_v38 = vpop.f32.mrb[113].mxu0  ;;  %v2833_v40 = vpop.f32.mrb[113].mxu1 }
 0x235   :  { %v2722_v41 = vadd.f32 %v2721_v38, %v2720_v32  ;;  %v2834_v42 = vadd.f32 %v2833_v40, %v2832_v33  ;;  %v2723_v43 = vpop.f32.mrb[114].mxu0  ;;  %v2835_v44 = vpop.f32.mrb[114].mxu1  ;;  %1839 = vadd.xlane.f32.xlu0 %v3631_v35  ;;  %v3635_v46 = vadd.f32 %v3507_v5, %v1747_v36 }
 0x236   :  { %v2724_v52 = vpop.f32.mrb[115].mxu0  ;;  %v2836_v25 = vpop.f32.mrb[115].mxu1 }
 0x237   :  { %v1563_v53 = vadd.f32 %v2834_v42, %v2722_v41  ;;  %v2725_v54 = vadd.f32 %v2724_v52, %v2723_v43  ;;  %v2837_v55 = vadd.f32 %v2836_v25, %v2835_v44  ;;  %1841 = vadd.xlane.f32.xlu1 %v3635_v46  ;;  %v3047_v25 = vld [vmem:[%s3998_s0 + $0x70] sm:$0xff]  }
 0x239   :  { %v1566_v57 = vadd.f32 %v2837_v55, %v2725_v54  ;;  %v1748_v58 = vadd.f32 %v1684_v51, %v1563_v53  ;;  %v1688_v53 = vunpack.c.l.bf16 %v3047_v25 }
 0x23b   :  { %v2726_v60 = vpop.f32.mrb[116].mxu0  ;;  %v2838_v61 = vpop.f32.mrb[116].mxu1  ;;  %v3642_v62 = vadd.f32 %v3507_v5, %v1748_v58  ;;  %v1749_v0 = vadd.f32 %v1685_v27, %v1566_v57 }
 0x23c   :  { %v2727_v3 = vpop.f32.mrb[117].mxu0  ;;  %v2839_v4 = vpop.f32.mrb[117].mxu1 }
 0x23d   :  { %v2728_v6 = vadd.f32 %v2727_v3, %v2726_v60  ;;  %v2840_v8 = vadd.f32 %v2839_v4, %v2838_v61  ;;  %v2729_v9 = vpop.f32.mrb[118].mxu0  ;;  %v2841_v12 = vpop.f32.mrb[118].mxu1  ;;  %1843 = vadd.xlane.f32.xlu0 %v3642_v62  ;;  %v3646_v14 = vadd.f32 %v3507_v5, %v1749_v0  ;;  %v1689_v60 = vunpack.c.h.bf16 %v3047_v25 }
 0x23e   :  { %v2730_v20 = vpop.f32.mrb[119].mxu0  ;;  %v2842_v21 = vpop.f32.mrb[119].mxu1 }
 0x23f   :  { %v1571_v22 = vadd.f32 %v2840_v8, %v2728_v6  ;;  %v2731_v23 = vadd.f32 %v2730_v20, %v2729_v9  ;;  %v2843_v24 = vadd.f32 %v2842_v21, %v2841_v12  ;;  %1845 = vadd.xlane.f32.xlu1 %v3646_v14 }
 0x241   :  { %v1574_v30 = vadd.f32 %v2843_v24, %v2731_v23  ;;  %v1750_v32 = vadd.f32 %v1686_v16, %v1571_v22  ;;  %v3048_v23 = vld [vmem:[%s3998_s0 + $0x78] sm:$0xff]  }
 0x242   :  { %v1690_v24 = vunpack.c.l.bf16 %v3048_v23 }
 0x243   :  { %v2732_v33 = vpop.f32.mrb[120].mxu0  ;;  %v2844_v36 = vpop.f32.mrb[120].mxu1  ;;  %v3653_v38 = vadd.f32 %v3507_v5, %v1750_v32  ;;  %v1751_v40 = vadd.f32 %v1687_v28, %v1574_v30 }
 0x244   :  { %v2733_v41 = vpop.f32.mrb[121].mxu0  ;;  %v2845_v42 = vpop.f32.mrb[121].mxu1 }
 0x245   :  { %v2734_v43 = vadd.f32 %v2733_v41, %v2732_v33  ;;  %v2846_v44 = vadd.f32 %v2845_v42, %v2844_v36  ;;  %v2735_v48 = vpop.f32.mrb[122].mxu0  ;;  %v2847_v51 = vpop.f32.mrb[122].mxu1  ;;  %1847 = vadd.xlane.f32.xlu0 %v3653_v38  ;;  %v3657_v52 = vadd.f32 %v3507_v5, %v1751_v40  ;;  %v1691_v40 = vunpack.c.h.bf16 %v3048_v23 }
 0x246   :  { %v2736_v54 = vpop.f32.mrb[123].mxu0  ;;  %v2848_v55 = vpop.f32.mrb[123].mxu1 }
 0x247   :  { %v1579_v27 = vadd.f32 %v2846_v44, %v2734_v43  ;;  %v2737_v57 = vadd.f32 %v2736_v54, %v2735_v48  ;;  %v2849_v58 = vadd.f32 %v2848_v55, %v2847_v51  ;;  %1849 = vadd.xlane.f32.xlu1 %v3657_v52 }
 0x249   :  { %v1582_v61 = vadd.f32 %v2849_v58, %v2737_v57  ;;  %v1752_v0 = vadd.f32 %v1688_v53, %v1579_v27 }
 0x24b   :  { %v2738_v3 = vpop.f32.mrb[124].mxu0  ;;  %v2850_v4 = vpop.f32.mrb[124].mxu1  ;;  %v3664_v6 = vadd.f32 %v3507_v5, %v1752_v0  ;;  %v1753_v8 = vadd.f32 %v1689_v60, %v1582_v61 }
 0x24c   :  { %v2739_v9 = vpop.f32.mrb[125].mxu0  ;;  %v2851_v12 = vpop.f32.mrb[125].mxu1 }
 0x24d   :  { %v2740_v15 = vadd.f32 %v2739_v9, %v2738_v3  ;;  %v2852_v16 = vadd.f32 %v2851_v12, %v2850_v4  ;;  %v2741_v20 = vpop.f32.mrb[126].mxu0  ;;  %v2853_v21 = vpop.f32.mrb[126].mxu1  ;;  %1851 = vadd.xlane.f32.xlu0 %v3664_v6  ;;  %v3668_v22 = vadd.f32 %v3507_v5, %v1753_v8 }
 0x24e   :  { %v2742_v28 = vpop.f32.mrb[127].mxu0  ;;  %v2854_v30 = vpop.f32.mrb[127].mxu1 }
 0x24f   :  { %v1587_v32 = vadd.f32 %v2852_v16, %v2740_v15  ;;  %v2743_v33 = vadd.f32 %v2742_v28, %v2741_v20  ;;  %v2855_v36 = vadd.f32 %v2854_v30, %v2853_v21  ;;  %1853 = vadd.xlane.f32.xlu1 %v3668_v22 }
 0x251   :  { %v1590_v41 = vadd.f32 %v2855_v36, %v2743_v33  ;;  %v1754_v42 = vadd.f32 %v1690_v24, %v1587_v32 }
 0x253   :  { %v3675_v43 = vadd.f32 %v3507_v5, %v1754_v42  ;;  %v1755_v44 = vadd.f32 %v1691_v40, %v1590_v41 }
 0x255   :  { %1855 = vadd.xlane.f32.xlu0 %v3675_v43  ;;  %v3679_v48 = vadd.f32 %v3507_v5, %v1755_v44 }
 0x257   :  { %1857 = vadd.xlane.f32.xlu1 %v3679_v48 }
 0x26a   :  { %v1796_v51 = vpop.xlane.xlu0 %1795 }
 0x26b   :  { %v1860_v25 = vmul.f32 0.0078125, %v1796_v51 }
 0x26d   :  { %v3683_v53 = vsub.f32 %v3510_v10, %v1860_v25 }
 0x26e   :  { %v1798_v54 = vpop.xlane.xlu0 %1797 }
 0x26f   :  { %v1861_v55 = vmul.f32 0.0078125, %v1798_v54  ;;  %v1924_v27 = vmul.f32 %v3683_v53, %v3683_v53 }
 0x271   :  { %v3688_v57 = vsub.f32 %v3517_v29, %v1861_v55  ;;  %1956 = vadd.xlane.f32.xlu0 %v1924_v27 }
 0x272   :  { %v1800_v58 = vpop.xlane.xlu1 %1799 }
 0x273   :  { %v1862_v60 = vmul.f32 0.0078125, %v1800_v58  ;;  %v1925_v5 = vmul.f32 %v3688_v57, %v3688_v57 }
 0x275   :  { %v3693_v61 = vsub.f32 %v3521_v34, %v1862_v60  ;;  %1958 = vadd.xlane.f32.xlu1 %v1925_v5 }
 0x276   :  { %v1802_v10 = vpop.xlane.xlu1 %1801 }
 0x277   :  { %v1863_v0 = vmul.f32 0.0078125, %v1802_v10  ;;  %v1926_v3 = vmul.f32 %v3693_v61, %v3693_v61 }
 0x279   :  { %v3698_v4 = vsub.f32 %v3528_v50, %v1863_v0  ;;  %1960 = vadd.xlane.f32.xlu0 %v1926_v3 }
 0x27a   :  { %v1804_v29 = vpop.xlane.xlu0 %1803 }
 0x27b   :  { %v1864_v8 = vmul.f32 0.0078125, %v1804_v29  ;;  %v1927_v9 = vmul.f32 %v3698_v4, %v3698_v4 }
 0x27c   :  { %v1806_v12 = vpop.xlane.xlu1 %1805 }
 0x27d   :  { %v3703_v15 = vsub.f32 %v3532_v26, %v1864_v8  ;;  %v1865_v34 = vmul.f32 0.0078125, %v1806_v12  ;;  %1962 = vadd.xlane.f32.xlu1 %v1927_v9 }
 0x27f   :  { %v3706_v16 = vsub.f32 %v3536_v59, %v1865_v34  ;;  %v1928_v20 = vmul.f32 %v3703_v15, %v3703_v15 }
 0x281   :  { %1964 = vadd.xlane.f32.xlu0 %v1928_v20  ;;  %v1929_v50 = vmul.f32 %v3706_v16, %v3706_v16 }
 0x282   :  { %v1808_v21 = vpop.xlane.xlu0 %1807 }
 0x283   :  { %v1866_v23 = vmul.f32 0.0078125, %v1808_v21  ;;  %1966 = vadd.xlane.f32.xlu1 %v1929_v50 }
 0x284   :  { %v1810_v24 = vpop.xlane.xlu1 %1809 }
 0x285   :  { %v3713_v28 = vsub.f32 %v3543_v11, %v1866_v23  ;;  %v1867_v26 = vmul.f32 0.0078125, %v1810_v24 }
 0x287   :  { %v3716_v30 = vsub.f32 %v3547_v19, %v1867_v26  ;;  %v1930_v59 = vmul.f32 %v3713_v28, %v3713_v28 }
 0x289   :  { %1968 = vadd.xlane.f32.xlu0 %v1930_v59  ;;  %v1931_v32 = vmul.f32 %v3716_v30, %v3716_v30 }
 0x28a   :  { %v1812_v33 = vpop.xlane.xlu0 %1811 }
 0x28b   :  { %v1868_v36 = vmul.f32 0.0078125, %v1812_v33  ;;  %1970 = vadd.xlane.f32.xlu1 %v1931_v32 }
 0x28c   :  { %v1814_v40 = vpop.xlane.xlu1 %1813 }
 0x28d   :  { %v3723_v41 = vsub.f32 %v3554_v37, %v1868_v36  ;;  %v1869_v11 = vmul.f32 0.0078125, %v1814_v40 }
 0x28f   :  { %v3726_v42 = vsub.f32 %v3558_v45, %v1869_v11  ;;  %v1932_v19 = vmul.f32 %v3723_v41, %v3723_v41 }
 0x291   :  { %1972 = vadd.xlane.f32.xlu0 %v1932_v19  ;;  %v1933_v44 = vmul.f32 %v3726_v42, %v3726_v42 }
 0x292   :  { %v1816_v51 = vpop.xlane.xlu0 %1815 }
 0x293   :  { %v1870_v25 = vmul.f32 0.0078125, %v1816_v51  ;;  %1974 = vadd.xlane.f32.xlu1 %v1933_v44 }
 0x294   :  { %v1818_v54 = vpop.xlane.xlu1 %1817 }
 0x295   :  { %v3733_v55 = vsub.f32 %v3565_v56, %v1870_v25  ;;  %v1871_v37 = vmul.f32 0.0078125, %v1818_v54 }
 0x297   :  { %v3736_v27 = vsub.f32 %v3569_v2, %v1871_v37  ;;  %v1934_v45 = vmul.f32 %v3733_v55, %v3733_v55 }
 0x299   :  { %1976 = vadd.xlane.f32.xlu0 %v1934_v45  ;;  %v1935_v58 = vmul.f32 %v3736_v27, %v3736_v27 }
 0x29a   :  { %v1820_v60 = vpop.xlane.xlu0 %1819 }
 0x29b   :  { %v1872_v5 = vmul.f32 0.0078125, %v1820_v60  ;;  %1978 = vadd.xlane.f32.xlu1 %v1935_v58 }
 0x29c   :  { %v1822_v10 = vpop.xlane.xlu1 %1821 }
 0x29d   :  { %v3743_v0 = vsub.f32 %v3576_v18, %v1872_v5  ;;  %v1873_v56 = vmul.f32 0.0078125, %v1822_v10 }
 0x29f   :  { %v3746_v3 = vsub.f32 %v3580_v31, %v1873_v56  ;;  %v1936_v2 = vmul.f32 %v3743_v0, %v3743_v0 }
 0x2a1   :  { %1980 = vadd.xlane.f32.xlu0 %v1936_v2  ;;  %v1937_v29 = vmul.f32 %v3746_v3, %v3746_v3 }
 0x2a2   :  { %v1824_v8 = vpop.xlane.xlu0 %1823 }
 0x2a3   :  { %v1874_v9 = vmul.f32 0.0078125, %v1824_v8  ;;  %1982 = vadd.xlane.f32.xlu1 %v1937_v29 }
 0x2a4   :  { %v1826_v12 = vpop.xlane.xlu1 %1825 }
 0x2a5   :  { %v3753_v34 = vsub.f32 %v3587_v47, %v1874_v9  ;;  %v1875_v18 = vmul.f32 0.0078125, %v1826_v12 }
 0x2a7   :  { %v3756_v20 = vsub.f32 %v3591_v1, %v1875_v18  ;;  %v1938_v31 = vmul.f32 %v3753_v34, %v3753_v34 }
 0x2a9   :  { %1984 = vadd.xlane.f32.xlu0 %v1938_v31  ;;  %v1939_v50 = vmul.f32 %v3756_v20, %v3756_v20 }
 0x2aa   :  { %v1828_v21 = vpop.xlane.xlu0 %1827 }
 0x2ab   :  { %v1876_v23 = vmul.f32 0.0078125, %v1828_v21  ;;  %1986 = vadd.xlane.f32.xlu1 %v1939_v50 }
 0x2ac   :  { %v1830_v24 = vpop.xlane.xlu1 %1829 }
 0x2ad   :  { %v3763_v26 = vsub.f32 %v3598_v7, %v1876_v23  ;;  %v1877_v47 = vmul.f32 0.0078125, %v1830_v24 }
 0x2af   :  { %v3766_v59 = vsub.f32 %v3602_v17, %v1877_v47  ;;  %v1940_v1 = vmul.f32 %v3763_v26, %v3763_v26 }
 0x2b1   :  { %1988 = vadd.xlane.f32.xlu0 %v1940_v1  ;;  %v1941_v32 = vmul.f32 %v3766_v59, %v3766_v59 }
 0x2b2   :  { %v1832_v33 = vpop.xlane.xlu0 %1831 }
 0x2b3   :  { %v1878_v36 = vmul.f32 0.0078125, %v1832_v33  ;;  %1990 = vadd.xlane.f32.xlu1 %v1941_v32 }
 0x2b4   :  { %v1834_v40 = vpop.xlane.xlu1 %1833 }
 0x2b5   :  { %v3773_v11 = vsub.f32 %v3609_v39, %v1878_v36  ;;  %v1879_v7 = vmul.f32 0.0078125, %v1834_v40 }
 0x2b7   :  { %v3776_v19 = vsub.f32 %v3613_v49, %v1879_v7  ;;  %v1942_v17 = vmul.f32 %v3773_v11, %v3773_v11 }
 0x2b9   :  { %1992 = vadd.xlane.f32.xlu0 %v1942_v17  ;;  %v1943_v44 = vmul.f32 %v3776_v19, %v3776_v19 }
 0x2ba   :  { %v1836_v51 = vpop.xlane.xlu0 %1835 }
 0x2bb   :  { %v1880_v25 = vmul.f32 0.0078125, %v1836_v51  ;;  %1994 = vadd.xlane.f32.xlu1 %v1943_v44 }
 0x2bc   :  { %v1838_v54 = vpop.xlane.xlu1 %1837 }
 0x2bd   :  { %v3783_v37 = vsub.f32 %v3620_v63, %v1880_v25  ;;  %v1881_v39 = vmul.f32 0.0078125, %v1838_v54 }
 0x2bf   :  { %v3786_v45 = vsub.f32 %v3624_v13, %v1881_v39  ;;  %v1944_v49 = vmul.f32 %v3783_v37, %v3783_v37 }
 0x2c1   :  { %1996 = vadd.xlane.f32.xlu0 %v1944_v49  ;;  %v1945_v58 = vmul.f32 %v3786_v45, %v3786_v45 }
 0x2c2   :  { %v1840_v60 = vpop.xlane.xlu0 %1839 }
 0x2c3   :  { %v1882_v5 = vmul.f32 0.0078125, %v1840_v60  ;;  %1998 = vadd.xlane.f32.xlu1 %v1945_v58 }
 0x2c4   :  { %v1842_v10 = vpop.xlane.xlu1 %1841 }
 0x2c5   :  { %v3793_v56 = vsub.f32 %v3631_v35, %v1882_v5  ;;  %v1883_v63 = vmul.f32 0.0078125, %v1842_v10 }
 0x2c7   :  { %v3796_v2 = vsub.f32 %v3635_v46, %v1883_v63  ;;  %v1946_v13 = vmul.f32 %v3793_v56, %v3793_v56 }
 0x2c9   :  { %2000 = vadd.xlane.f32.xlu0 %v1946_v13  ;;  %v1947_v29 = vmul.f32 %v3796_v2, %v3796_v2 }
 0x2ca   :  { %v1844_v8 = vpop.xlane.xlu0 %1843 }
 0x2cb   :  { %v1884_v9 = vmul.f32 0.0078125, %v1844_v8  ;;  %2002 = vadd.xlane.f32.xlu1 %v1947_v29 }
 0x2cc   :  { %v1846_v12 = vpop.xlane.xlu1 %1845 }
 0x2cd   :  { %v3803_v18 = vsub.f32 %v3642_v62, %v1884_v9  ;;  %v1885_v35 = vmul.f32 0.0078125, %v1846_v12 }
 0x2cf   :  { %v3806_v31 = vsub.f32 %v3646_v14, %v1885_v35  ;;  %v1948_v46 = vmul.f32 %v3803_v18, %v3803_v18 }
 0x2d1   :  { %2004 = vadd.xlane.f32.xlu0 %v1948_v46  ;;  %v1949_v50 = vmul.f32 %v3806_v31, %v3806_v31 }
 0x2d2   :  { %v1848_v21 = vpop.xlane.xlu0 %1847 }
 0x2d3   :  { %v1886_v23 = vmul.f32 0.0078125, %v1848_v21  ;;  %2006 = vadd.xlane.f32.xlu1 %v1949_v50 }
 0x2d4   :  { %v1850_v24 = vpop.xlane.xlu1 %1849 }
 0x2d5   :  { %v3813_v47 = vsub.f32 %v3653_v38, %v1886_v23  ;;  %v1887_v62 = vmul.f32 0.0078125, %v1850_v24  ;;  %v3846_v23 = vld [vmem:[%s4001_s5] ss:$0 sm:$0xff] }
 0x2d7   :  { %v3816_v1 = vsub.f32 %v3657_v52, %v1887_v62  ;;  %v1950_v14 = vmul.f32 %v3813_v47, %v3813_v47 }
 0x2d9   :  { %2008 = vadd.xlane.f32.xlu0 %v1950_v14  ;;  %v1951_v32 = vmul.f32 %v3816_v1, %v3816_v1 }
 0x2da   :  { %v1852_v33 = vpop.xlane.xlu0 %1851 }
 0x2db   :  { %v1888_v36 = vmul.f32 0.0078125, %v1852_v33  ;;  %2010 = vadd.xlane.f32.xlu1 %v1951_v32 }
 0x2dc   :  { %v1854_v40 = vpop.xlane.xlu1 %1853 }
 0x2dd   :  { %v3823_v7 = vsub.f32 %v3664_v6, %v1888_v36  ;;  %v1889_v38 = vmul.f32 0.0078125, %v1854_v40 }
 0x2df   :  { %v3826_v17 = vsub.f32 %v3668_v22, %v1889_v38  ;;  %v1952_v52 = vmul.f32 %v3823_v7, %v3823_v7 }
 0x2e1   :  { %2012 = vadd.xlane.f32.xlu0 %v1952_v52  ;;  %v1953_v44 = vmul.f32 %v3826_v17, %v3826_v17 }
 0x2e2   :  { %v1856_v51 = vpop.xlane.xlu0 %1855 }
 0x2e3   :  { %v1890_v25 = vmul.f32 0.0078125, %v1856_v51  ;;  %2014 = vadd.xlane.f32.xlu1 %v1953_v44 }
 0x2e4   :  { %v1858_v54 = vpop.xlane.xlu1 %1857 }
 0x2e5   :  { %v3833_v39 = vsub.f32 %v3675_v43, %v1890_v25  ;;  %v1891_v6 = vmul.f32 0.0078125, %v1858_v54 }
 0x2e7   :  { %v3836_v49 = vsub.f32 %v3679_v48, %v1891_v6  ;;  %v1954_v22 = vmul.f32 %v3833_v39, %v3833_v39 }
 0x2e9   :  { %2016 = vadd.xlane.f32.xlu0 %v1954_v22  ;;  %v1955_v58 = vmul.f32 %v3836_v49, %v3836_v49 }
 0x2eb   :  { %2018 = vadd.xlane.f32.xlu1 %v1955_v58 }
 0x2fe   :  { %v1957_v60 = vpop.xlane.xlu0 %1956 }
 0x2ff   :  { %v2020_v5 = vmul.f32 0.0078125, %v1957_v60 }
 0x301   :  { %v2052_v10 = vadd.f32 1e-05, %v2020_v5 }
 0x302   :  { %v1959_v63 = vpop.xlane.xlu1 %1958 }
 0x303   :  { %2969 = vrsqrt.f32 %v2052_v10  ;;  %v2021_v13 = vmul.f32 0.0078125, %v1959_v63 }
 0x305   :  { %v2053_v43 = vadd.f32 1e-05, %v2021_v13 }
 0x306   :  { %v1961_v29 = vpop.xlane.xlu0 %1960 }
 0x307   :  { %2971 = vrsqrt.f32 %v2053_v43  ;;  %v2022_v8 = vmul.f32 0.0078125, %v1961_v29 }
 0x309   :  { %v2054_v48 = vadd.f32 1e-05, %v2022_v8 }
 0x30a   :  { %v1963_v9 = vpop.xlane.xlu1 %1962 }
 0x30b   :  { %2973 = vrsqrt.f32 %v2054_v48  ;;  %v2023_v12 = vmul.f32 0.0078125, %v1963_v9 }
 0x30d   :  { %v2970_v35 = vpop.eup %2969  ;;  %v2055_v46 = vadd.f32 1e-05, %v2023_v12 }
 0x30e   :  { %v2116_v50 = vmul.f32 %v2970_v35, %v3683_v53  ;;  %v1965_v21 = vpop.xlane.xlu0 %1964  ;;  %v3853_v53 = vld [vmem:[%s4002_s6] ss:$0 sm:$0xff] }
 0x30f   :  { %2975 = vrsqrt.f32 %v2055_v46  ;;  %v2024_v24 = vmul.f32 0.0078125, %v1965_v21 }
 0x310   :  { %v1967_v62 = vpop.xlane.xlu1 %1966  ;;  %v2155_v36 = vmul.f32 %v3846_v23, %v2116_v50 }
 0x311   :  { %v2972_v14 = vpop.eup %2971  ;;  %v2056_v32 = vadd.f32 1e-05, %v2024_v24  ;;  %v2025_v33 = vmul.f32 0.0078125, %v1967_v62 }
 0x312   :  { %v2117_v40 = vmul.f32 %v2972_v14, %v3688_v57  ;;  %v2194_v51 = vadd.f32 %v3853_v53, %v2155_v36 }
 0x313   :  { %2977 = vrsqrt.f32 %v2056_v32  ;;  %v2057_v38 = vadd.f32 1e-05, %v2025_v33 }
 0x314   :  { %v2156_v52 = vmul.f32 %v3846_v23, %v2117_v40 }
 0x315   :  { %v2974_v44 = vpop.eup %2973  ;;  %2979 = vrsqrt.f32 %v2057_v38 }
 0x316   :  { %v2195_v25 = vadd.f32 %v3853_v53, %v2156_v52  ;;  %v2118_v54 = vmul.f32 %v2974_v44, %v3693_v61  ;;  %v1969_v6 = vpop.xlane.xlu0 %1968 }
 0x317   :  { %v2026_v22 = vmul.f32 0.0078125, %v1969_v6 }
 0x318   :  { %v2540_v57 = vpack.c.bf16 %v2195_v25, %v2194_v51  ;;  %v1971_v58 = vpop.xlane.xlu1 %1970  ;;  %v2157_v63 = vmul.f32 %v3846_v23, %v2118_v54 }
 0x319   :  { %v2976_v60 = vpop.eup %2975  ;;  %v2058_v5 = vadd.f32 1e-05, %v2026_v22  ;;  %v2027_v10 = vmul.f32 0.0078125, %v1971_v58 }
 0x31a   :  { %2541 = vst [vmem:[%s4003_s7] sm:$0xff] %v2540_v57   ;;  %v2119_v13 = vmul.f32 %v2976_v60, %v3698_v4  ;;  %v2196_v8 = vadd.f32 %v3853_v53, %v2157_v63 }
 0x31b   :  { %2981 = vrsqrt.f32 %v2058_v5  ;;  %v2059_v43 = vadd.f32 1e-05, %v2027_v10 }
 0x31c   :  { %v2158_v29 = vmul.f32 %v3846_v23, %v2119_v13 }
 0x31d   :  { %v2978_v61 = vpop.eup %2977  ;;  %2983 = vrsqrt.f32 %v2059_v43 }
 0x31e   :  { %v2197_v48 = vadd.f32 %v3853_v53, %v2158_v29  ;;  %v2120_v9 = vmul.f32 %v2978_v61, %v3703_v15  ;;  %v1973_v12 = vpop.xlane.xlu0 %1972 }
 0x31f   :  { %v2980_v35 = vpop.eup %2979  ;;  %v2028_v46 = vmul.f32 0.0078125, %v1973_v12 }
 0x320   :  { %v2545_v50 = vpack.c.bf16 %v2197_v48, %v2196_v8  ;;  %v2159_v21 = vmul.f32 %v3846_v23, %v2120_v9  ;;  %v2121_v4 = vmul.f32 %v2980_v35, %v3706_v16  ;;  %v1975_v24 = vpop.xlane.xlu1 %1974 }
 0x321   :  { %v2060_v62 = vadd.f32 1e-05, %v2028_v46  ;;  %v2029_v14 = vmul.f32 0.0078125, %v1975_v24 }
 0x322   :  { %2617 = vst [vmem:[%s4003_s7 + $0x8] sm:$0xff] %v2545_v50   ;;  %v2160_v32 = vmul.f32 %v3846_v23, %v2121_v4  ;;  %v2198_v15 = vadd.f32 %v3853_v53, %v2159_v21 }
 0x323   :  { %2985 = vrsqrt.f32 %v2060_v62  ;;  %v2061_v33 = vadd.f32 1e-05, %v2029_v14 }
 0x324   :  { %v2199_v36 = vadd.f32 %v3853_v53, %v2160_v32 }
 0x325   :  { %v2982_v40 = vpop.eup %2981  ;;  %2987 = vrsqrt.f32 %v2061_v33 }
 0x326   :  { %v2550_v38 = vpack.c.bf16 %v2199_v36, %v2198_v15  ;;  %v2122_v16 = vmul.f32 %v2982_v40, %v3713_v28  ;;  %v1977_v52 = vpop.xlane.xlu0 %1976 }
 0x327   :  { %v2984_v44 = vpop.eup %2983  ;;  %v2030_v51 = vmul.f32 0.0078125, %v1977_v52 }
 0x328   :  { %2618 = vst [vmem:[%s4003_s7 + $0x10] sm:$0xff] %v2550_v38   ;;  %v2161_v25 = vmul.f32 %v3846_v23, %v2122_v16  ;;  %v2123_v54 = vmul.f32 %v2984_v44, %v3716_v30  ;;  %v1979_v6 = vpop.xlane.xlu1 %1978 }
 0x329   :  { %v2062_v22 = vadd.f32 1e-05, %v2030_v51  ;;  %v2031_v57 = vmul.f32 0.0078125, %v1979_v6 }
 0x32a   :  { %v2162_v58 = vmul.f32 %v3846_v23, %v2123_v54  ;;  %v2200_v28 = vadd.f32 %v3853_v53, %v2161_v25 }
 0x32b   :  { %2989 = vrsqrt.f32 %v2062_v22  ;;  %v2063_v60 = vadd.f32 1e-05, %v2031_v57 }
 0x32c   :  { %v2201_v5 = vadd.f32 %v3853_v53, %v2162_v58 }
 0x32d   :  { %v2986_v10 = vpop.eup %2985  ;;  %2991 = vrsqrt.f32 %v2063_v60 }
 0x32e   :  { %v2555_v63 = vpack.c.bf16 %v2201_v5, %v2200_v28  ;;  %v2124_v13 = vmul.f32 %v2986_v10, %v3723_v41  ;;  %v1981_v43 = vpop.xlane.xlu0 %1980 }
 0x32f   :  { %v2988_v29 = vpop.eup %2987  ;;  %v2032_v61 = vmul.f32 0.0078125, %v1981_v43 }
 0x330   :  { %2619 = vst [vmem:[%s4003_s7 + $0x18] sm:$0xff] %v2555_v63   ;;  %v2163_v30 = vmul.f32 %v3846_v23, %v2124_v13  ;;  %v2125_v8 = vmul.f32 %v2988_v29, %v3726_v42  ;;  %v1983_v48 = vpop.xlane.xlu1 %1982 }
 0x331   :  { %v2064_v9 = vadd.f32 1e-05, %v2032_v61  ;;  %v2033_v12 = vmul.f32 0.0078125, %v1983_v48 }
 0x332   :  { %v2164_v35 = vmul.f32 %v3846_v23, %v2125_v8  ;;  %v2202_v41 = vadd.f32 %v3853_v53, %v2163_v30 }
 0x333   :  { %2993 = vrsqrt.f32 %v2064_v9  ;;  %v2065_v46 = vadd.f32 1e-05, %v2033_v12 }
 0x334   :  { %v2203_v50 = vadd.f32 %v3853_v53, %v2164_v35 }
 0x335   :  { %v2990_v21 = vpop.eup %2989  ;;  %2995 = vrsqrt.f32 %v2065_v46 }
 0x336   :  { %v2560_v4 = vpack.c.bf16 %v2203_v50, %v2202_v41  ;;  %v2126_v24 = vmul.f32 %v2990_v21, %v3733_v55  ;;  %v1985_v62 = vpop.xlane.xlu0 %1984 }
 0x337   :  { %v2992_v14 = vpop.eup %2991  ;;  %v2034_v32 = vmul.f32 0.0078125, %v1985_v62 }
 0x338   :  { %2620 = vst [vmem:[%s4003_s7 + $0x20] sm:$0xff] %v2560_v4   ;;  %v2165_v42 = vmul.f32 %v3846_v23, %v2126_v24  ;;  %v2127_v33 = vmul.f32 %v2992_v14, %v3736_v27  ;;  %v1987_v15 = vpop.xlane.xlu1 %1986 }
 0x339   :  { %v2066_v36 = vadd.f32 1e-05, %v2034_v32  ;;  %v2035_v40 = vmul.f32 0.0078125, %v1987_v15 }
 0x33a   :  { %v2166_v38 = vmul.f32 %v3846_v23, %v2127_v33  ;;  %v2204_v55 = vadd.f32 %v3853_v53, %v2165_v42 }
 0x33b   :  { %2997 = vrsqrt.f32 %v2066_v36  ;;  %v2067_v16 = vadd.f32 1e-05, %v2035_v40 }
 0x33c   :  { %v2205_v52 = vadd.f32 %v3853_v53, %v2166_v38 }
 0x33d   :  { %v2994_v44 = vpop.eup %2993  ;;  %2999 = vrsqrt.f32 %v2067_v16 }
 0x33e   :  { %v2565_v51 = vpack.c.bf16 %v2205_v52, %v2204_v55  ;;  %v2128_v25 = vmul.f32 %v2994_v44, %v3743_v0  ;;  %v1989_v54 = vpop.xlane.xlu0 %1988 }
 0x33f   :  { %v2996_v6 = vpop.eup %2995  ;;  %v2036_v22 = vmul.f32 0.0078125, %v1989_v54 }
 0x340   :  { %2621 = vst [vmem:[%s4003_s7 + $0x28] sm:$0xff] %v2565_v51   ;;  %v2167_v27 = vmul.f32 %v3846_v23, %v2128_v25  ;;  %v2129_v57 = vmul.f32 %v2996_v6, %v3746_v3  ;;  %v1991_v58 = vpop.xlane.xlu1 %1990 }
 0x341   :  { %v2068_v60 = vadd.f32 1e-05, %v2036_v22  ;;  %v2037_v28 = vmul.f32 0.0078125, %v1991_v58 }
 0x342   :  { %v2168_v5 = vmul.f32 %v3846_v23, %v2129_v57  ;;  %v2206_v0 = vadd.f32 %v3853_v53, %v2167_v27 }
 0x343   :  { %3001 = vrsqrt.f32 %v2068_v60  ;;  %v2069_v10 = vadd.f32 1e-05, %v2037_v28 }
 0x344   :  { %v2207_v63 = vadd.f32 %v3853_v53, %v2168_v5 }
 0x345   :  { %v2998_v13 = vpop.eup %2997  ;;  %3003 = vrsqrt.f32 %v2069_v10 }
 0x346   :  { %v2570_v43 = vpack.c.bf16 %v2207_v63, %v2206_v0  ;;  %v2130_v29 = vmul.f32 %v2998_v13, %v3753_v34  ;;  %v1993_v61 = vpop.xlane.xlu0 %1992 }
 0x347   :  { %v3000_v30 = vpop.eup %2999  ;;  %v2038_v8 = vmul.f32 0.0078125, %v1993_v61 }
 0x348   :  { %2622 = vst [vmem:[%s4003_s7 + $0x30] sm:$0xff] %v2570_v43   ;;  %v2169_v3 = vmul.f32 %v3846_v23, %v2130_v29  ;;  %v2131_v48 = vmul.f32 %v3000_v30, %v3756_v20  ;;  %v1995_v9 = vpop.xlane.xlu1 %1994 }
 0x349   :  { %v2070_v12 = vadd.f32 1e-05, %v2038_v8  ;;  %v2039_v35 = vmul.f32 0.0078125, %v1995_v9 }
 0x34a   :  { %v2170_v46 = vmul.f32 %v3846_v23, %v2131_v48  ;;  %v2208_v34 = vadd.f32 %v3853_v53, %v2169_v3 }
 0x34b   :  { %3005 = vrsqrt.f32 %v2070_v12  ;;  %v2071_v41 = vadd.f32 1e-05, %v2039_v35 }
 0x34c   :  { %v2209_v50 = vadd.f32 %v3853_v53, %v2170_v46 }
 0x34d   :  { %v3002_v21 = vpop.eup %3001  ;;  %3007 = vrsqrt.f32 %v2071_v41 }
 0x34e   :  { %v2575_v4 = vpack.c.bf16 %v2209_v50, %v2208_v34  ;;  %v2132_v24 = vmul.f32 %v3002_v21, %v3763_v26  ;;  %v1997_v62 = vpop.xlane.xlu0 %1996 }
 0x34f   :  { %v3004_v14 = vpop.eup %3003  ;;  %v2040_v32 = vmul.f32 0.0078125, %v1997_v62 }
 0x350   :  { %2623 = vst [vmem:[%s4003_s7 + $0x38] sm:$0xff] %v2575_v4   ;;  %v2171_v20 = vmul.f32 %v3846_v23, %v2132_v24  ;;  %v2133_v42 = vmul.f32 %v3004_v14, %v3766_v59  ;;  %v1999_v33 = vpop.xlane.xlu1 %1998 }
 0x351   :  { %v2072_v15 = vadd.f32 1e-05, %v2040_v32  ;;  %v2041_v36 = vmul.f32 0.0078125, %v1999_v33 }
 0x352   :  { %v2172_v40 = vmul.f32 %v3846_v23, %v2133_v42  ;;  %v2210_v26 = vadd.f32 %v3853_v53, %v2171_v20 }
 0x353   :  { %3009 = vrsqrt.f32 %v2072_v15  ;;  %v2073_v38 = vadd.f32 1e-05, %v2041_v36 }
 0x354   :  { %v2211_v16 = vadd.f32 %v3853_v53, %v2172_v40 }
 0x355   :  { %v3006_v55 = vpop.eup %3005  ;;  %3011 = vrsqrt.f32 %v2073_v38 }
 0x356   :  { %v2580_v52 = vpack.c.bf16 %v2211_v16, %v2210_v26  ;;  %v2134_v44 = vmul.f32 %v3006_v55, %v3773_v11  ;;  %v2001_v51 = vpop.xlane.xlu0 %2000 }
 0x357   :  { %v3008_v25 = vpop.eup %3007  ;;  %v2042_v54 = vmul.f32 0.0078125, %v2001_v51 }
 0x358   :  { %2624 = vst [vmem:[%s4003_s7 + $0x40] sm:$0xff] %v2580_v52   ;;  %v2173_v59 = vmul.f32 %v3846_v23, %v2134_v44  ;;  %v2135_v6 = vmul.f32 %v3008_v25, %v3776_v19  ;;  %v2003_v22 = vpop.xlane.xlu1 %2002 }
 0x359   :  { %v2074_v27 = vadd.f32 1e-05, %v2042_v54  ;;  %v2043_v57 = vmul.f32 0.0078125, %v2003_v22 }
 0x35a   :  { %v2174_v58 = vmul.f32 %v3846_v23, %v2135_v6  ;;  %v2212_v11 = vadd.f32 %v3853_v53, %v2173_v59 }
 0x35b   :  { %3013 = vrsqrt.f32 %v2074_v27  ;;  %v2075_v60 = vadd.f32 1e-05, %v2043_v57 }
 0x35c   :  { %v2213_v28 = vadd.f32 %v3853_v53, %v2174_v58 }
 0x35d   :  { %v3010_v5 = vpop.eup %3009  ;;  %3015 = vrsqrt.f32 %v2075_v60 }
 0x35e   :  { %v2585_v10 = vpack.c.bf16 %v2213_v28, %v2212_v11  ;;  %v2136_v0 = vmul.f32 %v3010_v5, %v3783_v37  ;;  %v2005_v63 = vpop.xlane.xlu0 %2004 }
 0x35f   :  { %v3012_v13 = vpop.eup %3011  ;;  %v2044_v43 = vmul.f32 0.0078125, %v2005_v63 }
 0x360   :  { %2625 = vst [vmem:[%s4003_s7 + $0x48] sm:$0xff] %v2585_v10   ;;  %v2175_v19 = vmul.f32 %v3846_v23, %v2136_v0  ;;  %v2137_v29 = vmul.f32 %v3012_v13, %v3786_v45  ;;  %v2007_v61 = vpop.xlane.xlu1 %2006 }
 0x361   :  { %v2076_v30 = vadd.f32 1e-05, %v2044_v43  ;;  %v2045_v8 = vmul.f32 0.0078125, %v2007_v61 }
 0x362   :  { %v2176_v3 = vmul.f32 %v3846_v23, %v2137_v29  ;;  %v2214_v37 = vadd.f32 %v3853_v53, %v2175_v19 }
 0x363   :  { %3017 = vrsqrt.f32 %v2076_v30  ;;  %v2077_v48 = vadd.f32 1e-05, %v2045_v8 }
 0x364   :  { %v2215_v9 = vadd.f32 %v3853_v53, %v2176_v3 }
 0x365   :  { %v3014_v12 = vpop.eup %3013  ;;  %3019 = vrsqrt.f32 %v2077_v48 }
 0x366   :  { %v2590_v35 = vpack.c.bf16 %v2215_v9, %v2214_v37  ;;  %v2138_v46 = vmul.f32 %v3014_v12, %v3793_v56  ;;  %v2009_v41 = vpop.xlane.xlu0 %2008 }
 0x367   :  { %v3016_v34 = vpop.eup %3015  ;;  %v2046_v50 = vmul.f32 0.0078125, %v2009_v41 }
 0x368   :  { %2626 = vst [vmem:[%s4003_s7 + $0x50] sm:$0xff] %v2590_v35   ;;  %v2177_v45 = vmul.f32 %v3846_v23, %v2138_v46  ;;  %v2139_v21 = vmul.f32 %v3016_v34, %v3796_v2  ;;  %v2011_v4 = vpop.xlane.xlu1 %2010 }
 0x369   :  { %v2078_v24 = vadd.f32 1e-05, %v2046_v50  ;;  %v2047_v62 = vmul.f32 0.0078125, %v2011_v4 }
 0x36a   :  { %v2178_v14 = vmul.f32 %v3846_v23, %v2139_v21  ;;  %v2216_v56 = vadd.f32 %v3853_v53, %v2177_v45 }
 0x36b   :  { %3021 = vrsqrt.f32 %v2078_v24  ;;  %v2079_v32 = vadd.f32 1e-05, %v2047_v62 }
 0x36c   :  { %v2217_v20 = vadd.f32 %v3853_v53, %v2178_v14 }
 0x36d   :  { %v3018_v42 = vpop.eup %3017  ;;  %3023 = vrsqrt.f32 %v2079_v32 }
 0x36e   :  { %v2595_v33 = vpack.c.bf16 %v2217_v20, %v2216_v56  ;;  %v2140_v15 = vmul.f32 %v3018_v42, %v3803_v18  ;;  %v2013_v36 = vpop.xlane.xlu0 %2012 }
 0x36f   :  { %v3020_v40 = vpop.eup %3019  ;;  %v2048_v38 = vmul.f32 0.0078125, %v2013_v36 }
 0x370   :  { %2627 = vst [vmem:[%s4003_s7 + $0x58] sm:$0xff] %v2595_v33   ;;  %v2179_v2 = vmul.f32 %v3846_v23, %v2140_v15  ;;  %v2141_v26 = vmul.f32 %v3020_v40, %v3806_v31  ;;  %v2015_v16 = vpop.xlane.xlu1 %2014 }
 0x371   :  { %v2080_v55 = vadd.f32 1e-05, %v2048_v38  ;;  %v2049_v52 = vmul.f32 0.0078125, %v2015_v16 }
 0x372   :  { %v2180_v44 = vmul.f32 %v3846_v23, %v2141_v26  ;;  %v2218_v18 = vadd.f32 %v3853_v53, %v2179_v2 }
 0x373   :  { %3025 = vrsqrt.f32 %v2080_v55  ;;  %v2081_v51 = vadd.f32 1e-05, %v2049_v52 }
 0x374   :  { %v2219_v25 = vadd.f32 %v3853_v53, %v2180_v44 }
 0x375   :  { %v3022_v54 = vpop.eup %3021  ;;  %3027 = vrsqrt.f32 %v2081_v51 }
 0x376   :  { %v2600_v59 = vpack.c.bf16 %v2219_v25, %v2218_v18  ;;  %v2142_v6 = vmul.f32 %v3022_v54, %v3813_v47  ;;  %v2017_v22 = vpop.xlane.xlu0 %2016 }
 0x377   :  { %v3024_v27 = vpop.eup %3023  ;;  %v2050_v57 = vmul.f32 0.0078125, %v2017_v22 }
 0x378   :  { %2628 = vst [vmem:[%s4003_s7 + $0x60] sm:$0xff] %v2600_v59   ;;  %v2181_v31 = vmul.f32 %v3846_v23, %v2142_v6  ;;  %v2143_v58 = vmul.f32 %v3024_v27, %v3816_v1  ;;  %v2019_v60 = vpop.xlane.xlu1 %2018 }
 0x379   :  { %v2082_v11 = vadd.f32 1e-05, %v2050_v57  ;;  %v2051_v28 = vmul.f32 0.0078125, %v2019_v60 }
 0x37a   :  { %v2182_v5 = vmul.f32 %v3846_v23, %v2143_v58  ;;  %v2220_v47 = vadd.f32 %v3853_v53, %v2181_v31 }
 0x37b   :  { %3029 = vrsqrt.f32 %v2082_v11  ;;  %v2083_v10 = vadd.f32 1e-05, %v2051_v28 }
 0x37c   :  { %v2221_v0 = vadd.f32 %v3853_v53, %v2182_v5 }
 0x37d   :  { %v3026_v63 = vpop.eup %3025  ;;  %3031 = vrsqrt.f32 %v2083_v10 }
 0x37e   :  { %v2605_v13 = vpack.c.bf16 %v2221_v0, %v2220_v47  ;;  %v2144_v43 = vmul.f32 %v3026_v63, %v3823_v7 }
 0x37f   :  { %v3028_v19 = vpop.eup %3027 }
 0x380   :  { %2629 = vst [vmem:[%s4003_s7 + $0x68] sm:$0xff] %v2605_v13   ;;  %v2183_v1 = vmul.f32 %v3846_v23, %v2144_v43  ;;  %v2145_v29 = vmul.f32 %v3028_v19, %v3826_v17 }
 0x382   :  { %v2184_v61 = vmul.f32 %v3846_v23, %v2145_v29  ;;  %v2222_v30 = vadd.f32 %v3853_v53, %v2183_v1 }
 0x384   :  { %v2223_v8 = vadd.f32 %v3853_v53, %v2184_v61 }
 0x385   :  { %v3030_v3 = vpop.eup %3029 }
 0x386   :  { %v2610_v48 = vpack.c.bf16 %v2223_v8, %v2222_v30  ;;  %v2146_v37 = vmul.f32 %v3030_v3, %v3833_v39 }
 0x387   :  { %v3032_v7 = vpop.eup %3031 }
 0x388   :  { %2630 = vst [vmem:[%s4003_s7 + $0x70] sm:$0xff] %v2610_v48   ;;  %v2185_v9 = vmul.f32 %v3846_v23, %v2146_v37  ;;  %v2147_v12 = vmul.f32 %v3032_v7, %v3836_v49 }
 0x38a   :  { %v2186_v17 = vmul.f32 %v3846_v23, %v2147_v12  ;;  %v2224_v35 = vadd.f32 %v3853_v53, %v2185_v9 }
 0x38c   :  { %v2225_v46 = vadd.f32 %v3853_v53, %v2186_v17 }
 0x38e   :  { %v2615_v41 = vpack.c.bf16 %v2225_v46, %v2224_v35 }
 0x390   :  { %2631 = vst [vmem:[%s4003_s7 + $0x78] sm:$0xff] %v2615_v41  }

// kernel: coordinate_transformer_forward.9
= control target key start
LH: loop header
LB: loop body
LE: loop exit
PB: predicated region body
PF: predicated region fallthrough
CT: control target
= control target key end

     0   :  { %v2762_v1 = vmov 0   ;;  %s3709_s1 = inlined_call_operand.vmem [shape: bf16[128,512], index: 1, kind: input, shape index: {}]   ;;  %s3710_s3 = inlined_call_operand.vmem [shape: bf16[512,128], index: 3, kind: input, shape index: {}]   ;;  %s3711_s0 = inlined_call_operand.vmem [shape: bf16[256,128], index: 0, kind: input, shape index: {}]   ;;  %s3712_s2 = inlined_call_operand.vmem [shape: f32[1,512], index: 2, kind: input, shape index: {}]   ;;  %s3713_s4 = inlined_call_operand.vmem [shape: f32[1,128], index: 4, kind: input, shape index: {}]   ;;  %s3714_s5 = inlined_call_operand.vmem [shape: f32[1,128], index: 5, kind: input, shape index: {}]   ;;  %s3715_s6 = inlined_call_operand.vmem [shape: f32[1,128], index: 6, kind: input, shape index: {}]   ;;  %s3716_s7 = inlined_call_operand.vmem [shape: bf16[256,128], index: 7, kind: output, shape index: {}]  }
   0x1   :  { %v2570_v0 = vld [vmem:[%s3709_s1 + $0x4] ss:$16 sps:$4 sm:$0xff]   ;;  %437 = vmatprep.mubr.bf16.mxu0 %v2762_v1  ;;  %630 = vmatprep.mubr.bf16.mxu1 %v2762_v1  ;;  %v2572_v2 = vld [vmem:[%s3709_s1 + $0xc] ss:$16 sps:$4 sm:$0xff]   ;;  %v2574_v3 = vld [vmem:[%s3709_s1] ss:$16 sps:$4 sm:$0xff]  }
   0x2   :  { %405 = vmatprep.subr.bf16.mxu0 %v2570_v0  ;;  %v2575_v4 = vld [vmem:[%s3709_s1 + $0x8] ss:$16 sps:$4 sm:$0xff]   ;;  %598 = vmatprep.subr.bf16.mxu1 %v2572_v2  ;;  %v2576_v5 = vld [vmem:[%s3709_s1 + $0x24] ss:$16 sps:$4 sm:$0xff]   ;;  %v2578_v6 = vld [vmem:[%s3709_s1 + $0x2c] ss:$16 sps:$4 sm:$0xff]  }
   0x3   :  { %406 = vmatpush1.bf16.msra.mxu0 %v2574_v3  ;;  %599 = vmatpush1.bf16.msra.mxu1 %v2575_v4  ;;  %v2580_v7 = vld [vmem:[%s3709_s1 + $0x20] ss:$16 sps:$4 sm:$0xff]   ;;  %v2581_v8 = vld [vmem:[%s3709_s1 + $0x28] ss:$16 sps:$4 sm:$0xff]   ;;  %v2582_v9 = vld [vmem:[%s3709_s1 + $0x44] ss:$16 sps:$4 sm:$0xff]  }
   0x4   :  { %407 = vmatprep.subr.bf16.mxu0 %v2576_v5  ;;  %600 = vmatprep.subr.bf16.mxu1 %v2578_v6  ;;  %v2584_v10 = vld [vmem:[%s3709_s1 + $0x4c] ss:$16 sps:$4 sm:$0xff]   ;;  %v2586_v11 = vld [vmem:[%s3709_s1 + $0x40] ss:$16 sps:$4 sm:$0xff]   ;;  %v2587_v12 = vld [vmem:[%s3709_s1 + $0x48] ss:$16 sps:$4 sm:$0xff]  }
   0x5   :  { %v2588_v13 = vld [vmem:[%s3709_s1 + $0x64] ss:$16 sps:$4 sm:$0xff]   ;;  %v2590_v14 = vld [vmem:[%s3709_s1 + $0x6c] ss:$16 sps:$4 sm:$0xff]   ;;  %v2592_v15 = vld [vmem:[%s3709_s1 + $0x60] ss:$16 sps:$4 sm:$0xff]  }
   0x6   :  { %v2593_v16 = vld [vmem:[%s3709_s1 + $0x68] ss:$16 sps:$4 sm:$0xff]   ;;  %v2594_v17 = vld [vmem:[%s3709_s1 + $0x84] ss:$16 sps:$4 sm:$0xff]   ;;  %v2596_v18 = vld [vmem:[%s3709_s1 + $0x8c] ss:$16 sps:$4 sm:$0xff]  }
   0x7   :  { %408 = vmatpush1.bf16.msra.mxu0 %v2580_v7  ;;  %601 = vmatpush1.bf16.msra.mxu1 %v2581_v8  ;;  %v2598_v19 = vld [vmem:[%s3709_s1 + $0x80] ss:$16 sps:$4 sm:$0xff]   ;;  %v2599_v20 = vld [vmem:[%s3709_s1 + $0x88] ss:$16 sps:$4 sm:$0xff]   ;;  %v2600_v21 = vld [vmem:[%s3709_s1 + $0xa4] ss:$16 sps:$4 sm:$0xff]  }
   0x8   :  { %409 = vmatprep.subr.bf16.mxu0 %v2582_v9  ;;  %602 = vmatprep.subr.bf16.mxu1 %v2584_v10  ;;  %v2602_v22 = vld [vmem:[%s3709_s1 + $0xac] ss:$16 sps:$4 sm:$0xff]   ;;  %v2604_v23 = vld [vmem:[%s3709_s1 + $0xa0] ss:$16 sps:$4 sm:$0xff]   ;;  %v2605_v24 = vld [vmem:[%s3709_s1 + $0xa8] ss:$16 sps:$4 sm:$0xff]  }
   0x9   :  { %v2606_v25 = vld [vmem:[%s3709_s1 + $0xc4] ss:$16 sps:$4 sm:$0xff]   ;;  %v2608_v26 = vld [vmem:[%s3709_s1 + $0xcc] ss:$16 sps:$4 sm:$0xff]   ;;  %v2610_v27 = vld [vmem:[%s3709_s1 + $0xc0] ss:$16 sps:$4 sm:$0xff]  }
   0xa   :  { %v2611_v28 = vld [vmem:[%s3709_s1 + $0xc8] ss:$16 sps:$4 sm:$0xff]   ;;  %v2612_v29 = vld [vmem:[%s3709_s1 + $0xe4] ss:$16 sps:$4 sm:$0xff]   ;;  %v2614_v30 = vld [vmem:[%s3709_s1 + $0xec] ss:$16 sps:$4 sm:$0xff]  }
   0xb   :  { %410 = vmatpush1.bf16.msra.mxu0 %v2586_v11  ;;  %603 = vmatpush1.bf16.msra.mxu1 %v2587_v12  ;;  %v2616_v31 = vld [vmem:[%s3709_s1 + $0xe0] ss:$16 sps:$4 sm:$0xff]   ;;  %v2617_v32 = vld [vmem:[%s3709_s1 + $0xe8] ss:$16 sps:$4 sm:$0xff]  }
   0xc   :  { %411 = vmatprep.subr.bf16.mxu0 %v2588_v13  ;;  %604 = vmatprep.subr.bf16.mxu1 %v2590_v14  ;;  %v63_v33 = vld [vmem:[%s3711_s0] sm:$0xff]   ;;  %v65_v38 = vld [vmem:[%s3711_s0 + $0x8] sm:$0xff]   ;;  %v2642_v43 = vld [vmem:[%s3710_s3 + $0x50] sm:$0xff]  }
   0xd   :  { %v2630_v34 = vld [vmem:[%s3710_s3 + $0x40] sm:$0xff]   ;;  %v2636_v39 = vld [vmem:[%s3710_s3 + $0x48] sm:$0xff]   ;;  %v2643_v44 = vld [vmem:[%s3710_s3 + $0xd0] sm:$0xff]  }
   0xe   :  { %v2631_v35 = vld [vmem:[%s3710_s3 + $0xc0] sm:$0xff]   ;;  %v2637_v40 = vld [vmem:[%s3710_s3 + $0xc8] sm:$0xff]   ;;  %v2644_v45 = vld [vmem:[%s3710_s3 + $0x10] sm:$0xff]  }
   0xf   :  { %412 = vmatpush1.bf16.msra.mxu0 %v2592_v15  ;;  %605 = vmatpush1.bf16.msra.mxu1 %v2593_v16  ;;  %v2632_v36 = vld [vmem:[%s3710_s3] sm:$0xff]   ;;  %v2638_v41 = vld [vmem:[%s3710_s3 + $0x8] sm:$0xff]   ;;  %v2645_v46 = vld [vmem:[%s3710_s3 + $0x90] sm:$0xff]  }
  0x10   :  { %413 = vmatprep.subr.bf16.mxu0 %v2594_v17  ;;  %606 = vmatprep.subr.bf16.mxu1 %v2596_v18  ;;  %v2633_v37 = vld [vmem:[%s3710_s3 + $0x80] sm:$0xff]   ;;  %v2639_v42 = vld [vmem:[%s3710_s3 + $0x88] sm:$0xff]   ;;  %v2646_v47 = vld [vmem:[%s3710_s3 + $0x58] sm:$0xff]   ;;  %v129_v18 = vlaneseq }
  0x11   :  { %v67_v48 = vld [vmem:[%s3711_s0 + $0x10] sm:$0xff]   ;;  %v2647_v49 = vld [vmem:[%s3710_s3 + $0xd8] sm:$0xff]   ;;  %v2650_v52 = vld [vmem:[%s3710_s3 + $0x60] sm:$0xff]  }
  0x12   :  { %v2648_v50 = vld [vmem:[%s3710_s3 + $0x18] sm:$0xff]   ;;  %v2651_v53 = vld [vmem:[%s3710_s3 + $0xe0] sm:$0xff]   ;;  %v2654_v56 = vld [vmem:[%s3710_s3 + $0x68] sm:$0xff]  }
  0x13   :  { %414 = vmatpush1.bf16.msra.mxu0 %v2598_v19  ;;  %607 = vmatpush1.bf16.msra.mxu1 %v2599_v20  ;;  %v2649_v51 = vld [vmem:[%s3710_s3 + $0x98] sm:$0xff]   ;;  %v2652_v54 = vld [vmem:[%s3710_s3 + $0x20] sm:$0xff]   ;;  %v2655_v58 = vld [vmem:[%s3710_s3 + $0xe8] sm:$0xff]   ;;  %v130_v19 = vshrl.u32 %v129_v18, 7 }
  0x14   :  { %415 = vmatprep.subr.bf16.mxu0 %v2600_v21  ;;  %608 = vmatprep.subr.bf16.mxu1 %v2602_v22  ;;  %v2653_v55 = vld [vmem:[%s3710_s3 + $0xa0] sm:$0xff]   ;;  %v69_v57 = vld [vmem:[%s3711_s0 + $0x18] sm:$0xff]   ;;  %v2656_v59 = vld [vmem:[%s3710_s3 + $0x28] sm:$0xff]  }
  0x15   :  { %v2657_v60 = vld [vmem:[%s3710_s3 + $0xa8] sm:$0xff]   ;;  %v2658_v61 = vld [vmem:[%s3710_s3 + $0x70] sm:$0xff]   ;;  %v2662_v2 = vld [vmem:[%s3710_s3 + $0x78] sm:$0xff]   ;;  %v131_v20 = vsub.s32 0, %v130_v19  ;;  %v139_v21 = vsub.s32 2, %v130_v19 }
  0x16   :  { %v2659_v62 = vld [vmem:[%s3710_s3 + $0xf0] sm:$0xff]   ;;  %v2663_v3 = vld [vmem:[%s3710_s3 + $0xf8] sm:$0xff]   ;;  %v71_v4 = vld [vmem:[%s3711_s0 + $0x20] sm:$0xff]  }
  0x17   :  { %416 = vmatpush1.bf16.msra.mxu0 %v2604_v23  ;;  %609 = vmatpush1.bf16.msra.mxu1 %v2605_v24  ;;  %v2660_v63 = vld [vmem:[%s3710_s3 + $0x30] sm:$0xff]   ;;  %v2664_v5 = vld [vmem:[%s3710_s3 + $0x38] sm:$0xff]   ;;  %v73_v7 = vld [vmem:[%s3711_s0 + $0x28] sm:$0xff]   ;;  %v135_v23 = vsub.s32 1, %v130_v19  ;;  %v143_v24 = vsub.s32 3, %v130_v19 }
  0x18   :  { %417 = vmatprep.subr.bf16.mxu0 %v2606_v25  ;;  %610 = vmatprep.subr.bf16.mxu1 %v2608_v26  ;;  %v2661_v0 = vld [vmem:[%s3710_s3 + $0xb0] sm:$0xff]   ;;  %v2665_v6 = vld [vmem:[%s3710_s3 + $0xb8] sm:$0xff]   ;;  %v79_v10 = vld [vmem:[%s3711_s0 + $0x40] sm:$0xff]  }
  0x19   :  { %v75_v8 = vld [vmem:[%s3711_s0 + $0x30] sm:$0xff]   ;;  %v77_v9 = vld [vmem:[%s3711_s0 + $0x38] sm:$0xff]   ;;  %v81_v11 = vld [vmem:[%s3711_s0 + $0x48] sm:$0xff]  }
  0x1a   :  { %v83_v12 = vld [vmem:[%s3711_s0 + $0x50] sm:$0xff]   ;;  %v85_v13 = vld [vmem:[%s3711_s0 + $0x58] sm:$0xff]   ;;  %v87_v14 = vld [vmem:[%s3711_s0 + $0x60] sm:$0xff]  }
  0x1b   :  { %418 = vmatpush1.bf16.msra.mxu0 %v2610_v27  ;;  %611 = vmatpush1.bf16.msra.mxu1 %v2611_v28  ;;  %v89_v15 = vld [vmem:[%s3711_s0 + $0x68] sm:$0xff]   ;;  %v91_v16 = vld [vmem:[%s3711_s0 + $0x70] sm:$0xff]   ;;  %v93_v17 = vld [vmem:[%s3711_s0 + $0x78] sm:$0xff]  }
  0x1c   :  { %419 = vmatprep.subr.bf16.mxu0 %v2612_v29  ;;  %612 = vmatprep.subr.bf16.mxu1 %v2614_v30  ;;  %v127_v22 = vld [vmem:[%s3712_s2] sm:$0xf] }
  0x1d   :  { %v3078_v25 = vrot.slane %v127_v22, %v131_v20  ;;  %v3080_v26 = vrot.slane %v127_v22, %v139_v21  ;;  %v3084_v27 = vrot.slane %v127_v22, %v143_v24 }
  0x1f   :  { %420 = vmatpush1.bf16.msra.mxu0 %v2616_v31  ;;  %613 = vmatpush1.bf16.msra.mxu1 %v2617_v32 }
  0x20   :  { %2345 = vmatprep.subr.bf16.mxu0 %v2630_v34  ;;  %2457 = vmatprep.subr.bf16.mxu1 %v2631_v35 }
  0x22   :  { %438 = vmatmul.mubr.bf16.vlgmr.msra.gmra.mrb[0].mxu0 %v63_v33  ;;  %631 = vmatmul.mubr.bf16.vlgmr.msra.gmra.mrb[0].mxu1 %v63_v33 }
  0x23   :  { %447 = vmatprep.mubr.bf16.mxu0 %v2762_v1  ;;  %640 = vmatprep.mubr.bf16.mxu1 %v2762_v1 }
  0x24   :  { %2346 = vmatpush3.bf16.msra.mxu0 %v2632_v36  ;;  %2458 = vmatpush3.bf16.msra.mxu1 %v2633_v37 }
  0x25   :  { %2347 = vmatprep.subr.bf16.mxu0 %v2636_v39  ;;  %2459 = vmatprep.subr.bf16.mxu1 %v2637_v40 }
  0x28   :  { %2348 = vmatpush3.bf16.msra.mxu0 %v2638_v41  ;;  %2460 = vmatpush3.bf16.msra.mxu1 %v2639_v42 }
  0x29   :  { %2349 = vmatprep.subr.bf16.mxu0 %v2642_v43  ;;  %2461 = vmatprep.subr.bf16.mxu1 %v2643_v44 }
  0x2a   :  { %448 = vmatmul.mubr.bf16.gmra.mrb[4].mxu0 %v65_v38  ;;  %641 = vmatmul.mubr.bf16.gmra.mrb[4].mxu1 %v65_v38 }
  0x2b   :  { %457 = vmatprep.mubr.bf16.mxu0 %v2762_v1  ;;  %650 = vmatprep.mubr.bf16.mxu1 %v2762_v1 }
  0x2c   :  { %2350 = vmatpush3.bf16.msra.mxu0 %v2644_v45  ;;  %2462 = vmatpush3.bf16.msra.mxu1 %v2645_v46 }
  0x2d   :  { %2351 = vmatprep.subr.bf16.mxu0 %v2646_v47  ;;  %2463 = vmatprep.subr.bf16.mxu1 %v2647_v49 }
  0x30   :  { %2352 = vmatpush3.bf16.msra.mxu0 %v2648_v50  ;;  %2464 = vmatpush3.bf16.msra.mxu1 %v2649_v51 }
  0x31   :  { %2353 = vmatprep.subr.bf16.mxu0 %v2650_v52  ;;  %2465 = vmatprep.subr.bf16.mxu1 %v2651_v53 }
  0x32   :  { %458 = vmatmul.mubr.bf16.gmra.mrb[8].mxu0 %v67_v48  ;;  %651 = vmatmul.mubr.bf16.gmra.mrb[8].mxu1 %v67_v48 }
  0x33   :  { %467 = vmatprep.mubr.bf16.mxu0 %v2762_v1  ;;  %660 = vmatprep.mubr.bf16.mxu1 %v2762_v1 }
  0x34   :  { %2354 = vmatpush3.bf16.msra.mxu0 %v2652_v54  ;;  %2466 = vmatpush3.bf16.msra.mxu1 %v2653_v55 }
  0x35   :  { %2355 = vmatprep.subr.bf16.mxu0 %v2654_v56  ;;  %2467 = vmatprep.subr.bf16.mxu1 %v2655_v58 }
  0x38   :  { %2356 = vmatpush3.bf16.msra.mxu0 %v2656_v59  ;;  %2468 = vmatpush3.bf16.msra.mxu1 %v2657_v60 }
  0x39   :  { %2357 = vmatprep.subr.bf16.mxu0 %v2658_v61  ;;  %2469 = vmatprep.subr.bf16.mxu1 %v2659_v62 }
  0x3a   :  { %468 = vmatmul.mubr.bf16.gmra.mrb[12].mxu0 %v69_v57  ;;  %661 = vmatmul.mubr.bf16.gmra.mrb[12].mxu1 %v69_v57 }
  0x3b   :  { %477 = vmatprep.mubr.bf16.mxu0 %v2762_v1  ;;  %670 = vmatprep.mubr.bf16.mxu1 %v2762_v1 }
  0x3c   :  { %2358 = vmatpush3.bf16.msra.mxu0 %v2660_v63  ;;  %2470 = vmatpush3.bf16.msra.mxu1 %v2661_v0 }
  0x3d   :  { %2359 = vmatprep.subr.bf16.mxu0 %v2662_v2  ;;  %2471 = vmatprep.subr.bf16.mxu1 %v2663_v3 }
  0x40   :  { %2360 = vmatpush3.bf16.msra.mxu0 %v2664_v5  ;;  %2472 = vmatpush3.bf16.msra.mxu1 %v2665_v6 }
  0x42   :  { %478 = vmatmul.mubr.bf16.gmra.mrb[16].mxu0 %v71_v4  ;;  %671 = vmatmul.mubr.bf16.gmra.mrb[16].mxu1 %v71_v4 }
  0x43   :  { %487 = vmatprep.mubr.bf16.mxu0 %v2762_v1  ;;  %680 = vmatprep.mubr.bf16.mxu1 %v2762_v1 }
  0x4a   :  { %488 = vmatmul.mubr.bf16.gmra.mrb[20].mxu0 %v73_v7  ;;  %681 = vmatmul.mubr.bf16.gmra.mrb[20].mxu1 %v73_v7 }
  0x4b   :  { %497 = vmatprep.mubr.bf16.mxu0 %v2762_v1  ;;  %690 = vmatprep.mubr.bf16.mxu1 %v2762_v1 }
  0x52   :  { %498 = vmatmul.mubr.bf16.gmra.mrb[24].mxu0 %v75_v8  ;;  %691 = vmatmul.mubr.bf16.gmra.mrb[24].mxu1 %v75_v8 }
  0x53   :  { %507 = vmatprep.mubr.bf16.mxu0 %v2762_v1  ;;  %700 = vmatprep.mubr.bf16.mxu1 %v2762_v1 }
  0x5a   :  { %508 = vmatmul.mubr.bf16.gmra.mrb[28].mxu0 %v77_v9  ;;  %701 = vmatmul.mubr.bf16.gmra.mrb[28].mxu1 %v77_v9 }
  0x5b   :  { %517 = vmatprep.mubr.bf16.mxu0 %v2762_v1  ;;  %710 = vmatprep.mubr.bf16.mxu1 %v2762_v1 }
  0x62   :  { %518 = vmatmul.mubr.bf16.gmra.mrb[32].mxu0 %v79_v10  ;;  %711 = vmatmul.mubr.bf16.gmra.mrb[32].mxu1 %v79_v10 }
  0x63   :  { %527 = vmatprep.mubr.bf16.mxu0 %v2762_v1  ;;  %720 = vmatprep.mubr.bf16.mxu1 %v2762_v1 }
  0x6a   :  { %528 = vmatmul.mubr.bf16.gmra.mrb[36].mxu0 %v81_v11  ;;  %721 = vmatmul.mubr.bf16.gmra.mrb[36].mxu1 %v81_v11 }
  0x6b   :  { %537 = vmatprep.mubr.bf16.mxu0 %v2762_v1  ;;  %730 = vmatprep.mubr.bf16.mxu1 %v2762_v1 }
  0x72   :  { %538 = vmatmul.mubr.bf16.gmra.mrb[40].mxu0 %v83_v12  ;;  %731 = vmatmul.mubr.bf16.gmra.mrb[40].mxu1 %v83_v12 }
  0x73   :  { %547 = vmatprep.mubr.bf16.mxu0 %v2762_v1  ;;  %740 = vmatprep.mubr.bf16.mxu1 %v2762_v1 }
  0x7a   :  { %548 = vmatmul.mubr.bf16.gmra.mrb[44].mxu0 %v85_v13  ;;  %741 = vmatmul.mubr.bf16.gmra.mrb[44].mxu1 %v85_v13 }
  0x7b   :  { %557 = vmatprep.mubr.bf16.mxu0 %v2762_v1  ;;  %750 = vmatprep.mubr.bf16.mxu1 %v2762_v1 }
  0x82   :  { %558 = vmatmul.mubr.bf16.gmra.mrb[48].mxu0 %v87_v14  ;;  %751 = vmatmul.mubr.bf16.gmra.mrb[48].mxu1 %v87_v14 }
  0x83   :  { %567 = vmatprep.mubr.bf16.mxu0 %v2762_v1  ;;  %760 = vmatprep.mubr.bf16.mxu1 %v2762_v1 }
  0x8a   :  { %568 = vmatmul.mubr.bf16.gmra.mrb[52].mxu0 %v89_v15  ;;  %761 = vmatmul.mubr.bf16.gmra.mrb[52].mxu1 %v89_v15 }
  0x8b   :  { %577 = vmatprep.mubr.bf16.mxu0 %v2762_v1  ;;  %770 = vmatprep.mubr.bf16.mxu1 %v2762_v1 }
  0x92   :  { %578 = vmatmul.mubr.bf16.gmra.mrb[56].mxu0 %v91_v16  ;;  %771 = vmatmul.mubr.bf16.gmra.mrb[56].mxu1 %v91_v16 }
  0x93   :  { %587 = vmatprep.mubr.bf16.mxu0 %v2762_v1  ;;  %780 = vmatprep.mubr.bf16.mxu1 %v2762_v1  ;;  %v3082_v1 = vrot.slane %v127_v22, %v135_v23 }
  0x9a   :  { %588 = vmatmul.mubr.bf16.gmra.mrb[60].mxu0 %v93_v17  ;;  %781 = vmatmul.mubr.bf16.gmra.mrb[60].mxu1 %v93_v17 }
  0xf5   :  { %v439_v28 = vpop.f32.mrb[0].mxu0  ;;  %v632_v29 = vpop.f32.mrb[0].mxu1 }
  0xf6   :  { %v440_v30 = vadd.f32 %v439_v28, %v3078_v25  ;;  %v633_v31 = vadd.f32 %v632_v29, %v3080_v26  ;;  %v441_v32 = vpop.f32.mrb[1].mxu0  ;;  %v634_v33 = vpop.f32.mrb[1].mxu1 }
  0xf7   :  { %v442_v34 = vadd.f32 %v441_v32, %v3082_v1  ;;  %v635_v35 = vadd.f32 %v634_v33, %v3084_v27  ;;  %v443_v36 = vpop.f32.mrb[2].mxu0  ;;  %v636_v37 = vpop.f32.mrb[2].mxu1 }
  0xf8   :  { %v444_v38 = vadd.f32 %v443_v36, %v3078_v25  ;;  %v637_v39 = vadd.f32 %v636_v37, %v3080_v26  ;;  %v445_v40 = vpop.f32.mrb[3].mxu0  ;;  %v638_v41 = vpop.f32.mrb[3].mxu1  ;;  %v791_v44 = vmax.f32 %v440_v30, 0.0  ;;  %v793_v45 = vmax.f32 %v633_v31, 0.0 }
  0xf9   :  { %v446_v42 = vadd.f32 %v445_v40, %v3082_v1  ;;  %v639_v43 = vadd.f32 %v638_v41, %v3084_v27  ;;  %v792_v48 = vmax.f32 %v442_v34, 0.0  ;;  %v794_v49 = vmax.f32 %v635_v35, 0.0 }
  0xfa   :  { %v795_v46 = vmax.f32 %v444_v38, 0.0  ;;  %v797_v47 = vmax.f32 %v637_v39, 0.0 }
  0xfb   :  { %v796_v50 = vmax.f32 %v446_v42, 0.0  ;;  %v798_v51 = vmax.f32 %v639_v43, 0.0 }
  0xfc   :  { %v951_v52 = vpack.c.bf16 %v795_v46, %v791_v44  ;;  %v953_v53 = vpack.c.bf16 %v797_v47, %v793_v45 }
  0xfd   :  { %v952_v54 = vpack.c.bf16 %v796_v50, %v792_v48  ;;  %v954_v55 = vpack.c.bf16 %v798_v51, %v794_v49  ;;  %v449_v56 = vpop.f32.mrb[4].mxu0  ;;  %v642_v57 = vpop.f32.mrb[4].mxu1 }
  0xfe   :  { %v450_v58 = vadd.f32 %v449_v56, %v3078_v25  ;;  %v643_v59 = vadd.f32 %v642_v57, %v3080_v26  ;;  %v451_v60 = vpop.f32.mrb[5].mxu0  ;;  %v644_v61 = vpop.f32.mrb[5].mxu1 }
  0xff   :  { %v452_v62 = vadd.f32 %v451_v60, %v3082_v1  ;;  %v645_v63 = vadd.f32 %v644_v61, %v3084_v27  ;;  %v453_v0 = vpop.f32.mrb[6].mxu0  ;;  %v646_v2 = vpop.f32.mrb[6].mxu1  ;;  %1303 = vmatprep.mubr.bf16.mxu0 %v952_v54  ;;  %1464 = vmatprep.mubr.bf16.mxu1 %v954_v55 }
 0x100   :  { %v454_v3 = vadd.f32 %v453_v0, %v3078_v25  ;;  %v647_v4 = vadd.f32 %v646_v2, %v3080_v26  ;;  %v455_v5 = vpop.f32.mrb[7].mxu0  ;;  %v648_v6 = vpop.f32.mrb[7].mxu1  ;;  %1304 = vmatmul.mubr.bf16.vlgmr.msra.gmra.mrb[64].mxu0 %v951_v52  ;;  %1465 = vmatmul.mubr.bf16.vlgmr.msra.gmra.mrb[64].mxu1 %v953_v53  ;;  %v799_v9 = vmax.f32 %v450_v58, 0.0  ;;  %v801_v10 = vmax.f32 %v643_v59, 0.0 }
 0x101   :  { %v456_v7 = vadd.f32 %v455_v5, %v3082_v1  ;;  %v649_v8 = vadd.f32 %v648_v6, %v3084_v27  ;;  %v800_v13 = vmax.f32 %v452_v62, 0.0  ;;  %v802_v14 = vmax.f32 %v645_v63, 0.0 }
 0x102   :  { %v803_v11 = vmax.f32 %v454_v3, 0.0  ;;  %v805_v12 = vmax.f32 %v647_v4, 0.0 }
 0x103   :  { %v804_v15 = vmax.f32 %v456_v7, 0.0  ;;  %v806_v16 = vmax.f32 %v649_v8, 0.0 }
 0x104   :  { %v955_v17 = vpack.c.bf16 %v803_v11, %v799_v9  ;;  %v957_v18 = vpack.c.bf16 %v805_v12, %v801_v10 }
 0x105   :  { %v956_v19 = vpack.c.bf16 %v804_v15, %v800_v13  ;;  %v958_v20 = vpack.c.bf16 %v806_v16, %v802_v14  ;;  %v459_v21 = vpop.f32.mrb[8].mxu0  ;;  %v652_v22 = vpop.f32.mrb[8].mxu1 }
 0x106   :  { %v460_v23 = vadd.f32 %v459_v21, %v3078_v25  ;;  %v653_v24 = vadd.f32 %v652_v22, %v3080_v26  ;;  %v461_v28 = vpop.f32.mrb[9].mxu0  ;;  %v654_v29 = vpop.f32.mrb[9].mxu1 }
 0x107   :  { %v462_v30 = vadd.f32 %v461_v28, %v3082_v1  ;;  %v655_v31 = vadd.f32 %v654_v29, %v3084_v27  ;;  %v463_v32 = vpop.f32.mrb[10].mxu0  ;;  %v656_v33 = vpop.f32.mrb[10].mxu1  ;;  %1311 = vmatprep.mubr.bf16.mxu0 %v956_v19  ;;  %1472 = vmatprep.mubr.bf16.mxu1 %v958_v20 }
 0x108   :  { %v464_v34 = vadd.f32 %v463_v32, %v3078_v25  ;;  %v657_v35 = vadd.f32 %v656_v33, %v3080_v26  ;;  %v465_v36 = vpop.f32.mrb[11].mxu0  ;;  %v658_v37 = vpop.f32.mrb[11].mxu1  ;;  %1312 = vmatmul.mubr.bf16.gmra.mrb[68].mxu0 %v955_v17  ;;  %1473 = vmatmul.mubr.bf16.gmra.mrb[68].mxu1 %v957_v18  ;;  %v807_v40 = vmax.f32 %v460_v23, 0.0  ;;  %v809_v41 = vmax.f32 %v653_v24, 0.0 }
 0x109   :  { %v466_v38 = vadd.f32 %v465_v36, %v3082_v1  ;;  %v659_v39 = vadd.f32 %v658_v37, %v3084_v27  ;;  %v808_v44 = vmax.f32 %v462_v30, 0.0  ;;  %v810_v45 = vmax.f32 %v655_v31, 0.0 }
 0x10a   :  { %v811_v42 = vmax.f32 %v464_v34, 0.0  ;;  %v813_v43 = vmax.f32 %v657_v35, 0.0 }
 0x10b   :  { %v812_v46 = vmax.f32 %v466_v38, 0.0  ;;  %v814_v47 = vmax.f32 %v659_v39, 0.0 }
 0x10c   :  { %v959_v48 = vpack.c.bf16 %v811_v42, %v807_v40  ;;  %v961_v49 = vpack.c.bf16 %v813_v43, %v809_v41 }
 0x10d   :  { %v960_v50 = vpack.c.bf16 %v812_v46, %v808_v44  ;;  %v962_v51 = vpack.c.bf16 %v814_v47, %v810_v45  ;;  %v469_v52 = vpop.f32.mrb[12].mxu0  ;;  %v662_v53 = vpop.f32.mrb[12].mxu1 }
 0x10e   :  { %v470_v54 = vadd.f32 %v469_v52, %v3078_v25  ;;  %v663_v55 = vadd.f32 %v662_v53, %v3080_v26  ;;  %v471_v56 = vpop.f32.mrb[13].mxu0  ;;  %v664_v57 = vpop.f32.mrb[13].mxu1 }
 0x10f   :  { %v472_v58 = vadd.f32 %v471_v56, %v3082_v1  ;;  %v665_v59 = vadd.f32 %v664_v57, %v3084_v27  ;;  %v473_v60 = vpop.f32.mrb[14].mxu0  ;;  %v666_v61 = vpop.f32.mrb[14].mxu1  ;;  %1319 = vmatprep.mubr.bf16.mxu0 %v960_v50  ;;  %1480 = vmatprep.mubr.bf16.mxu1 %v962_v51 }
 0x110   :  { %v474_v62 = vadd.f32 %v473_v60, %v3078_v25  ;;  %v667_v63 = vadd.f32 %v666_v61, %v3080_v26  ;;  %v475_v0 = vpop.f32.mrb[15].mxu0  ;;  %v668_v2 = vpop.f32.mrb[15].mxu1  ;;  %1320 = vmatmul.mubr.bf16.gmra.mrb[72].mxu0 %v959_v48  ;;  %1481 = vmatmul.mubr.bf16.gmra.mrb[72].mxu1 %v961_v49  ;;  %v815_v5 = vmax.f32 %v470_v54, 0.0  ;;  %v817_v6 = vmax.f32 %v663_v55, 0.0 }
 0x111   :  { %v476_v3 = vadd.f32 %v475_v0, %v3082_v1  ;;  %v669_v4 = vadd.f32 %v668_v2, %v3084_v27  ;;  %v816_v9 = vmax.f32 %v472_v58, 0.0  ;;  %v818_v10 = vmax.f32 %v665_v59, 0.0 }
 0x112   :  { %v819_v7 = vmax.f32 %v474_v62, 0.0  ;;  %v821_v8 = vmax.f32 %v667_v63, 0.0 }
 0x113   :  { %v820_v11 = vmax.f32 %v476_v3, 0.0  ;;  %v822_v12 = vmax.f32 %v669_v4, 0.0 }
 0x114   :  { %v963_v13 = vpack.c.bf16 %v819_v7, %v815_v5  ;;  %v965_v14 = vpack.c.bf16 %v821_v8, %v817_v6 }
 0x115   :  { %v964_v15 = vpack.c.bf16 %v820_v11, %v816_v9  ;;  %v966_v16 = vpack.c.bf16 %v822_v12, %v818_v10  ;;  %v479_v17 = vpop.f32.mrb[16].mxu0  ;;  %v672_v18 = vpop.f32.mrb[16].mxu1 }
 0x116   :  { %v480_v19 = vadd.f32 %v479_v17, %v3078_v25  ;;  %v673_v20 = vadd.f32 %v672_v18, %v3080_v26  ;;  %v481_v21 = vpop.f32.mrb[17].mxu0  ;;  %v674_v22 = vpop.f32.mrb[17].mxu1 }
 0x117   :  { %v482_v23 = vadd.f32 %v481_v21, %v3082_v1  ;;  %v675_v24 = vadd.f32 %v674_v22, %v3084_v27  ;;  %v483_v28 = vpop.f32.mrb[18].mxu0  ;;  %v676_v29 = vpop.f32.mrb[18].mxu1  ;;  %1327 = vmatprep.mubr.bf16.mxu0 %v964_v15  ;;  %1488 = vmatprep.mubr.bf16.mxu1 %v966_v16 }
 0x118   :  { %v484_v30 = vadd.f32 %v483_v28, %v3078_v25  ;;  %v677_v31 = vadd.f32 %v676_v29, %v3080_v26  ;;  %v485_v32 = vpop.f32.mrb[19].mxu0  ;;  %v678_v33 = vpop.f32.mrb[19].mxu1  ;;  %1328 = vmatmul.mubr.bf16.gmra.mrb[76].mxu0 %v963_v13  ;;  %1489 = vmatmul.mubr.bf16.gmra.mrb[76].mxu1 %v965_v14  ;;  %v823_v36 = vmax.f32 %v480_v19, 0.0  ;;  %v825_v37 = vmax.f32 %v673_v20, 0.0 }
 0x119   :  { %v486_v34 = vadd.f32 %v485_v32, %v3082_v1  ;;  %v679_v35 = vadd.f32 %v678_v33, %v3084_v27  ;;  %v824_v40 = vmax.f32 %v482_v23, 0.0  ;;  %v826_v41 = vmax.f32 %v675_v24, 0.0 }
 0x11a   :  { %v827_v38 = vmax.f32 %v484_v30, 0.0  ;;  %v829_v39 = vmax.f32 %v677_v31, 0.0 }
 0x11b   :  { %v828_v42 = vmax.f32 %v486_v34, 0.0  ;;  %v830_v43 = vmax.f32 %v679_v35, 0.0 }
 0x11c   :  { %v967_v44 = vpack.c.bf16 %v827_v38, %v823_v36  ;;  %v969_v45 = vpack.c.bf16 %v829_v39, %v825_v37 }
 0x11d   :  { %v968_v46 = vpack.c.bf16 %v828_v42, %v824_v40  ;;  %v970_v47 = vpack.c.bf16 %v830_v43, %v826_v41  ;;  %v489_v48 = vpop.f32.mrb[20].mxu0  ;;  %v682_v49 = vpop.f32.mrb[20].mxu1 }
 0x11e   :  { %v490_v50 = vadd.f32 %v489_v48, %v3078_v25  ;;  %v683_v51 = vadd.f32 %v682_v49, %v3080_v26  ;;  %v491_v52 = vpop.f32.mrb[21].mxu0  ;;  %v684_v53 = vpop.f32.mrb[21].mxu1 }
 0x11f   :  { %v492_v54 = vadd.f32 %v491_v52, %v3082_v1  ;;  %v685_v55 = vadd.f32 %v684_v53, %v3084_v27  ;;  %v493_v56 = vpop.f32.mrb[22].mxu0  ;;  %v686_v57 = vpop.f32.mrb[22].mxu1  ;;  %1335 = vmatprep.mubr.bf16.mxu0 %v968_v46  ;;  %1496 = vmatprep.mubr.bf16.mxu1 %v970_v47 }
 0x120   :  { %v494_v58 = vadd.f32 %v493_v56, %v3078_v25  ;;  %v687_v59 = vadd.f32 %v686_v57, %v3080_v26  ;;  %v495_v60 = vpop.f32.mrb[23].mxu0  ;;  %v688_v61 = vpop.f32.mrb[23].mxu1  ;;  %1336 = vmatmul.mubr.bf16.gmra.mrb[80].mxu0 %v967_v44  ;;  %1497 = vmatmul.mubr.bf16.gmra.mrb[80].mxu1 %v969_v45  ;;  %v831_v0 = vmax.f32 %v490_v50, 0.0  ;;  %v833_v2 = vmax.f32 %v683_v51, 0.0 }
 0x121   :  { %v496_v62 = vadd.f32 %v495_v60, %v3082_v1  ;;  %v689_v63 = vadd.f32 %v688_v61, %v3084_v27  ;;  %v832_v5 = vmax.f32 %v492_v54, 0.0  ;;  %v834_v6 = vmax.f32 %v685_v55, 0.0 }
 0x122   :  { %v835_v3 = vmax.f32 %v494_v58, 0.0  ;;  %v837_v4 = vmax.f32 %v687_v59, 0.0 }
 0x123   :  { %v836_v7 = vmax.f32 %v496_v62, 0.0  ;;  %v838_v8 = vmax.f32 %v689_v63, 0.0 }
 0x124   :  { %v971_v9 = vpack.c.bf16 %v835_v3, %v831_v0  ;;  %v973_v10 = vpack.c.bf16 %v837_v4, %v833_v2 }
 0x125   :  { %v972_v11 = vpack.c.bf16 %v836_v7, %v832_v5  ;;  %v974_v12 = vpack.c.bf16 %v838_v8, %v834_v6  ;;  %v499_v13 = vpop.f32.mrb[24].mxu0  ;;  %v692_v14 = vpop.f32.mrb[24].mxu1 }
 0x126   :  { %v500_v15 = vadd.f32 %v499_v13, %v3078_v25  ;;  %v693_v16 = vadd.f32 %v692_v14, %v3080_v26  ;;  %v501_v17 = vpop.f32.mrb[25].mxu0  ;;  %v694_v18 = vpop.f32.mrb[25].mxu1 }
 0x127   :  { %v502_v19 = vadd.f32 %v501_v17, %v3082_v1  ;;  %v695_v20 = vadd.f32 %v694_v18, %v3084_v27  ;;  %v503_v21 = vpop.f32.mrb[26].mxu0  ;;  %v696_v22 = vpop.f32.mrb[26].mxu1  ;;  %1343 = vmatprep.mubr.bf16.mxu0 %v972_v11  ;;  %1504 = vmatprep.mubr.bf16.mxu1 %v974_v12 }
 0x128   :  { %v504_v23 = vadd.f32 %v503_v21, %v3078_v25  ;;  %v697_v24 = vadd.f32 %v696_v22, %v3080_v26  ;;  %v505_v28 = vpop.f32.mrb[27].mxu0  ;;  %v698_v29 = vpop.f32.mrb[27].mxu1  ;;  %1344 = vmatmul.mubr.bf16.gmra.mrb[84].mxu0 %v971_v9  ;;  %1505 = vmatmul.mubr.bf16.gmra.mrb[84].mxu1 %v973_v10  ;;  %v839_v32 = vmax.f32 %v500_v15, 0.0  ;;  %v841_v33 = vmax.f32 %v693_v16, 0.0 }
 0x129   :  { %v506_v30 = vadd.f32 %v505_v28, %v3082_v1  ;;  %v699_v31 = vadd.f32 %v698_v29, %v3084_v27  ;;  %v840_v36 = vmax.f32 %v502_v19, 0.0  ;;  %v842_v37 = vmax.f32 %v695_v20, 0.0 }
 0x12a   :  { %v843_v34 = vmax.f32 %v504_v23, 0.0  ;;  %v845_v35 = vmax.f32 %v697_v24, 0.0 }
 0x12b   :  { %v844_v38 = vmax.f32 %v506_v30, 0.0  ;;  %v846_v39 = vmax.f32 %v699_v31, 0.0 }
 0x12c   :  { %v975_v40 = vpack.c.bf16 %v843_v34, %v839_v32  ;;  %v977_v41 = vpack.c.bf16 %v845_v35, %v841_v33 }
 0x12d   :  { %v976_v42 = vpack.c.bf16 %v844_v38, %v840_v36  ;;  %v978_v43 = vpack.c.bf16 %v846_v39, %v842_v37  ;;  %v509_v44 = vpop.f32.mrb[28].mxu0  ;;  %v702_v45 = vpop.f32.mrb[28].mxu1 }
 0x12e   :  { %v510_v46 = vadd.f32 %v509_v44, %v3078_v25  ;;  %v703_v47 = vadd.f32 %v702_v45, %v3080_v26  ;;  %v511_v48 = vpop.f32.mrb[29].mxu0  ;;  %v704_v49 = vpop.f32.mrb[29].mxu1 }
 0x12f   :  { %v512_v50 = vadd.f32 %v511_v48, %v3082_v1  ;;  %v705_v51 = vadd.f32 %v704_v49, %v3084_v27  ;;  %v513_v52 = vpop.f32.mrb[30].mxu0  ;;  %v706_v53 = vpop.f32.mrb[30].mxu1  ;;  %1351 = vmatprep.mubr.bf16.mxu0 %v976_v42  ;;  %1512 = vmatprep.mubr.bf16.mxu1 %v978_v43 }
 0x130   :  { %v514_v54 = vadd.f32 %v513_v52, %v3078_v25  ;;  %v707_v55 = vadd.f32 %v706_v53, %v3080_v26  ;;  %v515_v56 = vpop.f32.mrb[31].mxu0  ;;  %v708_v57 = vpop.f32.mrb[31].mxu1  ;;  %1352 = vmatmul.mubr.bf16.gmra.mrb[88].mxu0 %v975_v40  ;;  %1513 = vmatmul.mubr.bf16.gmra.mrb[88].mxu1 %v977_v41  ;;  %v847_v60 = vmax.f32 %v510_v46, 0.0  ;;  %v849_v61 = vmax.f32 %v703_v47, 0.0 }
 0x131   :  { %v516_v58 = vadd.f32 %v515_v56, %v3082_v1  ;;  %v709_v59 = vadd.f32 %v708_v57, %v3084_v27  ;;  %v848_v0 = vmax.f32 %v512_v50, 0.0  ;;  %v850_v2 = vmax.f32 %v705_v51, 0.0 }
 0x132   :  { %v851_v62 = vmax.f32 %v514_v54, 0.0  ;;  %v853_v63 = vmax.f32 %v707_v55, 0.0 }
 0x133   :  { %v852_v3 = vmax.f32 %v516_v58, 0.0  ;;  %v854_v4 = vmax.f32 %v709_v59, 0.0 }
 0x134   :  { %v979_v5 = vpack.c.bf16 %v851_v62, %v847_v60  ;;  %v981_v6 = vpack.c.bf16 %v853_v63, %v849_v61 }
 0x135   :  { %v980_v7 = vpack.c.bf16 %v852_v3, %v848_v0  ;;  %v982_v8 = vpack.c.bf16 %v854_v4, %v850_v2  ;;  %v519_v9 = vpop.f32.mrb[32].mxu0  ;;  %v712_v10 = vpop.f32.mrb[32].mxu1 }
 0x136   :  { %v520_v11 = vadd.f32 %v519_v9, %v3078_v25  ;;  %v713_v12 = vadd.f32 %v712_v10, %v3080_v26  ;;  %v521_v13 = vpop.f32.mrb[33].mxu0  ;;  %v714_v14 = vpop.f32.mrb[33].mxu1 }
 0x137   :  { %v522_v15 = vadd.f32 %v521_v13, %v3082_v1  ;;  %v715_v16 = vadd.f32 %v714_v14, %v3084_v27  ;;  %v523_v17 = vpop.f32.mrb[34].mxu0  ;;  %v716_v18 = vpop.f32.mrb[34].mxu1  ;;  %1359 = vmatprep.mubr.bf16.mxu0 %v980_v7  ;;  %1520 = vmatprep.mubr.bf16.mxu1 %v982_v8 }
 0x138   :  { %v524_v19 = vadd.f32 %v523_v17, %v3078_v25  ;;  %v717_v20 = vadd.f32 %v716_v18, %v3080_v26  ;;  %v525_v21 = vpop.f32.mrb[35].mxu0  ;;  %v718_v22 = vpop.f32.mrb[35].mxu1  ;;  %1360 = vmatmul.mubr.bf16.gmra.mrb[92].mxu0 %v979_v5  ;;  %1521 = vmatmul.mubr.bf16.gmra.mrb[92].mxu1 %v981_v6  ;;  %v855_v28 = vmax.f32 %v520_v11, 0.0  ;;  %v857_v29 = vmax.f32 %v713_v12, 0.0 }
 0x139   :  { %v526_v23 = vadd.f32 %v525_v21, %v3082_v1  ;;  %v719_v24 = vadd.f32 %v718_v22, %v3084_v27  ;;  %v856_v32 = vmax.f32 %v522_v15, 0.0  ;;  %v858_v33 = vmax.f32 %v715_v16, 0.0 }
 0x13a   :  { %v859_v30 = vmax.f32 %v524_v19, 0.0  ;;  %v861_v31 = vmax.f32 %v717_v20, 0.0 }
 0x13b   :  { %v860_v34 = vmax.f32 %v526_v23, 0.0  ;;  %v862_v35 = vmax.f32 %v719_v24, 0.0 }
 0x13c   :  { %v983_v36 = vpack.c.bf16 %v859_v30, %v855_v28  ;;  %v985_v37 = vpack.c.bf16 %v861_v31, %v857_v29 }
 0x13d   :  { %v984_v38 = vpack.c.bf16 %v860_v34, %v856_v32  ;;  %v986_v39 = vpack.c.bf16 %v862_v35, %v858_v33  ;;  %v529_v40 = vpop.f32.mrb[36].mxu0  ;;  %v722_v41 = vpop.f32.mrb[36].mxu1 }
 0x13e   :  { %v530_v42 = vadd.f32 %v529_v40, %v3078_v25  ;;  %v723_v43 = vadd.f32 %v722_v41, %v3080_v26  ;;  %v531_v44 = vpop.f32.mrb[37].mxu0  ;;  %v724_v45 = vpop.f32.mrb[37].mxu1 }
 0x13f   :  { %v532_v46 = vadd.f32 %v531_v44, %v3082_v1  ;;  %v725_v47 = vadd.f32 %v724_v45, %v3084_v27  ;;  %v533_v48 = vpop.f32.mrb[38].mxu0  ;;  %v726_v49 = vpop.f32.mrb[38].mxu1  ;;  %1367 = vmatprep.mubr.bf16.mxu0 %v984_v38  ;;  %1528 = vmatprep.mubr.bf16.mxu1 %v986_v39 }
 0x140   :  { %v534_v50 = vadd.f32 %v533_v48, %v3078_v25  ;;  %v727_v51 = vadd.f32 %v726_v49, %v3080_v26  ;;  %v535_v52 = vpop.f32.mrb[39].mxu0  ;;  %v728_v53 = vpop.f32.mrb[39].mxu1  ;;  %1368 = vmatmul.mubr.bf16.gmra.mrb[96].mxu0 %v983_v36  ;;  %1529 = vmatmul.mubr.bf16.gmra.mrb[96].mxu1 %v985_v37  ;;  %v863_v56 = vmax.f32 %v530_v42, 0.0  ;;  %v865_v57 = vmax.f32 %v723_v43, 0.0 }
 0x141   :  { %v536_v54 = vadd.f32 %v535_v52, %v3082_v1  ;;  %v729_v55 = vadd.f32 %v728_v53, %v3084_v27  ;;  %v864_v60 = vmax.f32 %v532_v46, 0.0  ;;  %v866_v61 = vmax.f32 %v725_v47, 0.0 }
 0x142   :  { %v867_v58 = vmax.f32 %v534_v50, 0.0  ;;  %v869_v59 = vmax.f32 %v727_v51, 0.0 }
 0x143   :  { %v868_v62 = vmax.f32 %v536_v54, 0.0  ;;  %v870_v63 = vmax.f32 %v729_v55, 0.0 }
 0x144   :  { %v987_v0 = vpack.c.bf16 %v867_v58, %v863_v56  ;;  %v989_v2 = vpack.c.bf16 %v869_v59, %v865_v57 }
 0x145   :  { %v988_v3 = vpack.c.bf16 %v868_v62, %v864_v60  ;;  %v990_v4 = vpack.c.bf16 %v870_v63, %v866_v61  ;;  %v539_v5 = vpop.f32.mrb[40].mxu0  ;;  %v732_v6 = vpop.f32.mrb[40].mxu1 }
 0x146   :  { %v540_v7 = vadd.f32 %v539_v5, %v3078_v25  ;;  %v733_v8 = vadd.f32 %v732_v6, %v3080_v26  ;;  %v541_v9 = vpop.f32.mrb[41].mxu0  ;;  %v734_v10 = vpop.f32.mrb[41].mxu1 }
 0x147   :  { %v542_v11 = vadd.f32 %v541_v9, %v3082_v1  ;;  %v735_v12 = vadd.f32 %v734_v10, %v3084_v27  ;;  %v543_v13 = vpop.f32.mrb[42].mxu0  ;;  %v736_v14 = vpop.f32.mrb[42].mxu1  ;;  %1375 = vmatprep.mubr.bf16.mxu0 %v988_v3  ;;  %1536 = vmatprep.mubr.bf16.mxu1 %v990_v4 }
 0x148   :  { %v544_v15 = vadd.f32 %v543_v13, %v3078_v25  ;;  %v737_v16 = vadd.f32 %v736_v14, %v3080_v26  ;;  %v545_v17 = vpop.f32.mrb[43].mxu0  ;;  %v738_v18 = vpop.f32.mrb[43].mxu1  ;;  %1376 = vmatmul.mubr.bf16.gmra.mrb[100].mxu0 %v987_v0  ;;  %1537 = vmatmul.mubr.bf16.gmra.mrb[100].mxu1 %v989_v2  ;;  %v871_v21 = vmax.f32 %v540_v7, 0.0  ;;  %v873_v22 = vmax.f32 %v733_v8, 0.0 }
 0x149   :  { %v546_v19 = vadd.f32 %v545_v17, %v3082_v1  ;;  %v739_v20 = vadd.f32 %v738_v18, %v3084_v27  ;;  %v872_v28 = vmax.f32 %v542_v11, 0.0  ;;  %v874_v29 = vmax.f32 %v735_v12, 0.0 }
 0x14a   :  { %v875_v23 = vmax.f32 %v544_v15, 0.0  ;;  %v877_v24 = vmax.f32 %v737_v16, 0.0 }
 0x14b   :  { %v876_v30 = vmax.f32 %v546_v19, 0.0  ;;  %v878_v31 = vmax.f32 %v739_v20, 0.0 }
 0x14c   :  { %v991_v32 = vpack.c.bf16 %v875_v23, %v871_v21  ;;  %v993_v33 = vpack.c.bf16 %v877_v24, %v873_v22 }
 0x14d   :  { %v992_v34 = vpack.c.bf16 %v876_v30, %v872_v28  ;;  %v994_v35 = vpack.c.bf16 %v878_v31, %v874_v29  ;;  %v549_v36 = vpop.f32.mrb[44].mxu0  ;;  %v742_v37 = vpop.f32.mrb[44].mxu1 }
 0x14e   :  { %v550_v38 = vadd.f32 %v549_v36, %v3078_v25  ;;  %v743_v39 = vadd.f32 %v742_v37, %v3080_v26  ;;  %v551_v40 = vpop.f32.mrb[45].mxu0  ;;  %v744_v41 = vpop.f32.mrb[45].mxu1 }
 0x14f   :  { %v552_v42 = vadd.f32 %v551_v40, %v3082_v1  ;;  %v745_v43 = vadd.f32 %v744_v41, %v3084_v27  ;;  %v553_v44 = vpop.f32.mrb[46].mxu0  ;;  %v746_v45 = vpop.f32.mrb[46].mxu1  ;;  %1383 = vmatprep.mubr.bf16.mxu0 %v992_v34  ;;  %1544 = vmatprep.mubr.bf16.mxu1 %v994_v35 }
 0x150   :  { %v554_v46 = vadd.f32 %v553_v44, %v3078_v25  ;;  %v747_v47 = vadd.f32 %v746_v45, %v3080_v26  ;;  %v555_v48 = vpop.f32.mrb[47].mxu0  ;;  %v748_v49 = vpop.f32.mrb[47].mxu1  ;;  %1384 = vmatmul.mubr.bf16.gmra.mrb[104].mxu0 %v991_v32  ;;  %1545 = vmatmul.mubr.bf16.gmra.mrb[104].mxu1 %v993_v33  ;;  %v879_v52 = vmax.f32 %v550_v38, 0.0  ;;  %v881_v53 = vmax.f32 %v743_v39, 0.0 }
 0x151   :  { %v556_v50 = vadd.f32 %v555_v48, %v3082_v1  ;;  %v749_v51 = vadd.f32 %v748_v49, %v3084_v27  ;;  %v880_v56 = vmax.f32 %v552_v42, 0.0  ;;  %v882_v57 = vmax.f32 %v745_v43, 0.0 }
 0x152   :  { %v883_v54 = vmax.f32 %v554_v46, 0.0  ;;  %v885_v55 = vmax.f32 %v747_v47, 0.0 }
 0x153   :  { %v884_v58 = vmax.f32 %v556_v50, 0.0  ;;  %v886_v59 = vmax.f32 %v749_v51, 0.0 }
 0x154   :  { %v995_v60 = vpack.c.bf16 %v883_v54, %v879_v52  ;;  %v997_v61 = vpack.c.bf16 %v885_v55, %v881_v53 }
 0x155   :  { %v996_v62 = vpack.c.bf16 %v884_v58, %v880_v56  ;;  %v998_v63 = vpack.c.bf16 %v886_v59, %v882_v57  ;;  %v559_v0 = vpop.f32.mrb[48].mxu0  ;;  %v752_v2 = vpop.f32.mrb[48].mxu1 }
 0x156   :  { %v560_v3 = vadd.f32 %v559_v0, %v3078_v25  ;;  %v753_v4 = vadd.f32 %v752_v2, %v3080_v26  ;;  %v561_v5 = vpop.f32.mrb[49].mxu0  ;;  %v754_v6 = vpop.f32.mrb[49].mxu1 }
 0x157   :  { %v562_v7 = vadd.f32 %v561_v5, %v3082_v1  ;;  %v755_v8 = vadd.f32 %v754_v6, %v3084_v27  ;;  %v563_v9 = vpop.f32.mrb[50].mxu0  ;;  %v756_v10 = vpop.f32.mrb[50].mxu1  ;;  %1391 = vmatprep.mubr.bf16.mxu0 %v996_v62  ;;  %1552 = vmatprep.mubr.bf16.mxu1 %v998_v63 }
 0x158   :  { %v564_v11 = vadd.f32 %v563_v9, %v3078_v25  ;;  %v757_v12 = vadd.f32 %v756_v10, %v3080_v26  ;;  %v565_v13 = vpop.f32.mrb[51].mxu0  ;;  %v758_v14 = vpop.f32.mrb[51].mxu1  ;;  %1392 = vmatmul.mubr.bf16.gmra.mrb[108].mxu0 %v995_v60  ;;  %1553 = vmatmul.mubr.bf16.gmra.mrb[108].mxu1 %v997_v61  ;;  %v887_v17 = vmax.f32 %v560_v3, 0.0  ;;  %v889_v18 = vmax.f32 %v753_v4, 0.0 }
 0x159   :  { %v566_v15 = vadd.f32 %v565_v13, %v3082_v1  ;;  %v759_v16 = vadd.f32 %v758_v14, %v3084_v27  ;;  %v888_v21 = vmax.f32 %v562_v7, 0.0  ;;  %v890_v22 = vmax.f32 %v755_v8, 0.0 }
 0x15a   :  { %v891_v19 = vmax.f32 %v564_v11, 0.0  ;;  %v893_v20 = vmax.f32 %v757_v12, 0.0 }
 0x15b   :  { %v892_v23 = vmax.f32 %v566_v15, 0.0  ;;  %v894_v24 = vmax.f32 %v759_v16, 0.0 }
 0x15c   :  { %v999_v28 = vpack.c.bf16 %v891_v19, %v887_v17  ;;  %v1001_v29 = vpack.c.bf16 %v893_v20, %v889_v18 }
 0x15d   :  { %v1000_v30 = vpack.c.bf16 %v892_v23, %v888_v21  ;;  %v1002_v31 = vpack.c.bf16 %v894_v24, %v890_v22  ;;  %v569_v32 = vpop.f32.mrb[52].mxu0  ;;  %v762_v33 = vpop.f32.mrb[52].mxu1 }
 0x15e   :  { %v570_v34 = vadd.f32 %v569_v32, %v3078_v25  ;;  %v763_v35 = vadd.f32 %v762_v33, %v3080_v26  ;;  %v571_v36 = vpop.f32.mrb[53].mxu0  ;;  %v764_v37 = vpop.f32.mrb[53].mxu1 }
 0x15f   :  { %v572_v38 = vadd.f32 %v571_v36, %v3082_v1  ;;  %v765_v39 = vadd.f32 %v764_v37, %v3084_v27  ;;  %v573_v40 = vpop.f32.mrb[54].mxu0  ;;  %v766_v41 = vpop.f32.mrb[54].mxu1  ;;  %1399 = vmatprep.mubr.bf16.mxu0 %v1000_v30  ;;  %1560 = vmatprep.mubr.bf16.mxu1 %v1002_v31 }
 0x160   :  { %v574_v42 = vadd.f32 %v573_v40, %v3078_v25  ;;  %v767_v43 = vadd.f32 %v766_v41, %v3080_v26  ;;  %v575_v44 = vpop.f32.mrb[55].mxu0  ;;  %v768_v45 = vpop.f32.mrb[55].mxu1  ;;  %1400 = vmatmul.mubr.bf16.gmra.mrb[112].mxu0 %v999_v28  ;;  %1561 = vmatmul.mubr.bf16.gmra.mrb[112].mxu1 %v1001_v29  ;;  %v895_v48 = vmax.f32 %v570_v34, 0.0  ;;  %v897_v49 = vmax.f32 %v763_v35, 0.0 }
 0x161   :  { %v576_v46 = vadd.f32 %v575_v44, %v3082_v1  ;;  %v769_v47 = vadd.f32 %v768_v45, %v3084_v27  ;;  %v896_v52 = vmax.f32 %v572_v38, 0.0  ;;  %v898_v53 = vmax.f32 %v765_v39, 0.0 }
 0x162   :  { %v899_v50 = vmax.f32 %v574_v42, 0.0  ;;  %v901_v51 = vmax.f32 %v767_v43, 0.0 }
 0x163   :  { %v900_v54 = vmax.f32 %v576_v46, 0.0  ;;  %v902_v55 = vmax.f32 %v769_v47, 0.0 }
 0x164   :  { %v1003_v56 = vpack.c.bf16 %v899_v50, %v895_v48  ;;  %v1005_v57 = vpack.c.bf16 %v901_v51, %v897_v49 }
 0x165   :  { %v1004_v58 = vpack.c.bf16 %v900_v54, %v896_v52  ;;  %v1006_v59 = vpack.c.bf16 %v902_v55, %v898_v53  ;;  %v579_v60 = vpop.f32.mrb[56].mxu0  ;;  %v772_v61 = vpop.f32.mrb[56].mxu1 }
 0x166   :  { %v580_v62 = vadd.f32 %v579_v60, %v3078_v25  ;;  %v773_v63 = vadd.f32 %v772_v61, %v3080_v26  ;;  %v581_v0 = vpop.f32.mrb[57].mxu0  ;;  %v774_v2 = vpop.f32.mrb[57].mxu1  ;;  %v2746_v60 = vld [vmem:[%s3711_s0] sm:$0xff]  }
 0x167   :  { %v582_v3 = vadd.f32 %v581_v0, %v3082_v1  ;;  %v775_v4 = vadd.f32 %v774_v2, %v3084_v27  ;;  %v583_v5 = vpop.f32.mrb[58].mxu0  ;;  %v776_v6 = vpop.f32.mrb[58].mxu1  ;;  %1407 = vmatprep.mubr.bf16.mxu0 %v1004_v58  ;;  %1568 = vmatprep.mubr.bf16.mxu1 %v1006_v59  ;;  %v1660_v61 = vunpack.c.l.bf16 %v2746_v60 }
 0x168   :  { %v584_v7 = vadd.f32 %v583_v5, %v3078_v25  ;;  %v777_v8 = vadd.f32 %v776_v6, %v3080_v26  ;;  %v585_v9 = vpop.f32.mrb[59].mxu0  ;;  %v778_v10 = vpop.f32.mrb[59].mxu1  ;;  %1408 = vmatmul.mubr.bf16.gmra.mrb[116].mxu0 %v1003_v56  ;;  %1569 = vmatmul.mubr.bf16.gmra.mrb[116].mxu1 %v1005_v57  ;;  %v903_v13 = vmax.f32 %v580_v62, 0.0  ;;  %v905_v14 = vmax.f32 %v773_v63, 0.0  ;;  %v3220_v5 = vld [vmem:[%s3713_s4] ss:$0 sm:$0xff] }
 0x169   :  { %v586_v11 = vadd.f32 %v585_v9, %v3082_v1  ;;  %v779_v12 = vadd.f32 %v778_v10, %v3084_v27  ;;  %v904_v17 = vmax.f32 %v582_v3, 0.0  ;;  %v906_v18 = vmax.f32 %v775_v4, 0.0 }
 0x16a   :  { %v907_v15 = vmax.f32 %v584_v7, 0.0  ;;  %v909_v16 = vmax.f32 %v777_v8, 0.0  ;;  %v1661_v4 = vunpack.c.h.bf16 %v2746_v60  ;;  %v2749_v60 = vld [vmem:[%s3711_s0 + $0x18] sm:$0xff]  }
 0x16b   :  { %v908_v19 = vmax.f32 %v586_v11, 0.0  ;;  %v910_v20 = vmax.f32 %v779_v12, 0.0 }
 0x16c   :  { %v1007_v21 = vpack.c.bf16 %v907_v15, %v903_v13  ;;  %v1009_v22 = vpack.c.bf16 %v909_v16, %v905_v14 }
 0x16d   :  { %v1008_v23 = vpack.c.bf16 %v908_v19, %v904_v17  ;;  %v1010_v24 = vpack.c.bf16 %v910_v20, %v906_v18  ;;  %v589_v28 = vpop.f32.mrb[60].mxu0  ;;  %v782_v29 = vpop.f32.mrb[60].mxu1  ;;  %v2747_v18 = vld [vmem:[%s3711_s0 + $0x8] sm:$0xff]  }
 0x16e   :  { %v590_v30 = vadd.f32 %v589_v28, %v3078_v25  ;;  %v783_v31 = vadd.f32 %v782_v29, %v3080_v26  ;;  %v591_v32 = vpop.f32.mrb[61].mxu0  ;;  %v784_v33 = vpop.f32.mrb[61].mxu1  ;;  %v1662_v19 = vunpack.c.l.bf16 %v2747_v18 }
 0x16f   :  { %v592_v34 = vadd.f32 %v591_v32, %v3082_v1  ;;  %v785_v35 = vadd.f32 %v784_v33, %v3084_v27  ;;  %v593_v36 = vpop.f32.mrb[62].mxu0  ;;  %v786_v37 = vpop.f32.mrb[62].mxu1  ;;  %1415 = vmatprep.mubr.bf16.mxu0 %v1008_v23  ;;  %1576 = vmatprep.mubr.bf16.mxu1 %v1010_v24 }
 0x170   :  { %v594_v38 = vadd.f32 %v593_v36, %v3078_v25  ;;  %v787_v39 = vadd.f32 %v786_v37, %v3080_v26  ;;  %v595_v40 = vpop.f32.mrb[63].mxu0  ;;  %v788_v41 = vpop.f32.mrb[63].mxu1  ;;  %1416 = vmatmul.mubr.bf16.gmra.mrb[120].mxu0 %v1007_v21  ;;  %1577 = vmatmul.mubr.bf16.gmra.mrb[120].mxu1 %v1009_v22  ;;  %v911_v44 = vmax.f32 %v590_v30, 0.0  ;;  %v913_v45 = vmax.f32 %v783_v31, 0.0 }
 0x171   :  { %v596_v42 = vadd.f32 %v595_v40, %v3082_v1  ;;  %v789_v43 = vadd.f32 %v788_v41, %v3084_v27  ;;  %v912_v48 = vmax.f32 %v592_v34, 0.0  ;;  %v914_v49 = vmax.f32 %v785_v35, 0.0 }
 0x172   :  { %v915_v46 = vmax.f32 %v594_v38, 0.0  ;;  %v917_v47 = vmax.f32 %v787_v39, 0.0  ;;  %v1663_v22 = vunpack.c.h.bf16 %v2747_v18 }
 0x173   :  { %v916_v50 = vmax.f32 %v596_v42, 0.0  ;;  %v918_v51 = vmax.f32 %v789_v43, 0.0  ;;  %v2748_v42 = vld [vmem:[%s3711_s0 + $0x10] sm:$0xff]  }
 0x174   :  { %v1011_v52 = vpack.c.bf16 %v915_v46, %v911_v44  ;;  %v1013_v25 = vpack.c.bf16 %v917_v47, %v913_v45  ;;  %v1664_v43 = vunpack.c.l.bf16 %v2748_v42  ;;  %v1665_v46 = vunpack.c.h.bf16 %v2748_v42 }
 0x175   :  { %v1012_v53 = vpack.c.bf16 %v916_v50, %v912_v48  ;;  %v1014_v26 = vpack.c.bf16 %v918_v51, %v914_v49 }
 0x177   :  { %1423 = vmatprep.mubr.bf16.mxu0 %v1012_v53  ;;  %1584 = vmatprep.mubr.bf16.mxu1 %v1014_v26 }
 0x178   :  { %1424 = vmatmul.mubr.bf16.gmra.mrb[124].mxu0 %v1011_v52  ;;  %1585 = vmatmul.mubr.bf16.gmra.mrb[124].mxu1 %v1013_v25 }
 0x1d3   :  { %v2361_v54 = vpop.f32.mrb[64].mxu0  ;;  %v2473_v1 = vpop.f32.mrb[64].mxu1 }
 0x1d4   :  { %v2362_v55 = vpop.f32.mrb[65].mxu0  ;;  %v2474_v27 = vpop.f32.mrb[65].mxu1 }
 0x1d5   :  { %v2363_v56 = vadd.f32 %v2362_v55, %v2361_v54  ;;  %v2475_v57 = vadd.f32 %v2474_v27, %v2473_v1  ;;  %v2364_v58 = vpop.f32.mrb[66].mxu0  ;;  %v2476_v59 = vpop.f32.mrb[66].mxu1 }
 0x1d6   :  { %v2365_v62 = vpop.f32.mrb[67].mxu0  ;;  %v2477_v63 = vpop.f32.mrb[67].mxu1 }
 0x1d7   :  { %v1467_v0 = vadd.f32 %v2475_v57, %v2363_v56  ;;  %v2366_v2 = vadd.f32 %v2365_v62, %v2364_v58  ;;  %v2478_v3 = vadd.f32 %v2477_v63, %v2476_v59 }
 0x1d9   :  { %v1470_v6 = vadd.f32 %v2478_v3, %v2366_v2  ;;  %v1724_v7 = vadd.f32 %v1660_v61, %v1467_v0  ;;  %v1666_v61 = vunpack.c.l.bf16 %v2749_v60 }
 0x1db   :  { %v2367_v8 = vpop.f32.mrb[68].mxu0  ;;  %v2479_v9 = vpop.f32.mrb[68].mxu1  ;;  %v3223_v10 = vadd.f32 %v3220_v5, %v1724_v7  ;;  %v1725_v11 = vadd.f32 %v1661_v4, %v1470_v6  ;;  %v1667_v4 = vunpack.c.h.bf16 %v2749_v60 }
 0x1dc   :  { %v2368_v12 = vpop.f32.mrb[69].mxu0  ;;  %v2480_v13 = vpop.f32.mrb[69].mxu1 }
 0x1dd   :  { %v2369_v14 = vadd.f32 %v2368_v12, %v2367_v8  ;;  %v2481_v15 = vadd.f32 %v2480_v13, %v2479_v9  ;;  %v2370_v16 = vpop.f32.mrb[70].mxu0  ;;  %v2482_v17 = vpop.f32.mrb[70].mxu1  ;;  %1795 = vadd.xlane.f32.xlu0 %v3223_v10  ;;  %v3230_v29 = vadd.f32 %v3220_v5, %v1725_v11 }
 0x1de   :  { %v2371_v20 = vpop.f32.mrb[71].mxu0  ;;  %v2483_v21 = vpop.f32.mrb[71].mxu1 }
 0x1df   :  { %v1475_v23 = vadd.f32 %v2481_v15, %v2369_v14  ;;  %v2372_v24 = vadd.f32 %v2371_v20, %v2370_v16  ;;  %v2484_v28 = vadd.f32 %v2483_v21, %v2482_v17  ;;  %v2750_v20 = vld [vmem:[%s3711_s0 + $0x20] sm:$0xff]  }
 0x1e0   :  { %v1668_v21 = vunpack.c.l.bf16 %v2750_v20 }
 0x1e1   :  { %v1478_v30 = vadd.f32 %v2484_v28, %v2372_v24  ;;  %1797 = vadd.xlane.f32.xlu0 %v3230_v29  ;;  %v1726_v31 = vadd.f32 %v1662_v19, %v1475_v23 }
 0x1e3   :  { %v2373_v32 = vpop.f32.mrb[72].mxu0  ;;  %v2485_v33 = vpop.f32.mrb[72].mxu1  ;;  %v3234_v34 = vadd.f32 %v3220_v5, %v1726_v31  ;;  %v1727_v35 = vadd.f32 %v1663_v22, %v1478_v30  ;;  %v1669_v31 = vunpack.c.h.bf16 %v2750_v20 }
 0x1e4   :  { %v2374_v36 = vpop.f32.mrb[73].mxu0  ;;  %v2486_v37 = vpop.f32.mrb[73].mxu1 }
 0x1e5   :  { %v2375_v38 = vadd.f32 %v2374_v36, %v2373_v32  ;;  %v2487_v39 = vadd.f32 %v2486_v37, %v2485_v33  ;;  %v2376_v40 = vpop.f32.mrb[74].mxu0  ;;  %v2488_v41 = vpop.f32.mrb[74].mxu1  ;;  %1799 = vadd.xlane.f32.xlu1 %v3234_v34  ;;  %v3241_v50 = vadd.f32 %v3220_v5, %v1727_v35 }
 0x1e6   :  { %v2377_v44 = vpop.f32.mrb[75].mxu0  ;;  %v2489_v45 = vpop.f32.mrb[75].mxu1 }
 0x1e7   :  { %v1483_v47 = vadd.f32 %v2487_v39, %v2375_v38  ;;  %v2378_v48 = vadd.f32 %v2377_v44, %v2376_v40  ;;  %v2490_v49 = vadd.f32 %v2489_v45, %v2488_v41 }
 0x1e9   :  { %v1486_v51 = vadd.f32 %v2490_v49, %v2378_v48  ;;  %1801 = vadd.xlane.f32.xlu1 %v3241_v50  ;;  %v1728_v52 = vadd.f32 %v1664_v43, %v1483_v47 }
 0x1eb   :  { %v2379_v25 = vpop.f32.mrb[76].mxu0  ;;  %v2491_v53 = vpop.f32.mrb[76].mxu1  ;;  %v3245_v26 = vadd.f32 %v3220_v5, %v1728_v52  ;;  %v1729_v54 = vadd.f32 %v1665_v46, %v1486_v51  ;;  %v2751_v46 = vld [vmem:[%s3711_s0 + $0x28] sm:$0xff]  }
 0x1ec   :  { %v2380_v1 = vpop.f32.mrb[77].mxu0  ;;  %v2492_v55 = vpop.f32.mrb[77].mxu1  ;;  %v1670_v47 = vunpack.c.l.bf16 %v2751_v46 }
 0x1ed   :  { %v2381_v27 = vadd.f32 %v2380_v1, %v2379_v25  ;;  %v2493_v56 = vadd.f32 %v2492_v55, %v2491_v53  ;;  %v2382_v57 = vpop.f32.mrb[78].mxu0  ;;  %v2494_v58 = vpop.f32.mrb[78].mxu1  ;;  %1803 = vadd.xlane.f32.xlu0 %v3245_v26  ;;  %v3249_v59 = vadd.f32 %v3220_v5, %v1729_v54  ;;  %v1671_v53 = vunpack.c.h.bf16 %v2751_v46 }
 0x1ee   :  { %v2383_v62 = vpop.f32.mrb[79].mxu0  ;;  %v2495_v63 = vpop.f32.mrb[79].mxu1 }
 0x1ef   :  { %v1491_v0 = vadd.f32 %v2493_v56, %v2381_v27  ;;  %v2384_v2 = vadd.f32 %v2383_v62, %v2382_v57  ;;  %v2496_v3 = vadd.f32 %v2495_v63, %v2494_v58  ;;  %1805 = vadd.xlane.f32.xlu1 %v3249_v59 }
 0x1f1   :  { %v1494_v6 = vadd.f32 %v2496_v3, %v2384_v2  ;;  %v1730_v7 = vadd.f32 %v1666_v61, %v1491_v0  ;;  %v2752_v3 = vld [vmem:[%s3711_s0 + $0x30] sm:$0xff]  }
 0x1f3   :  { %v2385_v8 = vpop.f32.mrb[80].mxu0  ;;  %v2497_v9 = vpop.f32.mrb[80].mxu1  ;;  %v3256_v11 = vadd.f32 %v3220_v5, %v1730_v7  ;;  %v1731_v12 = vadd.f32 %v1667_v4, %v1494_v6  ;;  %v1672_v4 = vunpack.c.l.bf16 %v2752_v3 }
 0x1f4   :  { %v2386_v13 = vpop.f32.mrb[81].mxu0  ;;  %v2498_v14 = vpop.f32.mrb[81].mxu1 }
 0x1f5   :  { %v2387_v15 = vadd.f32 %v2386_v13, %v2385_v8  ;;  %v2499_v16 = vadd.f32 %v2498_v14, %v2497_v9  ;;  %v2388_v17 = vpop.f32.mrb[82].mxu0  ;;  %v2500_v18 = vpop.f32.mrb[82].mxu1  ;;  %1807 = vadd.xlane.f32.xlu0 %v3256_v11  ;;  %v3260_v19 = vadd.f32 %v3220_v5, %v1731_v12  ;;  %v1673_v13 = vunpack.c.h.bf16 %v2752_v3 }
 0x1f6   :  { %v2389_v22 = vpop.f32.mrb[83].mxu0  ;;  %v2501_v23 = vpop.f32.mrb[83].mxu1 }
 0x1f7   :  { %v1499_v24 = vadd.f32 %v2499_v16, %v2387_v15  ;;  %v2390_v28 = vadd.f32 %v2389_v22, %v2388_v17  ;;  %v2502_v30 = vadd.f32 %v2501_v23, %v2500_v18  ;;  %1809 = vadd.xlane.f32.xlu1 %v3260_v19 }
 0x1f9   :  { %v1502_v32 = vadd.f32 %v2502_v30, %v2390_v28  ;;  %v1732_v33 = vadd.f32 %v1668_v21, %v1499_v24 }
 0x1fb   :  { %v2391_v35 = vpop.f32.mrb[84].mxu0  ;;  %v2503_v36 = vpop.f32.mrb[84].mxu1  ;;  %v3267_v37 = vadd.f32 %v3220_v5, %v1732_v33  ;;  %v1733_v38 = vadd.f32 %v1669_v31, %v1502_v32  ;;  %v2753_v32 = vld [vmem:[%s3711_s0 + $0x38] sm:$0xff]  }
 0x1fc   :  { %v2392_v39 = vpop.f32.mrb[85].mxu0  ;;  %v2504_v40 = vpop.f32.mrb[85].mxu1  ;;  %v1674_v33 = vunpack.c.l.bf16 %v2753_v32 }
 0x1fd   :  { %v2393_v41 = vadd.f32 %v2392_v39, %v2391_v35  ;;  %v2505_v42 = vadd.f32 %v2504_v40, %v2503_v36  ;;  %v2394_v43 = vpop.f32.mrb[86].mxu0  ;;  %v2506_v44 = vpop.f32.mrb[86].mxu1  ;;  %1811 = vadd.xlane.f32.xlu0 %v3267_v37  ;;  %v3271_v45 = vadd.f32 %v3220_v5, %v1733_v38 }
 0x1fe   :  { %v2395_v48 = vpop.f32.mrb[87].mxu0  ;;  %v2507_v49 = vpop.f32.mrb[87].mxu1 }
 0x1ff   :  { %v1507_v51 = vadd.f32 %v2505_v42, %v2393_v41  ;;  %v2396_v52 = vadd.f32 %v2395_v48, %v2394_v43  ;;  %v2508_v25 = vadd.f32 %v2507_v49, %v2506_v44  ;;  %1813 = vadd.xlane.f32.xlu1 %v3271_v45  ;;  %v1675_v41 = vunpack.c.h.bf16 %v2753_v32 }
 0x201   :  { %v1510_v54 = vadd.f32 %v2508_v25, %v2396_v52  ;;  %v1734_v1 = vadd.f32 %v1670_v47, %v1507_v51 }
 0x203   :  { %v2397_v55 = vpop.f32.mrb[88].mxu0  ;;  %v2509_v27 = vpop.f32.mrb[88].mxu1  ;;  %v3278_v56 = vadd.f32 %v3220_v5, %v1734_v1  ;;  %v1735_v57 = vadd.f32 %v1671_v53, %v1510_v54 }
 0x204   :  { %v2398_v58 = vpop.f32.mrb[89].mxu0  ;;  %v2510_v60 = vpop.f32.mrb[89].mxu1 }
 0x205   :  { %v2399_v61 = vadd.f32 %v2398_v58, %v2397_v55  ;;  %v2511_v62 = vadd.f32 %v2510_v60, %v2509_v27  ;;  %v2400_v63 = vpop.f32.mrb[90].mxu0  ;;  %v2512_v0 = vpop.f32.mrb[90].mxu1  ;;  %1815 = vadd.xlane.f32.xlu0 %v3278_v56  ;;  %v3282_v2 = vadd.f32 %v3220_v5, %v1735_v57  ;;  %v2754_v55 = vld [vmem:[%s3711_s0 + $0x40] sm:$0xff]  }
 0x206   :  { %v2401_v6 = vpop.f32.mrb[91].mxu0  ;;  %v2513_v7 = vpop.f32.mrb[91].mxu1  ;;  %v1676_v27 = vunpack.c.l.bf16 %v2754_v55 }
 0x207   :  { %v1515_v8 = vadd.f32 %v2511_v62, %v2399_v61  ;;  %v2402_v9 = vadd.f32 %v2401_v6, %v2400_v63  ;;  %v2514_v12 = vadd.f32 %v2513_v7, %v2512_v0  ;;  %1817 = vadd.xlane.f32.xlu1 %v3282_v2  ;;  %v1677_v63 = vunpack.c.h.bf16 %v2754_v55 }
 0x209   :  { %v1518_v14 = vadd.f32 %v2514_v12, %v2402_v9  ;;  %v1736_v15 = vadd.f32 %v1672_v4, %v1515_v8 }
 0x20b   :  { %v2403_v16 = vpop.f32.mrb[92].mxu0  ;;  %v2515_v17 = vpop.f32.mrb[92].mxu1  ;;  %v3289_v18 = vadd.f32 %v3220_v5, %v1736_v15  ;;  %v1737_v20 = vadd.f32 %v1673_v13, %v1518_v14 }
 0x20c   :  { %v2404_v21 = vpop.f32.mrb[93].mxu0  ;;  %v2516_v22 = vpop.f32.mrb[93].mxu1 }
 0x20d   :  { %v2405_v23 = vadd.f32 %v2404_v21, %v2403_v16  ;;  %v2517_v24 = vadd.f32 %v2516_v22, %v2515_v17  ;;  %v2406_v28 = vpop.f32.mrb[94].mxu0  ;;  %v2518_v30 = vpop.f32.mrb[94].mxu1  ;;  %1819 = vadd.xlane.f32.xlu0 %v3289_v18  ;;  %v3293_v31 = vadd.f32 %v3220_v5, %v1737_v20  ;;  %v2755_v20 = vld [vmem:[%s3711_s0 + $0x48] sm:$0xff]  }
 0x20e   :  { %v2407_v35 = vpop.f32.mrb[95].mxu0  ;;  %v2519_v36 = vpop.f32.mrb[95].mxu1  ;;  %v1678_v21 = vunpack.c.l.bf16 %v2755_v20  ;;  %v1679_v32 = vunpack.c.h.bf16 %v2755_v20 }
 0x20f   :  { %v1523_v38 = vadd.f32 %v2517_v24, %v2405_v23  ;;  %v2408_v39 = vadd.f32 %v2407_v35, %v2406_v28  ;;  %v2520_v40 = vadd.f32 %v2519_v36, %v2518_v30  ;;  %1821 = vadd.xlane.f32.xlu1 %v3293_v31 }
 0x211   :  { %v1526_v42 = vadd.f32 %v2520_v40, %v2408_v39  ;;  %v1738_v43 = vadd.f32 %v1674_v33, %v1523_v38 }
 0x213   :  { %v2409_v44 = vpop.f32.mrb[96].mxu0  ;;  %v2521_v46 = vpop.f32.mrb[96].mxu1  ;;  %v3300_v47 = vadd.f32 %v3220_v5, %v1738_v43  ;;  %v1739_v48 = vadd.f32 %v1675_v41, %v1526_v42 }
 0x214   :  { %v2410_v49 = vpop.f32.mrb[97].mxu0  ;;  %v2522_v51 = vpop.f32.mrb[97].mxu1 }
 0x215   :  { %v2411_v52 = vadd.f32 %v2410_v49, %v2409_v44  ;;  %v2523_v25 = vadd.f32 %v2522_v51, %v2521_v46  ;;  %v2412_v53 = vpop.f32.mrb[98].mxu0  ;;  %v2524_v54 = vpop.f32.mrb[98].mxu1  ;;  %1823 = vadd.xlane.f32.xlu0 %v3300_v47  ;;  %v3304_v1 = vadd.f32 %v3220_v5, %v1739_v48  ;;  %v2756_v51 = vld [vmem:[%s3711_s0 + $0x50] sm:$0xff]  }
 0x216   :  { %v2413_v57 = vpop.f32.mrb[99].mxu0  ;;  %v2525_v58 = vpop.f32.mrb[99].mxu1 }
 0x217   :  { %v1531_v60 = vadd.f32 %v2523_v25, %v2411_v52  ;;  %v2414_v61 = vadd.f32 %v2413_v57, %v2412_v53  ;;  %v2526_v62 = vadd.f32 %v2525_v58, %v2524_v54  ;;  %1825 = vadd.xlane.f32.xlu1 %v3304_v1  ;;  %v1680_v52 = vunpack.c.l.bf16 %v2756_v51 }
 0x218   :  { %v1681_v57 = vunpack.c.h.bf16 %v2756_v51 }
 0x219   :  { %v1534_v0 = vadd.f32 %v2526_v62, %v2414_v61  ;;  %v1740_v3 = vadd.f32 %v1676_v27, %v1531_v60 }
 0x21b   :  { %v2415_v4 = vpop.f32.mrb[100].mxu0  ;;  %v2527_v6 = vpop.f32.mrb[100].mxu1  ;;  %v3311_v7 = vadd.f32 %v3220_v5, %v1740_v3  ;;  %v1741_v8 = vadd.f32 %v1677_v63, %v1534_v0 }
 0x21c   :  { %v2416_v9 = vpop.f32.mrb[101].mxu0  ;;  %v2528_v12 = vpop.f32.mrb[101].mxu1 }
 0x21d   :  { %v2417_v13 = vadd.f32 %v2416_v9, %v2415_v4  ;;  %v2529_v14 = vadd.f32 %v2528_v12, %v2527_v6  ;;  %v2418_v15 = vpop.f32.mrb[102].mxu0  ;;  %v2530_v16 = vpop.f32.mrb[102].mxu1  ;;  %1827 = vadd.xlane.f32.xlu0 %v3311_v7  ;;  %v3315_v17 = vadd.f32 %v3220_v5, %v1741_v8 }
 0x21e   :  { %v2419_v22 = vpop.f32.mrb[103].mxu0  ;;  %v2531_v23 = vpop.f32.mrb[103].mxu1 }
 0x21f   :  { %v1539_v24 = vadd.f32 %v2529_v14, %v2417_v13  ;;  %v2420_v28 = vadd.f32 %v2419_v22, %v2418_v15  ;;  %v2532_v30 = vadd.f32 %v2531_v23, %v2530_v16  ;;  %1829 = vadd.xlane.f32.xlu1 %v3315_v17  ;;  %v2757_v14 = vld [vmem:[%s3711_s0 + $0x58] sm:$0xff]  }
 0x220   :  { %v1682_v15 = vunpack.c.l.bf16 %v2757_v14 }
 0x221   :  { %v1542_v33 = vadd.f32 %v2532_v30, %v2420_v28  ;;  %v1742_v35 = vadd.f32 %v1678_v21, %v1539_v24  ;;  %v1683_v24 = vunpack.c.h.bf16 %v2757_v14 }
 0x223   :  { %v2421_v36 = vpop.f32.mrb[104].mxu0  ;;  %v2533_v38 = vpop.f32.mrb[104].mxu1  ;;  %v3322_v39 = vadd.f32 %v3220_v5, %v1742_v35  ;;  %v1743_v40 = vadd.f32 %v1679_v32, %v1542_v33 }
 0x224   :  { %v2422_v41 = vpop.f32.mrb[105].mxu0  ;;  %v2534_v42 = vpop.f32.mrb[105].mxu1 }
 0x225   :  { %v2423_v43 = vadd.f32 %v2422_v41, %v2421_v36  ;;  %v2535_v44 = vadd.f32 %v2534_v42, %v2533_v38  ;;  %v2424_v46 = vpop.f32.mrb[106].mxu0  ;;  %v2536_v48 = vpop.f32.mrb[106].mxu1  ;;  %1831 = vadd.xlane.f32.xlu0 %v3322_v39  ;;  %v3326_v49 = vadd.f32 %v3220_v5, %v1743_v40 }
 0x226   :  { %v2425_v25 = vpop.f32.mrb[107].mxu0  ;;  %v2537_v53 = vpop.f32.mrb[107].mxu1 }
 0x227   :  { %v1547_v54 = vadd.f32 %v2535_v44, %v2423_v43  ;;  %v2426_v55 = vadd.f32 %v2425_v25, %v2424_v46  ;;  %v2538_v27 = vadd.f32 %v2537_v53, %v2536_v48  ;;  %1833 = vadd.xlane.f32.xlu1 %v3326_v49  ;;  %v2758_v48 = vld [vmem:[%s3711_s0 + $0x60] sm:$0xff]  }
 0x228   :  { %v1684_v51 = vunpack.c.l.bf16 %v2758_v48 }
 0x229   :  { %v1550_v58 = vadd.f32 %v2538_v27, %v2426_v55  ;;  %v1744_v60 = vadd.f32 %v1680_v52, %v1547_v54  ;;  %v1685_v27 = vunpack.c.h.bf16 %v2758_v48 }
 0x22b   :  { %v2427_v61 = vpop.f32.mrb[108].mxu0  ;;  %v2539_v62 = vpop.f32.mrb[108].mxu1  ;;  %v3333_v63 = vadd.f32 %v3220_v5, %v1744_v60  ;;  %v1745_v0 = vadd.f32 %v1681_v57, %v1550_v58 }
 0x22c   :  { %v2428_v3 = vpop.f32.mrb[109].mxu0  ;;  %v2540_v4 = vpop.f32.mrb[109].mxu1 }
 0x22d   :  { %v2429_v6 = vadd.f32 %v2428_v3, %v2427_v61  ;;  %v2541_v8 = vadd.f32 %v2540_v4, %v2539_v62  ;;  %v2430_v9 = vpop.f32.mrb[110].mxu0  ;;  %v2542_v12 = vpop.f32.mrb[110].mxu1  ;;  %1835 = vadd.xlane.f32.xlu0 %v3333_v63  ;;  %v3337_v13 = vadd.f32 %v3220_v5, %v1745_v0 }
 0x22e   :  { %v2431_v16 = vpop.f32.mrb[111].mxu0  ;;  %v2543_v20 = vpop.f32.mrb[111].mxu1 }
 0x22f   :  { %v1555_v21 = vadd.f32 %v2541_v8, %v2429_v6  ;;  %v2432_v22 = vadd.f32 %v2431_v16, %v2430_v9  ;;  %v2544_v23 = vadd.f32 %v2543_v20, %v2542_v12  ;;  %1837 = vadd.xlane.f32.xlu1 %v3337_v13 }
 0x231   :  { %v1558_v28 = vadd.f32 %v2544_v23, %v2432_v22  ;;  %v1746_v30 = vadd.f32 %v1682_v15, %v1555_v21  ;;  %v2759_v15 = vld [vmem:[%s3711_s0 + $0x68] sm:$0xff]  }
 0x232   :  { %v1686_v16 = vunpack.c.l.bf16 %v2759_v15 }
 0x233   :  { %v2433_v32 = vpop.f32.mrb[112].mxu0  ;;  %v2545_v33 = vpop.f32.mrb[112].mxu1  ;;  %v3344_v35 = vadd.f32 %v3220_v5, %v1746_v30  ;;  %v1747_v36 = vadd.f32 %v1683_v24, %v1558_v28  ;;  %v1687_v28 = vunpack.c.h.bf16 %v2759_v15 }
 0x234   :  { %v2434_v38 = vpop.f32.mrb[113].mxu0  ;;  %v2546_v40 = vpop.f32.mrb[113].mxu1 }
 0x235   :  { %v2435_v41 = vadd.f32 %v2434_v38, %v2433_v32  ;;  %v2547_v42 = vadd.f32 %v2546_v40, %v2545_v33  ;;  %v2436_v43 = vpop.f32.mrb[114].mxu0  ;;  %v2548_v44 = vpop.f32.mrb[114].mxu1  ;;  %1839 = vadd.xlane.f32.xlu0 %v3344_v35  ;;  %v3348_v46 = vadd.f32 %v3220_v5, %v1747_v36 }
 0x236   :  { %v2437_v52 = vpop.f32.mrb[115].mxu0  ;;  %v2549_v25 = vpop.f32.mrb[115].mxu1 }
 0x237   :  { %v1563_v53 = vadd.f32 %v2547_v42, %v2435_v41  ;;  %v2438_v54 = vadd.f32 %v2437_v52, %v2436_v43  ;;  %v2550_v55 = vadd.f32 %v2549_v25, %v2548_v44  ;;  %1841 = vadd.xlane.f32.xlu1 %v3348_v46  ;;  %v2760_v25 = vld [vmem:[%s3711_s0 + $0x70] sm:$0xff]  }
 0x239   :  { %v1566_v57 = vadd.f32 %v2550_v55, %v2438_v54  ;;  %v1748_v58 = vadd.f32 %v1684_v51, %v1563_v53  ;;  %v1688_v53 = vunpack.c.l.bf16 %v2760_v25 }
 0x23b   :  { %v2439_v60 = vpop.f32.mrb[116].mxu0  ;;  %v2551_v61 = vpop.f32.mrb[116].mxu1  ;;  %v3355_v62 = vadd.f32 %v3220_v5, %v1748_v58  ;;  %v1749_v0 = vadd.f32 %v1685_v27, %v1566_v57 }
 0x23c   :  { %v2440_v3 = vpop.f32.mrb[117].mxu0  ;;  %v2552_v4 = vpop.f32.mrb[117].mxu1 }
 0x23d   :  { %v2441_v6 = vadd.f32 %v2440_v3, %v2439_v60  ;;  %v2553_v8 = vadd.f32 %v2552_v4, %v2551_v61  ;;  %v2442_v9 = vpop.f32.mrb[118].mxu0  ;;  %v2554_v12 = vpop.f32.mrb[118].mxu1  ;;  %1843 = vadd.xlane.f32.xlu0 %v3355_v62  ;;  %v3359_v14 = vadd.f32 %v3220_v5, %v1749_v0  ;;  %v1689_v60 = vunpack.c.h.bf16 %v2760_v25 }
 0x23e   :  { %v2443_v20 = vpop.f32.mrb[119].mxu0  ;;  %v2555_v21 = vpop.f32.mrb[119].mxu1 }
 0x23f   :  { %v1571_v22 = vadd.f32 %v2553_v8, %v2441_v6  ;;  %v2444_v23 = vadd.f32 %v2443_v20, %v2442_v9  ;;  %v2556_v24 = vadd.f32 %v2555_v21, %v2554_v12  ;;  %1845 = vadd.xlane.f32.xlu1 %v3359_v14 }
 0x241   :  { %v1574_v30 = vadd.f32 %v2556_v24, %v2444_v23  ;;  %v1750_v32 = vadd.f32 %v1686_v16, %v1571_v22  ;;  %v2761_v23 = vld [vmem:[%s3711_s0 + $0x78] sm:$0xff]  }
 0x242   :  { %v1690_v24 = vunpack.c.l.bf16 %v2761_v23 }
 0x243   :  { %v2445_v33 = vpop.f32.mrb[120].mxu0  ;;  %v2557_v36 = vpop.f32.mrb[120].mxu1  ;;  %v3366_v38 = vadd.f32 %v3220_v5, %v1750_v32  ;;  %v1751_v40 = vadd.f32 %v1687_v28, %v1574_v30 }
 0x244   :  { %v2446_v41 = vpop.f32.mrb[121].mxu0  ;;  %v2558_v42 = vpop.f32.mrb[121].mxu1 }
 0x245   :  { %v2447_v43 = vadd.f32 %v2446_v41, %v2445_v33  ;;  %v2559_v44 = vadd.f32 %v2558_v42, %v2557_v36  ;;  %v2448_v48 = vpop.f32.mrb[122].mxu0  ;;  %v2560_v51 = vpop.f32.mrb[122].mxu1  ;;  %1847 = vadd.xlane.f32.xlu0 %v3366_v38  ;;  %v3370_v52 = vadd.f32 %v3220_v5, %v1751_v40  ;;  %v1691_v40 = vunpack.c.h.bf16 %v2761_v23 }
 0x246   :  { %v2449_v54 = vpop.f32.mrb[123].mxu0  ;;  %v2561_v55 = vpop.f32.mrb[123].mxu1 }
 0x247   :  { %v1579_v27 = vadd.f32 %v2559_v44, %v2447_v43  ;;  %v2450_v57 = vadd.f32 %v2449_v54, %v2448_v48  ;;  %v2562_v58 = vadd.f32 %v2561_v55, %v2560_v51  ;;  %1849 = vadd.xlane.f32.xlu1 %v3370_v52 }
 0x249   :  { %v1582_v61 = vadd.f32 %v2562_v58, %v2450_v57  ;;  %v1752_v0 = vadd.f32 %v1688_v53, %v1579_v27 }
 0x24b   :  { %v2451_v3 = vpop.f32.mrb[124].mxu0  ;;  %v2563_v4 = vpop.f32.mrb[124].mxu1  ;;  %v3377_v6 = vadd.f32 %v3220_v5, %v1752_v0  ;;  %v1753_v8 = vadd.f32 %v1689_v60, %v1582_v61 }
 0x24c   :  { %v2452_v9 = vpop.f32.mrb[125].mxu0  ;;  %v2564_v12 = vpop.f32.mrb[125].mxu1 }
 0x24d   :  { %v2453_v15 = vadd.f32 %v2452_v9, %v2451_v3  ;;  %v2565_v16 = vadd.f32 %v2564_v12, %v2563_v4  ;;  %v2454_v20 = vpop.f32.mrb[126].mxu0  ;;  %v2566_v21 = vpop.f32.mrb[126].mxu1  ;;  %1851 = vadd.xlane.f32.xlu0 %v3377_v6  ;;  %v3381_v22 = vadd.f32 %v3220_v5, %v1753_v8 }
 0x24e   :  { %v2455_v28 = vpop.f32.mrb[127].mxu0  ;;  %v2567_v30 = vpop.f32.mrb[127].mxu1 }
 0x24f   :  { %v1587_v32 = vadd.f32 %v2565_v16, %v2453_v15  ;;  %v2456_v33 = vadd.f32 %v2455_v28, %v2454_v20  ;;  %v2568_v36 = vadd.f32 %v2567_v30, %v2566_v21  ;;  %1853 = vadd.xlane.f32.xlu1 %v3381_v22 }
 0x251   :  { %v1590_v41 = vadd.f32 %v2568_v36, %v2456_v33  ;;  %v1754_v42 = vadd.f32 %v1690_v24, %v1587_v32 }
 0x253   :  { %v3388_v43 = vadd.f32 %v3220_v5, %v1754_v42  ;;  %v1755_v44 = vadd.f32 %v1691_v40, %v1590_v41 }
 0x255   :  { %1855 = vadd.xlane.f32.xlu0 %v3388_v43  ;;  %v3392_v48 = vadd.f32 %v3220_v5, %v1755_v44 }
 0x257   :  { %1857 = vadd.xlane.f32.xlu1 %v3392_v48 }
 0x26a   :  { %v1796_v51 = vpop.xlane.xlu0 %1795 }
 0x26b   :  { %v1860_v25 = vmul.f32 0.0078125, %v1796_v51 }
 0x26d   :  { %v3396_v53 = vsub.f32 %v3223_v10, %v1860_v25 }
 0x26e   :  { %v1798_v54 = vpop.xlane.xlu0 %1797 }
 0x26f   :  { %v1861_v55 = vmul.f32 0.0078125, %v1798_v54  ;;  %v1924_v27 = vmul.f32 %v3396_v53, %v3396_v53 }
 0x271   :  { %v3401_v57 = vsub.f32 %v3230_v29, %v1861_v55  ;;  %1956 = vadd.xlane.f32.xlu0 %v1924_v27 }
 0x272   :  { %v1800_v58 = vpop.xlane.xlu1 %1799 }
 0x273   :  { %v1862_v60 = vmul.f32 0.0078125, %v1800_v58  ;;  %v1925_v5 = vmul.f32 %v3401_v57, %v3401_v57 }
 0x275   :  { %v3406_v61 = vsub.f32 %v3234_v34, %v1862_v60  ;;  %1958 = vadd.xlane.f32.xlu1 %v1925_v5 }
 0x276   :  { %v1802_v10 = vpop.xlane.xlu1 %1801 }
 0x277   :  { %v1863_v0 = vmul.f32 0.0078125, %v1802_v10  ;;  %v1926_v3 = vmul.f32 %v3406_v61, %v3406_v61 }
 0x279   :  { %v3411_v4 = vsub.f32 %v3241_v50, %v1863_v0  ;;  %1960 = vadd.xlane.f32.xlu0 %v1926_v3 }
 0x27a   :  { %v1804_v29 = vpop.xlane.xlu0 %1803 }
 0x27b   :  { %v1864_v8 = vmul.f32 0.0078125, %v1804_v29  ;;  %v1927_v9 = vmul.f32 %v3411_v4, %v3411_v4 }
 0x27c   :  { %v1806_v12 = vpop.xlane.xlu1 %1805 }
 0x27d   :  { %v3416_v15 = vsub.f32 %v3245_v26, %v1864_v8  ;;  %v1865_v34 = vmul.f32 0.0078125, %v1806_v12  ;;  %1962 = vadd.xlane.f32.xlu1 %v1927_v9 }
 0x27f   :  { %v3419_v16 = vsub.f32 %v3249_v59, %v1865_v34  ;;  %v1928_v20 = vmul.f32 %v3416_v15, %v3416_v15 }
 0x281   :  { %1964 = vadd.xlane.f32.xlu0 %v1928_v20  ;;  %v1929_v50 = vmul.f32 %v3419_v16, %v3419_v16 }
 0x282   :  { %v1808_v21 = vpop.xlane.xlu0 %1807 }
 0x283   :  { %v1866_v23 = vmul.f32 0.0078125, %v1808_v21  ;;  %1966 = vadd.xlane.f32.xlu1 %v1929_v50 }
 0x284   :  { %v1810_v24 = vpop.xlane.xlu1 %1809 }
 0x285   :  { %v3426_v28 = vsub.f32 %v3256_v11, %v1866_v23  ;;  %v1867_v26 = vmul.f32 0.0078125, %v1810_v24 }
 0x287   :  { %v3429_v30 = vsub.f32 %v3260_v19, %v1867_v26  ;;  %v1930_v59 = vmul.f32 %v3426_v28, %v3426_v28 }
 0x289   :  { %1968 = vadd.xlane.f32.xlu0 %v1930_v59  ;;  %v1931_v32 = vmul.f32 %v3429_v30, %v3429_v30 }
 0x28a   :  { %v1812_v33 = vpop.xlane.xlu0 %1811 }
 0x28b   :  { %v1868_v36 = vmul.f32 0.0078125, %v1812_v33  ;;  %1970 = vadd.xlane.f32.xlu1 %v1931_v32 }
 0x28c   :  { %v1814_v40 = vpop.xlane.xlu1 %1813 }
 0x28d   :  { %v3436_v41 = vsub.f32 %v3267_v37, %v1868_v36  ;;  %v1869_v11 = vmul.f32 0.0078125, %v1814_v40 }
 0x28f   :  { %v3439_v42 = vsub.f32 %v3271_v45, %v1869_v11  ;;  %v1932_v19 = vmul.f32 %v3436_v41, %v3436_v41 }
 0x291   :  { %1972 = vadd.xlane.f32.xlu0 %v1932_v19  ;;  %v1933_v44 = vmul.f32 %v3439_v42, %v3439_v42 }
 0x292   :  { %v1816_v51 = vpop.xlane.xlu0 %1815 }
 0x293   :  { %v1870_v25 = vmul.f32 0.0078125, %v1816_v51  ;;  %1974 = vadd.xlane.f32.xlu1 %v1933_v44 }
 0x294   :  { %v1818_v54 = vpop.xlane.xlu1 %1817 }
 0x295   :  { %v3446_v55 = vsub.f32 %v3278_v56, %v1870_v25  ;;  %v1871_v37 = vmul.f32 0.0078125, %v1818_v54 }
 0x297   :  { %v3449_v27 = vsub.f32 %v3282_v2, %v1871_v37  ;;  %v1934_v45 = vmul.f32 %v3446_v55, %v3446_v55 }
 0x299   :  { %1976 = vadd.xlane.f32.xlu0 %v1934_v45  ;;  %v1935_v58 = vmul.f32 %v3449_v27, %v3449_v27 }
 0x29a   :  { %v1820_v60 = vpop.xlane.xlu0 %1819 }
 0x29b   :  { %v1872_v5 = vmul.f32 0.0078125, %v1820_v60  ;;  %1978 = vadd.xlane.f32.xlu1 %v1935_v58 }
 0x29c   :  { %v1822_v10 = vpop.xlane.xlu1 %1821 }
 0x29d   :  { %v3456_v0 = vsub.f32 %v3289_v18, %v1872_v5  ;;  %v1873_v56 = vmul.f32 0.0078125, %v1822_v10 }
 0x29f   :  { %v3459_v3 = vsub.f32 %v3293_v31, %v1873_v56  ;;  %v1936_v2 = vmul.f32 %v3456_v0, %v3456_v0 }
 0x2a1   :  { %1980 = vadd.xlane.f32.xlu0 %v1936_v2  ;;  %v1937_v29 = vmul.f32 %v3459_v3, %v3459_v3 }
 0x2a2   :  { %v1824_v8 = vpop.xlane.xlu0 %1823 }
 0x2a3   :  { %v1874_v9 = vmul.f32 0.0078125, %v1824_v8  ;;  %1982 = vadd.xlane.f32.xlu1 %v1937_v29 }
 0x2a4   :  { %v1826_v12 = vpop.xlane.xlu1 %1825 }
 0x2a5   :  { %v3466_v34 = vsub.f32 %v3300_v47, %v1874_v9  ;;  %v1875_v18 = vmul.f32 0.0078125, %v1826_v12 }
 0x2a7   :  { %v3469_v20 = vsub.f32 %v3304_v1, %v1875_v18  ;;  %v1938_v31 = vmul.f32 %v3466_v34, %v3466_v34 }
 0x2a9   :  { %1984 = vadd.xlane.f32.xlu0 %v1938_v31  ;;  %v1939_v50 = vmul.f32 %v3469_v20, %v3469_v20 }
 0x2aa   :  { %v1828_v21 = vpop.xlane.xlu0 %1827 }
 0x2ab   :  { %v1876_v23 = vmul.f32 0.0078125, %v1828_v21  ;;  %1986 = vadd.xlane.f32.xlu1 %v1939_v50 }
 0x2ac   :  { %v1830_v24 = vpop.xlane.xlu1 %1829 }
 0x2ad   :  { %v3476_v26 = vsub.f32 %v3311_v7, %v1876_v23  ;;  %v1877_v47 = vmul.f32 0.0078125, %v1830_v24 }
 0x2af   :  { %v3479_v59 = vsub.f32 %v3315_v17, %v1877_v47  ;;  %v1940_v1 = vmul.f32 %v3476_v26, %v3476_v26 }
 0x2b1   :  { %1988 = vadd.xlane.f32.xlu0 %v1940_v1  ;;  %v1941_v32 = vmul.f32 %v3479_v59, %v3479_v59 }
 0x2b2   :  { %v1832_v33 = vpop.xlane.xlu0 %1831 }
 0x2b3   :  { %v1878_v36 = vmul.f32 0.0078125, %v1832_v33  ;;  %1990 = vadd.xlane.f32.xlu1 %v1941_v32 }
 0x2b4   :  { %v1834_v40 = vpop.xlane.xlu1 %1833 }
 0x2b5   :  { %v3486_v11 = vsub.f32 %v3322_v39, %v1878_v36  ;;  %v1879_v7 = vmul.f32 0.0078125, %v1834_v40 }
 0x2b7   :  { %v3489_v19 = vsub.f32 %v3326_v49, %v1879_v7  ;;  %v1942_v17 = vmul.f32 %v3486_v11, %v3486_v11 }
 0x2b9   :  { %1992 = vadd.xlane.f32.xlu0 %v1942_v17  ;;  %v1943_v44 = vmul.f32 %v3489_v19, %v3489_v19 }
 0x2ba   :  { %v1836_v51 = vpop.xlane.xlu0 %1835 }
 0x2bb   :  { %v1880_v25 = vmul.f32 0.0078125, %v1836_v51  ;;  %1994 = vadd.xlane.f32.xlu1 %v1943_v44 }
 0x2bc   :  { %v1838_v54 = vpop.xlane.xlu1 %1837 }
 0x2bd   :  { %v3496_v37 = vsub.f32 %v3333_v63, %v1880_v25  ;;  %v1881_v39 = vmul.f32 0.0078125, %v1838_v54 }
 0x2bf   :  { %v3499_v45 = vsub.f32 %v3337_v13, %v1881_v39  ;;  %v1944_v49 = vmul.f32 %v3496_v37, %v3496_v37 }
 0x2c1   :  { %1996 = vadd.xlane.f32.xlu0 %v1944_v49  ;;  %v1945_v58 = vmul.f32 %v3499_v45, %v3499_v45 }
 0x2c2   :  { %v1840_v60 = vpop.xlane.xlu0 %1839 }
 0x2c3   :  { %v1882_v5 = vmul.f32 0.0078125, %v1840_v60  ;;  %1998 = vadd.xlane.f32.xlu1 %v1945_v58 }
 0x2c4   :  { %v1842_v10 = vpop.xlane.xlu1 %1841 }
 0x2c5   :  { %v3506_v56 = vsub.f32 %v3344_v35, %v1882_v5  ;;  %v1883_v63 = vmul.f32 0.0078125, %v1842_v10 }
 0x2c7   :  { %v3509_v2 = vsub.f32 %v3348_v46, %v1883_v63  ;;  %v1946_v13 = vmul.f32 %v3506_v56, %v3506_v56 }
 0x2c9   :  { %2000 = vadd.xlane.f32.xlu0 %v1946_v13  ;;  %v1947_v29 = vmul.f32 %v3509_v2, %v3509_v2 }
 0x2ca   :  { %v1844_v8 = vpop.xlane.xlu0 %1843 }
 0x2cb   :  { %v1884_v9 = vmul.f32 0.0078125, %v1844_v8  ;;  %2002 = vadd.xlane.f32.xlu1 %v1947_v29 }
 0x2cc   :  { %v1846_v12 = vpop.xlane.xlu1 %1845 }
 0x2cd   :  { %v3516_v18 = vsub.f32 %v3355_v62, %v1884_v9  ;;  %v1885_v35 = vmul.f32 0.0078125, %v1846_v12 }
 0x2cf   :  { %v3519_v31 = vsub.f32 %v3359_v14, %v1885_v35  ;;  %v1948_v46 = vmul.f32 %v3516_v18, %v3516_v18 }
 0x2d1   :  { %2004 = vadd.xlane.f32.xlu0 %v1948_v46  ;;  %v1949_v50 = vmul.f32 %v3519_v31, %v3519_v31 }
 0x2d2   :  { %v1848_v21 = vpop.xlane.xlu0 %1847 }
 0x2d3   :  { %v1886_v23 = vmul.f32 0.0078125, %v1848_v21  ;;  %2006 = vadd.xlane.f32.xlu1 %v1949_v50 }
 0x2d4   :  { %v1850_v24 = vpop.xlane.xlu1 %1849 }
 0x2d5   :  { %v3526_v47 = vsub.f32 %v3366_v38, %v1886_v23  ;;  %v1887_v62 = vmul.f32 0.0078125, %v1850_v24  ;;  %v3559_v23 = vld [vmem:[%s3714_s5] ss:$0 sm:$0xff] }
 0x2d7   :  { %v3529_v1 = vsub.f32 %v3370_v52, %v1887_v62  ;;  %v1950_v14 = vmul.f32 %v3526_v47, %v3526_v47 }
 0x2d9   :  { %2008 = vadd.xlane.f32.xlu0 %v1950_v14  ;;  %v1951_v32 = vmul.f32 %v3529_v1, %v3529_v1 }
 0x2da   :  { %v1852_v33 = vpop.xlane.xlu0 %1851 }
 0x2db   :  { %v1888_v36 = vmul.f32 0.0078125, %v1852_v33  ;;  %2010 = vadd.xlane.f32.xlu1 %v1951_v32 }
 0x2dc   :  { %v1854_v40 = vpop.xlane.xlu1 %1853 }
 0x2dd   :  { %v3536_v7 = vsub.f32 %v3377_v6, %v1888_v36  ;;  %v1889_v38 = vmul.f32 0.0078125, %v1854_v40 }
 0x2df   :  { %v3539_v17 = vsub.f32 %v3381_v22, %v1889_v38  ;;  %v1952_v52 = vmul.f32 %v3536_v7, %v3536_v7 }
 0x2e1   :  { %2012 = vadd.xlane.f32.xlu0 %v1952_v52  ;;  %v1953_v44 = vmul.f32 %v3539_v17, %v3539_v17 }
 0x2e2   :  { %v1856_v51 = vpop.xlane.xlu0 %1855 }
 0x2e3   :  { %v1890_v25 = vmul.f32 0.0078125, %v1856_v51  ;;  %2014 = vadd.xlane.f32.xlu1 %v1953_v44 }
 0x2e4   :  { %v1858_v54 = vpop.xlane.xlu1 %1857 }
 0x2e5   :  { %v3546_v39 = vsub.f32 %v3388_v43, %v1890_v25  ;;  %v1891_v6 = vmul.f32 0.0078125, %v1858_v54 }
 0x2e7   :  { %v3549_v49 = vsub.f32 %v3392_v48, %v1891_v6  ;;  %v1954_v22 = vmul.f32 %v3546_v39, %v3546_v39 }
 0x2e9   :  { %2016 = vadd.xlane.f32.xlu0 %v1954_v22  ;;  %v1955_v58 = vmul.f32 %v3549_v49, %v3549_v49 }
 0x2eb   :  { %2018 = vadd.xlane.f32.xlu1 %v1955_v58 }
 0x2fe   :  { %v1957_v60 = vpop.xlane.xlu0 %1956 }
 0x2ff   :  { %v2020_v5 = vmul.f32 0.0078125, %v1957_v60 }
 0x301   :  { %v2052_v10 = vadd.f32 1e-05, %v2020_v5 }
 0x302   :  { %v1959_v63 = vpop.xlane.xlu1 %1958 }
 0x303   :  { %2682 = vrsqrt.f32 %v2052_v10  ;;  %v2021_v13 = vmul.f32 0.0078125, %v1959_v63 }
 0x305   :  { %v2053_v43 = vadd.f32 1e-05, %v2021_v13 }
 0x306   :  { %v1961_v29 = vpop.xlane.xlu0 %1960 }
 0x307   :  { %2684 = vrsqrt.f32 %v2053_v43  ;;  %v2022_v8 = vmul.f32 0.0078125, %v1961_v29 }
 0x309   :  { %v2054_v48 = vadd.f32 1e-05, %v2022_v8 }
 0x30a   :  { %v1963_v9 = vpop.xlane.xlu1 %1962 }
 0x30b   :  { %2686 = vrsqrt.f32 %v2054_v48  ;;  %v2023_v12 = vmul.f32 0.0078125, %v1963_v9 }
 0x30d   :  { %v2683_v35 = vpop.eup %2682  ;;  %v2055_v46 = vadd.f32 1e-05, %v2023_v12 }
 0x30e   :  { %v2116_v50 = vmul.f32 %v2683_v35, %v3396_v53  ;;  %v1965_v21 = vpop.xlane.xlu0 %1964  ;;  %v3566_v53 = vld [vmem:[%s3715_s6] ss:$0 sm:$0xff] }
 0x30f   :  { %2688 = vrsqrt.f32 %v2055_v46  ;;  %v2024_v24 = vmul.f32 0.0078125, %v1965_v21 }
 0x310   :  { %v1967_v62 = vpop.xlane.xlu1 %1966  ;;  %v2155_v36 = vmul.f32 %v3559_v23, %v2116_v50 }
 0x311   :  { %v2685_v14 = vpop.eup %2684  ;;  %v2056_v32 = vadd.f32 1e-05, %v2024_v24  ;;  %v2025_v33 = vmul.f32 0.0078125, %v1967_v62 }
 0x312   :  { %v2117_v40 = vmul.f32 %v2685_v14, %v3401_v57  ;;  %v2194_v51 = vadd.f32 %v3566_v53, %v2155_v36 }
 0x313   :  { %2690 = vrsqrt.f32 %v2056_v32  ;;  %v2057_v38 = vadd.f32 1e-05, %v2025_v33 }
 0x314   :  { %v2156_v52 = vmul.f32 %v3559_v23, %v2117_v40 }
 0x315   :  { %v2687_v44 = vpop.eup %2686  ;;  %2692 = vrsqrt.f32 %v2057_v38 }
 0x316   :  { %v2195_v25 = vadd.f32 %v3566_v53, %v2156_v52  ;;  %v2118_v54 = vmul.f32 %v2687_v44, %v3406_v61  ;;  %v1969_v6 = vpop.xlane.xlu0 %1968 }
 0x317   :  { %v2026_v22 = vmul.f32 0.0078125, %v1969_v6 }
 0x318   :  { %v2226_v57 = vpack.c.bf16 %v2195_v25, %v2194_v51  ;;  %v1971_v58 = vpop.xlane.xlu1 %1970  ;;  %v2157_v63 = vmul.f32 %v3559_v23, %v2118_v54 }
 0x319   :  { %v2689_v60 = vpop.eup %2688  ;;  %v2058_v5 = vadd.f32 1e-05, %v2026_v22  ;;  %v2027_v10 = vmul.f32 0.0078125, %v1971_v58 }
 0x31a   :  { %2242 = vst [vmem:[%s3716_s7] sm:$0xff] %v2226_v57  ;;  %v2119_v13 = vmul.f32 %v2689_v60, %v3411_v4  ;;  %v2196_v8 = vadd.f32 %v3566_v53, %v2157_v63 }
 0x31b   :  { %2694 = vrsqrt.f32 %v2058_v5  ;;  %v2059_v43 = vadd.f32 1e-05, %v2027_v10 }
 0x31c   :  { %v2158_v29 = vmul.f32 %v3559_v23, %v2119_v13 }
 0x31d   :  { %v2691_v61 = vpop.eup %2690  ;;  %2696 = vrsqrt.f32 %v2059_v43 }
 0x31e   :  { %v2197_v48 = vadd.f32 %v3566_v53, %v2158_v29  ;;  %v2120_v9 = vmul.f32 %v2691_v61, %v3416_v15  ;;  %v1973_v12 = vpop.xlane.xlu0 %1972 }
 0x31f   :  { %v2693_v35 = vpop.eup %2692  ;;  %v2028_v46 = vmul.f32 0.0078125, %v1973_v12 }
 0x320   :  { %v2227_v50 = vpack.c.bf16 %v2197_v48, %v2196_v8  ;;  %v2159_v21 = vmul.f32 %v3559_v23, %v2120_v9  ;;  %v2121_v4 = vmul.f32 %v2693_v35, %v3419_v16  ;;  %v1975_v24 = vpop.xlane.xlu1 %1974 }
 0x321   :  { %v2060_v62 = vadd.f32 1e-05, %v2028_v46  ;;  %v2029_v14 = vmul.f32 0.0078125, %v1975_v24 }
 0x322   :  { %2243 = vst [vmem:[%s3716_s7 + $0x8] sm:$0xff] %v2227_v50  ;;  %v2160_v32 = vmul.f32 %v3559_v23, %v2121_v4  ;;  %v2198_v15 = vadd.f32 %v3566_v53, %v2159_v21 }
 0x323   :  { %2698 = vrsqrt.f32 %v2060_v62  ;;  %v2061_v33 = vadd.f32 1e-05, %v2029_v14 }
 0x324   :  { %v2199_v36 = vadd.f32 %v3566_v53, %v2160_v32 }
 0x325   :  { %v2695_v40 = vpop.eup %2694  ;;  %2700 = vrsqrt.f32 %v2061_v33 }
 0x326   :  { %v2228_v38 = vpack.c.bf16 %v2199_v36, %v2198_v15  ;;  %v2122_v16 = vmul.f32 %v2695_v40, %v3426_v28  ;;  %v1977_v52 = vpop.xlane.xlu0 %1976 }
 0x327   :  { %v2697_v44 = vpop.eup %2696  ;;  %v2030_v51 = vmul.f32 0.0078125, %v1977_v52 }
 0x328   :  { %2244 = vst [vmem:[%s3716_s7 + $0x10] sm:$0xff] %v2228_v38  ;;  %v2161_v25 = vmul.f32 %v3559_v23, %v2122_v16  ;;  %v2123_v54 = vmul.f32 %v2697_v44, %v3429_v30  ;;  %v1979_v6 = vpop.xlane.xlu1 %1978 }
 0x329   :  { %v2062_v22 = vadd.f32 1e-05, %v2030_v51  ;;  %v2031_v57 = vmul.f32 0.0078125, %v1979_v6 }
 0x32a   :  { %v2162_v58 = vmul.f32 %v3559_v23, %v2123_v54  ;;  %v2200_v28 = vadd.f32 %v3566_v53, %v2161_v25 }
 0x32b   :  { %2702 = vrsqrt.f32 %v2062_v22  ;;  %v2063_v60 = vadd.f32 1e-05, %v2031_v57 }
 0x32c   :  { %v2201_v5 = vadd.f32 %v3566_v53, %v2162_v58 }
 0x32d   :  { %v2699_v10 = vpop.eup %2698  ;;  %2704 = vrsqrt.f32 %v2063_v60 }
 0x32e   :  { %v2229_v63 = vpack.c.bf16 %v2201_v5, %v2200_v28  ;;  %v2124_v13 = vmul.f32 %v2699_v10, %v3436_v41  ;;  %v1981_v43 = vpop.xlane.xlu0 %1980 }
 0x32f   :  { %v2701_v29 = vpop.eup %2700  ;;  %v2032_v61 = vmul.f32 0.0078125, %v1981_v43 }
 0x330   :  { %2245 = vst [vmem:[%s3716_s7 + $0x18] sm:$0xff] %v2229_v63  ;;  %v2163_v30 = vmul.f32 %v3559_v23, %v2124_v13  ;;  %v2125_v8 = vmul.f32 %v2701_v29, %v3439_v42  ;;  %v1983_v48 = vpop.xlane.xlu1 %1982 }
 0x331   :  { %v2064_v9 = vadd.f32 1e-05, %v2032_v61  ;;  %v2033_v12 = vmul.f32 0.0078125, %v1983_v48 }
 0x332   :  { %v2164_v35 = vmul.f32 %v3559_v23, %v2125_v8  ;;  %v2202_v41 = vadd.f32 %v3566_v53, %v2163_v30 }
 0x333   :  { %2706 = vrsqrt.f32 %v2064_v9  ;;  %v2065_v46 = vadd.f32 1e-05, %v2033_v12 }
 0x334   :  { %v2203_v50 = vadd.f32 %v3566_v53, %v2164_v35 }
 0x335   :  { %v2703_v21 = vpop.eup %2702  ;;  %2708 = vrsqrt.f32 %v2065_v46 }
 0x336   :  { %v2230_v4 = vpack.c.bf16 %v2203_v50, %v2202_v41  ;;  %v2126_v24 = vmul.f32 %v2703_v21, %v3446_v55  ;;  %v1985_v62 = vpop.xlane.xlu0 %1984 }
 0x337   :  { %v2705_v14 = vpop.eup %2704  ;;  %v2034_v32 = vmul.f32 0.0078125, %v1985_v62 }
 0x338   :  { %2246 = vst [vmem:[%s3716_s7 + $0x20] sm:$0xff] %v2230_v4  ;;  %v2165_v42 = vmul.f32 %v3559_v23, %v2126_v24  ;;  %v2127_v33 = vmul.f32 %v2705_v14, %v3449_v27  ;;  %v1987_v15 = vpop.xlane.xlu1 %1986 }
 0x339   :  { %v2066_v36 = vadd.f32 1e-05, %v2034_v32  ;;  %v2035_v40 = vmul.f32 0.0078125, %v1987_v15 }
 0x33a   :  { %v2166_v38 = vmul.f32 %v3559_v23, %v2127_v33  ;;  %v2204_v55 = vadd.f32 %v3566_v53, %v2165_v42 }
 0x33b   :  { %2710 = vrsqrt.f32 %v2066_v36  ;;  %v2067_v16 = vadd.f32 1e-05, %v2035_v40 }
 0x33c   :  { %v2205_v52 = vadd.f32 %v3566_v53, %v2166_v38 }
 0x33d   :  { %v2707_v44 = vpop.eup %2706  ;;  %2712 = vrsqrt.f32 %v2067_v16 }
 0x33e   :  { %v2231_v51 = vpack.c.bf16 %v2205_v52, %v2204_v55  ;;  %v2128_v25 = vmul.f32 %v2707_v44, %v3456_v0  ;;  %v1989_v54 = vpop.xlane.xlu0 %1988 }
 0x33f   :  { %v2709_v6 = vpop.eup %2708  ;;  %v2036_v22 = vmul.f32 0.0078125, %v1989_v54 }
 0x340   :  { %2247 = vst [vmem:[%s3716_s7 + $0x28] sm:$0xff] %v2231_v51  ;;  %v2167_v27 = vmul.f32 %v3559_v23, %v2128_v25  ;;  %v2129_v57 = vmul.f32 %v2709_v6, %v3459_v3  ;;  %v1991_v58 = vpop.xlane.xlu1 %1990 }
 0x341   :  { %v2068_v60 = vadd.f32 1e-05, %v2036_v22  ;;  %v2037_v28 = vmul.f32 0.0078125, %v1991_v58 }
 0x342   :  { %v2168_v5 = vmul.f32 %v3559_v23, %v2129_v57  ;;  %v2206_v0 = vadd.f32 %v3566_v53, %v2167_v27 }
 0x343   :  { %2714 = vrsqrt.f32 %v2068_v60  ;;  %v2069_v10 = vadd.f32 1e-05, %v2037_v28 }
 0x344   :  { %v2207_v63 = vadd.f32 %v3566_v53, %v2168_v5 }
 0x345   :  { %v2711_v13 = vpop.eup %2710  ;;  %2716 = vrsqrt.f32 %v2069_v10 }
 0x346   :  { %v2232_v43 = vpack.c.bf16 %v2207_v63, %v2206_v0  ;;  %v2130_v29 = vmul.f32 %v2711_v13, %v3466_v34  ;;  %v1993_v61 = vpop.xlane.xlu0 %1992 }
 0x347   :  { %v2713_v30 = vpop.eup %2712  ;;  %v2038_v8 = vmul.f32 0.0078125, %v1993_v61 }
 0x348   :  { %2248 = vst [vmem:[%s3716_s7 + $0x30] sm:$0xff] %v2232_v43  ;;  %v2169_v3 = vmul.f32 %v3559_v23, %v2130_v29  ;;  %v2131_v48 = vmul.f32 %v2713_v30, %v3469_v20  ;;  %v1995_v9 = vpop.xlane.xlu1 %1994 }
 0x349   :  { %v2070_v12 = vadd.f32 1e-05, %v2038_v8  ;;  %v2039_v35 = vmul.f32 0.0078125, %v1995_v9 }
 0x34a   :  { %v2170_v46 = vmul.f32 %v3559_v23, %v2131_v48  ;;  %v2208_v34 = vadd.f32 %v3566_v53, %v2169_v3 }
 0x34b   :  { %2718 = vrsqrt.f32 %v2070_v12  ;;  %v2071_v41 = vadd.f32 1e-05, %v2039_v35 }
 0x34c   :  { %v2209_v50 = vadd.f32 %v3566_v53, %v2170_v46 }
 0x34d   :  { %v2715_v21 = vpop.eup %2714  ;;  %2720 = vrsqrt.f32 %v2071_v41 }
 0x34e   :  { %v2233_v4 = vpack.c.bf16 %v2209_v50, %v2208_v34  ;;  %v2132_v24 = vmul.f32 %v2715_v21, %v3476_v26  ;;  %v1997_v62 = vpop.xlane.xlu0 %1996 }
 0x34f   :  { %v2717_v14 = vpop.eup %2716  ;;  %v2040_v32 = vmul.f32 0.0078125, %v1997_v62 }
 0x350   :  { %2249 = vst [vmem:[%s3716_s7 + $0x38] sm:$0xff] %v2233_v4  ;;  %v2171_v20 = vmul.f32 %v3559_v23, %v2132_v24  ;;  %v2133_v42 = vmul.f32 %v2717_v14, %v3479_v59  ;;  %v1999_v33 = vpop.xlane.xlu1 %1998 }
 0x351   :  { %v2072_v15 = vadd.f32 1e-05, %v2040_v32  ;;  %v2041_v36 = vmul.f32 0.0078125, %v1999_v33 }
 0x352   :  { %v2172_v40 = vmul.f32 %v3559_v23, %v2133_v42  ;;  %v2210_v26 = vadd.f32 %v3566_v53, %v2171_v20 }
 0x353   :  { %2722 = vrsqrt.f32 %v2072_v15  ;;  %v2073_v38 = vadd.f32 1e-05, %v2041_v36 }
 0x354   :  { %v2211_v16 = vadd.f32 %v3566_v53, %v2172_v40 }
 0x355   :  { %v2719_v55 = vpop.eup %2718  ;;  %2724 = vrsqrt.f32 %v2073_v38 }
 0x356   :  { %v2234_v52 = vpack.c.bf16 %v2211_v16, %v2210_v26  ;;  %v2134_v44 = vmul.f32 %v2719_v55, %v3486_v11  ;;  %v2001_v51 = vpop.xlane.xlu0 %2000 }
 0x357   :  { %v2721_v25 = vpop.eup %2720  ;;  %v2042_v54 = vmul.f32 0.0078125, %v2001_v51 }
 0x358   :  { %2250 = vst [vmem:[%s3716_s7 + $0x40] sm:$0xff] %v2234_v52  ;;  %v2173_v59 = vmul.f32 %v3559_v23, %v2134_v44  ;;  %v2135_v6 = vmul.f32 %v2721_v25, %v3489_v19  ;;  %v2003_v22 = vpop.xlane.xlu1 %2002 }
 0x359   :  { %v2074_v27 = vadd.f32 1e-05, %v2042_v54  ;;  %v2043_v57 = vmul.f32 0.0078125, %v2003_v22 }
 0x35a   :  { %v2174_v58 = vmul.f32 %v3559_v23, %v2135_v6  ;;  %v2212_v11 = vadd.f32 %v3566_v53, %v2173_v59 }
 0x35b   :  { %2726 = vrsqrt.f32 %v2074_v27  ;;  %v2075_v60 = vadd.f32 1e-05, %v2043_v57 }
 0x35c   :  { %v2213_v28 = vadd.f32 %v3566_v53, %v2174_v58 }
 0x35d   :  { %v2723_v5 = vpop.eup %2722  ;;  %2728 = vrsqrt.f32 %v2075_v60 }
 0x35e   :  { %v2235_v10 = vpack.c.bf16 %v2213_v28, %v2212_v11  ;;  %v2136_v0 = vmul.f32 %v2723_v5, %v3496_v37  ;;  %v2005_v63 = vpop.xlane.xlu0 %2004 }
 0x35f   :  { %v2725_v13 = vpop.eup %2724  ;;  %v2044_v43 = vmul.f32 0.0078125, %v2005_v63 }
 0x360   :  { %2251 = vst [vmem:[%s3716_s7 + $0x48] sm:$0xff] %v2235_v10  ;;  %v2175_v19 = vmul.f32 %v3559_v23, %v2136_v0  ;;  %v2137_v29 = vmul.f32 %v2725_v13, %v3499_v45  ;;  %v2007_v61 = vpop.xlane.xlu1 %2006 }
 0x361   :  { %v2076_v30 = vadd.f32 1e-05, %v2044_v43  ;;  %v2045_v8 = vmul.f32 0.0078125, %v2007_v61 }
 0x362   :  { %v2176_v3 = vmul.f32 %v3559_v23, %v2137_v29  ;;  %v2214_v37 = vadd.f32 %v3566_v53, %v2175_v19 }
 0x363   :  { %2730 = vrsqrt.f32 %v2076_v30  ;;  %v2077_v48 = vadd.f32 1e-05, %v2045_v8 }
 0x364   :  { %v2215_v9 = vadd.f32 %v3566_v53, %v2176_v3 }
 0x365   :  { %v2727_v12 = vpop.eup %2726  ;;  %2732 = vrsqrt.f32 %v2077_v48 }
 0x366   :  { %v2236_v35 = vpack.c.bf16 %v2215_v9, %v2214_v37  ;;  %v2138_v46 = vmul.f32 %v2727_v12, %v3506_v56  ;;  %v2009_v41 = vpop.xlane.xlu0 %2008 }
 0x367   :  { %v2729_v34 = vpop.eup %2728  ;;  %v2046_v50 = vmul.f32 0.0078125, %v2009_v41 }
 0x368   :  { %2252 = vst [vmem:[%s3716_s7 + $0x50] sm:$0xff] %v2236_v35  ;;  %v2177_v45 = vmul.f32 %v3559_v23, %v2138_v46  ;;  %v2139_v21 = vmul.f32 %v2729_v34, %v3509_v2  ;;  %v2011_v4 = vpop.xlane.xlu1 %2010 }
 0x369   :  { %v2078_v24 = vadd.f32 1e-05, %v2046_v50  ;;  %v2047_v62 = vmul.f32 0.0078125, %v2011_v4 }
 0x36a   :  { %v2178_v14 = vmul.f32 %v3559_v23, %v2139_v21  ;;  %v2216_v56 = vadd.f32 %v3566_v53, %v2177_v45 }
 0x36b   :  { %2734 = vrsqrt.f32 %v2078_v24  ;;  %v2079_v32 = vadd.f32 1e-05, %v2047_v62 }
 0x36c   :  { %v2217_v20 = vadd.f32 %v3566_v53, %v2178_v14 }
 0x36d   :  { %v2731_v42 = vpop.eup %2730  ;;  %2736 = vrsqrt.f32 %v2079_v32 }
 0x36e   :  { %v2237_v33 = vpack.c.bf16 %v2217_v20, %v2216_v56  ;;  %v2140_v15 = vmul.f32 %v2731_v42, %v3516_v18  ;;  %v2013_v36 = vpop.xlane.xlu0 %2012 }
 0x36f   :  { %v2733_v40 = vpop.eup %2732  ;;  %v2048_v38 = vmul.f32 0.0078125, %v2013_v36 }
 0x370   :  { %2253 = vst [vmem:[%s3716_s7 + $0x58] sm:$0xff] %v2237_v33  ;;  %v2179_v2 = vmul.f32 %v3559_v23, %v2140_v15  ;;  %v2141_v26 = vmul.f32 %v2733_v40, %v3519_v31  ;;  %v2015_v16 = vpop.xlane.xlu1 %2014 }
 0x371   :  { %v2080_v55 = vadd.f32 1e-05, %v2048_v38  ;;  %v2049_v52 = vmul.f32 0.0078125, %v2015_v16 }
 0x372   :  { %v2180_v44 = vmul.f32 %v3559_v23, %v2141_v26  ;;  %v2218_v18 = vadd.f32 %v3566_v53, %v2179_v2 }
 0x373   :  { %2738 = vrsqrt.f32 %v2080_v55  ;;  %v2081_v51 = vadd.f32 1e-05, %v2049_v52 }
 0x374   :  { %v2219_v25 = vadd.f32 %v3566_v53, %v2180_v44 }
 0x375   :  { %v2735_v54 = vpop.eup %2734  ;;  %2740 = vrsqrt.f32 %v2081_v51 }
 0x376   :  { %v2238_v59 = vpack.c.bf16 %v2219_v25, %v2218_v18  ;;  %v2142_v6 = vmul.f32 %v2735_v54, %v3526_v47  ;;  %v2017_v22 = vpop.xlane.xlu0 %2016 }
 0x377   :  { %v2737_v27 = vpop.eup %2736  ;;  %v2050_v57 = vmul.f32 0.0078125, %v2017_v22 }
 0x378   :  { %2254 = vst [vmem:[%s3716_s7 + $0x60] sm:$0xff] %v2238_v59  ;;  %v2181_v31 = vmul.f32 %v3559_v23, %v2142_v6  ;;  %v2143_v58 = vmul.f32 %v2737_v27, %v3529_v1  ;;  %v2019_v60 = vpop.xlane.xlu1 %2018 }
 0x379   :  { %v2082_v11 = vadd.f32 1e-05, %v2050_v57  ;;  %v2051_v28 = vmul.f32 0.0078125, %v2019_v60 }
 0x37a   :  { %v2182_v5 = vmul.f32 %v3559_v23, %v2143_v58  ;;  %v2220_v47 = vadd.f32 %v3566_v53, %v2181_v31 }
 0x37b   :  { %2742 = vrsqrt.f32 %v2082_v11  ;;  %v2083_v10 = vadd.f32 1e-05, %v2051_v28 }
 0x37c   :  { %v2221_v0 = vadd.f32 %v3566_v53, %v2182_v5 }
 0x37d   :  { %v2739_v63 = vpop.eup %2738  ;;  %2744 = vrsqrt.f32 %v2083_v10 }
 0x37e   :  { %v2239_v13 = vpack.c.bf16 %v2221_v0, %v2220_v47  ;;  %v2144_v43 = vmul.f32 %v2739_v63, %v3536_v7 }
 0x37f   :  { %v2741_v19 = vpop.eup %2740 }
 0x380   :  { %2255 = vst [vmem:[%s3716_s7 + $0x68] sm:$0xff] %v2239_v13  ;;  %v2183_v1 = vmul.f32 %v3559_v23, %v2144_v43  ;;  %v2145_v29 = vmul.f32 %v2741_v19, %v3539_v17 }
 0x382   :  { %v2184_v61 = vmul.f32 %v3559_v23, %v2145_v29  ;;  %v2222_v30 = vadd.f32 %v3566_v53, %v2183_v1 }
 0x384   :  { %v2223_v8 = vadd.f32 %v3566_v53, %v2184_v61 }
 0x385   :  { %v2743_v3 = vpop.eup %2742 }
 0x386   :  { %v2240_v48 = vpack.c.bf16 %v2223_v8, %v2222_v30  ;;  %v2146_v37 = vmul.f32 %v2743_v3, %v3546_v39 }
 0x387   :  { %v2745_v7 = vpop.eup %2744 }
 0x388   :  { %2256 = vst [vmem:[%s3716_s7 + $0x70] sm:$0xff] %v2240_v48  ;;  %v2185_v9 = vmul.f32 %v3559_v23, %v2146_v37  ;;  %v2147_v12 = vmul.f32 %v2745_v7, %v3549_v49 }
 0x38a   :  { %v2186_v17 = vmul.f32 %v3559_v23, %v2147_v12  ;;  %v2224_v35 = vadd.f32 %v3566_v53, %v2185_v9 }
 0x38c   :  { %v2225_v46 = vadd.f32 %v3566_v53, %v2186_v17 }
 0x38e   :  { %v2241_v41 = vpack.c.bf16 %v2225_v46, %v2224_v35 }
 0x390   :  { %2257 = vst [vmem:[%s3716_s7 + $0x78] sm:$0xff] %v2241_v41 }

</bundles_post_ra>
